<compile_context>
chip_gen: v5e
topology: v5e:2x2
jax: 0.10.0
libtpu: 0.0.40
codegen_flags: <defaults>
</compile_context>

<pallas_src>
import functools

import jax
import jax.numpy as jnp
from jax.experimental import pallas as pl
from jax.experimental.pallas import tpu as pltpu

IN_DIM = 1024
HID_DIM = 1024
OUT_DIM = 2
OUT_PAD = 128   # lane-dense padded width of the final layer


def _round_up(x, m):
    return (x + m - 1) // m * m


def _mlp_kernel(x_ref, w1_ref, b1_ref, w2_ref, b2_ref, w3_ref, b3_ref, o_ref):
    """Fused 3-layer MLP: relu(relu(x@W1+b1)@W2+b2)@W3+b3 (W3/b3 zero-padded to 128 cols)."""
    # Cast x to the weight dtype in-kernel (keeps the bf16 MXU path; no wrapper pass).
    x = x_ref[...].astype(w1_ref.dtype)                                   # (tm, 1024)
    h1 = jnp.dot(x, w1_ref[...], preferred_element_type=jnp.float32) + b1_ref[...]
    h1 = jnp.maximum(h1, 0.0).astype(w2_ref.dtype)                        # ReLU/bias in f32
    h2 = jnp.dot(h1, w2_ref[...], preferred_element_type=jnp.float32) + b2_ref[...]
    h2 = jnp.maximum(h2, 0.0).astype(w3_ref.dtype)
    o = jnp.dot(h2, w3_ref[...], preferred_element_type=jnp.float32) + b3_ref[...]
    o_ref[...] = o.astype(o_ref.dtype)                                    # (tm, 128)


def prepare_params(params, compute_dtype=jnp.bfloat16):
    """One-time param prep: pad final layer to 128 lane-dense cols, cast weights."""
    w1t, b1, w2t, b2, w3t, b3 = params
    w3p = jnp.pad(w3t, ((0, 0), (0, OUT_PAD - OUT_DIM)))
    b3p = jnp.pad(b3, ((0, 0), (0, OUT_PAD - OUT_DIM)))
    return (
        w1t.astype(compute_dtype), b1.astype(jnp.float32),
        w2t.astype(compute_dtype), b2.astype(jnp.float32),
        w3p.astype(compute_dtype), b3p.astype(jnp.float32),
    )
    # TODO(synk): optional fp8 weight quantization (per-out-channel scales) for v7x.


def _choose_tile(n, tm):
    """Bound zero-padding: one tile when n<=tm, otherwise near-even tiles of mult-of-8 rows."""
    if n <= tm:
        tm_eff = max(8, _round_up(n, 8))
        num_tiles = 1
    else:
        num_tiles = -(-n // tm)                       # ceil(n / tm)
        tm_eff = _round_up(-(-n // num_tiles), 8)     # round_up(ceil(n / num_tiles), 8)
    return tm_eff, num_tiles, tm_eff * num_tiles


@functools.partial(jax.jit, static_argnames=("tm",))
def fastrcnn_fc_head_forward(z_feature, prepared_params, *, tm=512):
    """Runs the relation_layer MLP: [N, 1024] f32 -> [N, 2] f32.

    `prepared_params` must come from prepare_params().  tm guidance:
    v5e/v6e: 512-1024; v7x: pick tm so that ceil(N/tm) >= 2 for megacore use.
    """
    w1c, b1, w2c, b2, w3c, b3p = prepared_params
    n = z_feature.shape[0]

    tm_eff, num_tiles, n_pad = _choose_tile(n, tm)
    grid = (num_tiles,)

    x = z_feature
    if n_pad != n:
        x = jnp.pad(x, ((0, n_pad - n), (0, 0)))

    w_itemsize = jnp.dtype(w1c.dtype).itemsize
    w_bytes = (IN_DIM * HID_DIM + HID_DIM * HID_DIM + HID_DIM * OUT_PAD) * w_itemsize
    b_bytes = (2 * HID_DIM + OUT_PAD) * 4

    cost = pl.CostEstimate(
        flops=2 * n_pad * (IN_DIM * HID_DIM + HID_DIM * HID_DIM + HID_DIM * OUT_PAD),
        transcendentals=0,
        bytes_accessed=w_bytes + b_bytes + n_pad * IN_DIM * 4 + n_pad * OUT_PAD * 4,
    )

    # Right-sized VMEM budget: single-buffered weights + double-buffered x/out tiles
    # + intermediate h1/h2 scratch + headroom.
    x_tile_bytes = 2 * tm_eff * IN_DIM * 4            # double-buffered f32 input tile
    o_tile_bytes = 2 * tm_eff * OUT_PAD * 4           # double-buffered f32 output tile
    h_bytes = 4 * tm_eff * HID_DIM * 4                # h1/h2 f32 + compute-dtype copies
    vmem_limit = int(min(
        48 * 1024 * 1024,
        max(16 * 1024 * 1024,
            _round_up(w_bytes + b_bytes + x_tile_bytes + o_tile_bytes + h_bytes
                      + 4 * 1024 * 1024, 1 << 20)),
    ))

    full = lambda i: (0, 0)   # weights / biases: constant block across the grid
    single = pl.Buffered(1)   # never a "next" block -> single-buffer resident weights

    out = pl.pallas_call(
        _mlp_kernel,
        out_shape=jax.ShapeDtypeStruct((n_pad, OUT_PAD), jnp.float32),
        grid_spec=pl.GridSpec(
            grid=grid,
            in_specs=[
                pl.BlockSpec((tm_eff, IN_DIM), lambda i: (i, 0)),                     # x tile (f32)
                pl.BlockSpec((IN_DIM, HID_DIM), full, pipeline_mode=single),          # W1^T
                pl.BlockSpec((1, HID_DIM), full, pipeline_mode=single),               # b1
                pl.BlockSpec((HID_DIM, HID_DIM), full, pipeline_mode=single),         # W2^T
                pl.BlockSpec((1, HID_DIM), full, pipeline_mode=single),               # b2
                pl.BlockSpec((HID_DIM, OUT_PAD), full, pipeline_mode=single),         # W3^T (padded)
                pl.BlockSpec((1, OUT_PAD), full, pipeline_mode=single),               # b3  (padded)
            ],
            out_specs=pl.BlockSpec((tm_eff, OUT_PAD), lambda i: (i, 0)),
        ),
        compiler_params=pltpu.CompilerParams(
            dimension_semantics=("parallel",),        # batch axis shards across TCs (v7x megacore)
            vmem_limit_bytes=vmem_limit,
        ),
        cost_estimate=cost,
    )(x, w1c, b1, w2c, b2, w3c, b3p)

    return out[:n, :OUT_DIM]


def init_params(key):
    """Deterministic init matching PyTorch normal_init(mean=0, std=0.01), bias=0."""
    k1, k2, k3 = jax.random.split(key, 3)
    # PyTorch Linear weight is (out, in); we store the transpose (in, out).
    w1t = (jax.random.normal(k1, (HID_DIM, IN_DIM), jnp.float32) * 0.01).T
    b1 = jnp.zeros((1, HID_DIM), jnp.float32)
    w2t = (jax.random.normal(k2, (HID_DIM, HID_DIM), jnp.float32) * 0.01).T
    b2 = jnp.zeros((1, HID_DIM), jnp.float32)
    w3t = (jax.random.normal(k3, (OUT_DIM, HID_DIM), jnp.float32) * 0.01).T
    b3 = jnp.zeros((1, OUT_DIM), jnp.float32)
    return w1t, b1, w2t, b2, w3t, b3


def reference_forward(z_feature, params):
    """Pure-JAX f32 reference of the same MLP."""
    w1t, b1, w2t, b2, w3t, b3 = params
    h1 = jnp.maximum(z_feature @ w1t + b1, 0.0)
    h2 = jnp.maximum(h1 @ w2t + b2, 0.0)
    return h2 @ w3t + b3


# TODO(synk): losses() (CrossEntropyLoss, ignore_index=2) is not part of forward(); not implemented here.

if __name__ == "__main__":
    key = jax.random.PRNGKey(0)
    k_param, k_x1, k_x2 = jax.random.split(key, 3)
    params = init_params(k_param)

    # One-time param preparation (hoisted out of the per-call jit).
    params_f32 = prepare_params(params, compute_dtype=jnp.float32)
    params_bf16 = prepare_params(params, compute_dtype=jnp.bfloat16)

    # 1) Small ragged batch (single-tile path, exact f32 compute).
    n_small = 7
    x_small = jax.random.normal(k_x1, (n_small, IN_DIM), jnp.float32)
    out_small = jax.block_until_ready(
        fastrcnn_fc_head_forward(x_small, params_f32, tm=512))
    ref_small = reference_forward(x_small, params)
    assert out_small.shape == (n_small, OUT_DIM), out_small.shape
    assert jnp.allclose(out_small, ref_small, atol=1e-4, rtol=1e-4), "f32 mismatch vs reference"

    # 2) Ragged RoI batch: bounded-padding tiling (3 tiles of 104 rows) + default bf16 MXU path.
    n_big = 300
    x_big = jax.random.normal(k_x2, (n_big, IN_DIM), jnp.float32)
    out_big = jax.block_until_ready(
        fastrcnn_fc_head_forward(x_big, params_bf16, tm=128))
    ref_big = reference_forward(x_big, params)
    assert out_big.shape == (n_big, OUT_DIM), out_big.shape
    assert jnp.allclose(out_big, ref_big, atol=1e-2, rtol=5e-2), "bf16 mismatch vs reference"

    print("KERNEL_OK")
</pallas_src>

<mosaic_0001>
module attributes {stable_mosaic.version = 11 : i64} {
  func.func @_mlp_kernel(%arg0: i32, %arg1: memref<8x1024xf32, #tpu.memory_space<vmem>>, %arg2: memref<1024x1024xf32, #tpu.memory_space<vmem>>, %arg3: memref<1x1024xf32, #tpu.memory_space<vmem>>, %arg4: memref<1024x1024xf32, #tpu.memory_space<vmem>>, %arg5: memref<1x1024xf32, #tpu.memory_space<vmem>>, %arg6: memref<1024x128xf32, #tpu.memory_space<vmem>>, %arg7: memref<1x128xf32, #tpu.memory_space<vmem>>, %arg8: memref<8x128xf32, #tpu.memory_space<vmem>>) attributes {dimension_semantics = [#tpu.dimension_semantics<parallel>], iteration_bounds = array<i64: 1>, scalar_prefetch = 0 : i64, scratch_operands = 0 : i64, tpu.core_type = #tpu.core_type<tc>, window_params = [{transform_indices = @transform_0, window_bounds = array<i64: 8, 1024>}, {pipeline_mode = #tpu.pipeline_mode<synchronous>, transform_indices = @transform_1, window_bounds = array<i64: 1024, 1024>}, {pipeline_mode = #tpu.pipeline_mode<synchronous>, transform_indices = @transform_2, window_bounds = array<i64: 1, 1024>}, {pipeline_mode = #tpu.pipeline_mode<synchronous>, transform_indices = @transform_3, window_bounds = array<i64: 1024, 1024>}, {pipeline_mode = #tpu.pipeline_mode<synchronous>, transform_indices = @transform_4, window_bounds = array<i64: 1, 1024>}, {pipeline_mode = #tpu.pipeline_mode<synchronous>, transform_indices = @transform_5, window_bounds = array<i64: 1024, 128>}, {pipeline_mode = #tpu.pipeline_mode<synchronous>, transform_indices = @transform_6, window_bounds = array<i64: 1, 128>}, {transform_indices = @transform_7, window_bounds = array<i64: 8, 128>}]} {
    %c0 = arith.constant 0 : index
    %c0_0 = arith.constant 0 : index
    %0 = vector.load %arg1[%c0, %c0_0] : memref<8x1024xf32, #tpu.memory_space<vmem>>, vector<8x1024xf32>
    %c0_1 = arith.constant 0 : index
    %c0_2 = arith.constant 0 : index
    %1 = vector.load %arg2[%c0_1, %c0_2] : memref<1024x1024xf32, #tpu.memory_space<vmem>>, vector<1024x1024xf32>
    %cst = arith.constant dense<0.000000e+00> : vector<8x1024xf32>
    %2 = tpu.matmul %0, %1, %cst {dimension_numbers = #tpu.dot_dimension_numbers<[1], [0], [0], [1], [0, 0, 1, 1], [], []>} : vector<8x1024xf32>, vector<1024x1024xf32>, vector<8x1024xf32> -> vector<8x1024xf32>
    %c0_3 = arith.constant 0 : index
    %c0_4 = arith.constant 0 : index
    %3 = vector.load %arg3[%c0_3, %c0_4] : memref<1x1024xf32, #tpu.memory_space<vmem>>, vector<1x1024xf32>
    %4 = vector.broadcast %3 : vector<1x1024xf32> to vector<8x1024xf32>
    %5 = arith.addf %2, %4 : vector<8x1024xf32>
    %cst_5 = arith.constant 0.000000e+00 : f32
    %6 = vector.broadcast %cst_5 : f32 to vector<8x1024xf32>
    %7 = arith.maximumf %5, %6 : vector<8x1024xf32>
    %c0_6 = arith.constant 0 : index
    %c0_7 = arith.constant 0 : index
    %8 = vector.load %arg4[%c0_6, %c0_7] : memref<1024x1024xf32, #tpu.memory_space<vmem>>, vector<1024x1024xf32>
    %cst_8 = arith.constant dense<0.000000e+00> : vector<8x1024xf32>
    %9 = tpu.matmul %7, %8, %cst_8 {dimension_numbers = #tpu.dot_dimension_numbers<[1], [0], [0], [1], [0, 0, 1, 1], [], []>} : vector<8x1024xf32>, vector<1024x1024xf32>, vector<8x1024xf32> -> vector<8x1024xf32>
    %c0_9 = arith.constant 0 : index
    %c0_10 = arith.constant 0 : index
    %10 = vector.load %arg5[%c0_9, %c0_10] : memref<1x1024xf32, #tpu.memory_space<vmem>>, vector<1x1024xf32>
    %11 = vector.broadcast %10 : vector<1x1024xf32> to vector<8x1024xf32>
    %12 = arith.addf %9, %11 : vector<8x1024xf32>
    %cst_11 = arith.constant 0.000000e+00 : f32
    %13 = vector.broadcast %cst_11 : f32 to vector<8x1024xf32>
    %14 = arith.maximumf %12, %13 : vector<8x1024xf32>
    %c0_12 = arith.constant 0 : index
    %c0_13 = arith.constant 0 : index
    %15 = vector.load %arg6[%c0_12, %c0_13] : memref<1024x128xf32, #tpu.memory_space<vmem>>, vector<1024x128xf32>
    %cst_14 = arith.constant dense<0.000000e+00> : vector<8x128xf32>
    %16 = tpu.matmul %14, %15, %cst_14 {dimension_numbers = #tpu.dot_dimension_numbers<[1], [0], [0], [1], [0, 0, 1, 1], [], []>} : vector<8x1024xf32>, vector<1024x128xf32>, vector<8x128xf32> -> vector<8x128xf32>
    %c0_15 = arith.constant 0 : index
    %c0_16 = arith.constant 0 : index
    %17 = vector.load %arg7[%c0_15, %c0_16] : memref<1x128xf32, #tpu.memory_space<vmem>>, vector<1x128xf32>
    %18 = vector.broadcast %17 : vector<1x128xf32> to vector<8x128xf32>
    %19 = arith.addf %16, %18 : vector<8x128xf32>
    %c0_17 = arith.constant 0 : index
    %c0_18 = arith.constant 0 : index
    %20 = vector.load %arg8[%c0_17, %c0_18] : memref<8x128xf32, #tpu.memory_space<vmem>>, vector<8x128xf32>
    tpu.vector_store %arg8[%c0_17, %c0_18], %19 {strides = array<i32>} : memref<8x128xf32, #tpu.memory_space<vmem>>, vector<8x128xf32>,
    return
  }
  func.func @transform_0(%arg0: i32) -> (i32, i32) {
    %c0_i32 = arith.constant 0 : i32
    %c0_i32_0 = arith.constant 0 : i32
    return %arg0, %c0_i32 : i32, i32
  }
  func.func @transform_1(%arg0: i32) -> (i32, i32) {
    %c0_i32 = arith.constant 0 : i32
    %c0_i32_0 = arith.constant 0 : i32
    %c0_i32_1 = arith.constant 0 : i32
    return %c0_i32, %c0_i32_0 : i32, i32
  }
  func.func @transform_2(%arg0: i32) -> (i32, i32) {
    %c0_i32 = arith.constant 0 : i32
    %c0_i32_0 = arith.constant 0 : i32
    %c0_i32_1 = arith.constant 0 : i32
    return %c0_i32, %c0_i32_0 : i32, i32
  }
  func.func @transform_3(%arg0: i32) -> (i32, i32) {
    %c0_i32 = arith.constant 0 : i32
    %c0_i32_0 = arith.constant 0 : i32
    %c0_i32_1 = arith.constant 0 : i32
    return %c0_i32, %c0_i32_0 : i32, i32
  }
  func.func @transform_4(%arg0: i32) -> (i32, i32) {
    %c0_i32 = arith.constant 0 : i32
    %c0_i32_0 = arith.constant 0 : i32
    %c0_i32_1 = arith.constant 0 : i32
    return %c0_i32, %c0_i32_0 : i32, i32
  }
  func.func @transform_5(%arg0: i32) -> (i32, i32) {
    %c0_i32 = arith.constant 0 : i32
    %c0_i32_0 = arith.constant 0 : i32
    %c0_i32_1 = arith.constant 0 : i32
    return %c0_i32, %c0_i32_0 : i32, i32
  }
  func.func @transform_6(%arg0: i32) -> (i32, i32) {
    %c0_i32 = arith.constant 0 : i32
    %c0_i32_0 = arith.constant 0 : i32
    %c0_i32_1 = arith.constant 0 : i32
    return %c0_i32, %c0_i32_0 : i32, i32
  }
  func.func @transform_7(%arg0: i32) -> (i32, i32) {
    %c0_i32 = arith.constant 0 : i32
    %c0_i32_0 = arith.constant 0 : i32
    return %arg0, %c0_i32 : i32, i32
  }
}

</mosaic_0001>

<bundles_post_ra>
// kernel: fastrcnn_fc_head_forward.1
= control target key start
LH: loop header
LB: loop body
LE: loop exit
PB: predicated region body
PF: predicated region fallthrough
CT: control target
= control target key end

     0   :  { %12 = vsyncpa [#allocation3], 0  ;;  %s5878_s0 = inlined_call_operand.vmem [shape: f32[8,1024], index: 0, kind: input, shape index: {}]   ;;  %s5879_s1 = inlined_call_operand.hbm [shape: f32[1024,1024], index: 1, kind: input, shape index: {}]   ;;  %s5880_s2 = inlined_call_operand.hbm [shape: f32[1,1024], index: 2, kind: input, shape index: {}]   ;;  %s5881_s3 = inlined_call_operand.hbm [shape: f32[1024,1024], index: 3, kind: input, shape index: {}]   ;;  %s5882_s4 = inlined_call_operand.hbm [shape: f32[1,1024], index: 4, kind: input, shape index: {}]   ;;  %s5883_s5 = inlined_call_operand.hbm [shape: f32[1024,128], index: 5, kind: input, shape index: {}]   ;;  %s5884_s6 = inlined_call_operand.hbm [shape: f32[1,128], index: 6, kind: input, shape index: {}]   ;;  %s5885_s7 = inlined_call_operand.vmem [shape: f32[8,128], index: 7, kind: output, shape index: {}]  }
   0x1   :  { %13 = vsyncpa [#allocation5], 0 }
   0x2   :  { %14 = vsyncpa [#allocation8], 0  ;;  %s36_s26 = sshll.u32 %s5880_s2, 4  ;;  %s37_s26 = int_to_ptr.hbm [resolvable:$true] %s36_s26 }
   0x3   :  { %15 = vsyncpa [#allocation11], 0  ;;  %s5271_s27 = smov [#allocation4]   ;;  %s60_s8 = sshll.u32 %s5882_s4, 4  ;;  %s61_s8 = int_to_ptr.hbm [resolvable:$true] %s60_s8 }
   0x4   :  { %s38_s28 = sshll.u32 %s5271_s27, 4  ;;  %s5272_s9 = smov [#allocation7]   ;;  %s39_s28 = int_to_ptr.vmem [resolvable:$true] %s38_s28 }
   0x5   :  { %41 = dma.hbm_to_vmem [thread:$0]  %s37_s26, 128, %s39_s28, [#allocation5]  }
   0x6   :  { %s62_s10 = sshll.u32 %s5272_s9, 4  ;;  %s22_s13 = sshll.u32 %s5879_s1, 4  ;;  %s63_s10 = int_to_ptr.vmem [resolvable:$true] %s62_s10  ;;  %s23_s13 = int_to_ptr.hbm [resolvable:$true] %s22_s13 }
   0x7   :  { %65 = dma.hbm_to_vmem [thread:$0]  %s61_s8, 128, %s63_s10, [#allocation8]  }
   0x8   :  { %s5273_s2 = smov [#allocation2]   ;;  %s46_s17 = sshll.u32 %s5881_s3, 4  ;;  %s47_s17 = int_to_ptr.hbm [resolvable:$true] %s46_s17 }
   0x9   :  { %s24_s14 = sshll.u32 %s5273_s2, 4  ;;  %s5274_s18 = smov 1024   ;;  %s25_s14 = int_to_ptr.vmem [resolvable:$true] %s24_s14 }
   0xa   :  { %s5275_s4 = smov 64   ;;  %s5276_s19 = smov [#allocation6]  }
   0xb   :  { %30 = dma.hbm_to_vmem [thread:$0]  %s23_s13, 131072, %s25_s14, [#allocation3], %s5274_s18, %s5274_s18, %s5275_s4  }
   0xc   :  { %s48_s20 = sshll.u32 %s5276_s19, 4  ;;  %s70_s1 = sshll.u32 %s5883_s5, 4  ;;  %s49_s20 = int_to_ptr.vmem [resolvable:$true] %s48_s20  ;;  %s71_s1 = int_to_ptr.hbm [resolvable:$true] %s70_s1 }
   0xd   :  { %54 = dma.hbm_to_vmem [thread:$0]  %s47_s17, 131072, %s49_s20, [#allocation5], %s5274_s18, %s5274_s18, %s5275_s4  }
   0xe   :  { %s5277_s23 = smov [#allocation9]   ;;  %s84_s3 = sshll.u32 %s5884_s6, 4  ;;  %s85_s3 = int_to_ptr.hbm [resolvable:$true] %s84_s3 }
   0xf   :  { %s72_s24 = sshll.u32 %s5277_s23, 4  ;;  %s5278_s27 = smov 128   ;;  %s73_s24 = int_to_ptr.vmem [resolvable:$true] %s72_s24 }
  0x10   :  { %s5279_s28 = smov 8   ;;  %s5280_s29 = smov [#allocation10]  }
  0x11   :  { %78 = dma.hbm_to_vmem [thread:$0]  %s71_s1, 16384, %s73_s24, [#allocation8], %s5278_s27, %s5278_s27, %s5279_s28  }
  0x12   :  { %s86_s30 = sshll.u32 %s5280_s29, 4  ;;  %s87_s30 = int_to_ptr.vmem [resolvable:$true] %s86_s30 }
  0x13   :  { %89 = dma.hbm_to_vmem [thread:$0]  %s85_s3, 16, %s87_s30, [#allocation11]  }
  0x14   :  { %5263 = dma.done.wait [#allocation3], 131072  }
  0x15   :  { %5264 = vsyncadd [#allocation3], 4294836224 }
  0x16   :  { %5265 = dma.done.wait [#allocation5], 131200  }
  0x17   :  { %5266 = vsyncadd [#allocation5], 4294836096 }
  0x18   :  { %5267 = dma.done.wait [#allocation8], 16512  }
  0x19   :  { %5268 = vsyncadd [#allocation8], 4294950784 }
  0x1a   :  { %5269 = dma.done.wait [#allocation11], 16  }
  0x1b   :  { %5270 = vsyncadd [#allocation11], 4294967280  ;;  %v242_v0 = vld [vmem:[#allocation2 + $0x3c0] sm:$0xff] }
  0x1c   :  { %v370_v1 = vld [vmem:[#allocation2 + $0x7c0] sm:$0xff]  ;;  %1164 = vmatpush.msra.mxu0 %v242_v0 }
  0x1d   :  { %v498_v2 = vld [vmem:[#allocation2 + $0xbc0] sm:$0xff]  ;;  %1184 = vmatpush.msra.mxu1 %v370_v1 }
  0x1e   :  { %v626_v3 = vld [vmem:[#allocation2 + $0xfc0] sm:$0xff]  ;;  %1204 = vmatpush.msra.mxu2 %v498_v2 }
  0x1f   :  { %v234_v4 = vld [vmem:[#allocation2 + $0x380] sm:$0xff]  ;;  %1224 = vmatpush.msra.mxu3 %v626_v3 }
  0x20   :  { %v362_v5 = vld [vmem:[#allocation2 + $0x780] sm:$0xff]  ;;  %1165 = vmatpush.msra.mxu0 %v234_v4 }
  0x21   :  { %v490_v6 = vld [vmem:[#allocation2 + $0xb80] sm:$0xff]  ;;  %1185 = vmatpush.msra.mxu1 %v362_v5 }
  0x22   :  { %v618_v7 = vld [vmem:[#allocation2 + $0xf80] sm:$0xff]  ;;  %1205 = vmatpush.msra.mxu2 %v490_v6 }
  0x23   :  { %v226_v8 = vld [vmem:[#allocation2 + $0x340] sm:$0xff]  ;;  %1225 = vmatpush.msra.mxu3 %v618_v7 }
  0x24   :  { %v354_v9 = vld [vmem:[#allocation2 + $0x740] sm:$0xff]  ;;  %1166 = vmatpush.msra.mxu0 %v226_v8 }
  0x25   :  { %v482_v10 = vld [vmem:[#allocation2 + $0xb40] sm:$0xff]  ;;  %1186 = vmatpush.msra.mxu1 %v354_v9 }
  0x26   :  { %v610_v11 = vld [vmem:[#allocation2 + $0xf40] sm:$0xff]  ;;  %1206 = vmatpush.msra.mxu2 %v482_v10 }
  0x27   :  { %v218_v12 = vld [vmem:[#allocation2 + $0x300] sm:$0xff]  ;;  %1226 = vmatpush.msra.mxu3 %v610_v11 }
  0x28   :  { %v346_v13 = vld [vmem:[#allocation2 + $0x700] sm:$0xff]  ;;  %1167 = vmatpush.msra.mxu0 %v218_v12 }
  0x29   :  { %v474_v14 = vld [vmem:[#allocation2 + $0xb00] sm:$0xff]  ;;  %1187 = vmatpush.msra.mxu1 %v346_v13 }
  0x2a   :  { %v602_v15 = vld [vmem:[#allocation2 + $0xf00] sm:$0xff]  ;;  %1207 = vmatpush.msra.mxu2 %v474_v14 }
  0x2b   :  { %v210_v16 = vld [vmem:[#allocation2 + $0x2c0] sm:$0xff]  ;;  %1227 = vmatpush.msra.mxu3 %v602_v15 }
  0x2c   :  { %v338_v17 = vld [vmem:[#allocation2 + $0x6c0] sm:$0xff]  ;;  %1168 = vmatpush.msra.mxu0 %v210_v16 }
  0x2d   :  { %v466_v18 = vld [vmem:[#allocation2 + $0xac0] sm:$0xff]  ;;  %1188 = vmatpush.msra.mxu1 %v338_v17 }
  0x2e   :  { %v594_v19 = vld [vmem:[#allocation2 + $0xec0] sm:$0xff]  ;;  %1208 = vmatpush.msra.mxu2 %v466_v18 }
  0x2f   :  { %v202_v20 = vld [vmem:[#allocation2 + $0x280] sm:$0xff]  ;;  %1228 = vmatpush.msra.mxu3 %v594_v19 }
  0x30   :  { %v330_v21 = vld [vmem:[#allocation2 + $0x680] sm:$0xff]  ;;  %1169 = vmatpush.msra.mxu0 %v202_v20 }
  0x31   :  { %v458_v22 = vld [vmem:[#allocation2 + $0xa80] sm:$0xff]  ;;  %1189 = vmatpush.msra.mxu1 %v330_v21 }
  0x32   :  { %v586_v23 = vld [vmem:[#allocation2 + $0xe80] sm:$0xff]  ;;  %1209 = vmatpush.msra.mxu2 %v458_v22 }
  0x33   :  { %v194_v24 = vld [vmem:[#allocation2 + $0x240] sm:$0xff]  ;;  %1229 = vmatpush.msra.mxu3 %v586_v23 }
  0x34   :  { %v322_v25 = vld [vmem:[#allocation2 + $0x640] sm:$0xff]  ;;  %1170 = vmatpush.msra.mxu0 %v194_v24 }
  0x35   :  { %v450_v26 = vld [vmem:[#allocation2 + $0xa40] sm:$0xff]  ;;  %1190 = vmatpush.msra.mxu1 %v322_v25 }
  0x36   :  { %v578_v27 = vld [vmem:[#allocation2 + $0xe40] sm:$0xff]  ;;  %1210 = vmatpush.msra.mxu2 %v450_v26 }
  0x37   :  { %v186_v28 = vld [vmem:[#allocation2 + $0x200] sm:$0xff]  ;;  %1230 = vmatpush.msra.mxu3 %v578_v27 }
  0x38   :  { %v314_v29 = vld [vmem:[#allocation2 + $0x600] sm:$0xff]  ;;  %1171 = vmatpush.msra.mxu0 %v186_v28 }
  0x39   :  { %v442_v30 = vld [vmem:[#allocation2 + $0xa00] sm:$0xff]  ;;  %1191 = vmatpush.msra.mxu1 %v314_v29 }
  0x3a   :  { %v570_v31 = vld [vmem:[#allocation2 + $0xe00] sm:$0xff]  ;;  %1211 = vmatpush.msra.mxu2 %v442_v30 }
  0x3b   :  { %v178_v32 = vld [vmem:[#allocation2 + $0x1c0] sm:$0xff]  ;;  %1231 = vmatpush.msra.mxu3 %v570_v31 }
  0x3c   :  { %v306_v33 = vld [vmem:[#allocation2 + $0x5c0] sm:$0xff]  ;;  %1172 = vmatpush.msra.mxu0 %v178_v32 }
  0x3d   :  { %v434_v34 = vld [vmem:[#allocation2 + $0x9c0] sm:$0xff]  ;;  %1192 = vmatpush.msra.mxu1 %v306_v33 }
  0x3e   :  { %v562_v35 = vld [vmem:[#allocation2 + $0xdc0] sm:$0xff]  ;;  %1212 = vmatpush.msra.mxu2 %v434_v34 }
  0x3f   :  { %v170_v36 = vld [vmem:[#allocation2 + $0x180] sm:$0xff]  ;;  %1232 = vmatpush.msra.mxu3 %v562_v35 }
  0x40   :  { %v298_v37 = vld [vmem:[#allocation2 + $0x580] sm:$0xff]  ;;  %1173 = vmatpush.msra.mxu0 %v170_v36 }
  0x41   :  { %v426_v38 = vld [vmem:[#allocation2 + $0x980] sm:$0xff]  ;;  %1193 = vmatpush.msra.mxu1 %v298_v37 }
  0x42   :  { %v554_v39 = vld [vmem:[#allocation2 + $0xd80] sm:$0xff]  ;;  %1213 = vmatpush.msra.mxu2 %v426_v38 }
  0x43   :  { %v162_v40 = vld [vmem:[#allocation2 + $0x140] sm:$0xff]  ;;  %1233 = vmatpush.msra.mxu3 %v554_v39 }
  0x44   :  { %v290_v41 = vld [vmem:[#allocation2 + $0x540] sm:$0xff]  ;;  %1174 = vmatpush.msra.mxu0 %v162_v40 }
  0x45   :  { %v418_v42 = vld [vmem:[#allocation2 + $0x940] sm:$0xff]  ;;  %1194 = vmatpush.msra.mxu1 %v290_v41 }
  0x46   :  { %v546_v43 = vld [vmem:[#allocation2 + $0xd40] sm:$0xff]  ;;  %1214 = vmatpush.msra.mxu2 %v418_v42 }
  0x47   :  { %v154_v44 = vld [vmem:[#allocation2 + $0x100] sm:$0xff]  ;;  %1234 = vmatpush.msra.mxu3 %v546_v43 }
  0x48   :  { %v282_v45 = vld [vmem:[#allocation2 + $0x500] sm:$0xff]  ;;  %1175 = vmatpush.msra.mxu0 %v154_v44 }
  0x49   :  { %v410_v46 = vld [vmem:[#allocation2 + $0x900] sm:$0xff]  ;;  %1195 = vmatpush.msra.mxu1 %v282_v45 }
  0x4a   :  { %v538_v47 = vld [vmem:[#allocation2 + $0xd00] sm:$0xff]  ;;  %1215 = vmatpush.msra.mxu2 %v410_v46 }
  0x4b   :  { %v146_v48 = vld [vmem:[#allocation2 + $0xc0] sm:$0xff]  ;;  %1235 = vmatpush.msra.mxu3 %v538_v47 }
  0x4c   :  { %v274_v49 = vld [vmem:[#allocation2 + $0x4c0] sm:$0xff]  ;;  %1176 = vmatpush.msra.mxu0 %v146_v48 }
  0x4d   :  { %v402_v50 = vld [vmem:[#allocation2 + $0x8c0] sm:$0xff]  ;;  %1196 = vmatpush.msra.mxu1 %v274_v49 }
  0x4e   :  { %v530_v51 = vld [vmem:[#allocation2 + $0xcc0] sm:$0xff]  ;;  %1216 = vmatpush.msra.mxu2 %v402_v50 }
  0x4f   :  { %v138_v52 = vld [vmem:[#allocation2 + $0x80] sm:$0xff]  ;;  %1236 = vmatpush.msra.mxu3 %v530_v51 }
  0x50   :  { %v266_v53 = vld [vmem:[#allocation2 + $0x480] sm:$0xff]  ;;  %1177 = vmatpush.msra.mxu0 %v138_v52 }
  0x51   :  { %v394_v54 = vld [vmem:[#allocation2 + $0x880] sm:$0xff]  ;;  %1197 = vmatpush.msra.mxu1 %v266_v53 }
  0x52   :  { %v522_v55 = vld [vmem:[#allocation2 + $0xc80] sm:$0xff]  ;;  %1217 = vmatpush.msra.mxu2 %v394_v54 }
  0x53   :  { %v130_v56 = vld [vmem:[#allocation2 + $0x40] sm:$0xff]  ;;  %1237 = vmatpush.msra.mxu3 %v522_v55 }
  0x54   :  { %v258_v57 = vld [vmem:[#allocation2 + $0x440] sm:$0xff]  ;;  %1178 = vmatpush.msra.mxu0 %v130_v56 }
  0x55   :  { %v386_v58 = vld [vmem:[#allocation2 + $0x840] sm:$0xff]  ;;  %1198 = vmatpush.msra.mxu1 %v258_v57 }
  0x56   :  { %v514_v59 = vld [vmem:[#allocation2 + $0xc40] sm:$0xff]  ;;  %1218 = vmatpush.msra.mxu2 %v386_v58 }
  0x57   :  { %v122_v60 = vld [vmem:[#allocation2] sm:$0xff]  ;;  %1238 = vmatpush.msra.mxu3 %v514_v59 }
  0x58   :  { %v250_v61 = vld [vmem:[#allocation2 + $0x400] sm:$0xff]  ;;  %1179 = vmatpush.msra.mxu0 %v122_v60 }
  0x59   :  { %v378_v62 = vld [vmem:[#allocation2 + $0x800] sm:$0xff]  ;;  %1199 = vmatpush.msra.mxu1 %v250_v61 }
  0x5a   :  { %v506_v63 = vld [vmem:[#allocation2 + $0xc00] sm:$0xff]  ;;  %1219 = vmatpush.msra.mxu2 %v378_v62 }
  0x5b   :  { %v754_v0 = vld [vmem:[#allocation2 + $0x13c0] sm:$0xff]  ;;  %1239 = vmatpush.msra.mxu3 %v506_v63 }
  0x5c   :  { %v882_v1 = vld [vmem:[#allocation2 + $0x17c0] sm:$0xff]  ;;  %1244 = vmatpush.msrb.mxu0 %v754_v0 }
  0x5d   :  { %v1010_v2 = vld [vmem:[#allocation2 + $0x1bc0] sm:$0xff]  ;;  %1264 = vmatpush.msrb.mxu1 %v882_v1  ;;  %v5347_v1 = vld [vmem:[%s5878_s0 + $0x8] sm:$0xff] }
  0x5e   :  { %v1138_v3 = vld [vmem:[#allocation2 + $0x1fc0] sm:$0xff]  ;;  %1284 = vmatpush.msrb.mxu2 %v1010_v2  ;;  %v5352_v2 = vld [vmem:[%s5878_s0 + $0x10] sm:$0xff]  ;;  %1200 = vmatmul.f32.vlgmr.msra.gmra.mxu1 %v5347_v1 }
  0x5f   :  { %v746_v4 = vld [vmem:[#allocation2 + $0x1380] sm:$0xff]  ;;  %1304 = vmatpush.msrb.mxu3 %v1138_v3  ;;  %v5357_v3 = vld [vmem:[%s5878_s0 + $0x18] sm:$0xff]  ;;  %1220 = vmatmul.f32.vlgmr.msra.gmra.mxu2 %v5352_v2 }
  0x60   :  { %v874_v5 = vld [vmem:[#allocation2 + $0x1780] sm:$0xff]  ;;  %1245 = vmatpush.msrb.mxu0 %v746_v4  ;;  %v243_v4 = vld [vmem:[#allocation2 + $0x3c8] sm:$0xff]  ;;  %1240 = vmatmul.f32.vlgmr.msra.gmra.mxu3 %v5357_v3 }
  0x61   :  { %v1002_v6 = vld [vmem:[#allocation2 + $0x1b80] sm:$0xff]  ;;  %1265 = vmatpush.msrb.mxu1 %v874_v5  ;;  %v371_v5 = vld [vmem:[#allocation2 + $0x7c8] sm:$0xff] }
  0x62   :  { %v1130_v7 = vld [vmem:[#allocation2 + $0x1f80] sm:$0xff]  ;;  %1285 = vmatpush.msrb.mxu2 %v1002_v6  ;;  %v499_v6 = vld [vmem:[#allocation2 + $0xbc8] sm:$0xff] }
  0x63   :  { %v738_v8 = vld [vmem:[#allocation2 + $0x1340] sm:$0xff]  ;;  %1305 = vmatpush.msrb.mxu3 %v1130_v7  ;;  %v627_v7 = vld [vmem:[#allocation2 + $0xfc8] sm:$0xff] }
  0x64   :  { %v866_v9 = vld [vmem:[#allocation2 + $0x1740] sm:$0xff]  ;;  %1246 = vmatpush.msrb.mxu0 %v738_v8  ;;  %v235_v8 = vld [vmem:[#allocation2 + $0x388] sm:$0xff] }
  0x65   :  { %v994_v10 = vld [vmem:[#allocation2 + $0x1b40] sm:$0xff]  ;;  %1266 = vmatpush.msrb.mxu1 %v866_v9  ;;  %v363_v9 = vld [vmem:[#allocation2 + $0x788] sm:$0xff] }
  0x66   :  { %v1122_v11 = vld [vmem:[#allocation2 + $0x1f40] sm:$0xff]  ;;  %1286 = vmatpush.msrb.mxu2 %v994_v10  ;;  %v491_v10 = vld [vmem:[#allocation2 + $0xb88] sm:$0xff] }
  0x67   :  { %v730_v12 = vld [vmem:[#allocation2 + $0x1300] sm:$0xff]  ;;  %1306 = vmatpush.msrb.mxu3 %v1122_v11  ;;  %v619_v11 = vld [vmem:[#allocation2 + $0xf88] sm:$0xff] }
  0x68   :  { %v858_v13 = vld [vmem:[#allocation2 + $0x1700] sm:$0xff]  ;;  %1247 = vmatpush.msrb.mxu0 %v730_v12  ;;  %v227_v12 = vld [vmem:[#allocation2 + $0x348] sm:$0xff] }
  0x69   :  { %v986_v14 = vld [vmem:[#allocation2 + $0x1b00] sm:$0xff]  ;;  %1267 = vmatpush.msrb.mxu1 %v858_v13  ;;  %v355_v13 = vld [vmem:[#allocation2 + $0x748] sm:$0xff] }
  0x6a   :  { %v1114_v15 = vld [vmem:[#allocation2 + $0x1f00] sm:$0xff]  ;;  %1287 = vmatpush.msrb.mxu2 %v986_v14  ;;  %v483_v14 = vld [vmem:[#allocation2 + $0xb48] sm:$0xff] }
  0x6b   :  { %v722_v16 = vld [vmem:[#allocation2 + $0x12c0] sm:$0xff]  ;;  %1307 = vmatpush.msrb.mxu3 %v1114_v15  ;;  %v611_v15 = vld [vmem:[#allocation2 + $0xf48] sm:$0xff] }
  0x6c   :  { %v850_v17 = vld [vmem:[#allocation2 + $0x16c0] sm:$0xff]  ;;  %1248 = vmatpush.msrb.mxu0 %v722_v16  ;;  %v219_v16 = vld [vmem:[#allocation2 + $0x308] sm:$0xff] }
  0x6d   :  { %v978_v18 = vld [vmem:[#allocation2 + $0x1ac0] sm:$0xff]  ;;  %1268 = vmatpush.msrb.mxu1 %v850_v17  ;;  %v347_v17 = vld [vmem:[#allocation2 + $0x708] sm:$0xff] }
  0x6e   :  { %v1106_v19 = vld [vmem:[#allocation2 + $0x1ec0] sm:$0xff]  ;;  %1288 = vmatpush.msrb.mxu2 %v978_v18  ;;  %v475_v18 = vld [vmem:[#allocation2 + $0xb08] sm:$0xff] }
  0x6f   :  { %v714_v20 = vld [vmem:[#allocation2 + $0x1280] sm:$0xff]  ;;  %1308 = vmatpush.msrb.mxu3 %v1106_v19  ;;  %v603_v19 = vld [vmem:[#allocation2 + $0xf08] sm:$0xff] }
  0x70   :  { %v842_v21 = vld [vmem:[#allocation2 + $0x1680] sm:$0xff]  ;;  %1249 = vmatpush.msrb.mxu0 %v714_v20  ;;  %v5366_v20 = vld [vmem:[%s5878_s0 + $0x30] sm:$0xff] }
  0x71   :  { %v970_v22 = vld [vmem:[#allocation2 + $0x1a80] sm:$0xff]  ;;  %1269 = vmatpush.msrb.mxu1 %v842_v21  ;;  %v211_v21 = vld [vmem:[#allocation2 + $0x2c8] sm:$0xff] }
  0x72   :  { %v1098_v23 = vld [vmem:[#allocation2 + $0x1e80] sm:$0xff]  ;;  %1289 = vmatpush.msrb.mxu2 %v970_v22  ;;  %v339_v22 = vld [vmem:[#allocation2 + $0x6c8] sm:$0xff] }
  0x73   :  { %v706_v24 = vld [vmem:[#allocation2 + $0x1240] sm:$0xff]  ;;  %1309 = vmatpush.msrb.mxu3 %v1098_v23  ;;  %v467_v23 = vld [vmem:[#allocation2 + $0xac8] sm:$0xff] }
  0x74   :  { %v834_v25 = vld [vmem:[#allocation2 + $0x1640] sm:$0xff]  ;;  %1250 = vmatpush.msrb.mxu0 %v706_v24  ;;  %v595_v24 = vld [vmem:[#allocation2 + $0xec8] sm:$0xff] }
  0x75   :  { %v962_v26 = vld [vmem:[#allocation2 + $0x1a40] sm:$0xff]  ;;  %1270 = vmatpush.msrb.mxu1 %v834_v25 }
  0x76   :  { %v1090_v27 = vld [vmem:[#allocation2 + $0x1e40] sm:$0xff]  ;;  %1290 = vmatpush.msrb.mxu2 %v962_v26  ;;  %v5377_v26 = vld [vmem:[%s5878_s0 + $0x38] sm:$0xff] }
  0x77   :  { %v698_v28 = vld [vmem:[#allocation2 + $0x1200] sm:$0xff]  ;;  %1310 = vmatpush.msrb.mxu3 %v1090_v27  ;;  %v203_v27 = vld [vmem:[#allocation2 + $0x288] sm:$0xff] }
  0x78   :  { %v826_v29 = vld [vmem:[#allocation2 + $0x1600] sm:$0xff]  ;;  %1251 = vmatpush.msrb.mxu0 %v698_v28  ;;  %v331_v28 = vld [vmem:[#allocation2 + $0x688] sm:$0xff] }
  0x79   :  { %v954_v30 = vld [vmem:[#allocation2 + $0x1a00] sm:$0xff]  ;;  %1271 = vmatpush.msrb.mxu1 %v826_v29  ;;  %v459_v29 = vld [vmem:[#allocation2 + $0xa88] sm:$0xff] }
  0x7a   :  { %v1082_v31 = vld [vmem:[#allocation2 + $0x1e00] sm:$0xff]  ;;  %1291 = vmatpush.msrb.mxu2 %v954_v30  ;;  %v587_v30 = vld [vmem:[#allocation2 + $0xe88] sm:$0xff] }
  0x7b   :  { %v690_v32 = vld [vmem:[#allocation2 + $0x11c0] sm:$0xff]  ;;  %1311 = vmatpush.msrb.mxu3 %v1082_v31  ;;  %v5383_v31 = vld [vmem:[%s5878_s0 + $0x28] sm:$0xff] }
  0x7c   :  { %v818_v33 = vld [vmem:[#allocation2 + $0x15c0] sm:$0xff]  ;;  %1252 = vmatpush.msrb.mxu0 %v690_v32  ;;  %v195_v32 = vld [vmem:[#allocation2 + $0x248] sm:$0xff] }
  0x7d   :  { %v946_v34 = vld [vmem:[#allocation2 + $0x19c0] sm:$0xff]  ;;  %1272 = vmatpush.msrb.mxu1 %v818_v33  ;;  %v323_v33 = vld [vmem:[#allocation2 + $0x648] sm:$0xff] }
  0x7e   :  { %v1074_v35 = vld [vmem:[#allocation2 + $0x1dc0] sm:$0xff]  ;;  %1292 = vmatpush.msrb.mxu2 %v946_v34  ;;  %v451_v34 = vld [vmem:[#allocation2 + $0xa48] sm:$0xff] }
  0x7f   :  { %v682_v36 = vld [vmem:[#allocation2 + $0x1180] sm:$0xff]  ;;  %1312 = vmatpush.msrb.mxu3 %v1074_v35  ;;  %v579_v35 = vld [vmem:[#allocation2 + $0xe48] sm:$0xff] }
  0x80   :  { %v810_v37 = vld [vmem:[#allocation2 + $0x1580] sm:$0xff]  ;;  %1253 = vmatpush.msrb.mxu0 %v682_v36  ;;  %v187_v36 = vld [vmem:[#allocation2 + $0x208] sm:$0xff] }
  0x81   :  { %v938_v38 = vld [vmem:[#allocation2 + $0x1980] sm:$0xff]  ;;  %1273 = vmatpush.msrb.mxu1 %v810_v37  ;;  %v315_v37 = vld [vmem:[#allocation2 + $0x608] sm:$0xff] }
  0x82   :  { %v1066_v39 = vld [vmem:[#allocation2 + $0x1d80] sm:$0xff]  ;;  %1293 = vmatpush.msrb.mxu2 %v938_v38  ;;  %v443_v38 = vld [vmem:[#allocation2 + $0xa08] sm:$0xff] }
  0x83   :  { %v674_v40 = vld [vmem:[#allocation2 + $0x1140] sm:$0xff]  ;;  %1313 = vmatpush.msrb.mxu3 %v1066_v39  ;;  %v571_v39 = vld [vmem:[#allocation2 + $0xe08] sm:$0xff] }
  0x84   :  { %v802_v41 = vld [vmem:[#allocation2 + $0x1540] sm:$0xff]  ;;  %1254 = vmatpush.msrb.mxu0 %v674_v40  ;;  %v179_v40 = vld [vmem:[#allocation2 + $0x1c8] sm:$0xff] }
  0x85   :  { %v930_v42 = vld [vmem:[#allocation2 + $0x1940] sm:$0xff]  ;;  %1274 = vmatpush.msrb.mxu1 %v802_v41  ;;  %v307_v41 = vld [vmem:[#allocation2 + $0x5c8] sm:$0xff] }
  0x86   :  { %v1058_v43 = vld [vmem:[#allocation2 + $0x1d40] sm:$0xff]  ;;  %1294 = vmatpush.msrb.mxu2 %v930_v42  ;;  %v435_v42 = vld [vmem:[#allocation2 + $0x9c8] sm:$0xff] }
  0x87   :  { %v666_v44 = vld [vmem:[#allocation2 + $0x1100] sm:$0xff]  ;;  %1314 = vmatpush.msrb.mxu3 %v1058_v43  ;;  %v563_v43 = vld [vmem:[#allocation2 + $0xdc8] sm:$0xff] }
  0x88   :  { %v794_v45 = vld [vmem:[#allocation2 + $0x1500] sm:$0xff]  ;;  %1255 = vmatpush.msrb.mxu0 %v666_v44  ;;  %v171_v44 = vld [vmem:[#allocation2 + $0x188] sm:$0xff] }
  0x89   :  { %v922_v46 = vld [vmem:[#allocation2 + $0x1900] sm:$0xff]  ;;  %1275 = vmatpush.msrb.mxu1 %v794_v45  ;;  %v299_v45 = vld [vmem:[#allocation2 + $0x588] sm:$0xff] }
  0x8a   :  { %v1050_v47 = vld [vmem:[#allocation2 + $0x1d00] sm:$0xff]  ;;  %1295 = vmatpush.msrb.mxu2 %v922_v46  ;;  %v427_v46 = vld [vmem:[#allocation2 + $0x988] sm:$0xff] }
  0x8b   :  { %v658_v48 = vld [vmem:[#allocation2 + $0x10c0] sm:$0xff]  ;;  %1315 = vmatpush.msrb.mxu3 %v1050_v47  ;;  %v555_v47 = vld [vmem:[#allocation2 + $0xd88] sm:$0xff] }
  0x8c   :  { %v786_v49 = vld [vmem:[#allocation2 + $0x14c0] sm:$0xff]  ;;  %1256 = vmatpush.msrb.mxu0 %v658_v48  ;;  %v163_v48 = vld [vmem:[#allocation2 + $0x148] sm:$0xff] }
  0x8d   :  { %v914_v50 = vld [vmem:[#allocation2 + $0x18c0] sm:$0xff]  ;;  %1276 = vmatpush.msrb.mxu1 %v786_v49  ;;  %v291_v49 = vld [vmem:[#allocation2 + $0x548] sm:$0xff] }
  0x8e   :  { %v1042_v51 = vld [vmem:[#allocation2 + $0x1cc0] sm:$0xff]  ;;  %1296 = vmatpush.msrb.mxu2 %v914_v50  ;;  %v419_v50 = vld [vmem:[#allocation2 + $0x948] sm:$0xff] }
  0x8f   :  { %v650_v52 = vld [vmem:[#allocation2 + $0x1080] sm:$0xff]  ;;  %1316 = vmatpush.msrb.mxu3 %v1042_v51  ;;  %v547_v51 = vld [vmem:[#allocation2 + $0xd48] sm:$0xff] }
  0x90   :  { %v778_v53 = vld [vmem:[#allocation2 + $0x1480] sm:$0xff]  ;;  %1257 = vmatpush.msrb.mxu0 %v650_v52  ;;  %v155_v52 = vld [vmem:[#allocation2 + $0x108] sm:$0xff] }
  0x91   :  { %v906_v54 = vld [vmem:[#allocation2 + $0x1880] sm:$0xff]  ;;  %1277 = vmatpush.msrb.mxu1 %v778_v53  ;;  %v283_v53 = vld [vmem:[#allocation2 + $0x508] sm:$0xff] }
  0x92   :  { %v1034_v55 = vld [vmem:[#allocation2 + $0x1c80] sm:$0xff]  ;;  %1297 = vmatpush.msrb.mxu2 %v906_v54  ;;  %v411_v54 = vld [vmem:[#allocation2 + $0x908] sm:$0xff] }
  0x93   :  { %v642_v56 = vld [vmem:[#allocation2 + $0x1040] sm:$0xff]  ;;  %1317 = vmatpush.msrb.mxu3 %v1034_v55  ;;  %v539_v55 = vld [vmem:[#allocation2 + $0xd08] sm:$0xff] }
  0x94   :  { %v770_v57 = vld [vmem:[#allocation2 + $0x1440] sm:$0xff]  ;;  %1258 = vmatpush.msrb.mxu0 %v642_v56  ;;  %v147_v56 = vld [vmem:[#allocation2 + $0xc8] sm:$0xff] }
  0x95   :  { %v898_v58 = vld [vmem:[#allocation2 + $0x1840] sm:$0xff]  ;;  %1278 = vmatpush.msrb.mxu1 %v770_v57  ;;  %v275_v57 = vld [vmem:[#allocation2 + $0x4c8] sm:$0xff] }
  0x96   :  { %v1026_v59 = vld [vmem:[#allocation2 + $0x1c40] sm:$0xff]  ;;  %1298 = vmatpush.msrb.mxu2 %v898_v58  ;;  %v403_v58 = vld [vmem:[#allocation2 + $0x8c8] sm:$0xff] }
  0x97   :  { %v634_v60 = vld [vmem:[#allocation2 + $0x1000] sm:$0xff]  ;;  %1318 = vmatpush.msrb.mxu3 %v1026_v59  ;;  %v531_v59 = vld [vmem:[#allocation2 + $0xcc8] sm:$0xff] }
  0x98   :  { %v762_v61 = vld [vmem:[#allocation2 + $0x1400] sm:$0xff]  ;;  %1259 = vmatpush.msrb.mxu0 %v634_v60  ;;  %v139_v60 = vld [vmem:[#allocation2 + $0x88] sm:$0xff] }
  0x99   :  { %v890_v62 = vld [vmem:[#allocation2 + $0x1800] sm:$0xff]  ;;  %1279 = vmatpush.msrb.mxu1 %v762_v61  ;;  %v267_v61 = vld [vmem:[#allocation2 + $0x488] sm:$0xff] }
  0x9a   :  { %v1018_v63 = vld [vmem:[#allocation2 + $0x1c00] sm:$0xff]  ;;  %1299 = vmatpush.msrb.mxu2 %v890_v62  ;;  %1280 = vmatmul.f32.vlgmr.msrb.gmra.mxu1 %v5383_v31  ;;  %v395_v62 = vld [vmem:[#allocation2 + $0x888] sm:$0xff] }
  0x9b   :  { %v5342_v0 = vld [vmem:[%s5878_s0] sm:$0xff]  ;;  %1319 = vmatpush.msrb.mxu3 %v1018_v63  ;;  %1344 = vmatpush.msra.mxu1 %v371_v5  ;;  %v523_v63 = vld [vmem:[#allocation2 + $0xc88] sm:$0xff] }
  0x9c   :  { %1180 = vmatmul.f32.vlgmr.msra.gmra.mxu0 %v5342_v0  ;;  %1364 = vmatpush.msra.mxu2 %v499_v6  ;;  %v5371_v25 = vld [vmem:[%s5878_s0 + $0x20] sm:$0xff]  ;;  %v259_v5 = vld [vmem:[#allocation2 + $0x448] sm:$0xff] }
  0x9d   :  { %1324 = vmatpush.msra.mxu0 %v243_v4  ;;  %1384 = vmatpush.msra.mxu3 %v627_v7  ;;  %v131_v4 = vld [vmem:[#allocation2 + $0x48] sm:$0xff] }
  0x9e   :  { %1345 = vmatpush.msra.mxu1 %v363_v9  ;;  %1365 = vmatpush.msra.mxu2 %v491_v10  ;;  %v387_v6 = vld [vmem:[#allocation2 + $0x848] sm:$0xff] }
  0x9f   :  { %1325 = vmatpush.msra.mxu0 %v235_v8  ;;  %1385 = vmatpush.msra.mxu3 %v619_v11  ;;  %v515_v7 = vld [vmem:[#allocation2 + $0xc48] sm:$0xff] }
  0xa0   :  { %1346 = vmatpush.msra.mxu1 %v355_v13  ;;  %1366 = vmatpush.msra.mxu2 %v483_v14  ;;  %v123_v8 = vld [vmem:[#allocation2 + $0x8] sm:$0xff] }
  0xa1   :  { %1326 = vmatpush.msra.mxu0 %v227_v12  ;;  %1386 = vmatpush.msra.mxu3 %v611_v15  ;;  %v251_v9 = vld [vmem:[#allocation2 + $0x408] sm:$0xff] }
  0xa2   :  { %1347 = vmatpush.msra.mxu1 %v347_v17  ;;  %1367 = vmatpush.msra.mxu2 %v475_v18  ;;  %v379_v10 = vld [vmem:[#allocation2 + $0x808] sm:$0xff] }
  0xa3   :  { %1327 = vmatpush.msra.mxu0 %v219_v16  ;;  %1387 = vmatpush.msra.mxu3 %v603_v19  ;;  %v507_v11 = vld [vmem:[#allocation2 + $0xc08] sm:$0xff] }
  0xa4   :  { %1300 = vmatmul.f32.vlgmr.msrb.gmra.mxu2 %v5366_v20  ;;  %1348 = vmatpush.msra.mxu1 %v339_v22  ;;  %v755_v12 = vld [vmem:[#allocation2 + $0x13c8] sm:$0xff] }
  0xa5   :  { %1328 = vmatpush.msra.mxu0 %v211_v21  ;;  %1368 = vmatpush.msra.mxu2 %v467_v23  ;;  %v883_v13 = vld [vmem:[#allocation2 + $0x17c8] sm:$0xff] }
  0xa6   :  { %1388 = vmatpush.msra.mxu3 %v595_v24  ;;  %1260 = vmatmul.f32.vlgmr.msrb.gmra.mxu0 %v5371_v25  ;;  %v1011_v14 = vld [vmem:[#allocation2 + $0x1bc8] sm:$0xff] }
  0xa7   :  { %1320 = vmatmul.f32.vlgmr.msrb.gmra.mxu3 %v5377_v26  ;;  %1329 = vmatpush.msra.mxu0 %v203_v27  ;;  %v1139_v15 = vld [vmem:[#allocation2 + $0x1fc8] sm:$0xff] }
  0xa8   :  { %1349 = vmatpush.msra.mxu1 %v331_v28  ;;  %1369 = vmatpush.msra.mxu2 %v459_v29  ;;  %v747_v16 = vld [vmem:[#allocation2 + $0x1388] sm:$0xff] }
  0xa9   :  { %1389 = vmatpush.msra.mxu3 %v587_v30  ;;  %1330 = vmatpush.msra.mxu0 %v195_v32  ;;  %v875_v17 = vld [vmem:[#allocation2 + $0x1788] sm:$0xff] }
  0xaa   :  { %1350 = vmatpush.msra.mxu1 %v323_v33  ;;  %1370 = vmatpush.msra.mxu2 %v451_v34  ;;  %v1003_v18 = vld [vmem:[#allocation2 + $0x1b88] sm:$0xff] }
  0xab   :  { %1390 = vmatpush.msra.mxu3 %v579_v35  ;;  %1331 = vmatpush.msra.mxu0 %v187_v36  ;;  %v1131_v19 = vld [vmem:[#allocation2 + $0x1f88] sm:$0xff] }
  0xac   :  { %1351 = vmatpush.msra.mxu1 %v315_v37  ;;  %1371 = vmatpush.msra.mxu2 %v443_v38  ;;  %v739_v21 = vld [vmem:[#allocation2 + $0x1348] sm:$0xff] }
  0xad   :  { %1391 = vmatpush.msra.mxu3 %v571_v39  ;;  %1332 = vmatpush.msra.mxu0 %v179_v40  ;;  %v867_v22 = vld [vmem:[#allocation2 + $0x1748] sm:$0xff] }
  0xae   :  { %1352 = vmatpush.msra.mxu1 %v307_v41  ;;  %1372 = vmatpush.msra.mxu2 %v435_v42  ;;  %v995_v23 = vld [vmem:[#allocation2 + $0x1b48] sm:$0xff] }
  0xaf   :  { %1392 = vmatpush.msra.mxu3 %v563_v43  ;;  %1333 = vmatpush.msra.mxu0 %v171_v44  ;;  %v1123_v24 = vld [vmem:[#allocation2 + $0x1f48] sm:$0xff] }
  0xb0   :  { %1353 = vmatpush.msra.mxu1 %v299_v45  ;;  %1373 = vmatpush.msra.mxu2 %v427_v46  ;;  %v731_v27 = vld [vmem:[#allocation2 + $0x1308] sm:$0xff] }
  0xb1   :  { %1393 = vmatpush.msra.mxu3 %v555_v47  ;;  %1334 = vmatpush.msra.mxu0 %v163_v48  ;;  %v859_v28 = vld [vmem:[#allocation2 + $0x1708] sm:$0xff] }
  0xb2   :  { %1354 = vmatpush.msra.mxu1 %v291_v49  ;;  %1374 = vmatpush.msra.mxu2 %v419_v50  ;;  %v987_v29 = vld [vmem:[#allocation2 + $0x1b08] sm:$0xff] }
  0xb3   :  { %1394 = vmatpush.msra.mxu3 %v547_v51  ;;  %1335 = vmatpush.msra.mxu0 %v155_v52  ;;  %v1115_v30 = vld [vmem:[#allocation2 + $0x1f08] sm:$0xff] }
  0xb4   :  { %1355 = vmatpush.msra.mxu1 %v283_v53  ;;  %1375 = vmatpush.msra.mxu2 %v411_v54  ;;  %v723_v32 = vld [vmem:[#allocation2 + $0x12c8] sm:$0xff] }
  0xb5   :  { %1395 = vmatpush.msra.mxu3 %v539_v55  ;;  %1336 = vmatpush.msra.mxu0 %v147_v56  ;;  %v851_v33 = vld [vmem:[#allocation2 + $0x16c8] sm:$0xff] }
  0xb6   :  { %1356 = vmatpush.msra.mxu1 %v275_v57  ;;  %1376 = vmatpush.msra.mxu2 %v403_v58  ;;  %v979_v34 = vld [vmem:[#allocation2 + $0x1ac8] sm:$0xff] }
  0xb7   :  { %1396 = vmatpush.msra.mxu3 %v531_v59  ;;  %1337 = vmatpush.msra.mxu0 %v139_v60  ;;  %v1107_v35 = vld [vmem:[#allocation2 + $0x1ec8] sm:$0xff] }
  0xb8   :  { %1357 = vmatpush.msra.mxu1 %v267_v61  ;;  %1377 = vmatpush.msra.mxu2 %v395_v62  ;;  %v715_v36 = vld [vmem:[#allocation2 + $0x1288] sm:$0xff] }
  0xb9   :  { %1397 = vmatpush.msra.mxu3 %v523_v63  ;;  %1338 = vmatpush.msra.mxu0 %v131_v4  ;;  %v843_v37 = vld [vmem:[#allocation2 + $0x1688] sm:$0xff] }
  0xba   :  { %1358 = vmatpush.msra.mxu1 %v259_v5  ;;  %1378 = vmatpush.msra.mxu2 %v387_v6  ;;  %v971_v38 = vld [vmem:[#allocation2 + $0x1a88] sm:$0xff] }
  0xbb   :  { %1398 = vmatpush.msra.mxu3 %v515_v7  ;;  %1339 = vmatpush.msra.mxu0 %v123_v8  ;;  %v1099_v39 = vld [vmem:[#allocation2 + $0x1e88] sm:$0xff] }
  0xbc   :  { %1359 = vmatpush.msra.mxu1 %v251_v9  ;;  %1379 = vmatpush.msra.mxu2 %v379_v10  ;;  %v707_v40 = vld [vmem:[#allocation2 + $0x1248] sm:$0xff] }
  0xbd   :  { %1399 = vmatpush.msra.mxu3 %v507_v11  ;;  %1404 = vmatpush.msrb.mxu0 %v755_v12  ;;  %v835_v41 = vld [vmem:[#allocation2 + $0x1648] sm:$0xff] }
  0xbe   :  { %1424 = vmatpush.msrb.mxu1 %v883_v13  ;;  %1444 = vmatpush.msrb.mxu2 %v1011_v14  ;;  %v963_v42 = vld [vmem:[#allocation2 + $0x1a48] sm:$0xff] }
  0xbf   :  { %1464 = vmatpush.msrb.mxu3 %v1139_v15  ;;  %1405 = vmatpush.msrb.mxu0 %v747_v16  ;;  %v1091_v43 = vld [vmem:[#allocation2 + $0x1e48] sm:$0xff] }
  0xc0   :  { %1425 = vmatpush.msrb.mxu1 %v875_v17  ;;  %1445 = vmatpush.msrb.mxu2 %v1003_v18  ;;  %v699_v44 = vld [vmem:[#allocation2 + $0x1208] sm:$0xff] }
  0xc1   :  { %1465 = vmatpush.msrb.mxu3 %v1131_v19  ;;  %1406 = vmatpush.msrb.mxu0 %v739_v21  ;;  %v827_v45 = vld [vmem:[#allocation2 + $0x1608] sm:$0xff]  ;;  %v244_v21 = vld [vmem:[#allocation2 + $0x3d0] sm:$0xff] }
  0xc2   :  { %1426 = vmatpush.msrb.mxu1 %v867_v22  ;;  %1446 = vmatpush.msrb.mxu2 %v995_v23  ;;  %v955_v46 = vld [vmem:[#allocation2 + $0x1a08] sm:$0xff]  ;;  %v372_v22 = vld [vmem:[#allocation2 + $0x7d0] sm:$0xff] }
  0xc3   :  { %1466 = vmatpush.msrb.mxu3 %v1123_v24  ;;  %1407 = vmatpush.msrb.mxu0 %v731_v27  ;;  %v1083_v47 = vld [vmem:[#allocation2 + $0x1e08] sm:$0xff]  ;;  %v500_v23 = vld [vmem:[#allocation2 + $0xbd0] sm:$0xff] }
  0xc4   :  { %1427 = vmatpush.msrb.mxu1 %v859_v28  ;;  %1447 = vmatpush.msrb.mxu2 %v987_v29  ;;  %v691_v48 = vld [vmem:[#allocation2 + $0x11c8] sm:$0xff]  ;;  %v628_v24 = vld [vmem:[#allocation2 + $0xfd0] sm:$0xff] }
  0xc5   :  { %1467 = vmatpush.msrb.mxu3 %v1115_v30  ;;  %1408 = vmatpush.msrb.mxu0 %v723_v32  ;;  %v819_v49 = vld [vmem:[#allocation2 + $0x15c8] sm:$0xff]  ;;  %v236_v27 = vld [vmem:[#allocation2 + $0x390] sm:$0xff] }
  0xc6   :  { %1428 = vmatpush.msrb.mxu1 %v851_v33  ;;  %1448 = vmatpush.msrb.mxu2 %v979_v34  ;;  %v947_v50 = vld [vmem:[#allocation2 + $0x19c8] sm:$0xff]  ;;  %v364_v28 = vld [vmem:[#allocation2 + $0x790] sm:$0xff] }
  0xc7   :  { %1468 = vmatpush.msrb.mxu3 %v1107_v35  ;;  %1409 = vmatpush.msrb.mxu0 %v715_v36  ;;  %v1075_v51 = vld [vmem:[#allocation2 + $0x1dc8] sm:$0xff]  ;;  %v492_v29 = vld [vmem:[#allocation2 + $0xb90] sm:$0xff] }
  0xc8   :  { %1429 = vmatpush.msrb.mxu1 %v843_v37  ;;  %1449 = vmatpush.msrb.mxu2 %v971_v38  ;;  %v683_v52 = vld [vmem:[#allocation2 + $0x1188] sm:$0xff]  ;;  %v620_v30 = vld [vmem:[#allocation2 + $0xf90] sm:$0xff] }
  0xc9   :  { %1469 = vmatpush.msrb.mxu3 %v1099_v39  ;;  %1410 = vmatpush.msrb.mxu0 %v707_v40  ;;  %v811_v53 = vld [vmem:[#allocation2 + $0x1588] sm:$0xff]  ;;  %v228_v32 = vld [vmem:[#allocation2 + $0x350] sm:$0xff] }
  0xca   :  { %1430 = vmatpush.msrb.mxu1 %v835_v41  ;;  %1450 = vmatpush.msrb.mxu2 %v963_v42  ;;  %v939_v54 = vld [vmem:[#allocation2 + $0x1988] sm:$0xff]  ;;  %v356_v33 = vld [vmem:[#allocation2 + $0x750] sm:$0xff] }
  0xcb   :  { %1470 = vmatpush.msrb.mxu3 %v1091_v43  ;;  %1411 = vmatpush.msrb.mxu0 %v699_v44  ;;  %v1067_v55 = vld [vmem:[#allocation2 + $0x1d88] sm:$0xff]  ;;  %v220_v34 = vld [vmem:[#allocation2 + $0x310] sm:$0xff] }
  0xcc   :  { %1431 = vmatpush.msrb.mxu1 %v827_v45  ;;  %1451 = vmatpush.msrb.mxu2 %v955_v46  ;;  %v675_v56 = vld [vmem:[#allocation2 + $0x1148] sm:$0xff]  ;;  %v604_v35 = vld [vmem:[#allocation2 + $0xf10] sm:$0xff] }
  0xcd   :  { %1471 = vmatpush.msrb.mxu3 %v1083_v47  ;;  %1412 = vmatpush.msrb.mxu0 %v691_v48  ;;  %v803_v57 = vld [vmem:[#allocation2 + $0x1548] sm:$0xff]  ;;  %v212_v36 = vld [vmem:[#allocation2 + $0x2d0] sm:$0xff] }
  0xce   :  { %1432 = vmatpush.msrb.mxu1 %v819_v49  ;;  %1452 = vmatpush.msrb.mxu2 %v947_v50  ;;  %v931_v58 = vld [vmem:[#allocation2 + $0x1948] sm:$0xff]  ;;  %v340_v37 = vld [vmem:[#allocation2 + $0x6d0] sm:$0xff] }
  0xcf   :  { %1472 = vmatpush.msrb.mxu3 %v1075_v51  ;;  %1413 = vmatpush.msrb.mxu0 %v683_v52  ;;  %v1059_v59 = vld [vmem:[#allocation2 + $0x1d48] sm:$0xff]  ;;  %v468_v38 = vld [vmem:[#allocation2 + $0xad0] sm:$0xff] }
  0xd0   :  { %1433 = vmatpush.msrb.mxu1 %v811_v53  ;;  %1453 = vmatpush.msrb.mxu2 %v939_v54  ;;  %v667_v60 = vld [vmem:[#allocation2 + $0x1108] sm:$0xff]  ;;  %v596_v39 = vld [vmem:[#allocation2 + $0xed0] sm:$0xff] }
  0xd1   :  { %1473 = vmatpush.msrb.mxu3 %v1067_v55  ;;  %v795_v61 = vld [vmem:[#allocation2 + $0x1508] sm:$0xff]  ;;  %1414 = vmatpush.msrb.mxu0 %v675_v56  ;;  %v204_v40 = vld [vmem:[#allocation2 + $0x290] sm:$0xff] }
  0xd2   :  { %1434 = vmatpush.msrb.mxu1 %v803_v57  ;;  %v923_v62 = vld [vmem:[#allocation2 + $0x1908] sm:$0xff]  ;;  %1454 = vmatpush.msrb.mxu2 %v931_v58  ;;  %v332_v41 = vld [vmem:[#allocation2 + $0x690] sm:$0xff] }
  0xd3   :  { %v1051_v63 = vld [vmem:[#allocation2 + $0x1d08] sm:$0xff]  ;;  %1474 = vmatpush.msrb.mxu3 %v1059_v59  ;;  %1415 = vmatpush.msrb.mxu0 %v667_v60  ;;  %v460_v42 = vld [vmem:[#allocation2 + $0xa90] sm:$0xff] }
  0xd4   :  { %v659_v4 = vld [vmem:[#allocation2 + $0x10c8] sm:$0xff]  ;;  %1435 = vmatpush.msrb.mxu1 %v795_v61  ;;  %1455 = vmatpush.msrb.mxu2 %v923_v62  ;;  %v588_v43 = vld [vmem:[#allocation2 + $0xe90] sm:$0xff] }
  0xd5   :  { %v787_v5 = vld [vmem:[#allocation2 + $0x14c8] sm:$0xff]  ;;  %1475 = vmatpush.msrb.mxu3 %v1051_v63  ;;  %1416 = vmatpush.msrb.mxu0 %v659_v4  ;;  %v196_v44 = vld [vmem:[#allocation2 + $0x250] sm:$0xff] }
  0xd6   :  { %v915_v6 = vld [vmem:[#allocation2 + $0x18c8] sm:$0xff]  ;;  %1436 = vmatpush.msrb.mxu1 %v787_v5  ;;  %1340 = vmatmul.f32.vlgmr.msra.gmra.mxu0 %v5342_v0  ;;  %v484_v0 = vld [vmem:[#allocation2 + $0xb50] sm:$0xff] }
  0xd7   :  { %v1043_v7 = vld [vmem:[#allocation2 + $0x1cc8] sm:$0xff]  ;;  %1456 = vmatpush.msrb.mxu2 %v915_v6  ;;  %1360 = vmatmul.f32.vlgmr.msra.gmra.mxu1 %v5347_v1  ;;  %v612_v1 = vld [vmem:[#allocation2 + $0xf50] sm:$0xff] }
  0xd8   :  { %v651_v8 = vld [vmem:[#allocation2 + $0x1088] sm:$0xff]  ;;  %1476 = vmatpush.msrb.mxu3 %v1043_v7  ;;  %1380 = vmatmul.f32.vlgmr.msra.gmra.mxu2 %v5352_v2  ;;  %v348_v2 = vld [vmem:[#allocation2 + $0x710] sm:$0xff] }
  0xd9   :  { %v779_v9 = vld [vmem:[#allocation2 + $0x1488] sm:$0xff]  ;;  %1417 = vmatpush.msrb.mxu0 %v651_v8  ;;  %1400 = vmatmul.f32.vlgmr.msra.gmra.mxu3 %v5357_v3  ;;  %v476_v3 = vld [vmem:[#allocation2 + $0xb10] sm:$0xff] }
  0xda   :  { %v907_v10 = vld [vmem:[#allocation2 + $0x1888] sm:$0xff]  ;;  %1437 = vmatpush.msrb.mxu1 %v779_v9  ;;  %v324_v45 = vld [vmem:[#allocation2 + $0x650] sm:$0xff] }
  0xdb   :  { %v1035_v11 = vld [vmem:[#allocation2 + $0x1c88] sm:$0xff]  ;;  %1457 = vmatpush.msrb.mxu2 %v907_v10  ;;  %v452_v46 = vld [vmem:[#allocation2 + $0xa50] sm:$0xff] }
  0xdc   :  { %v643_v12 = vld [vmem:[#allocation2 + $0x1048] sm:$0xff]  ;;  %1477 = vmatpush.msrb.mxu3 %v1035_v11  ;;  %v580_v47 = vld [vmem:[#allocation2 + $0xe50] sm:$0xff] }
  0xdd   :  { %v771_v13 = vld [vmem:[#allocation2 + $0x1448] sm:$0xff]  ;;  %1418 = vmatpush.msrb.mxu0 %v643_v12  ;;  %v316_v48 = vld [vmem:[#allocation2 + $0x610] sm:$0xff] }
  0xde   :  { %v899_v14 = vld [vmem:[#allocation2 + $0x1848] sm:$0xff]  ;;  %1438 = vmatpush.msrb.mxu1 %v771_v13  ;;  %v444_v49 = vld [vmem:[#allocation2 + $0xa10] sm:$0xff] }
  0xdf   :  { %v1027_v15 = vld [vmem:[#allocation2 + $0x1c48] sm:$0xff]  ;;  %1458 = vmatpush.msrb.mxu2 %v899_v14  ;;  %v572_v50 = vld [vmem:[#allocation2 + $0xe10] sm:$0xff] }
  0xe0   :  { %v635_v16 = vld [vmem:[#allocation2 + $0x1008] sm:$0xff]  ;;  %1478 = vmatpush.msrb.mxu3 %v1027_v15  ;;  %v436_v51 = vld [vmem:[#allocation2 + $0x9d0] sm:$0xff] }
  0xe1   :  { %v763_v17 = vld [vmem:[#allocation2 + $0x1408] sm:$0xff]  ;;  %1419 = vmatpush.msrb.mxu0 %v635_v16  ;;  %v564_v52 = vld [vmem:[#allocation2 + $0xdd0] sm:$0xff] }
  0xe2   :  { %v891_v18 = vld [vmem:[#allocation2 + $0x1808] sm:$0xff]  ;;  %1439 = vmatpush.msrb.mxu1 %v763_v17  ;;  %1420 = vmatmul.f32.vlgmr.msrb.gmra.mxu0 %v5371_v25  ;;  %v180_v25 = vld [vmem:[#allocation2 + $0x1d0] sm:$0xff] }
  0xe3   :  { %v1019_v19 = vld [vmem:[#allocation2 + $0x1c08] sm:$0xff]  ;;  %1459 = vmatpush.msrb.mxu2 %v891_v18  ;;  %1484 = vmatpush.msra.mxu0 %v244_v21  ;;  %v172_v53 = vld [vmem:[#allocation2 + $0x190] sm:$0xff] }
  0xe4   :  { %1479 = vmatpush.msrb.mxu3 %v1019_v19  ;;  %1504 = vmatpush.msra.mxu1 %v372_v22  ;;  %v300_v54 = vld [vmem:[#allocation2 + $0x590] sm:$0xff] }
  0xe5   :  { %1524 = vmatpush.msra.mxu2 %v500_v23  ;;  %1485 = vmatpush.msra.mxu0 %v236_v27  ;;  %v556_v55 = vld [vmem:[#allocation2 + $0xd90] sm:$0xff] }
  0xe6   :  { %1544 = vmatpush.msra.mxu3 %v628_v24  ;;  %1505 = vmatpush.msra.mxu1 %v364_v28  ;;  %v164_v56 = vld [vmem:[#allocation2 + $0x150] sm:$0xff] }
  0xe7   :  { %1525 = vmatpush.msra.mxu2 %v492_v29  ;;  %1486 = vmatpush.msra.mxu0 %v228_v32  ;;  %v292_v57 = vld [vmem:[#allocation2 + $0x550] sm:$0xff] }
  0xe8   :  { %1545 = vmatpush.msra.mxu3 %v620_v30  ;;  %1506 = vmatpush.msra.mxu1 %v356_v33  ;;  %v420_v58 = vld [vmem:[#allocation2 + $0x950] sm:$0xff] }
  0xe9   :  { %1526 = vmatpush.msra.mxu2 %v484_v0  ;;  %1487 = vmatpush.msra.mxu0 %v220_v34  ;;  %v548_v59 = vld [vmem:[#allocation2 + $0xd50] sm:$0xff] }
  0xea   :  { %1546 = vmatpush.msra.mxu3 %v612_v1  ;;  %1507 = vmatpush.msra.mxu1 %v348_v2  ;;  %v156_v60 = vld [vmem:[#allocation2 + $0x110] sm:$0xff] }
  0xeb   :  { %1527 = vmatpush.msra.mxu2 %v476_v3  ;;  %1488 = vmatpush.msra.mxu0 %v212_v36  ;;  %v284_v61 = vld [vmem:[#allocation2 + $0x510] sm:$0xff] }
  0xec   :  { %1547 = vmatpush.msra.mxu3 %v604_v35  ;;  %1460 = vmatmul.f32.vlgmr.msrb.gmra.mxu2 %v5366_v20  ;;  %v188_v20 = vld [vmem:[#allocation2 + $0x210] sm:$0xff] }
  0xed   :  { %1508 = vmatpush.msra.mxu1 %v340_v37  ;;  %1528 = vmatpush.msra.mxu2 %v468_v38  ;;  %v412_v62 = vld [vmem:[#allocation2 + $0x910] sm:$0xff] }
  0xee   :  { %1548 = vmatpush.msra.mxu3 %v596_v39  ;;  %1489 = vmatpush.msra.mxu0 %v204_v40  ;;  %v540_v63 = vld [vmem:[#allocation2 + $0xd10] sm:$0xff] }
  0xef   :  { %1480 = vmatmul.f32.vlgmr.msrb.gmra.mxu3 %v5377_v26  ;;  %1509 = vmatpush.msra.mxu1 %v332_v41  ;;  %v308_v26 = vld [vmem:[#allocation2 + $0x5d0] sm:$0xff] }
  0xf0   :  { %1529 = vmatpush.msra.mxu2 %v460_v42  ;;  %1549 = vmatpush.msra.mxu3 %v588_v43  ;;  %v148_v4 = vld [vmem:[#allocation2 + $0xd0] sm:$0xff] }
  0xf1   :  { %1440 = vmatmul.f32.vlgmr.msrb.gmra.mxu1 %v5383_v31  ;;  %1490 = vmatpush.msra.mxu0 %v196_v44  ;;  %v428_v31 = vld [vmem:[#allocation2 + $0x990] sm:$0xff] }
  0xf2   :  { %1510 = vmatpush.msra.mxu1 %v324_v45  ;;  %1530 = vmatpush.msra.mxu2 %v452_v46  ;;  %v276_v5 = vld [vmem:[#allocation2 + $0x4d0] sm:$0xff] }
  0xf3   :  { %1550 = vmatpush.msra.mxu3 %v580_v47  ;;  %1491 = vmatpush.msra.mxu0 %v188_v20  ;;  %v404_v6 = vld [vmem:[#allocation2 + $0x8d0] sm:$0xff] }
  0xf4   :  { %1511 = vmatpush.msra.mxu1 %v316_v48  ;;  %1531 = vmatpush.msra.mxu2 %v444_v49  ;;  %v532_v7 = vld [vmem:[#allocation2 + $0xcd0] sm:$0xff] }
  0xf5   :  { %1551 = vmatpush.msra.mxu3 %v572_v50  ;;  %1492 = vmatpush.msra.mxu0 %v180_v25  ;;  %v140_v8 = vld [vmem:[#allocation2 + $0x90] sm:$0xff] }
  0xf6   :  { %1512 = vmatpush.msra.mxu1 %v308_v26  ;;  %1532 = vmatpush.msra.mxu2 %v436_v51  ;;  %v268_v9 = vld [vmem:[#allocation2 + $0x490] sm:$0xff] }
  0xf7   :  { %1552 = vmatpush.msra.mxu3 %v564_v52  ;;  %1493 = vmatpush.msra.mxu0 %v172_v53  ;;  %v396_v10 = vld [vmem:[#allocation2 + $0x890] sm:$0xff] }
  0xf8   :  { %1513 = vmatpush.msra.mxu1 %v300_v54  ;;  %1533 = vmatpush.msra.mxu2 %v428_v31  ;;  %v524_v11 = vld [vmem:[#allocation2 + $0xc90] sm:$0xff] }
  0xf9   :  { %1553 = vmatpush.msra.mxu3 %v556_v55  ;;  %1494 = vmatpush.msra.mxu0 %v164_v56  ;;  %v132_v12 = vld [vmem:[#allocation2 + $0x50] sm:$0xff] }
  0xfa   :  { %1514 = vmatpush.msra.mxu1 %v292_v57  ;;  %1534 = vmatpush.msra.mxu2 %v420_v58  ;;  %v260_v13 = vld [vmem:[#allocation2 + $0x450] sm:$0xff] }
  0xfb   :  { %1554 = vmatpush.msra.mxu3 %v548_v59  ;;  %1495 = vmatpush.msra.mxu0 %v156_v60  ;;  %v388_v14 = vld [vmem:[#allocation2 + $0x850] sm:$0xff] }
  0xfc   :  { %1515 = vmatpush.msra.mxu1 %v284_v61  ;;  %1535 = vmatpush.msra.mxu2 %v412_v62  ;;  %v516_v15 = vld [vmem:[#allocation2 + $0xc50] sm:$0xff] }
  0xfd   :  { %1555 = vmatpush.msra.mxu3 %v540_v63  ;;  %1496 = vmatpush.msra.mxu0 %v148_v4  ;;  %v124_v16 = vld [vmem:[#allocation2 + $0x10] sm:$0xff] }
  0xfe   :  { %1516 = vmatpush.msra.mxu1 %v276_v5  ;;  %1536 = vmatpush.msra.mxu2 %v404_v6  ;;  %v252_v17 = vld [vmem:[#allocation2 + $0x410] sm:$0xff] }
  0xff   :  { %1556 = vmatpush.msra.mxu3 %v532_v7  ;;  %1497 = vmatpush.msra.mxu0 %v140_v8  ;;  %v380_v18 = vld [vmem:[#allocation2 + $0x810] sm:$0xff] }
 0x100   :  { %1517 = vmatpush.msra.mxu1 %v268_v9  ;;  %1537 = vmatpush.msra.mxu2 %v396_v10  ;;  %v508_v19 = vld [vmem:[#allocation2 + $0xc10] sm:$0xff] }
 0x101   :  { %1557 = vmatpush.msra.mxu3 %v524_v11  ;;  %1498 = vmatpush.msra.mxu0 %v132_v12  ;;  %v756_v21 = vld [vmem:[#allocation2 + $0x13d0] sm:$0xff] }
 0x102   :  { %1518 = vmatpush.msra.mxu1 %v260_v13  ;;  %1538 = vmatpush.msra.mxu2 %v388_v14  ;;  %v884_v22 = vld [vmem:[#allocation2 + $0x17d0] sm:$0xff] }
 0x103   :  { %1558 = vmatpush.msra.mxu3 %v516_v15  ;;  %1499 = vmatpush.msra.mxu0 %v124_v16  ;;  %v1012_v23 = vld [vmem:[#allocation2 + $0x1bd0] sm:$0xff] }
 0x104   :  { %1519 = vmatpush.msra.mxu1 %v252_v17  ;;  %v1140_v24 = vld [vmem:[#allocation2 + $0x1fd0] sm:$0xff]  ;;  %1539 = vmatpush.msra.mxu2 %v380_v18 }
 0x105   :  { %1559 = vmatpush.msra.mxu3 %v508_v19  ;;  %v748_v27 = vld [vmem:[#allocation2 + $0x1390] sm:$0xff]  ;;  %1564 = vmatpush.msrb.mxu0 %v756_v21  ;;  %v245_v21 = vld [vmem:[#allocation2 + $0x3d8] sm:$0xff] }
 0x106   :  { %v876_v28 = vld [vmem:[#allocation2 + $0x1790] sm:$0xff]  ;;  %1584 = vmatpush.msrb.mxu1 %v884_v22  ;;  %1604 = vmatpush.msrb.mxu2 %v1012_v23  ;;  %v373_v22 = vld [vmem:[#allocation2 + $0x7d8] sm:$0xff]  ;;  %v5398_v23 = vld [vmem:[%s5878_s0] sm:$0xff] }
 0x107   :  { %v1004_v29 = vld [vmem:[#allocation2 + $0x1b90] sm:$0xff]  ;;  %1624 = vmatpush.msrb.mxu3 %v1140_v24  ;;  %1565 = vmatpush.msrb.mxu0 %v748_v27  ;;  %v5404_v24 = vld [vmem:[%s5878_s0 + $0x8] sm:$0xff]  ;;  %v501_v27 = vld [vmem:[#allocation2 + $0xbd8] sm:$0xff] }
 0x108   :  { %v1132_v30 = vld [vmem:[#allocation2 + $0x1f90] sm:$0xff]  ;;  %1585 = vmatpush.msrb.mxu1 %v876_v28  ;;  %1605 = vmatpush.msrb.mxu2 %v1004_v29  ;;  %v629_v28 = vld [vmem:[#allocation2 + $0xfd8] sm:$0xff] }
 0x109   :  { %v740_v32 = vld [vmem:[#allocation2 + $0x1350] sm:$0xff]  ;;  %1625 = vmatpush.msrb.mxu3 %v1132_v30  ;;  %1500 = vmatmul.f32.vlgmr.msra.gmra.mxu0 %v5398_v23  ;;  %v5416_v30 = vld [vmem:[%s5878_s0 + $0x18] sm:$0xff] }
 0x10a   :  { %v868_v33 = vld [vmem:[#allocation2 + $0x1750] sm:$0xff]  ;;  %1566 = vmatpush.msrb.mxu0 %v740_v32  ;;  %1520 = vmatmul.f32.vlgmr.msra.gmra.mxu1 %v5404_v24  ;;  %v237_v32 = vld [vmem:[#allocation2 + $0x398] sm:$0xff] }
 0x10b   :  { %v996_v0 = vld [vmem:[#allocation2 + $0x1b50] sm:$0xff]  ;;  %1586 = vmatpush.msrb.mxu1 %v868_v33  ;;  %1560 = vmatmul.f32.vlgmr.msra.gmra.mxu3 %v5416_v30  ;;  %v365_v33 = vld [vmem:[#allocation2 + $0x798] sm:$0xff] }
 0x10c   :  { %v1124_v1 = vld [vmem:[#allocation2 + $0x1f50] sm:$0xff]  ;;  %1606 = vmatpush.msrb.mxu2 %v996_v0  ;;  %v493_v0 = vld [vmem:[#allocation2 + $0xb98] sm:$0xff] }
 0x10d   :  { %v732_v34 = vld [vmem:[#allocation2 + $0x1310] sm:$0xff]  ;;  %1626 = vmatpush.msrb.mxu3 %v1124_v1  ;;  %v621_v1 = vld [vmem:[#allocation2 + $0xf98] sm:$0xff] }
 0x10e   :  { %v860_v2 = vld [vmem:[#allocation2 + $0x1710] sm:$0xff]  ;;  %1567 = vmatpush.msrb.mxu0 %v732_v34  ;;  %v229_v34 = vld [vmem:[#allocation2 + $0x358] sm:$0xff] }
 0x10f   :  { %v988_v3 = vld [vmem:[#allocation2 + $0x1b10] sm:$0xff]  ;;  %1587 = vmatpush.msrb.mxu1 %v860_v2  ;;  %v357_v2 = vld [vmem:[#allocation2 + $0x758] sm:$0xff] }
 0x110   :  { %v1116_v35 = vld [vmem:[#allocation2 + $0x1f10] sm:$0xff]  ;;  %1607 = vmatpush.msrb.mxu2 %v988_v3  ;;  %v485_v3 = vld [vmem:[#allocation2 + $0xb58] sm:$0xff] }
 0x111   :  { %v724_v36 = vld [vmem:[#allocation2 + $0x12d0] sm:$0xff]  ;;  %1627 = vmatpush.msrb.mxu3 %v1116_v35  ;;  %v613_v35 = vld [vmem:[#allocation2 + $0xf58] sm:$0xff] }
 0x112   :  { %v852_v37 = vld [vmem:[#allocation2 + $0x16d0] sm:$0xff]  ;;  %1568 = vmatpush.msrb.mxu0 %v724_v36  ;;  %v221_v36 = vld [vmem:[#allocation2 + $0x318] sm:$0xff] }
 0x113   :  { %v980_v38 = vld [vmem:[#allocation2 + $0x1ad0] sm:$0xff]  ;;  %1588 = vmatpush.msrb.mxu1 %v852_v37  ;;  %v349_v37 = vld [vmem:[#allocation2 + $0x718] sm:$0xff] }
 0x114   :  { %v1108_v39 = vld [vmem:[#allocation2 + $0x1ed0] sm:$0xff]  ;;  %1608 = vmatpush.msrb.mxu2 %v980_v38  ;;  %v477_v38 = vld [vmem:[#allocation2 + $0xb18] sm:$0xff] }
 0x115   :  { %v716_v40 = vld [vmem:[#allocation2 + $0x1290] sm:$0xff]  ;;  %1628 = vmatpush.msrb.mxu3 %v1108_v39  ;;  %v605_v39 = vld [vmem:[#allocation2 + $0xf18] sm:$0xff] }
 0x116   :  { %v844_v41 = vld [vmem:[#allocation2 + $0x1690] sm:$0xff]  ;;  %1569 = vmatpush.msrb.mxu0 %v716_v40  ;;  %v213_v40 = vld [vmem:[#allocation2 + $0x2d8] sm:$0xff] }
 0x117   :  { %v972_v42 = vld [vmem:[#allocation2 + $0x1a90] sm:$0xff]  ;;  %1589 = vmatpush.msrb.mxu1 %v844_v41  ;;  %v341_v41 = vld [vmem:[#allocation2 + $0x6d8] sm:$0xff] }
 0x118   :  { %v1100_v43 = vld [vmem:[#allocation2 + $0x1e90] sm:$0xff]  ;;  %1609 = vmatpush.msrb.mxu2 %v972_v42  ;;  %v469_v42 = vld [vmem:[#allocation2 + $0xad8] sm:$0xff] }
 0x119   :  { %v708_v44 = vld [vmem:[#allocation2 + $0x1250] sm:$0xff]  ;;  %1629 = vmatpush.msrb.mxu3 %v1100_v43  ;;  %v597_v43 = vld [vmem:[#allocation2 + $0xed8] sm:$0xff] }
 0x11a   :  { %v836_v45 = vld [vmem:[#allocation2 + $0x1650] sm:$0xff]  ;;  %1570 = vmatpush.msrb.mxu0 %v708_v44 }
 0x11b   :  { %v964_v46 = vld [vmem:[#allocation2 + $0x1a50] sm:$0xff]  ;;  %1590 = vmatpush.msrb.mxu1 %v836_v45  ;;  %v205_v45 = vld [vmem:[#allocation2 + $0x298] sm:$0xff] }
 0x11c   :  { %v1092_v47 = vld [vmem:[#allocation2 + $0x1e50] sm:$0xff]  ;;  %1610 = vmatpush.msrb.mxu2 %v964_v46  ;;  %v333_v46 = vld [vmem:[#allocation2 + $0x698] sm:$0xff] }
 0x11d   :  { %v700_v20 = vld [vmem:[#allocation2 + $0x1210] sm:$0xff]  ;;  %1630 = vmatpush.msrb.mxu3 %v1092_v47  ;;  %v461_v47 = vld [vmem:[#allocation2 + $0xa98] sm:$0xff] }
 0x11e   :  { %v828_v48 = vld [vmem:[#allocation2 + $0x1610] sm:$0xff]  ;;  %1571 = vmatpush.msrb.mxu0 %v700_v20  ;;  %v5428_v20 = vld [vmem:[%s5878_s0 + $0x20] sm:$0xff] }
 0x11f   :  { %v956_v49 = vld [vmem:[#allocation2 + $0x1a10] sm:$0xff]  ;;  %1591 = vmatpush.msrb.mxu1 %v828_v48  ;;  %v589_v48 = vld [vmem:[#allocation2 + $0xe98] sm:$0xff] }
 0x120   :  { %v1084_v50 = vld [vmem:[#allocation2 + $0x1e10] sm:$0xff]  ;;  %1611 = vmatpush.msrb.mxu2 %v956_v49  ;;  %v5434_v49 = vld [vmem:[%s5878_s0 + $0x38] sm:$0xff] }
 0x121   :  { %v692_v25 = vld [vmem:[#allocation2 + $0x11d0] sm:$0xff]  ;;  %1631 = vmatpush.msrb.mxu3 %v1084_v50  ;;  %v197_v50 = vld [vmem:[#allocation2 + $0x258] sm:$0xff] }
 0x122   :  { %v820_v26 = vld [vmem:[#allocation2 + $0x15d0] sm:$0xff]  ;;  %1572 = vmatpush.msrb.mxu0 %v692_v25  ;;  %v325_v25 = vld [vmem:[#allocation2 + $0x658] sm:$0xff] }
 0x123   :  { %v948_v51 = vld [vmem:[#allocation2 + $0x19d0] sm:$0xff]  ;;  %1592 = vmatpush.msrb.mxu1 %v820_v26  ;;  %v453_v26 = vld [vmem:[#allocation2 + $0xa58] sm:$0xff] }
 0x124   :  { %v1076_v52 = vld [vmem:[#allocation2 + $0x1dd0] sm:$0xff]  ;;  %1612 = vmatpush.msrb.mxu2 %v948_v51  ;;  %v581_v51 = vld [vmem:[#allocation2 + $0xe58] sm:$0xff] }
 0x125   :  { %v684_v53 = vld [vmem:[#allocation2 + $0x1190] sm:$0xff]  ;;  %1632 = vmatpush.msrb.mxu3 %v1076_v52  ;;  %v5440_v52 = vld [vmem:[%s5878_s0 + $0x28] sm:$0xff] }
 0x126   :  { %v812_v54 = vld [vmem:[#allocation2 + $0x1590] sm:$0xff]  ;;  %1573 = vmatpush.msrb.mxu0 %v684_v53  ;;  %v189_v53 = vld [vmem:[#allocation2 + $0x218] sm:$0xff] }
 0x127   :  { %v940_v31 = vld [vmem:[#allocation2 + $0x1990] sm:$0xff]  ;;  %1593 = vmatpush.msrb.mxu1 %v812_v54  ;;  %v317_v54 = vld [vmem:[#allocation2 + $0x618] sm:$0xff] }
 0x128   :  { %v1068_v55 = vld [vmem:[#allocation2 + $0x1d90] sm:$0xff]  ;;  %1613 = vmatpush.msrb.mxu2 %v940_v31  ;;  %v445_v31 = vld [vmem:[#allocation2 + $0xa18] sm:$0xff] }
 0x129   :  { %v676_v56 = vld [vmem:[#allocation2 + $0x1150] sm:$0xff]  ;;  %1633 = vmatpush.msrb.mxu3 %v1068_v55  ;;  %v573_v55 = vld [vmem:[#allocation2 + $0xe18] sm:$0xff] }
 0x12a   :  { %v804_v57 = vld [vmem:[#allocation2 + $0x1550] sm:$0xff]  ;;  %1574 = vmatpush.msrb.mxu0 %v676_v56  ;;  %v181_v56 = vld [vmem:[#allocation2 + $0x1d8] sm:$0xff] }
 0x12b   :  { %v932_v58 = vld [vmem:[#allocation2 + $0x1950] sm:$0xff]  ;;  %1594 = vmatpush.msrb.mxu1 %v804_v57  ;;  %v309_v57 = vld [vmem:[#allocation2 + $0x5d8] sm:$0xff] }
 0x12c   :  { %v1060_v59 = vld [vmem:[#allocation2 + $0x1d50] sm:$0xff]  ;;  %1614 = vmatpush.msrb.mxu2 %v932_v58  ;;  %v437_v58 = vld [vmem:[#allocation2 + $0x9d8] sm:$0xff] }
 0x12d   :  { %v668_v60 = vld [vmem:[#allocation2 + $0x1110] sm:$0xff]  ;;  %1634 = vmatpush.msrb.mxu3 %v1060_v59  ;;  %v565_v59 = vld [vmem:[#allocation2 + $0xdd8] sm:$0xff] }
 0x12e   :  { %v796_v61 = vld [vmem:[#allocation2 + $0x1510] sm:$0xff]  ;;  %1575 = vmatpush.msrb.mxu0 %v668_v60  ;;  %v173_v60 = vld [vmem:[#allocation2 + $0x198] sm:$0xff] }
 0x12f   :  { %v924_v62 = vld [vmem:[#allocation2 + $0x1910] sm:$0xff]  ;;  %1595 = vmatpush.msrb.mxu1 %v796_v61  ;;  %v301_v61 = vld [vmem:[#allocation2 + $0x598] sm:$0xff] }
 0x130   :  { %v1052_v63 = vld [vmem:[#allocation2 + $0x1d10] sm:$0xff]  ;;  %1615 = vmatpush.msrb.mxu2 %v924_v62  ;;  %v429_v62 = vld [vmem:[#allocation2 + $0x998] sm:$0xff] }
 0x131   :  { %v660_v4 = vld [vmem:[#allocation2 + $0x10d0] sm:$0xff]  ;;  %1635 = vmatpush.msrb.mxu3 %v1052_v63  ;;  %v557_v63 = vld [vmem:[#allocation2 + $0xd98] sm:$0xff] }
 0x132   :  { %v788_v5 = vld [vmem:[#allocation2 + $0x14d0] sm:$0xff]  ;;  %1576 = vmatpush.msrb.mxu0 %v660_v4  ;;  %v165_v4 = vld [vmem:[#allocation2 + $0x158] sm:$0xff] }
 0x133   :  { %v916_v6 = vld [vmem:[#allocation2 + $0x18d0] sm:$0xff]  ;;  %1596 = vmatpush.msrb.mxu1 %v788_v5  ;;  %v293_v5 = vld [vmem:[#allocation2 + $0x558] sm:$0xff] }
 0x134   :  { %v1044_v7 = vld [vmem:[#allocation2 + $0x1cd0] sm:$0xff]  ;;  %1616 = vmatpush.msrb.mxu2 %v916_v6  ;;  %v421_v6 = vld [vmem:[#allocation2 + $0x958] sm:$0xff] }
 0x135   :  { %v652_v8 = vld [vmem:[#allocation2 + $0x1090] sm:$0xff]  ;;  %1636 = vmatpush.msrb.mxu3 %v1044_v7  ;;  %v549_v7 = vld [vmem:[#allocation2 + $0xd58] sm:$0xff] }
 0x136   :  { %v780_v9 = vld [vmem:[#allocation2 + $0x1490] sm:$0xff]  ;;  %1577 = vmatpush.msrb.mxu0 %v652_v8  ;;  %v157_v8 = vld [vmem:[#allocation2 + $0x118] sm:$0xff] }
 0x137   :  { %v908_v10 = vld [vmem:[#allocation2 + $0x1890] sm:$0xff]  ;;  %1597 = vmatpush.msrb.mxu1 %v780_v9  ;;  %v285_v9 = vld [vmem:[#allocation2 + $0x518] sm:$0xff] }
 0x138   :  { %v1036_v11 = vld [vmem:[#allocation2 + $0x1c90] sm:$0xff]  ;;  %1617 = vmatpush.msrb.mxu2 %v908_v10  ;;  %v413_v10 = vld [vmem:[#allocation2 + $0x918] sm:$0xff] }
 0x139   :  { %v644_v12 = vld [vmem:[#allocation2 + $0x1050] sm:$0xff]  ;;  %1637 = vmatpush.msrb.mxu3 %v1036_v11  ;;  %v541_v11 = vld [vmem:[#allocation2 + $0xd18] sm:$0xff] }
 0x13a   :  { %v772_v13 = vld [vmem:[#allocation2 + $0x1450] sm:$0xff]  ;;  %1578 = vmatpush.msrb.mxu0 %v644_v12  ;;  %v149_v12 = vld [vmem:[#allocation2 + $0xd8] sm:$0xff] }
 0x13b   :  { %v900_v14 = vld [vmem:[#allocation2 + $0x1850] sm:$0xff]  ;;  %1598 = vmatpush.msrb.mxu1 %v772_v13  ;;  %v277_v13 = vld [vmem:[#allocation2 + $0x4d8] sm:$0xff] }
 0x13c   :  { %v1028_v15 = vld [vmem:[#allocation2 + $0x1c50] sm:$0xff]  ;;  %1618 = vmatpush.msrb.mxu2 %v900_v14  ;;  %v405_v14 = vld [vmem:[#allocation2 + $0x8d8] sm:$0xff] }
 0x13d   :  { %v636_v16 = vld [vmem:[#allocation2 + $0x1010] sm:$0xff]  ;;  %1638 = vmatpush.msrb.mxu3 %v1028_v15  ;;  %v533_v15 = vld [vmem:[#allocation2 + $0xcd8] sm:$0xff] }
 0x13e   :  { %v764_v17 = vld [vmem:[#allocation2 + $0x1410] sm:$0xff]  ;;  %1579 = vmatpush.msrb.mxu0 %v636_v16  ;;  %v141_v16 = vld [vmem:[#allocation2 + $0x98] sm:$0xff] }
 0x13f   :  { %v892_v18 = vld [vmem:[#allocation2 + $0x1810] sm:$0xff]  ;;  %1599 = vmatpush.msrb.mxu1 %v764_v17  ;;  %1580 = vmatmul.f32.vlgmr.msrb.gmra.mxu0 %v5428_v20  ;;  %v269_v17 = vld [vmem:[#allocation2 + $0x498] sm:$0xff] }
 0x140   :  { %v1020_v19 = vld [vmem:[#allocation2 + $0x1c10] sm:$0xff]  ;;  %1619 = vmatpush.msrb.mxu2 %v892_v18  ;;  %1644 = vmatpush.msra.mxu0 %v245_v21  ;;  %v397_v18 = vld [vmem:[#allocation2 + $0x898] sm:$0xff] }
 0x141   :  { %1639 = vmatpush.msrb.mxu3 %v1020_v19  ;;  %v5410_v29 = vld [vmem:[%s5878_s0 + $0x10] sm:$0xff]  ;;  %1664 = vmatpush.msra.mxu1 %v373_v22  ;;  %v525_v19 = vld [vmem:[#allocation2 + $0xc98] sm:$0xff] }
 0x142   :  { %1540 = vmatmul.f32.vlgmr.msra.gmra.mxu2 %v5410_v29  ;;  %1645 = vmatpush.msra.mxu0 %v237_v32  ;;  %v5422_v44 = vld [vmem:[%s5878_s0 + $0x30] sm:$0xff]  ;;  %v133_v21 = vld [vmem:[#allocation2 + $0x58] sm:$0xff] }
 0x143   :  { %1684 = vmatpush.msra.mxu2 %v501_v27  ;;  %1704 = vmatpush.msra.mxu3 %v629_v28  ;;  %v261_v22 = vld [vmem:[#allocation2 + $0x458] sm:$0xff] }
 0x144   :  { %1665 = vmatpush.msra.mxu1 %v365_v33  ;;  %1646 = vmatpush.msra.mxu0 %v229_v34  ;;  %v389_v27 = vld [vmem:[#allocation2 + $0x858] sm:$0xff] }
 0x145   :  { %1685 = vmatpush.msra.mxu2 %v493_v0  ;;  %1705 = vmatpush.msra.mxu3 %v621_v1  ;;  %v517_v28 = vld [vmem:[#allocation2 + $0xc58] sm:$0xff] }
 0x146   :  { %1666 = vmatpush.msra.mxu1 %v357_v2  ;;  %1647 = vmatpush.msra.mxu0 %v221_v36  ;;  %v125_v32 = vld [vmem:[#allocation2 + $0x18] sm:$0xff] }
 0x147   :  { %1686 = vmatpush.msra.mxu2 %v485_v3  ;;  %1706 = vmatpush.msra.mxu3 %v613_v35  ;;  %v253_v33 = vld [vmem:[#allocation2 + $0x418] sm:$0xff] }
 0x148   :  { %1667 = vmatpush.msra.mxu1 %v349_v37  ;;  %1648 = vmatpush.msra.mxu0 %v213_v40  ;;  %v381_v0 = vld [vmem:[#allocation2 + $0x818] sm:$0xff] }
 0x149   :  { %1687 = vmatpush.msra.mxu2 %v477_v38  ;;  %1707 = vmatpush.msra.mxu3 %v605_v39  ;;  %v509_v1 = vld [vmem:[#allocation2 + $0xc18] sm:$0xff] }
 0x14a   :  { %1620 = vmatmul.f32.vlgmr.msrb.gmra.mxu2 %v5422_v44  ;;  %1668 = vmatpush.msra.mxu1 %v341_v41  ;;  %v757_v34 = vld [vmem:[#allocation2 + $0x13d8] sm:$0xff] }
 0x14b   :  { %1688 = vmatpush.msra.mxu2 %v469_v42  ;;  %1708 = vmatpush.msra.mxu3 %v597_v43  ;;  %v885_v2 = vld [vmem:[#allocation2 + $0x17d8] sm:$0xff] }
 0x14c   :  { %1640 = vmatmul.f32.vlgmr.msrb.gmra.mxu3 %v5434_v49  ;;  %1649 = vmatpush.msra.mxu0 %v205_v45  ;;  %v1013_v3 = vld [vmem:[#allocation2 + $0x1bd8] sm:$0xff] }
 0x14d   :  { %1669 = vmatpush.msra.mxu1 %v333_v46  ;;  %1689 = vmatpush.msra.mxu2 %v461_v47  ;;  %v1141_v35 = vld [vmem:[#allocation2 + $0x1fd8] sm:$0xff] }
 0x14e   :  { %1709 = vmatpush.msra.mxu3 %v589_v48  ;;  %1600 = vmatmul.f32.vlgmr.msrb.gmra.mxu1 %v5440_v52  ;;  %v749_v36 = vld [vmem:[#allocation2 + $0x1398] sm:$0xff] }
 0x14f   :  { %1650 = vmatpush.msra.mxu0 %v197_v50  ;;  %1670 = vmatpush.msra.mxu1 %v325_v25  ;;  %v877_v37 = vld [vmem:[#allocation2 + $0x1798] sm:$0xff] }
 0x150   :  { %1690 = vmatpush.msra.mxu2 %v453_v26  ;;  %1710 = vmatpush.msra.mxu3 %v581_v51  ;;  %v1005_v38 = vld [vmem:[#allocation2 + $0x1b98] sm:$0xff] }
 0x151   :  { %1651 = vmatpush.msra.mxu0 %v189_v53  ;;  %1671 = vmatpush.msra.mxu1 %v317_v54  ;;  %v1133_v39 = vld [vmem:[#allocation2 + $0x1f98] sm:$0xff] }
 0x152   :  { %1691 = vmatpush.msra.mxu2 %v445_v31  ;;  %1711 = vmatpush.msra.mxu3 %v573_v55  ;;  %v741_v40 = vld [vmem:[#allocation2 + $0x1358] sm:$0xff] }
 0x153   :  { %1652 = vmatpush.msra.mxu0 %v181_v56  ;;  %1672 = vmatpush.msra.mxu1 %v309_v57  ;;  %v869_v41 = vld [vmem:[#allocation2 + $0x1758] sm:$0xff] }
 0x154   :  { %1692 = vmatpush.msra.mxu2 %v437_v58  ;;  %1712 = vmatpush.msra.mxu3 %v565_v59  ;;  %v997_v42 = vld [vmem:[#allocation2 + $0x1b58] sm:$0xff] }
 0x155   :  { %1653 = vmatpush.msra.mxu0 %v173_v60  ;;  %1673 = vmatpush.msra.mxu1 %v301_v61  ;;  %v1125_v43 = vld [vmem:[#allocation2 + $0x1f58] sm:$0xff] }
 0x156   :  { %1693 = vmatpush.msra.mxu2 %v429_v62  ;;  %1713 = vmatpush.msra.mxu3 %v557_v63  ;;  %v733_v45 = vld [vmem:[#allocation2 + $0x1318] sm:$0xff] }
 0x157   :  { %1654 = vmatpush.msra.mxu0 %v165_v4  ;;  %1674 = vmatpush.msra.mxu1 %v293_v5  ;;  %v861_v46 = vld [vmem:[#allocation2 + $0x1718] sm:$0xff] }
 0x158   :  { %1694 = vmatpush.msra.mxu2 %v421_v6  ;;  %1714 = vmatpush.msra.mxu3 %v549_v7  ;;  %v989_v47 = vld [vmem:[#allocation2 + $0x1b18] sm:$0xff] }
 0x159   :  { %1655 = vmatpush.msra.mxu0 %v157_v8  ;;  %1675 = vmatpush.msra.mxu1 %v285_v9  ;;  %v1117_v48 = vld [vmem:[#allocation2 + $0x1f18] sm:$0xff] }
 0x15a   :  { %1695 = vmatpush.msra.mxu2 %v413_v10  ;;  %1715 = vmatpush.msra.mxu3 %v541_v11  ;;  %v725_v50 = vld [vmem:[#allocation2 + $0x12d8] sm:$0xff] }
 0x15b   :  { %1656 = vmatpush.msra.mxu0 %v149_v12  ;;  %1676 = vmatpush.msra.mxu1 %v277_v13  ;;  %v853_v25 = vld [vmem:[#allocation2 + $0x16d8] sm:$0xff] }
 0x15c   :  { %1696 = vmatpush.msra.mxu2 %v405_v14  ;;  %1716 = vmatpush.msra.mxu3 %v533_v15  ;;  %v981_v26 = vld [vmem:[#allocation2 + $0x1ad8] sm:$0xff] }
 0x15d   :  { %1657 = vmatpush.msra.mxu0 %v141_v16  ;;  %1677 = vmatpush.msra.mxu1 %v269_v17  ;;  %v1109_v51 = vld [vmem:[#allocation2 + $0x1ed8] sm:$0xff] }
 0x15e   :  { %1697 = vmatpush.msra.mxu2 %v397_v18  ;;  %1717 = vmatpush.msra.mxu3 %v525_v19  ;;  %v717_v53 = vld [vmem:[#allocation2 + $0x1298] sm:$0xff] }
 0x15f   :  { %1658 = vmatpush.msra.mxu0 %v133_v21  ;;  %1678 = vmatpush.msra.mxu1 %v261_v22  ;;  %v845_v54 = vld [vmem:[#allocation2 + $0x1698] sm:$0xff] }
 0x160   :  { %1698 = vmatpush.msra.mxu2 %v389_v27  ;;  %1718 = vmatpush.msra.mxu3 %v517_v28  ;;  %v973_v31 = vld [vmem:[#allocation2 + $0x1a98] sm:$0xff] }
 0x161   :  { %1659 = vmatpush.msra.mxu0 %v125_v32  ;;  %1679 = vmatpush.msra.mxu1 %v253_v33  ;;  %v1101_v55 = vld [vmem:[#allocation2 + $0x1e98] sm:$0xff] }
 0x162   :  { %1699 = vmatpush.msra.mxu2 %v381_v0  ;;  %1719 = vmatpush.msra.mxu3 %v509_v1  ;;  %v709_v56 = vld [vmem:[#allocation2 + $0x1258] sm:$0xff] }
 0x163   :  { %1724 = vmatpush.msrb.mxu0 %v757_v34  ;;  %1744 = vmatpush.msrb.mxu1 %v885_v2  ;;  %v837_v57 = vld [vmem:[#allocation2 + $0x1658] sm:$0xff] }
 0x164   :  { %1764 = vmatpush.msrb.mxu2 %v1013_v3  ;;  %1784 = vmatpush.msrb.mxu3 %v1141_v35  ;;  %v965_v58 = vld [vmem:[#allocation2 + $0x1a58] sm:$0xff] }
 0x165   :  { %1725 = vmatpush.msrb.mxu0 %v749_v36  ;;  %1745 = vmatpush.msrb.mxu1 %v877_v37  ;;  %v1093_v59 = vld [vmem:[#allocation2 + $0x1e58] sm:$0xff] }
 0x166   :  { %1765 = vmatpush.msrb.mxu2 %v1005_v38  ;;  %1785 = vmatpush.msrb.mxu3 %v1133_v39  ;;  %v701_v60 = vld [vmem:[#allocation2 + $0x1218] sm:$0xff] }
 0x167   :  { %1726 = vmatpush.msrb.mxu0 %v741_v40  ;;  %1746 = vmatpush.msrb.mxu1 %v869_v41  ;;  %v829_v61 = vld [vmem:[#allocation2 + $0x1618] sm:$0xff]  ;;  %v246_v40 = vld [vmem:[#allocation2 + $0x3e0] sm:$0xff] }
 0x168   :  { %1766 = vmatpush.msrb.mxu2 %v997_v42  ;;  %1786 = vmatpush.msrb.mxu3 %v1125_v43  ;;  %v957_v62 = vld [vmem:[#allocation2 + $0x1a18] sm:$0xff]  ;;  %v374_v41 = vld [vmem:[#allocation2 + $0x7e0] sm:$0xff] }
 0x169   :  { %1727 = vmatpush.msrb.mxu0 %v733_v45  ;;  %1747 = vmatpush.msrb.mxu1 %v861_v46  ;;  %v1085_v63 = vld [vmem:[#allocation2 + $0x1e18] sm:$0xff]  ;;  %v502_v42 = vld [vmem:[#allocation2 + $0xbe0] sm:$0xff] }
 0x16a   :  { %1767 = vmatpush.msrb.mxu2 %v989_v47  ;;  %1787 = vmatpush.msrb.mxu3 %v1117_v48  ;;  %v693_v4 = vld [vmem:[#allocation2 + $0x11d8] sm:$0xff]  ;;  %v630_v43 = vld [vmem:[#allocation2 + $0xfe0] sm:$0xff] }
 0x16b   :  { %1728 = vmatpush.msrb.mxu0 %v725_v50  ;;  %1748 = vmatpush.msrb.mxu1 %v853_v25  ;;  %v821_v5 = vld [vmem:[#allocation2 + $0x15d8] sm:$0xff]  ;;  %v238_v45 = vld [vmem:[#allocation2 + $0x3a0] sm:$0xff] }
 0x16c   :  { %1768 = vmatpush.msrb.mxu2 %v981_v26  ;;  %1788 = vmatpush.msrb.mxu3 %v1109_v51  ;;  %v949_v6 = vld [vmem:[#allocation2 + $0x19d8] sm:$0xff]  ;;  %v366_v46 = vld [vmem:[#allocation2 + $0x7a0] sm:$0xff] }
 0x16d   :  { %1729 = vmatpush.msrb.mxu0 %v717_v53  ;;  %1749 = vmatpush.msrb.mxu1 %v845_v54  ;;  %v1077_v7 = vld [vmem:[#allocation2 + $0x1dd8] sm:$0xff]  ;;  %v494_v47 = vld [vmem:[#allocation2 + $0xba0] sm:$0xff] }
 0x16e   :  { %1769 = vmatpush.msrb.mxu2 %v973_v31  ;;  %1789 = vmatpush.msrb.mxu3 %v1101_v55  ;;  %v685_v8 = vld [vmem:[#allocation2 + $0x1198] sm:$0xff]  ;;  %v622_v48 = vld [vmem:[#allocation2 + $0xfa0] sm:$0xff] }
 0x16f   :  { %1730 = vmatpush.msrb.mxu0 %v709_v56  ;;  %1750 = vmatpush.msrb.mxu1 %v837_v57  ;;  %v813_v9 = vld [vmem:[#allocation2 + $0x1598] sm:$0xff]  ;;  %v230_v50 = vld [vmem:[#allocation2 + $0x360] sm:$0xff] }
 0x170   :  { %1770 = vmatpush.msrb.mxu2 %v965_v58  ;;  %1790 = vmatpush.msrb.mxu3 %v1093_v59  ;;  %v941_v10 = vld [vmem:[#allocation2 + $0x1998] sm:$0xff]  ;;  %v358_v25 = vld [vmem:[#allocation2 + $0x760] sm:$0xff] }
 0x171   :  { %1731 = vmatpush.msrb.mxu0 %v701_v60  ;;  %1751 = vmatpush.msrb.mxu1 %v829_v61  ;;  %v1069_v11 = vld [vmem:[#allocation2 + $0x1d98] sm:$0xff]  ;;  %v222_v26 = vld [vmem:[#allocation2 + $0x320] sm:$0xff] }
 0x172   :  { %1771 = vmatpush.msrb.mxu2 %v957_v62  ;;  %1791 = vmatpush.msrb.mxu3 %v1085_v63  ;;  %v677_v12 = vld [vmem:[#allocation2 + $0x1158] sm:$0xff]  ;;  %v606_v51 = vld [vmem:[#allocation2 + $0xf20] sm:$0xff] }
 0x173   :  { %1732 = vmatpush.msrb.mxu0 %v693_v4  ;;  %1752 = vmatpush.msrb.mxu1 %v821_v5  ;;  %v805_v13 = vld [vmem:[#allocation2 + $0x1558] sm:$0xff]  ;;  %v214_v53 = vld [vmem:[#allocation2 + $0x2e0] sm:$0xff] }
 0x174   :  { %1772 = vmatpush.msrb.mxu2 %v949_v6  ;;  %1792 = vmatpush.msrb.mxu3 %v1077_v7  ;;  %v933_v14 = vld [vmem:[#allocation2 + $0x1958] sm:$0xff]  ;;  %v342_v54 = vld [vmem:[#allocation2 + $0x6e0] sm:$0xff] }
 0x175   :  { %1733 = vmatpush.msrb.mxu0 %v685_v8  ;;  %1753 = vmatpush.msrb.mxu1 %v813_v9  ;;  %v1061_v15 = vld [vmem:[#allocation2 + $0x1d58] sm:$0xff]  ;;  %v470_v31 = vld [vmem:[#allocation2 + $0xae0] sm:$0xff] }
 0x176   :  { %1773 = vmatpush.msrb.mxu2 %v941_v10  ;;  %1793 = vmatpush.msrb.mxu3 %v1069_v11  ;;  %v669_v16 = vld [vmem:[#allocation2 + $0x1118] sm:$0xff]  ;;  %v598_v55 = vld [vmem:[#allocation2 + $0xee0] sm:$0xff] }
 0x177   :  { %v797_v17 = vld [vmem:[#allocation2 + $0x1518] sm:$0xff]  ;;  %1734 = vmatpush.msrb.mxu0 %v677_v12  ;;  %1754 = vmatpush.msrb.mxu1 %v805_v13  ;;  %v206_v56 = vld [vmem:[#allocation2 + $0x2a0] sm:$0xff] }
 0x178   :  { %v925_v18 = vld [vmem:[#allocation2 + $0x1918] sm:$0xff]  ;;  %1774 = vmatpush.msrb.mxu2 %v933_v14  ;;  %1794 = vmatpush.msrb.mxu3 %v1061_v15  ;;  %v334_v57 = vld [vmem:[#allocation2 + $0x6a0] sm:$0xff] }
 0x179   :  { %v1053_v19 = vld [vmem:[#allocation2 + $0x1d18] sm:$0xff]  ;;  %1735 = vmatpush.msrb.mxu0 %v669_v16  ;;  %1755 = vmatpush.msrb.mxu1 %v797_v17  ;;  %v462_v58 = vld [vmem:[#allocation2 + $0xaa0] sm:$0xff] }
 0x17a   :  { %v661_v21 = vld [vmem:[#allocation2 + $0x10d8] sm:$0xff]  ;;  %1775 = vmatpush.msrb.mxu2 %v925_v18  ;;  %1795 = vmatpush.msrb.mxu3 %v1053_v19  ;;  %v590_v59 = vld [vmem:[#allocation2 + $0xea0] sm:$0xff] }
 0x17b   :  { %v789_v22 = vld [vmem:[#allocation2 + $0x14d8] sm:$0xff]  ;;  %1736 = vmatpush.msrb.mxu0 %v661_v21  ;;  %1680 = vmatmul.f32.vlgmr.msra.gmra.mxu1 %v5404_v24  ;;  %v614_v24 = vld [vmem:[#allocation2 + $0xf60] sm:$0xff] }
 0x17c   :  { %v917_v27 = vld [vmem:[#allocation2 + $0x18d8] sm:$0xff]  ;;  %1756 = vmatpush.msrb.mxu1 %v789_v22  ;;  %1660 = vmatmul.f32.vlgmr.msra.gmra.mxu0 %v5398_v23  ;;  %v486_v23 = vld [vmem:[#allocation2 + $0xb60] sm:$0xff] }
 0x17d   :  { %v1045_v28 = vld [vmem:[#allocation2 + $0x1cd8] sm:$0xff]  ;;  %1776 = vmatpush.msrb.mxu2 %v917_v27  ;;  %1720 = vmatmul.f32.vlgmr.msra.gmra.mxu3 %v5416_v30  ;;  %v478_v30 = vld [vmem:[#allocation2 + $0xb20] sm:$0xff] }
 0x17e   :  { %v653_v32 = vld [vmem:[#allocation2 + $0x1098] sm:$0xff]  ;;  %1796 = vmatpush.msrb.mxu3 %v1045_v28  ;;  %1700 = vmatmul.f32.vlgmr.msra.gmra.mxu2 %v5410_v29  ;;  %v350_v29 = vld [vmem:[#allocation2 + $0x720] sm:$0xff] }
 0x17f   :  { %v781_v33 = vld [vmem:[#allocation2 + $0x1498] sm:$0xff]  ;;  %1737 = vmatpush.msrb.mxu0 %v653_v32  ;;  %v198_v60 = vld [vmem:[#allocation2 + $0x260] sm:$0xff] }
 0x180   :  { %v909_v0 = vld [vmem:[#allocation2 + $0x1898] sm:$0xff]  ;;  %1757 = vmatpush.msrb.mxu1 %v781_v33  ;;  %v326_v61 = vld [vmem:[#allocation2 + $0x660] sm:$0xff] }
 0x181   :  { %v1037_v1 = vld [vmem:[#allocation2 + $0x1c98] sm:$0xff]  ;;  %1777 = vmatpush.msrb.mxu2 %v909_v0  ;;  %v454_v62 = vld [vmem:[#allocation2 + $0xa60] sm:$0xff] }
 0x182   :  { %v645_v34 = vld [vmem:[#allocation2 + $0x1058] sm:$0xff]  ;;  %1797 = vmatpush.msrb.mxu3 %v1037_v1  ;;  %v582_v63 = vld [vmem:[#allocation2 + $0xe60] sm:$0xff] }
 0x183   :  { %v773_v2 = vld [vmem:[#allocation2 + $0x1458] sm:$0xff]  ;;  %1738 = vmatpush.msrb.mxu0 %v645_v34  ;;  %v318_v4 = vld [vmem:[#allocation2 + $0x620] sm:$0xff] }
 0x184   :  { %v901_v3 = vld [vmem:[#allocation2 + $0x1858] sm:$0xff]  ;;  %1758 = vmatpush.msrb.mxu1 %v773_v2  ;;  %v446_v5 = vld [vmem:[#allocation2 + $0xa20] sm:$0xff] }
 0x185   :  { %v1029_v35 = vld [vmem:[#allocation2 + $0x1c58] sm:$0xff]  ;;  %1778 = vmatpush.msrb.mxu2 %v901_v3  ;;  %v574_v6 = vld [vmem:[#allocation2 + $0xe20] sm:$0xff] }
 0x186   :  { %v637_v36 = vld [vmem:[#allocation2 + $0x1018] sm:$0xff]  ;;  %1798 = vmatpush.msrb.mxu3 %v1029_v35  ;;  %v438_v7 = vld [vmem:[#allocation2 + $0x9e0] sm:$0xff] }
 0x187   :  { %v765_v37 = vld [vmem:[#allocation2 + $0x1418] sm:$0xff]  ;;  %1739 = vmatpush.msrb.mxu0 %v637_v36  ;;  %v566_v8 = vld [vmem:[#allocation2 + $0xde0] sm:$0xff] }
 0x188   :  { %v893_v38 = vld [vmem:[#allocation2 + $0x1818] sm:$0xff]  ;;  %1759 = vmatpush.msrb.mxu1 %v765_v37  ;;  %1740 = vmatmul.f32.vlgmr.msrb.gmra.mxu0 %v5428_v20  ;;  %v182_v20 = vld [vmem:[#allocation2 + $0x1e0] sm:$0xff] }
 0x189   :  { %v1021_v39 = vld [vmem:[#allocation2 + $0x1c18] sm:$0xff]  ;;  %1779 = vmatpush.msrb.mxu2 %v893_v38  ;;  %1804 = vmatpush.msra.mxu0 %v246_v40  ;;  %v174_v9 = vld [vmem:[#allocation2 + $0x1a0] sm:$0xff] }
 0x18a   :  { %1799 = vmatpush.msrb.mxu3 %v1021_v39  ;;  %1824 = vmatpush.msra.mxu1 %v374_v41  ;;  %v302_v10 = vld [vmem:[#allocation2 + $0x5a0] sm:$0xff] }
 0x18b   :  { %1844 = vmatpush.msra.mxu2 %v502_v42  ;;  %1805 = vmatpush.msra.mxu0 %v238_v45  ;;  %v558_v11 = vld [vmem:[#allocation2 + $0xda0] sm:$0xff] }
 0x18c   :  { %1864 = vmatpush.msra.mxu3 %v630_v43  ;;  %1825 = vmatpush.msra.mxu1 %v366_v46  ;;  %v166_v12 = vld [vmem:[#allocation2 + $0x160] sm:$0xff] }
 0x18d   :  { %1845 = vmatpush.msra.mxu2 %v494_v47  ;;  %1806 = vmatpush.msra.mxu0 %v230_v50  ;;  %v294_v13 = vld [vmem:[#allocation2 + $0x560] sm:$0xff] }
 0x18e   :  { %1865 = vmatpush.msra.mxu3 %v622_v48  ;;  %1826 = vmatpush.msra.mxu1 %v358_v25  ;;  %v422_v14 = vld [vmem:[#allocation2 + $0x960] sm:$0xff] }
 0x18f   :  { %1846 = vmatpush.msra.mxu2 %v486_v23  ;;  %1807 = vmatpush.msra.mxu0 %v222_v26  ;;  %v550_v15 = vld [vmem:[#allocation2 + $0xd60] sm:$0xff] }
 0x190   :  { %1866 = vmatpush.msra.mxu3 %v614_v24  ;;  %1827 = vmatpush.msra.mxu1 %v350_v29  ;;  %v158_v16 = vld [vmem:[#allocation2 + $0x120] sm:$0xff] }
 0x191   :  { %1847 = vmatpush.msra.mxu2 %v478_v30  ;;  %1808 = vmatpush.msra.mxu0 %v214_v53  ;;  %v286_v17 = vld [vmem:[#allocation2 + $0x520] sm:$0xff] }
 0x192   :  { %1867 = vmatpush.msra.mxu3 %v606_v51  ;;  %1780 = vmatmul.f32.vlgmr.msrb.gmra.mxu2 %v5422_v44  ;;  %v190_v44 = vld [vmem:[#allocation2 + $0x220] sm:$0xff] }
 0x193   :  { %1828 = vmatpush.msra.mxu1 %v342_v54  ;;  %1848 = vmatpush.msra.mxu2 %v470_v31  ;;  %v414_v18 = vld [vmem:[#allocation2 + $0x920] sm:$0xff] }
 0x194   :  { %1868 = vmatpush.msra.mxu3 %v598_v55  ;;  %1809 = vmatpush.msra.mxu0 %v206_v56  ;;  %v542_v19 = vld [vmem:[#allocation2 + $0xd20] sm:$0xff] }
 0x195   :  { %1800 = vmatmul.f32.vlgmr.msrb.gmra.mxu3 %v5434_v49  ;;  %1829 = vmatpush.msra.mxu1 %v334_v57  ;;  %v310_v49 = vld [vmem:[#allocation2 + $0x5e0] sm:$0xff] }
 0x196   :  { %1849 = vmatpush.msra.mxu2 %v462_v58  ;;  %1869 = vmatpush.msra.mxu3 %v590_v59  ;;  %v150_v21 = vld [vmem:[#allocation2 + $0xe0] sm:$0xff] }
 0x197   :  { %1760 = vmatmul.f32.vlgmr.msrb.gmra.mxu1 %v5440_v52  ;;  %1810 = vmatpush.msra.mxu0 %v198_v60  ;;  %v430_v52 = vld [vmem:[#allocation2 + $0x9a0] sm:$0xff] }
 0x198   :  { %1830 = vmatpush.msra.mxu1 %v326_v61  ;;  %1850 = vmatpush.msra.mxu2 %v454_v62  ;;  %v278_v22 = vld [vmem:[#allocation2 + $0x4e0] sm:$0xff] }
 0x199   :  { %1870 = vmatpush.msra.mxu3 %v582_v63  ;;  %1811 = vmatpush.msra.mxu0 %v190_v44  ;;  %v406_v27 = vld [vmem:[#allocation2 + $0x8e0] sm:$0xff] }
 0x19a   :  { %1831 = vmatpush.msra.mxu1 %v318_v4  ;;  %1851 = vmatpush.msra.mxu2 %v446_v5  ;;  %v534_v28 = vld [vmem:[#allocation2 + $0xce0] sm:$0xff] }
 0x19b   :  { %1871 = vmatpush.msra.mxu3 %v574_v6  ;;  %1812 = vmatpush.msra.mxu0 %v182_v20  ;;  %v142_v32 = vld [vmem:[#allocation2 + $0xa0] sm:$0xff] }
 0x19c   :  { %1832 = vmatpush.msra.mxu1 %v310_v49  ;;  %1852 = vmatpush.msra.mxu2 %v438_v7  ;;  %v270_v33 = vld [vmem:[#allocation2 + $0x4a0] sm:$0xff] }
 0x19d   :  { %1872 = vmatpush.msra.mxu3 %v566_v8  ;;  %1813 = vmatpush.msra.mxu0 %v174_v9  ;;  %v398_v0 = vld [vmem:[#allocation2 + $0x8a0] sm:$0xff] }
 0x19e   :  { %1833 = vmatpush.msra.mxu1 %v302_v10  ;;  %1853 = vmatpush.msra.mxu2 %v430_v52  ;;  %v526_v1 = vld [vmem:[#allocation2 + $0xca0] sm:$0xff] }
 0x19f   :  { %1873 = vmatpush.msra.mxu3 %v558_v11  ;;  %1814 = vmatpush.msra.mxu0 %v166_v12  ;;  %v134_v34 = vld [vmem:[#allocation2 + $0x60] sm:$0xff] }
 0x1a0   :  { %1834 = vmatpush.msra.mxu1 %v294_v13  ;;  %1854 = vmatpush.msra.mxu2 %v422_v14  ;;  %v262_v2 = vld [vmem:[#allocation2 + $0x460] sm:$0xff] }
 0x1a1   :  { %1874 = vmatpush.msra.mxu3 %v550_v15  ;;  %1815 = vmatpush.msra.mxu0 %v158_v16  ;;  %v390_v3 = vld [vmem:[#allocation2 + $0x860] sm:$0xff] }
 0x1a2   :  { %1835 = vmatpush.msra.mxu1 %v286_v17  ;;  %1855 = vmatpush.msra.mxu2 %v414_v18  ;;  %v518_v35 = vld [vmem:[#allocation2 + $0xc60] sm:$0xff] }
 0x1a3   :  { %1875 = vmatpush.msra.mxu3 %v542_v19  ;;  %1816 = vmatpush.msra.mxu0 %v150_v21  ;;  %v126_v36 = vld [vmem:[#allocation2 + $0x20] sm:$0xff] }
 0x1a4   :  { %1836 = vmatpush.msra.mxu1 %v278_v22  ;;  %1856 = vmatpush.msra.mxu2 %v406_v27  ;;  %v254_v37 = vld [vmem:[#allocation2 + $0x420] sm:$0xff] }
 0x1a5   :  { %1876 = vmatpush.msra.mxu3 %v534_v28  ;;  %1817 = vmatpush.msra.mxu0 %v142_v32  ;;  %v382_v38 = vld [vmem:[#allocation2 + $0x820] sm:$0xff] }
 0x1a6   :  { %1837 = vmatpush.msra.mxu1 %v270_v33  ;;  %1857 = vmatpush.msra.mxu2 %v398_v0  ;;  %v510_v39 = vld [vmem:[#allocation2 + $0xc20] sm:$0xff] }
 0x1a7   :  { %1877 = vmatpush.msra.mxu3 %v526_v1  ;;  %1818 = vmatpush.msra.mxu0 %v134_v34  ;;  %v758_v40 = vld [vmem:[#allocation2 + $0x13e0] sm:$0xff] }
 0x1a8   :  { %1838 = vmatpush.msra.mxu1 %v262_v2  ;;  %1858 = vmatpush.msra.mxu2 %v390_v3  ;;  %v886_v41 = vld [vmem:[#allocation2 + $0x17e0] sm:$0xff] }
 0x1a9   :  { %1878 = vmatpush.msra.mxu3 %v518_v35  ;;  %1819 = vmatpush.msra.mxu0 %v126_v36  ;;  %v1014_v42 = vld [vmem:[#allocation2 + $0x1be0] sm:$0xff] }
 0x1aa   :  { %1839 = vmatpush.msra.mxu1 %v254_v37  ;;  %v1142_v43 = vld [vmem:[#allocation2 + $0x1fe0] sm:$0xff]  ;;  %1859 = vmatpush.msra.mxu2 %v382_v38 }
 0x1ab   :  { %1879 = vmatpush.msra.mxu3 %v510_v39  ;;  %v750_v45 = vld [vmem:[#allocation2 + $0x13a0] sm:$0xff]  ;;  %1884 = vmatpush.msrb.mxu0 %v758_v40  ;;  %v247_v40 = vld [vmem:[#allocation2 + $0x3e8] sm:$0xff] }
 0x1ac   :  { %v878_v46 = vld [vmem:[#allocation2 + $0x17a0] sm:$0xff]  ;;  %1904 = vmatpush.msrb.mxu1 %v886_v41  ;;  %1924 = vmatpush.msrb.mxu2 %v1014_v42  ;;  %v375_v41 = vld [vmem:[#allocation2 + $0x7e8] sm:$0xff] }
 0x1ad   :  { %v1006_v47 = vld [vmem:[#allocation2 + $0x1ba0] sm:$0xff]  ;;  %1944 = vmatpush.msrb.mxu3 %v1142_v43  ;;  %1885 = vmatpush.msrb.mxu0 %v750_v45  ;;  %v5460_v43 = vld [vmem:[%s5878_s0 + $0x8] sm:$0xff] }
 0x1ae   :  { %v1134_v48 = vld [vmem:[#allocation2 + $0x1fa0] sm:$0xff]  ;;  %1905 = vmatpush.msrb.mxu1 %v878_v46  ;;  %1925 = vmatpush.msrb.mxu2 %v1006_v47  ;;  %v503_v45 = vld [vmem:[#allocation2 + $0xbe8] sm:$0xff]  ;;  %v5466_v47 = vld [vmem:[%s5878_s0 + $0x10] sm:$0xff] }
 0x1af   :  { %v742_v50 = vld [vmem:[#allocation2 + $0x1360] sm:$0xff]  ;;  %1945 = vmatpush.msrb.mxu3 %v1134_v48  ;;  %1840 = vmatmul.f32.vlgmr.msra.gmra.mxu1 %v5460_v43  ;;  %v631_v46 = vld [vmem:[#allocation2 + $0xfe8] sm:$0xff]  ;;  %v5472_v48 = vld [vmem:[%s5878_s0 + $0x18] sm:$0xff] }
 0x1b0   :  { %v870_v25 = vld [vmem:[#allocation2 + $0x1760] sm:$0xff]  ;;  %1886 = vmatpush.msrb.mxu0 %v742_v50  ;;  %1860 = vmatmul.f32.vlgmr.msra.gmra.mxu2 %v5466_v47  ;;  %v239_v50 = vld [vmem:[#allocation2 + $0x3a8] sm:$0xff] }
 0x1b1   :  { %v998_v23 = vld [vmem:[#allocation2 + $0x1b60] sm:$0xff]  ;;  %1906 = vmatpush.msrb.mxu1 %v870_v25  ;;  %1880 = vmatmul.f32.vlgmr.msra.gmra.mxu3 %v5472_v48  ;;  %v367_v25 = vld [vmem:[#allocation2 + $0x7a8] sm:$0xff] }
 0x1b2   :  { %v1126_v24 = vld [vmem:[#allocation2 + $0x1f60] sm:$0xff]  ;;  %1926 = vmatpush.msrb.mxu2 %v998_v23  ;;  %v495_v23 = vld [vmem:[#allocation2 + $0xba8] sm:$0xff] }
 0x1b3   :  { %v734_v26 = vld [vmem:[#allocation2 + $0x1320] sm:$0xff]  ;;  %1946 = vmatpush.msrb.mxu3 %v1126_v24  ;;  %v623_v24 = vld [vmem:[#allocation2 + $0xfa8] sm:$0xff] }
 0x1b4   :  { %v862_v29 = vld [vmem:[#allocation2 + $0x1720] sm:$0xff]  ;;  %1887 = vmatpush.msrb.mxu0 %v734_v26  ;;  %v231_v26 = vld [vmem:[#allocation2 + $0x368] sm:$0xff] }
 0x1b5   :  { %v990_v30 = vld [vmem:[#allocation2 + $0x1b20] sm:$0xff]  ;;  %1907 = vmatpush.msrb.mxu1 %v862_v29  ;;  %v359_v29 = vld [vmem:[#allocation2 + $0x768] sm:$0xff] }
 0x1b6   :  { %v1118_v51 = vld [vmem:[#allocation2 + $0x1f20] sm:$0xff]  ;;  %1927 = vmatpush.msrb.mxu2 %v990_v30  ;;  %v487_v30 = vld [vmem:[#allocation2 + $0xb68] sm:$0xff] }
 0x1b7   :  { %v726_v53 = vld [vmem:[#allocation2 + $0x12e0] sm:$0xff]  ;;  %1947 = vmatpush.msrb.mxu3 %v1118_v51  ;;  %v615_v51 = vld [vmem:[#allocation2 + $0xf68] sm:$0xff] }
 0x1b8   :  { %v854_v54 = vld [vmem:[#allocation2 + $0x16e0] sm:$0xff]  ;;  %1888 = vmatpush.msrb.mxu0 %v726_v53  ;;  %v223_v53 = vld [vmem:[#allocation2 + $0x328] sm:$0xff] }
 0x1b9   :  { %v982_v31 = vld [vmem:[#allocation2 + $0x1ae0] sm:$0xff]  ;;  %1908 = vmatpush.msrb.mxu1 %v854_v54  ;;  %v351_v54 = vld [vmem:[#allocation2 + $0x728] sm:$0xff] }
 0x1ba   :  { %v1110_v55 = vld [vmem:[#allocation2 + $0x1ee0] sm:$0xff]  ;;  %1928 = vmatpush.msrb.mxu2 %v982_v31  ;;  %v479_v31 = vld [vmem:[#allocation2 + $0xb28] sm:$0xff] }
 0x1bb   :  { %v718_v56 = vld [vmem:[#allocation2 + $0x12a0] sm:$0xff]  ;;  %1948 = vmatpush.msrb.mxu3 %v1110_v55  ;;  %v607_v55 = vld [vmem:[#allocation2 + $0xf28] sm:$0xff] }
 0x1bc   :  { %v846_v57 = vld [vmem:[#allocation2 + $0x16a0] sm:$0xff]  ;;  %1889 = vmatpush.msrb.mxu0 %v718_v56  ;;  %v215_v56 = vld [vmem:[#allocation2 + $0x2e8] sm:$0xff] }
 0x1bd   :  { %v974_v58 = vld [vmem:[#allocation2 + $0x1aa0] sm:$0xff]  ;;  %1909 = vmatpush.msrb.mxu1 %v846_v57  ;;  %v343_v57 = vld [vmem:[#allocation2 + $0x6e8] sm:$0xff] }
 0x1be   :  { %v1102_v59 = vld [vmem:[#allocation2 + $0x1ea0] sm:$0xff]  ;;  %1929 = vmatpush.msrb.mxu2 %v974_v58  ;;  %v471_v58 = vld [vmem:[#allocation2 + $0xae8] sm:$0xff] }
 0x1bf   :  { %v710_v60 = vld [vmem:[#allocation2 + $0x1260] sm:$0xff]  ;;  %1949 = vmatpush.msrb.mxu3 %v1102_v59  ;;  %v599_v59 = vld [vmem:[#allocation2 + $0xee8] sm:$0xff] }
 0x1c0   :  { %v838_v61 = vld [vmem:[#allocation2 + $0x1660] sm:$0xff]  ;;  %1890 = vmatpush.msrb.mxu0 %v710_v60  ;;  %v5478_v60 = vld [vmem:[%s5878_s0 + $0x30] sm:$0xff] }
 0x1c1   :  { %v966_v62 = vld [vmem:[#allocation2 + $0x1a60] sm:$0xff]  ;;  %1910 = vmatpush.msrb.mxu1 %v838_v61  ;;  %v207_v61 = vld [vmem:[#allocation2 + $0x2a8] sm:$0xff] }
 0x1c2   :  { %v1094_v63 = vld [vmem:[#allocation2 + $0x1e60] sm:$0xff]  ;;  %1930 = vmatpush.msrb.mxu2 %v966_v62  ;;  %v335_v62 = vld [vmem:[#allocation2 + $0x6a8] sm:$0xff] }
 0x1c3   :  { %v702_v44 = vld [vmem:[#allocation2 + $0x1220] sm:$0xff]  ;;  %1950 = vmatpush.msrb.mxu3 %v1094_v63  ;;  %v463_v63 = vld [vmem:[#allocation2 + $0xaa8] sm:$0xff] }
 0x1c4   :  { %v830_v4 = vld [vmem:[#allocation2 + $0x1620] sm:$0xff]  ;;  %1891 = vmatpush.msrb.mxu0 %v702_v44 }
 0x1c5   :  { %v958_v5 = vld [vmem:[#allocation2 + $0x1a20] sm:$0xff]  ;;  %1911 = vmatpush.msrb.mxu1 %v830_v4  ;;  %v591_v4 = vld [vmem:[#allocation2 + $0xea8] sm:$0xff] }
 0x1c6   :  { %v1086_v6 = vld [vmem:[#allocation2 + $0x1e20] sm:$0xff]  ;;  %1931 = vmatpush.msrb.mxu2 %v958_v5  ;;  %v5490_v5 = vld [vmem:[%s5878_s0 + $0x38] sm:$0xff] }
 0x1c7   :  { %v694_v20 = vld [vmem:[#allocation2 + $0x11e0] sm:$0xff]  ;;  %1951 = vmatpush.msrb.mxu3 %v1086_v6  ;;  %v199_v6 = vld [vmem:[#allocation2 + $0x268] sm:$0xff] }
 0x1c8   :  { %v822_v49 = vld [vmem:[#allocation2 + $0x15e0] sm:$0xff]  ;;  %1892 = vmatpush.msrb.mxu0 %v694_v20  ;;  %v327_v20 = vld [vmem:[#allocation2 + $0x668] sm:$0xff] }
 0x1c9   :  { %v950_v7 = vld [vmem:[#allocation2 + $0x19e0] sm:$0xff]  ;;  %1912 = vmatpush.msrb.mxu1 %v822_v49  ;;  %v455_v49 = vld [vmem:[#allocation2 + $0xa68] sm:$0xff] }
 0x1ca   :  { %v1078_v8 = vld [vmem:[#allocation2 + $0x1de0] sm:$0xff]  ;;  %1932 = vmatpush.msrb.mxu2 %v950_v7  ;;  %v583_v7 = vld [vmem:[#allocation2 + $0xe68] sm:$0xff] }
 0x1cb   :  { %v686_v9 = vld [vmem:[#allocation2 + $0x11a0] sm:$0xff]  ;;  %1952 = vmatpush.msrb.mxu3 %v1078_v8  ;;  %v5496_v8 = vld [vmem:[%s5878_s0 + $0x28] sm:$0xff] }
 0x1cc   :  { %v814_v10 = vld [vmem:[#allocation2 + $0x15a0] sm:$0xff]  ;;  %1893 = vmatpush.msrb.mxu0 %v686_v9  ;;  %v191_v9 = vld [vmem:[#allocation2 + $0x228] sm:$0xff] }
 0x1cd   :  { %v942_v52 = vld [vmem:[#allocation2 + $0x19a0] sm:$0xff]  ;;  %1913 = vmatpush.msrb.mxu1 %v814_v10  ;;  %v319_v10 = vld [vmem:[#allocation2 + $0x628] sm:$0xff] }
 0x1ce   :  { %v1070_v11 = vld [vmem:[#allocation2 + $0x1da0] sm:$0xff]  ;;  %1933 = vmatpush.msrb.mxu2 %v942_v52  ;;  %v447_v52 = vld [vmem:[#allocation2 + $0xa28] sm:$0xff] }
 0x1cf   :  { %v678_v12 = vld [vmem:[#allocation2 + $0x1160] sm:$0xff]  ;;  %1953 = vmatpush.msrb.mxu3 %v1070_v11  ;;  %v575_v11 = vld [vmem:[#allocation2 + $0xe28] sm:$0xff] }
 0x1d0   :  { %v806_v13 = vld [vmem:[#allocation2 + $0x1560] sm:$0xff]  ;;  %1894 = vmatpush.msrb.mxu0 %v678_v12  ;;  %v183_v12 = vld [vmem:[#allocation2 + $0x1e8] sm:$0xff] }
 0x1d1   :  { %v934_v14 = vld [vmem:[#allocation2 + $0x1960] sm:$0xff]  ;;  %1914 = vmatpush.msrb.mxu1 %v806_v13  ;;  %v311_v13 = vld [vmem:[#allocation2 + $0x5e8] sm:$0xff] }
 0x1d2   :  { %v1062_v15 = vld [vmem:[#allocation2 + $0x1d60] sm:$0xff]  ;;  %1934 = vmatpush.msrb.mxu2 %v934_v14  ;;  %v439_v14 = vld [vmem:[#allocation2 + $0x9e8] sm:$0xff] }
 0x1d3   :  { %v670_v16 = vld [vmem:[#allocation2 + $0x1120] sm:$0xff]  ;;  %1954 = vmatpush.msrb.mxu3 %v1062_v15  ;;  %v567_v15 = vld [vmem:[#allocation2 + $0xde8] sm:$0xff] }
 0x1d4   :  { %v798_v17 = vld [vmem:[#allocation2 + $0x1520] sm:$0xff]  ;;  %1895 = vmatpush.msrb.mxu0 %v670_v16  ;;  %v175_v16 = vld [vmem:[#allocation2 + $0x1a8] sm:$0xff] }
 0x1d5   :  { %v926_v18 = vld [vmem:[#allocation2 + $0x1920] sm:$0xff]  ;;  %1915 = vmatpush.msrb.mxu1 %v798_v17  ;;  %v303_v17 = vld [vmem:[#allocation2 + $0x5a8] sm:$0xff] }
 0x1d6   :  { %v1054_v19 = vld [vmem:[#allocation2 + $0x1d20] sm:$0xff]  ;;  %1935 = vmatpush.msrb.mxu2 %v926_v18  ;;  %v431_v18 = vld [vmem:[#allocation2 + $0x9a8] sm:$0xff] }
 0x1d7   :  { %v662_v21 = vld [vmem:[#allocation2 + $0x10e0] sm:$0xff]  ;;  %1955 = vmatpush.msrb.mxu3 %v1054_v19  ;;  %v559_v19 = vld [vmem:[#allocation2 + $0xda8] sm:$0xff] }
 0x1d8   :  { %v790_v22 = vld [vmem:[#allocation2 + $0x14e0] sm:$0xff]  ;;  %1896 = vmatpush.msrb.mxu0 %v662_v21  ;;  %v167_v21 = vld [vmem:[#allocation2 + $0x168] sm:$0xff] }
 0x1d9   :  { %v918_v27 = vld [vmem:[#allocation2 + $0x18e0] sm:$0xff]  ;;  %1916 = vmatpush.msrb.mxu1 %v790_v22  ;;  %v295_v22 = vld [vmem:[#allocation2 + $0x568] sm:$0xff] }
 0x1da   :  { %v1046_v28 = vld [vmem:[#allocation2 + $0x1ce0] sm:$0xff]  ;;  %1936 = vmatpush.msrb.mxu2 %v918_v27  ;;  %v423_v27 = vld [vmem:[#allocation2 + $0x968] sm:$0xff] }
 0x1db   :  { %v654_v32 = vld [vmem:[#allocation2 + $0x10a0] sm:$0xff]  ;;  %1956 = vmatpush.msrb.mxu3 %v1046_v28  ;;  %v551_v28 = vld [vmem:[#allocation2 + $0xd68] sm:$0xff] }
 0x1dc   :  { %v782_v33 = vld [vmem:[#allocation2 + $0x14a0] sm:$0xff]  ;;  %1897 = vmatpush.msrb.mxu0 %v654_v32  ;;  %v159_v32 = vld [vmem:[#allocation2 + $0x128] sm:$0xff] }
 0x1dd   :  { %v910_v0 = vld [vmem:[#allocation2 + $0x18a0] sm:$0xff]  ;;  %1917 = vmatpush.msrb.mxu1 %v782_v33  ;;  %v287_v33 = vld [vmem:[#allocation2 + $0x528] sm:$0xff] }
 0x1de   :  { %v1038_v1 = vld [vmem:[#allocation2 + $0x1ca0] sm:$0xff]  ;;  %1937 = vmatpush.msrb.mxu2 %v910_v0  ;;  %v415_v0 = vld [vmem:[#allocation2 + $0x928] sm:$0xff] }
 0x1df   :  { %v646_v34 = vld [vmem:[#allocation2 + $0x1060] sm:$0xff]  ;;  %1957 = vmatpush.msrb.mxu3 %v1038_v1  ;;  %v543_v1 = vld [vmem:[#allocation2 + $0xd28] sm:$0xff] }
 0x1e0   :  { %v774_v2 = vld [vmem:[#allocation2 + $0x1460] sm:$0xff]  ;;  %1898 = vmatpush.msrb.mxu0 %v646_v34  ;;  %v151_v34 = vld [vmem:[#allocation2 + $0xe8] sm:$0xff] }
 0x1e1   :  { %v902_v3 = vld [vmem:[#allocation2 + $0x1860] sm:$0xff]  ;;  %1918 = vmatpush.msrb.mxu1 %v774_v2  ;;  %v279_v2 = vld [vmem:[#allocation2 + $0x4e8] sm:$0xff] }
 0x1e2   :  { %v1030_v35 = vld [vmem:[#allocation2 + $0x1c60] sm:$0xff]  ;;  %1938 = vmatpush.msrb.mxu2 %v902_v3  ;;  %v407_v3 = vld [vmem:[#allocation2 + $0x8e8] sm:$0xff] }
 0x1e3   :  { %v638_v36 = vld [vmem:[#allocation2 + $0x1020] sm:$0xff]  ;;  %1958 = vmatpush.msrb.mxu3 %v1030_v35  ;;  %v535_v35 = vld [vmem:[#allocation2 + $0xce8] sm:$0xff] }
 0x1e4   :  { %v766_v37 = vld [vmem:[#allocation2 + $0x1420] sm:$0xff]  ;;  %1899 = vmatpush.msrb.mxu0 %v638_v36  ;;  %v143_v36 = vld [vmem:[#allocation2 + $0xa8] sm:$0xff] }
 0x1e5   :  { %v894_v38 = vld [vmem:[#allocation2 + $0x1820] sm:$0xff]  ;;  %1919 = vmatpush.msrb.mxu1 %v766_v37  ;;  %v271_v37 = vld [vmem:[#allocation2 + $0x4a8] sm:$0xff] }
 0x1e6   :  { %v1022_v39 = vld [vmem:[#allocation2 + $0x1c20] sm:$0xff]  ;;  %1939 = vmatpush.msrb.mxu2 %v894_v38  ;;  %1920 = vmatmul.f32.vlgmr.msrb.gmra.mxu1 %v5496_v8  ;;  %v399_v38 = vld [vmem:[#allocation2 + $0x8a8] sm:$0xff] }
 0x1e7   :  { %1959 = vmatpush.msrb.mxu3 %v1022_v39  ;;  %v5454_v42 = vld [vmem:[%s5878_s0] sm:$0xff]  ;;  %1984 = vmatpush.msra.mxu1 %v375_v41  ;;  %v527_v39 = vld [vmem:[#allocation2 + $0xca8] sm:$0xff] }
 0x1e8   :  { %1820 = vmatmul.f32.vlgmr.msra.gmra.mxu0 %v5454_v42  ;;  %2004 = vmatpush.msra.mxu2 %v503_v45  ;;  %v5484_v44 = vld [vmem:[%s5878_s0 + $0x20] sm:$0xff]  ;;  %v263_v41 = vld [vmem:[#allocation2 + $0x468] sm:$0xff] }
 0x1e9   :  { %1964 = vmatpush.msra.mxu0 %v247_v40  ;;  %2024 = vmatpush.msra.mxu3 %v631_v46  ;;  %v135_v40 = vld [vmem:[#allocation2 + $0x68] sm:$0xff] }
 0x1ea   :  { %1985 = vmatpush.msra.mxu1 %v367_v25  ;;  %2005 = vmatpush.msra.mxu2 %v495_v23  ;;  %v391_v45 = vld [vmem:[#allocation2 + $0x868] sm:$0xff] }
 0x1eb   :  { %1965 = vmatpush.msra.mxu0 %v239_v50  ;;  %2025 = vmatpush.msra.mxu3 %v623_v24  ;;  %v519_v46 = vld [vmem:[#allocation2 + $0xc68] sm:$0xff] }
 0x1ec   :  { %1986 = vmatpush.msra.mxu1 %v359_v29  ;;  %2006 = vmatpush.msra.mxu2 %v487_v30  ;;  %v127_v50 = vld [vmem:[#allocation2 + $0x28] sm:$0xff] }
 0x1ed   :  { %1966 = vmatpush.msra.mxu0 %v231_v26  ;;  %2026 = vmatpush.msra.mxu3 %v615_v51  ;;  %v255_v25 = vld [vmem:[#allocation2 + $0x428] sm:$0xff] }
 0x1ee   :  { %1987 = vmatpush.msra.mxu1 %v351_v54  ;;  %2007 = vmatpush.msra.mxu2 %v479_v31  ;;  %v383_v23 = vld [vmem:[#allocation2 + $0x828] sm:$0xff] }
 0x1ef   :  { %1967 = vmatpush.msra.mxu0 %v223_v53  ;;  %2027 = vmatpush.msra.mxu3 %v607_v55  ;;  %v511_v24 = vld [vmem:[#allocation2 + $0xc28] sm:$0xff] }
 0x1f0   :  { %1940 = vmatmul.f32.vlgmr.msrb.gmra.mxu2 %v5478_v60  ;;  %1988 = vmatpush.msra.mxu1 %v343_v57  ;;  %v759_v26 = vld [vmem:[#allocation2 + $0x13e8] sm:$0xff] }
 0x1f1   :  { %1968 = vmatpush.msra.mxu0 %v215_v56  ;;  %2008 = vmatpush.msra.mxu2 %v471_v58  ;;  %v887_v29 = vld [vmem:[#allocation2 + $0x17e8] sm:$0xff] }
 0x1f2   :  { %2028 = vmatpush.msra.mxu3 %v599_v59  ;;  %1900 = vmatmul.f32.vlgmr.msrb.gmra.mxu0 %v5484_v44  ;;  %v1015_v30 = vld [vmem:[#allocation2 + $0x1be8] sm:$0xff] }
 0x1f3   :  { %1960 = vmatmul.f32.vlgmr.msrb.gmra.mxu3 %v5490_v5  ;;  %1969 = vmatpush.msra.mxu0 %v207_v61  ;;  %v1143_v51 = vld [vmem:[#allocation2 + $0x1fe8] sm:$0xff] }
 0x1f4   :  { %1989 = vmatpush.msra.mxu1 %v335_v62  ;;  %2009 = vmatpush.msra.mxu2 %v463_v63  ;;  %v751_v53 = vld [vmem:[#allocation2 + $0x13a8] sm:$0xff] }
 0x1f5   :  { %2029 = vmatpush.msra.mxu3 %v591_v4  ;;  %1970 = vmatpush.msra.mxu0 %v199_v6  ;;  %v879_v54 = vld [vmem:[#allocation2 + $0x17a8] sm:$0xff] }
 0x1f6   :  { %1990 = vmatpush.msra.mxu1 %v327_v20  ;;  %2010 = vmatpush.msra.mxu2 %v455_v49  ;;  %v1007_v31 = vld [vmem:[#allocation2 + $0x1ba8] sm:$0xff] }
 0x1f7   :  { %2030 = vmatpush.msra.mxu3 %v583_v7  ;;  %1971 = vmatpush.msra.mxu0 %v191_v9  ;;  %v1135_v55 = vld [vmem:[#allocation2 + $0x1fa8] sm:$0xff] }
 0x1f8   :  { %1991 = vmatpush.msra.mxu1 %v319_v10  ;;  %2011 = vmatpush.msra.mxu2 %v447_v52  ;;  %v743_v56 = vld [vmem:[#allocation2 + $0x1368] sm:$0xff] }
 0x1f9   :  { %2031 = vmatpush.msra.mxu3 %v575_v11  ;;  %1972 = vmatpush.msra.mxu0 %v183_v12  ;;  %v871_v57 = vld [vmem:[#allocation2 + $0x1768] sm:$0xff] }
 0x1fa   :  { %1992 = vmatpush.msra.mxu1 %v311_v13  ;;  %2012 = vmatpush.msra.mxu2 %v439_v14  ;;  %v999_v58 = vld [vmem:[#allocation2 + $0x1b68] sm:$0xff] }
 0x1fb   :  { %2032 = vmatpush.msra.mxu3 %v567_v15  ;;  %1973 = vmatpush.msra.mxu0 %v175_v16  ;;  %v1127_v59 = vld [vmem:[#allocation2 + $0x1f68] sm:$0xff] }
 0x1fc   :  { %1993 = vmatpush.msra.mxu1 %v303_v17  ;;  %2013 = vmatpush.msra.mxu2 %v431_v18  ;;  %v735_v61 = vld [vmem:[#allocation2 + $0x1328] sm:$0xff] }
 0x1fd   :  { %2033 = vmatpush.msra.mxu3 %v559_v19  ;;  %1974 = vmatpush.msra.mxu0 %v167_v21  ;;  %v863_v62 = vld [vmem:[#allocation2 + $0x1728] sm:$0xff] }
 0x1fe   :  { %1994 = vmatpush.msra.mxu1 %v295_v22  ;;  %2014 = vmatpush.msra.mxu2 %v423_v27  ;;  %v991_v63 = vld [vmem:[#allocation2 + $0x1b28] sm:$0xff] }
 0x1ff   :  { %2034 = vmatpush.msra.mxu3 %v551_v28  ;;  %1975 = vmatpush.msra.mxu0 %v159_v32  ;;  %v1119_v4 = vld [vmem:[#allocation2 + $0x1f28] sm:$0xff] }
 0x200   :  { %1995 = vmatpush.msra.mxu1 %v287_v33  ;;  %2015 = vmatpush.msra.mxu2 %v415_v0  ;;  %v727_v6 = vld [vmem:[#allocation2 + $0x12e8] sm:$0xff] }
 0x201   :  { %2035 = vmatpush.msra.mxu3 %v543_v1  ;;  %1976 = vmatpush.msra.mxu0 %v151_v34  ;;  %v855_v20 = vld [vmem:[#allocation2 + $0x16e8] sm:$0xff] }
 0x202   :  { %1996 = vmatpush.msra.mxu1 %v279_v2  ;;  %2016 = vmatpush.msra.mxu2 %v407_v3  ;;  %v983_v49 = vld [vmem:[#allocation2 + $0x1ae8] sm:$0xff] }
 0x203   :  { %2036 = vmatpush.msra.mxu3 %v535_v35  ;;  %1977 = vmatpush.msra.mxu0 %v143_v36  ;;  %v1111_v7 = vld [vmem:[#allocation2 + $0x1ee8] sm:$0xff] }
 0x204   :  { %1997 = vmatpush.msra.mxu1 %v271_v37  ;;  %2017 = vmatpush.msra.mxu2 %v399_v38  ;;  %v719_v9 = vld [vmem:[#allocation2 + $0x12a8] sm:$0xff] }
 0x205   :  { %2037 = vmatpush.msra.mxu3 %v527_v39  ;;  %1978 = vmatpush.msra.mxu0 %v135_v40  ;;  %v847_v10 = vld [vmem:[#allocation2 + $0x16a8] sm:$0xff] }
 0x206   :  { %1998 = vmatpush.msra.mxu1 %v263_v41  ;;  %2018 = vmatpush.msra.mxu2 %v391_v45  ;;  %v975_v52 = vld [vmem:[#allocation2 + $0x1aa8] sm:$0xff] }
 0x207   :  { %2038 = vmatpush.msra.mxu3 %v519_v46  ;;  %1979 = vmatpush.msra.mxu0 %v127_v50  ;;  %v1103_v11 = vld [vmem:[#allocation2 + $0x1ea8] sm:$0xff] }
 0x208   :  { %1999 = vmatpush.msra.mxu1 %v255_v25  ;;  %2019 = vmatpush.msra.mxu2 %v383_v23  ;;  %v711_v12 = vld [vmem:[#allocation2 + $0x1268] sm:$0xff] }
 0x209   :  { %2039 = vmatpush.msra.mxu3 %v511_v24  ;;  %2044 = vmatpush.msrb.mxu0 %v759_v26  ;;  %v839_v13 = vld [vmem:[#allocation2 + $0x1668] sm:$0xff] }
 0x20a   :  { %2064 = vmatpush.msrb.mxu1 %v887_v29  ;;  %2084 = vmatpush.msrb.mxu2 %v1015_v30  ;;  %v967_v14 = vld [vmem:[#allocation2 + $0x1a68] sm:$0xff] }
 0x20b   :  { %2104 = vmatpush.msrb.mxu3 %v1143_v51  ;;  %2045 = vmatpush.msrb.mxu0 %v751_v53  ;;  %v1095_v15 = vld [vmem:[#allocation2 + $0x1e68] sm:$0xff] }
 0x20c   :  { %2065 = vmatpush.msrb.mxu1 %v879_v54  ;;  %2085 = vmatpush.msrb.mxu2 %v1007_v31  ;;  %v703_v16 = vld [vmem:[#allocation2 + $0x1228] sm:$0xff] }
 0x20d   :  { %2105 = vmatpush.msrb.mxu3 %v1135_v55  ;;  %2046 = vmatpush.msrb.mxu0 %v743_v56  ;;  %v831_v17 = vld [vmem:[#allocation2 + $0x1628] sm:$0xff]  ;;  %v248_v56 = vld [vmem:[#allocation2 + $0x3f0] sm:$0xff] }
 0x20e   :  { %2066 = vmatpush.msrb.mxu1 %v871_v57  ;;  %2086 = vmatpush.msrb.mxu2 %v999_v58  ;;  %v959_v18 = vld [vmem:[#allocation2 + $0x1a28] sm:$0xff]  ;;  %v376_v57 = vld [vmem:[#allocation2 + $0x7f0] sm:$0xff] }
 0x20f   :  { %2106 = vmatpush.msrb.mxu3 %v1127_v59  ;;  %2047 = vmatpush.msrb.mxu0 %v735_v61  ;;  %v1087_v19 = vld [vmem:[#allocation2 + $0x1e28] sm:$0xff]  ;;  %v504_v58 = vld [vmem:[#allocation2 + $0xbf0] sm:$0xff] }
 0x210   :  { %2067 = vmatpush.msrb.mxu1 %v863_v62  ;;  %2087 = vmatpush.msrb.mxu2 %v991_v63  ;;  %v695_v21 = vld [vmem:[#allocation2 + $0x11e8] sm:$0xff]  ;;  %v632_v59 = vld [vmem:[#allocation2 + $0xff0] sm:$0xff] }
 0x211   :  { %2107 = vmatpush.msrb.mxu3 %v1119_v4  ;;  %2048 = vmatpush.msrb.mxu0 %v727_v6  ;;  %v823_v22 = vld [vmem:[#allocation2 + $0x15e8] sm:$0xff]  ;;  %v240_v61 = vld [vmem:[#allocation2 + $0x3b0] sm:$0xff] }
 0x212   :  { %2068 = vmatpush.msrb.mxu1 %v855_v20  ;;  %2088 = vmatpush.msrb.mxu2 %v983_v49  ;;  %v951_v27 = vld [vmem:[#allocation2 + $0x19e8] sm:$0xff]  ;;  %v368_v62 = vld [vmem:[#allocation2 + $0x7b0] sm:$0xff] }
 0x213   :  { %2108 = vmatpush.msrb.mxu3 %v1111_v7  ;;  %2049 = vmatpush.msrb.mxu0 %v719_v9  ;;  %v1079_v28 = vld [vmem:[#allocation2 + $0x1de8] sm:$0xff]  ;;  %v496_v63 = vld [vmem:[#allocation2 + $0xbb0] sm:$0xff] }
 0x214   :  { %2069 = vmatpush.msrb.mxu1 %v847_v10  ;;  %2089 = vmatpush.msrb.mxu2 %v975_v52  ;;  %v687_v32 = vld [vmem:[#allocation2 + $0x11a8] sm:$0xff]  ;;  %v624_v4 = vld [vmem:[#allocation2 + $0xfb0] sm:$0xff] }
 0x215   :  { %2109 = vmatpush.msrb.mxu3 %v1103_v11  ;;  %2050 = vmatpush.msrb.mxu0 %v711_v12  ;;  %v815_v33 = vld [vmem:[#allocation2 + $0x15a8] sm:$0xff]  ;;  %v232_v6 = vld [vmem:[#allocation2 + $0x370] sm:$0xff] }
 0x216   :  { %2070 = vmatpush.msrb.mxu1 %v839_v13  ;;  %2090 = vmatpush.msrb.mxu2 %v967_v14  ;;  %v943_v0 = vld [vmem:[#allocation2 + $0x19a8] sm:$0xff]  ;;  %v360_v20 = vld [vmem:[#allocation2 + $0x770] sm:$0xff] }
 0x217   :  { %2110 = vmatpush.msrb.mxu3 %v1095_v15  ;;  %2051 = vmatpush.msrb.mxu0 %v703_v16  ;;  %v1071_v1 = vld [vmem:[#allocation2 + $0x1da8] sm:$0xff]  ;;  %v488_v49 = vld [vmem:[#allocation2 + $0xb70] sm:$0xff] }
 0x218   :  { %2071 = vmatpush.msrb.mxu1 %v831_v17  ;;  %2091 = vmatpush.msrb.mxu2 %v959_v18  ;;  %v679_v34 = vld [vmem:[#allocation2 + $0x1168] sm:$0xff]  ;;  %v224_v7 = vld [vmem:[#allocation2 + $0x330] sm:$0xff] }
 0x219   :  { %2111 = vmatpush.msrb.mxu3 %v1087_v19  ;;  %2052 = vmatpush.msrb.mxu0 %v695_v21  ;;  %v807_v2 = vld [vmem:[#allocation2 + $0x1568] sm:$0xff]  ;;  %v352_v9 = vld [vmem:[#allocation2 + $0x730] sm:$0xff] }
 0x21a   :  { %2072 = vmatpush.msrb.mxu1 %v823_v22  ;;  %2092 = vmatpush.msrb.mxu2 %v951_v27  ;;  %v935_v3 = vld [vmem:[#allocation2 + $0x1968] sm:$0xff]  ;;  %v480_v10 = vld [vmem:[#allocation2 + $0xb30] sm:$0xff] }
 0x21b   :  { %2112 = vmatpush.msrb.mxu3 %v1079_v28  ;;  %2053 = vmatpush.msrb.mxu0 %v687_v32  ;;  %v1063_v35 = vld [vmem:[#allocation2 + $0x1d68] sm:$0xff]  ;;  %v608_v52 = vld [vmem:[#allocation2 + $0xf30] sm:$0xff] }
 0x21c   :  { %2073 = vmatpush.msrb.mxu1 %v815_v33  ;;  %2093 = vmatpush.msrb.mxu2 %v943_v0  ;;  %v671_v36 = vld [vmem:[#allocation2 + $0x1128] sm:$0xff]  ;;  %v216_v11 = vld [vmem:[#allocation2 + $0x2f0] sm:$0xff] }
 0x21d   :  { %2113 = vmatpush.msrb.mxu3 %v1071_v1  ;;  %v799_v37 = vld [vmem:[#allocation2 + $0x1528] sm:$0xff]  ;;  %2054 = vmatpush.msrb.mxu0 %v679_v34  ;;  %v344_v12 = vld [vmem:[#allocation2 + $0x6f0] sm:$0xff] }
 0x21e   :  { %2074 = vmatpush.msrb.mxu1 %v807_v2  ;;  %v927_v38 = vld [vmem:[#allocation2 + $0x1928] sm:$0xff]  ;;  %2094 = vmatpush.msrb.mxu2 %v935_v3  ;;  %v472_v13 = vld [vmem:[#allocation2 + $0xaf0] sm:$0xff] }
 0x21f   :  { %v1055_v39 = vld [vmem:[#allocation2 + $0x1d28] sm:$0xff]  ;;  %2114 = vmatpush.msrb.mxu3 %v1063_v35  ;;  %2055 = vmatpush.msrb.mxu0 %v671_v36  ;;  %v600_v14 = vld [vmem:[#allocation2 + $0xef0] sm:$0xff] }
 0x220   :  { %v663_v40 = vld [vmem:[#allocation2 + $0x10e8] sm:$0xff]  ;;  %2075 = vmatpush.msrb.mxu1 %v799_v37  ;;  %2095 = vmatpush.msrb.mxu2 %v927_v38  ;;  %v208_v15 = vld [vmem:[#allocation2 + $0x2b0] sm:$0xff] }
 0x221   :  { %v791_v41 = vld [vmem:[#allocation2 + $0x14e8] sm:$0xff]  ;;  %2115 = vmatpush.msrb.mxu3 %v1055_v39  ;;  %2056 = vmatpush.msrb.mxu0 %v663_v40  ;;  %v336_v16 = vld [vmem:[#allocation2 + $0x6b0] sm:$0xff] }
 0x222   :  { %v919_v45 = vld [vmem:[#allocation2 + $0x18e8] sm:$0xff]  ;;  %2076 = vmatpush.msrb.mxu1 %v791_v41  ;;  %1980 = vmatmul.f32.vlgmr.msra.gmra.mxu0 %v5454_v42  ;;  %v464_v17 = vld [vmem:[#allocation2 + $0xab0] sm:$0xff] }
 0x223   :  { %v1047_v46 = vld [vmem:[#allocation2 + $0x1ce8] sm:$0xff]  ;;  %2096 = vmatpush.msrb.mxu2 %v919_v45  ;;  %2000 = vmatmul.f32.vlgmr.msra.gmra.mxu1 %v5460_v43  ;;  %v616_v43 = vld [vmem:[#allocation2 + $0xf70] sm:$0xff] }
 0x224   :  { %v655_v50 = vld [vmem:[#allocation2 + $0x10a8] sm:$0xff]  ;;  %2116 = vmatpush.msrb.mxu3 %v1047_v46  ;;  %2020 = vmatmul.f32.vlgmr.msra.gmra.mxu2 %v5466_v47  ;;  %v592_v18 = vld [vmem:[#allocation2 + $0xeb0] sm:$0xff] }
 0x225   :  { %v783_v25 = vld [vmem:[#allocation2 + $0x14a8] sm:$0xff]  ;;  %2057 = vmatpush.msrb.mxu0 %v655_v50  ;;  %2040 = vmatmul.f32.vlgmr.msra.gmra.mxu3 %v5472_v48  ;;  %v200_v19 = vld [vmem:[#allocation2 + $0x270] sm:$0xff] }
 0x226   :  { %v911_v23 = vld [vmem:[#allocation2 + $0x18a8] sm:$0xff]  ;;  %2077 = vmatpush.msrb.mxu1 %v783_v25  ;;  %v328_v21 = vld [vmem:[#allocation2 + $0x670] sm:$0xff] }
 0x227   :  { %v1039_v24 = vld [vmem:[#allocation2 + $0x1ca8] sm:$0xff]  ;;  %2097 = vmatpush.msrb.mxu2 %v911_v23  ;;  %v456_v22 = vld [vmem:[#allocation2 + $0xa70] sm:$0xff] }
 0x228   :  { %v647_v26 = vld [vmem:[#allocation2 + $0x1068] sm:$0xff]  ;;  %2117 = vmatpush.msrb.mxu3 %v1039_v24  ;;  %v584_v27 = vld [vmem:[#allocation2 + $0xe70] sm:$0xff] }
 0x229   :  { %v775_v29 = vld [vmem:[#allocation2 + $0x1468] sm:$0xff]  ;;  %2058 = vmatpush.msrb.mxu0 %v647_v26  ;;  %v192_v28 = vld [vmem:[#allocation2 + $0x230] sm:$0xff] }
 0x22a   :  { %v903_v30 = vld [vmem:[#allocation2 + $0x1868] sm:$0xff]  ;;  %2078 = vmatpush.msrb.mxu1 %v775_v29  ;;  %v320_v32 = vld [vmem:[#allocation2 + $0x630] sm:$0xff] }
 0x22b   :  { %v1031_v51 = vld [vmem:[#allocation2 + $0x1c68] sm:$0xff]  ;;  %2098 = vmatpush.msrb.mxu2 %v903_v30  ;;  %v448_v33 = vld [vmem:[#allocation2 + $0xa30] sm:$0xff] }
 0x22c   :  { %v639_v53 = vld [vmem:[#allocation2 + $0x1028] sm:$0xff]  ;;  %2118 = vmatpush.msrb.mxu3 %v1031_v51  ;;  %v576_v0 = vld [vmem:[#allocation2 + $0xe30] sm:$0xff] }
 0x22d   :  { %v767_v54 = vld [vmem:[#allocation2 + $0x1428] sm:$0xff]  ;;  %2059 = vmatpush.msrb.mxu0 %v639_v53  ;;  %v184_v1 = vld [vmem:[#allocation2 + $0x1f0] sm:$0xff] }
 0x22e   :  { %v895_v31 = vld [vmem:[#allocation2 + $0x1828] sm:$0xff]  ;;  %2079 = vmatpush.msrb.mxu1 %v767_v54  ;;  %2060 = vmatmul.f32.vlgmr.msrb.gmra.mxu0 %v5484_v44  ;;  %v312_v34 = vld [vmem:[#allocation2 + $0x5f0] sm:$0xff] }
 0x22f   :  { %v1023_v55 = vld [vmem:[#allocation2 + $0x1c28] sm:$0xff]  ;;  %2099 = vmatpush.msrb.mxu2 %v895_v31  ;;  %2124 = vmatpush.msra.mxu0 %v248_v56  ;;  %v440_v2 = vld [vmem:[#allocation2 + $0x9f0] sm:$0xff] }
 0x230   :  { %2119 = vmatpush.msrb.mxu3 %v1023_v55  ;;  %2144 = vmatpush.msra.mxu1 %v376_v57  ;;  %v568_v3 = vld [vmem:[#allocation2 + $0xdf0] sm:$0xff] }
 0x231   :  { %2164 = vmatpush.msra.mxu2 %v504_v58  ;;  %2125 = vmatpush.msra.mxu0 %v240_v61  ;;  %v176_v35 = vld [vmem:[#allocation2 + $0x1b0] sm:$0xff] }
 0x232   :  { %2184 = vmatpush.msra.mxu3 %v632_v59  ;;  %2145 = vmatpush.msra.mxu1 %v368_v62  ;;  %v304_v36 = vld [vmem:[#allocation2 + $0x5b0] sm:$0xff] }
 0x233   :  { %2165 = vmatpush.msra.mxu2 %v496_v63  ;;  %2126 = vmatpush.msra.mxu0 %v232_v6  ;;  %v432_v37 = vld [vmem:[#allocation2 + $0x9b0] sm:$0xff] }
 0x234   :  { %2185 = vmatpush.msra.mxu3 %v624_v4  ;;  %2146 = vmatpush.msra.mxu1 %v360_v20  ;;  %v560_v38 = vld [vmem:[#allocation2 + $0xdb0] sm:$0xff] }
 0x235   :  { %2166 = vmatpush.msra.mxu2 %v488_v49  ;;  %2127 = vmatpush.msra.mxu0 %v224_v7  ;;  %v168_v39 = vld [vmem:[#allocation2 + $0x170] sm:$0xff] }
 0x236   :  { %2186 = vmatpush.msra.mxu3 %v616_v43  ;;  %2147 = vmatpush.msra.mxu1 %v352_v9  ;;  %v296_v40 = vld [vmem:[#allocation2 + $0x570] sm:$0xff] }
 0x237   :  { %2167 = vmatpush.msra.mxu2 %v480_v10  ;;  %2128 = vmatpush.msra.mxu0 %v216_v11  ;;  %v424_v41 = vld [vmem:[#allocation2 + $0x970] sm:$0xff] }
 0x238   :  { %2187 = vmatpush.msra.mxu3 %v608_v52  ;;  %2100 = vmatmul.f32.vlgmr.msrb.gmra.mxu2 %v5478_v60  ;;  %v552_v45 = vld [vmem:[#allocation2 + $0xd70] sm:$0xff] }
 0x239   :  { %2148 = vmatpush.msra.mxu1 %v344_v12  ;;  %2168 = vmatpush.msra.mxu2 %v472_v13  ;;  %v160_v46 = vld [vmem:[#allocation2 + $0x130] sm:$0xff] }
 0x23a   :  { %2188 = vmatpush.msra.mxu3 %v600_v14  ;;  %2129 = vmatpush.msra.mxu0 %v208_v15  ;;  %v288_v50 = vld [vmem:[#allocation2 + $0x530] sm:$0xff] }
 0x23b   :  { %2120 = vmatmul.f32.vlgmr.msrb.gmra.mxu3 %v5490_v5  ;;  %2149 = vmatpush.msra.mxu1 %v336_v16  ;;  %v416_v25 = vld [vmem:[#allocation2 + $0x930] sm:$0xff] }
 0x23c   :  { %2169 = vmatpush.msra.mxu2 %v464_v17  ;;  %2189 = vmatpush.msra.mxu3 %v592_v18  ;;  %v544_v23 = vld [vmem:[#allocation2 + $0xd30] sm:$0xff] }
 0x23d   :  { %2080 = vmatmul.f32.vlgmr.msrb.gmra.mxu1 %v5496_v8  ;;  %2130 = vmatpush.msra.mxu0 %v200_v19  ;;  %v152_v24 = vld [vmem:[#allocation2 + $0xf0] sm:$0xff] }
 0x23e   :  { %2150 = vmatpush.msra.mxu1 %v328_v21  ;;  %2170 = vmatpush.msra.mxu2 %v456_v22  ;;  %v280_v26 = vld [vmem:[#allocation2 + $0x4f0] sm:$0xff] }
 0x23f   :  { %2190 = vmatpush.msra.mxu3 %v584_v27  ;;  %2131 = vmatpush.msra.mxu0 %v192_v28  ;;  %v408_v29 = vld [vmem:[#allocation2 + $0x8f0] sm:$0xff] }
 0x240   :  { %2151 = vmatpush.msra.mxu1 %v320_v32  ;;  %2171 = vmatpush.msra.mxu2 %v448_v33  ;;  %v536_v30 = vld [vmem:[#allocation2 + $0xcf0] sm:$0xff] }
 0x241   :  { %2191 = vmatpush.msra.mxu3 %v576_v0  ;;  %2132 = vmatpush.msra.mxu0 %v184_v1  ;;  %v144_v51 = vld [vmem:[#allocation2 + $0xb0] sm:$0xff] }
 0x242   :  { %2152 = vmatpush.msra.mxu1 %v312_v34  ;;  %2172 = vmatpush.msra.mxu2 %v440_v2  ;;  %v272_v53 = vld [vmem:[#allocation2 + $0x4b0] sm:$0xff] }
 0x243   :  { %2192 = vmatpush.msra.mxu3 %v568_v3  ;;  %2133 = vmatpush.msra.mxu0 %v176_v35  ;;  %v400_v54 = vld [vmem:[#allocation2 + $0x8b0] sm:$0xff] }
 0x244   :  { %2153 = vmatpush.msra.mxu1 %v304_v36  ;;  %2173 = vmatpush.msra.mxu2 %v432_v37  ;;  %v528_v31 = vld [vmem:[#allocation2 + $0xcb0] sm:$0xff] }
 0x245   :  { %2193 = vmatpush.msra.mxu3 %v560_v38  ;;  %2134 = vmatpush.msra.mxu0 %v168_v39  ;;  %v136_v55 = vld [vmem:[#allocation2 + $0x70] sm:$0xff] }
 0x246   :  { %2154 = vmatpush.msra.mxu1 %v296_v40  ;;  %2174 = vmatpush.msra.mxu2 %v424_v41  ;;  %v264_v56 = vld [vmem:[#allocation2 + $0x470] sm:$0xff] }
 0x247   :  { %2194 = vmatpush.msra.mxu3 %v552_v45  ;;  %2135 = vmatpush.msra.mxu0 %v160_v46  ;;  %v392_v57 = vld [vmem:[#allocation2 + $0x870] sm:$0xff] }
 0x248   :  { %2155 = vmatpush.msra.mxu1 %v288_v50  ;;  %2175 = vmatpush.msra.mxu2 %v416_v25  ;;  %v520_v58 = vld [vmem:[#allocation2 + $0xc70] sm:$0xff] }
 0x249   :  { %2195 = vmatpush.msra.mxu3 %v544_v23  ;;  %2136 = vmatpush.msra.mxu0 %v152_v24  ;;  %v128_v59 = vld [vmem:[#allocation2 + $0x30] sm:$0xff] }
 0x24a   :  { %2156 = vmatpush.msra.mxu1 %v280_v26  ;;  %2176 = vmatpush.msra.mxu2 %v408_v29  ;;  %v256_v61 = vld [vmem:[#allocation2 + $0x430] sm:$0xff] }
 0x24b   :  { %2196 = vmatpush.msra.mxu3 %v536_v30  ;;  %2137 = vmatpush.msra.mxu0 %v144_v51  ;;  %v384_v62 = vld [vmem:[#allocation2 + $0x830] sm:$0xff] }
 0x24c   :  { %2157 = vmatpush.msra.mxu1 %v272_v53  ;;  %2177 = vmatpush.msra.mxu2 %v400_v54  ;;  %v512_v63 = vld [vmem:[#allocation2 + $0xc30] sm:$0xff] }
 0x24d   :  { %2197 = vmatpush.msra.mxu3 %v528_v31  ;;  %2138 = vmatpush.msra.mxu0 %v136_v55  ;;  %v760_v4 = vld [vmem:[#allocation2 + $0x13f0] sm:$0xff] }
 0x24e   :  { %2158 = vmatpush.msra.mxu1 %v264_v56  ;;  %2178 = vmatpush.msra.mxu2 %v392_v57  ;;  %v888_v6 = vld [vmem:[#allocation2 + $0x17f0] sm:$0xff] }
 0x24f   :  { %2198 = vmatpush.msra.mxu3 %v520_v58  ;;  %2139 = vmatpush.msra.mxu0 %v128_v59  ;;  %v1016_v20 = vld [vmem:[#allocation2 + $0x1bf0] sm:$0xff] }
 0x250   :  { %2159 = vmatpush.msra.mxu1 %v256_v61  ;;  %v1144_v49 = vld [vmem:[#allocation2 + $0x1ff0] sm:$0xff]  ;;  %2179 = vmatpush.msra.mxu2 %v384_v62 }
 0x251   :  { %2199 = vmatpush.msra.mxu3 %v512_v63  ;;  %v752_v43 = vld [vmem:[#allocation2 + $0x13b0] sm:$0xff]  ;;  %2204 = vmatpush.msrb.mxu0 %v760_v4 }
 0x252   :  { %v880_v7 = vld [vmem:[#allocation2 + $0x17b0] sm:$0xff]  ;;  %2224 = vmatpush.msrb.mxu1 %v888_v6  ;;  %2244 = vmatpush.msrb.mxu2 %v1016_v20 }
 0x253   :  { %v1008_v9 = vld [vmem:[#allocation2 + $0x1bb0] sm:$0xff]  ;;  %2264 = vmatpush.msrb.mxu3 %v1144_v49  ;;  %2205 = vmatpush.msrb.mxu0 %v752_v43 }
 0x254   :  { %v1136_v10 = vld [vmem:[#allocation2 + $0x1fb0] sm:$0xff]  ;;  %2225 = vmatpush.msrb.mxu1 %v880_v7  ;;  %2245 = vmatpush.msrb.mxu2 %v1008_v9  ;;  %v249_v7 = vld [vmem:[#allocation2 + $0x3f8] sm:$0xff] }
 0x255   :  { %v744_v52 = vld [vmem:[#allocation2 + $0x1370] sm:$0xff]  ;;  %2265 = vmatpush.msrb.mxu3 %v1136_v10  ;;  %2180 = vmatmul.f32.vlgmr.msra.gmra.mxu2 %v5466_v47  ;;  %v5513_v47 = vld [vmem:[%s5878_s0 + $0x8] sm:$0xff]  ;;  %v377_v9 = vld [vmem:[#allocation2 + $0x7f8] sm:$0xff] }
 0x256   :  { %v872_v11 = vld [vmem:[#allocation2 + $0x1770] sm:$0xff]  ;;  %2206 = vmatpush.msrb.mxu0 %v744_v52  ;;  %2200 = vmatmul.f32.vlgmr.msra.gmra.mxu3 %v5472_v48  ;;  %v505_v10 = vld [vmem:[#allocation2 + $0xbf8] sm:$0xff] }
 0x257   :  { %v1000_v12 = vld [vmem:[#allocation2 + $0x1b70] sm:$0xff]  ;;  %2226 = vmatpush.msrb.mxu1 %v872_v11  ;;  %2140 = vmatmul.f32.vlgmr.msra.gmra.mxu0 %v5454_v42  ;;  %v633_v52 = vld [vmem:[#allocation2 + $0xff8] sm:$0xff] }
 0x258   :  { %v1128_v13 = vld [vmem:[#allocation2 + $0x1f70] sm:$0xff]  ;;  %2246 = vmatpush.msrb.mxu2 %v1000_v12  ;;  %2160 = vmatmul.f32.vlgmr.msra.gmra.mxu1 %v5513_v47  ;;  %v241_v11 = vld [vmem:[#allocation2 + $0x3b8] sm:$0xff] }
 0x259   :  { %v736_v14 = vld [vmem:[#allocation2 + $0x1330] sm:$0xff]  ;;  %2266 = vmatpush.msrb.mxu3 %v1128_v13  ;;  %v369_v12 = vld [vmem:[#allocation2 + $0x7b8] sm:$0xff] }
 0x25a   :  { %v864_v15 = vld [vmem:[#allocation2 + $0x1730] sm:$0xff]  ;;  %2207 = vmatpush.msrb.mxu0 %v736_v14  ;;  %v497_v13 = vld [vmem:[#allocation2 + $0xbb8] sm:$0xff] }
 0x25b   :  { %v992_v16 = vld [vmem:[#allocation2 + $0x1b30] sm:$0xff]  ;;  %2227 = vmatpush.msrb.mxu1 %v864_v15  ;;  %v625_v14 = vld [vmem:[#allocation2 + $0xfb8] sm:$0xff] }
 0x25c   :  { %v1120_v17 = vld [vmem:[#allocation2 + $0x1f30] sm:$0xff]  ;;  %2247 = vmatpush.msrb.mxu2 %v992_v16  ;;  %v233_v15 = vld [vmem:[#allocation2 + $0x378] sm:$0xff] }
 0x25d   :  { %v728_v18 = vld [vmem:[#allocation2 + $0x12f0] sm:$0xff]  ;;  %2267 = vmatpush.msrb.mxu3 %v1120_v17  ;;  %v361_v16 = vld [vmem:[#allocation2 + $0x778] sm:$0xff] }
 0x25e   :  { %v856_v19 = vld [vmem:[#allocation2 + $0x16f0] sm:$0xff]  ;;  %2208 = vmatpush.msrb.mxu0 %v728_v18  ;;  %v489_v17 = vld [vmem:[#allocation2 + $0xb78] sm:$0xff] }
 0x25f   :  { %v984_v21 = vld [vmem:[#allocation2 + $0x1af0] sm:$0xff]  ;;  %2228 = vmatpush.msrb.mxu1 %v856_v19  ;;  %v617_v18 = vld [vmem:[#allocation2 + $0xf78] sm:$0xff] }
 0x260   :  { %v1112_v22 = vld [vmem:[#allocation2 + $0x1ef0] sm:$0xff]  ;;  %2248 = vmatpush.msrb.mxu2 %v984_v21  ;;  %v353_v19 = vld [vmem:[#allocation2 + $0x738] sm:$0xff] }
 0x261   :  { %v720_v27 = vld [vmem:[#allocation2 + $0x12b0] sm:$0xff]  ;;  %2268 = vmatpush.msrb.mxu3 %v1112_v22  ;;  %v481_v21 = vld [vmem:[#allocation2 + $0xb38] sm:$0xff] }
 0x262   :  { %v848_v28 = vld [vmem:[#allocation2 + $0x16b0] sm:$0xff]  ;;  %2209 = vmatpush.msrb.mxu0 %v720_v27  ;;  %v609_v22 = vld [vmem:[#allocation2 + $0xf38] sm:$0xff] }
 0x263   :  { %v976_v32 = vld [vmem:[#allocation2 + $0x1ab0] sm:$0xff]  ;;  %2229 = vmatpush.msrb.mxu1 %v848_v28  ;;  %v473_v27 = vld [vmem:[#allocation2 + $0xaf8] sm:$0xff] }
 0x264   :  { %v1104_v33 = vld [vmem:[#allocation2 + $0x1eb0] sm:$0xff]  ;;  %2249 = vmatpush.msrb.mxu2 %v976_v32  ;;  %v601_v28 = vld [vmem:[#allocation2 + $0xef8] sm:$0xff]  ;;  %v5520_v32 = vpop.f32.mrf.mxu0 }
 0x265   :  { %v712_v0 = vld [vmem:[#allocation2 + $0x1270] sm:$0xff]  ;;  %2269 = vmatpush.msrb.mxu3 %v1104_v33  ;;  %v209_v33 = vld [vmem:[#allocation2 + $0x2b8] sm:$0xff] }
 0x266   :  { %v840_v1 = vld [vmem:[#allocation2 + $0x1670] sm:$0xff]  ;;  %2210 = vmatpush.msrb.mxu0 %v712_v0  ;;  %v465_v0 = vld [vmem:[#allocation2 + $0xab8] sm:$0xff] }
 0x267   :  { %v968_v34 = vld [vmem:[#allocation2 + $0x1a70] sm:$0xff]  ;;  %2230 = vmatpush.msrb.mxu1 %v840_v1  ;;  %v593_v1 = vld [vmem:[#allocation2 + $0xeb8] sm:$0xff] }
 0x268   :  { %v1096_v2 = vld [vmem:[#allocation2 + $0x1e70] sm:$0xff]  ;;  %2250 = vmatpush.msrb.mxu2 %v968_v34  ;;  %v201_v34 = vld [vmem:[#allocation2 + $0x278] sm:$0xff] }
 0x269   :  { %v704_v3 = vld [vmem:[#allocation2 + $0x1230] sm:$0xff]  ;;  %2270 = vmatpush.msrb.mxu3 %v1096_v2  ;;  %v329_v2 = vld [vmem:[#allocation2 + $0x678] sm:$0xff] }
 0x26a   :  { %v832_v35 = vld [vmem:[#allocation2 + $0x1630] sm:$0xff]  ;;  %2211 = vmatpush.msrb.mxu0 %v704_v3  ;;  %v5522_v3 = vpop.f32.mrf.mxu1 }
 0x26b   :  { %v960_v36 = vld [vmem:[#allocation2 + $0x1a30] sm:$0xff]  ;;  %2231 = vmatpush.msrb.mxu1 %v832_v35  ;;  %v457_v35 = vld [vmem:[#allocation2 + $0xa78] sm:$0xff] }
 0x26c   :  { %v1088_v37 = vld [vmem:[#allocation2 + $0x1e30] sm:$0xff]  ;;  %2251 = vmatpush.msrb.mxu2 %v960_v36  ;;  %v585_v36 = vld [vmem:[#allocation2 + $0xe78] sm:$0xff] }
 0x26d   :  { %v696_v38 = vld [vmem:[#allocation2 + $0x11f0] sm:$0xff]  ;;  %2271 = vmatpush.msrb.mxu3 %v1088_v37  ;;  %v5524_v37 = vpop.f32.mrf.mxu2 }
 0x26e   :  { %v824_v39 = vld [vmem:[#allocation2 + $0x15f0] sm:$0xff]  ;;  %2212 = vmatpush.msrb.mxu0 %v696_v38  ;;  %v193_v38 = vld [vmem:[#allocation2 + $0x238] sm:$0xff] }
 0x26f   :  { %v952_v40 = vld [vmem:[#allocation2 + $0x19f0] sm:$0xff]  ;;  %2232 = vmatpush.msrb.mxu1 %v824_v39  ;;  %v321_v39 = vld [vmem:[#allocation2 + $0x638] sm:$0xff] }
 0x270   :  { %v1080_v41 = vld [vmem:[#allocation2 + $0x1df0] sm:$0xff]  ;;  %2252 = vmatpush.msrb.mxu2 %v952_v40  ;;  %v449_v40 = vld [vmem:[#allocation2 + $0xa38] sm:$0xff] }
 0x271   :  { %v688_v45 = vld [vmem:[#allocation2 + $0x11b0] sm:$0xff]  ;;  %2272 = vmatpush.msrb.mxu3 %v1080_v41  ;;  %v577_v41 = vld [vmem:[#allocation2 + $0xe38] sm:$0xff] }
 0x272   :  { %v816_v46 = vld [vmem:[#allocation2 + $0x15b0] sm:$0xff]  ;;  %2213 = vmatpush.msrb.mxu0 %v688_v45  ;;  %v185_v45 = vld [vmem:[#allocation2 + $0x1f8] sm:$0xff] }
 0x273   :  { %v944_v50 = vld [vmem:[#allocation2 + $0x19b0] sm:$0xff]  ;;  %2233 = vmatpush.msrb.mxu1 %v816_v46  ;;  %v313_v46 = vld [vmem:[#allocation2 + $0x5f8] sm:$0xff] }
 0x274   :  { %v1072_v25 = vld [vmem:[#allocation2 + $0x1db0] sm:$0xff]  ;;  %2253 = vmatpush.msrb.mxu2 %v944_v50  ;;  %v5526_v50 = vpop.f32.mrf.mxu3 }
 0x275   :  { %v680_v23 = vld [vmem:[#allocation2 + $0x1170] sm:$0xff]  ;;  %2273 = vmatpush.msrb.mxu3 %v1072_v25  ;;  %v441_v25 = vld [vmem:[#allocation2 + $0x9f8] sm:$0xff] }
 0x276   :  { %v808_v24 = vld [vmem:[#allocation2 + $0x1570] sm:$0xff]  ;;  %2214 = vmatpush.msrb.mxu0 %v680_v23  ;;  %v569_v23 = vld [vmem:[#allocation2 + $0xdf8] sm:$0xff] }
 0x277   :  { %v936_v26 = vld [vmem:[#allocation2 + $0x1970] sm:$0xff]  ;;  %2234 = vmatpush.msrb.mxu1 %v808_v24  ;;  %v177_v24 = vld [vmem:[#allocation2 + $0x1b8] sm:$0xff] }
 0x278   :  { %v1064_v29 = vld [vmem:[#allocation2 + $0x1d70] sm:$0xff]  ;;  %2254 = vmatpush.msrb.mxu2 %v936_v26  ;;  %v305_v26 = vld [vmem:[#allocation2 + $0x5b8] sm:$0xff] }
 0x279   :  { %v672_v30 = vld [vmem:[#allocation2 + $0x1130] sm:$0xff]  ;;  %2274 = vmatpush.msrb.mxu3 %v1064_v29  ;;  %v433_v29 = vld [vmem:[#allocation2 + $0x9b8] sm:$0xff] }
 0x27a   :  { %v800_v51 = vld [vmem:[#allocation2 + $0x1530] sm:$0xff]  ;;  %2215 = vmatpush.msrb.mxu0 %v672_v30  ;;  %v561_v30 = vld [vmem:[#allocation2 + $0xdb8] sm:$0xff] }
 0x27b   :  { %v928_v53 = vld [vmem:[#allocation2 + $0x1930] sm:$0xff]  ;;  %2235 = vmatpush.msrb.mxu1 %v800_v51  ;;  %v5528_v51 = vpop.f32.mrf.mxu0 }
 0x27c   :  { %v1056_v54 = vld [vmem:[#allocation2 + $0x1d30] sm:$0xff]  ;;  %2255 = vmatpush.msrb.mxu2 %v928_v53  ;;  %v169_v53 = vld [vmem:[#allocation2 + $0x178] sm:$0xff] }
 0x27d   :  { %v664_v31 = vld [vmem:[#allocation2 + $0x10f0] sm:$0xff]  ;;  %2275 = vmatpush.msrb.mxu3 %v1056_v54  ;;  %v297_v54 = vld [vmem:[#allocation2 + $0x578] sm:$0xff] }
 0x27e   :  { %v792_v55 = vld [vmem:[#allocation2 + $0x14f0] sm:$0xff]  ;;  %2216 = vmatpush.msrb.mxu0 %v664_v31  ;;  %v425_v31 = vld [vmem:[#allocation2 + $0x978] sm:$0xff] }
 0x27f   :  { %v920_v56 = vld [vmem:[#allocation2 + $0x18f0] sm:$0xff]  ;;  %2236 = vmatpush.msrb.mxu1 %v792_v55  ;;  %v553_v55 = vld [vmem:[#allocation2 + $0xd78] sm:$0xff] }
 0x280   :  { %v1048_v57 = vld [vmem:[#allocation2 + $0x1cf0] sm:$0xff]  ;;  %2256 = vmatpush.msrb.mxu2 %v920_v56  ;;  %v161_v56 = vld [vmem:[#allocation2 + $0x138] sm:$0xff] }
 0x281   :  { %v656_v58 = vld [vmem:[#allocation2 + $0x10b0] sm:$0xff]  ;;  %2276 = vmatpush.msrb.mxu3 %v1048_v57  ;;  %v289_v57 = vld [vmem:[#allocation2 + $0x538] sm:$0xff] }
 0x282   :  { %v784_v59 = vld [vmem:[#allocation2 + $0x14b0] sm:$0xff]  ;;  %2217 = vmatpush.msrb.mxu0 %v656_v58  ;;  %v5530_v58 = vpop.f32.mrf.mxu1 }
 0x283   :  { %v912_v61 = vld [vmem:[#allocation2 + $0x18b0] sm:$0xff]  ;;  %2237 = vmatpush.msrb.mxu1 %v784_v59  ;;  %v417_v59 = vld [vmem:[#allocation2 + $0x938] sm:$0xff] }
 0x284   :  { %v1040_v62 = vld [vmem:[#allocation2 + $0x1cb0] sm:$0xff]  ;;  %2257 = vmatpush.msrb.mxu2 %v912_v61  ;;  %v545_v61 = vld [vmem:[#allocation2 + $0xd38] sm:$0xff] }
 0x285   :  { %v648_v63 = vld [vmem:[#allocation2 + $0x1070] sm:$0xff]  ;;  %2277 = vmatpush.msrb.mxu3 %v1040_v62  ;;  %v5532_v62 = vpop.f32.mrf.mxu2 }
 0x286   :  { %v776_v4 = vld [vmem:[#allocation2 + $0x1470] sm:$0xff]  ;;  %2218 = vmatpush.msrb.mxu0 %v648_v63  ;;  %v153_v63 = vld [vmem:[#allocation2 + $0xf8] sm:$0xff] }
 0x287   :  { %v904_v6 = vld [vmem:[#allocation2 + $0x1870] sm:$0xff]  ;;  %2238 = vmatpush.msrb.mxu1 %v776_v4  ;;  %v281_v4 = vld [vmem:[#allocation2 + $0x4f8] sm:$0xff] }
 0x288   :  { %v1032_v20 = vld [vmem:[#allocation2 + $0x1c70] sm:$0xff]  ;;  %2258 = vmatpush.msrb.mxu2 %v904_v6  ;;  %v409_v6 = vld [vmem:[#allocation2 + $0x8f8] sm:$0xff] }
 0x289   :  { %v640_v49 = vld [vmem:[#allocation2 + $0x1030] sm:$0xff]  ;;  %2278 = vmatpush.msrb.mxu3 %v1032_v20  ;;  %v537_v20 = vld [vmem:[#allocation2 + $0xcf8] sm:$0xff] }
 0x28a   :  { %v768_v42 = vld [vmem:[#allocation2 + $0x1430] sm:$0xff]  ;;  %2219 = vmatpush.msrb.mxu0 %v640_v49  ;;  %v145_v49 = vld [vmem:[#allocation2 + $0xb8] sm:$0xff] }
 0x28b   :  { %v896_v48 = vld [vmem:[#allocation2 + $0x1830] sm:$0xff]  ;;  %2239 = vmatpush.msrb.mxu1 %v768_v42  ;;  %2220 = vmatmul.f32.vlgmr.msrb.gmra.mxu0 %v5484_v44  ;;  %v217_v44 = vld [vmem:[#allocation2 + $0x2f8] sm:$0xff] }
 0x28c   :  { %v1024_v43 = vld [vmem:[#allocation2 + $0x1c30] sm:$0xff]  ;;  %2259 = vmatpush.msrb.mxu2 %v896_v48  ;;  %2284 = vmatpush.msra.mxu0 %v249_v7  ;;  %v273_v42 = vld [vmem:[#allocation2 + $0x4b8] sm:$0xff]  ;;  %v5534_v48 = vpop.f32.mrf.mxu3 }
 0x28d   :  { %2279 = vmatpush.msrb.mxu3 %v1024_v43  ;;  %2260 = vmatmul.f32.vlgmr.msrb.gmra.mxu2 %v5478_v60  ;;  %v225_v60 = vld [vmem:[#allocation2 + $0x338] sm:$0xff] }
 0x28e   :  { %2304 = vmatpush.msra.mxu1 %v377_v9  ;;  %2324 = vmatpush.msra.mxu2 %v505_v10  ;;  %v401_v43 = vld [vmem:[#allocation2 + $0x8b8] sm:$0xff]  ;;  %v5536_v9 = vpop.f32.mrf.mxu0 }
 0x28f   :  { %2344 = vmatpush.msra.mxu3 %v633_v52  ;;  %2285 = vmatpush.msra.mxu0 %v241_v11  ;;  %v529_v7 = vld [vmem:[#allocation2 + $0xcb8] sm:$0xff] }
 0x290   :  { %2280 = vmatmul.f32.vlgmr.msrb.gmra.mxu3 %v5490_v5  ;;  %2305 = vmatpush.msra.mxu1 %v369_v12  ;;  %v345_v5 = vld [vmem:[#allocation2 + $0x6f8] sm:$0xff] }
 0x291   :  { %2325 = vmatpush.msra.mxu2 %v497_v13  ;;  %2345 = vmatpush.msra.mxu3 %v625_v14  ;;  %v137_v10 = vld [vmem:[#allocation2 + $0x78] sm:$0xff] }
 0x292   :  { %2240 = vmatmul.f32.vlgmr.msrb.gmra.mxu1 %v5496_v8  ;;  %2286 = vmatpush.msra.mxu0 %v233_v15  ;;  %v337_v8 = vld [vmem:[#allocation2 + $0x6b8] sm:$0xff]  ;;  %v5538_v15 = vpop.f32.mrf.mxu1 }
 0x293   :  { %2306 = vmatpush.msra.mxu1 %v361_v16  ;;  %2326 = vmatpush.msra.mxu2 %v489_v17  ;;  %v265_v52 = vld [vmem:[#allocation2 + $0x478] sm:$0xff] }
 0x294   :  { %2346 = vmatpush.msra.mxu3 %v617_v18  ;;  %2287 = vmatpush.msra.mxu0 %v225_v60  ;;  %v393_v11 = vld [vmem:[#allocation2 + $0x878] sm:$0xff]  ;;  %v5540_v18 = vpop.f32.mrf.mxu2 }
 0x295   :  { %2307 = vmatpush.msra.mxu1 %v353_v19  ;;  %2327 = vmatpush.msra.mxu2 %v481_v21  ;;  %v521_v12 = vld [vmem:[#allocation2 + $0xc78] sm:$0xff] }
 0x296   :  { %2347 = vmatpush.msra.mxu3 %v609_v22  ;;  %2288 = vmatpush.msra.mxu0 %v217_v44  ;;  %v129_v13 = vld [vmem:[#allocation2 + $0x38] sm:$0xff] }
 0x297   :  { %2308 = vmatpush.msra.mxu1 %v345_v5  ;;  %2328 = vmatpush.msra.mxu2 %v473_v27  ;;  %v257_v14 = vld [vmem:[#allocation2 + $0x438] sm:$0xff]  ;;  %v5542_v27 = vpop.f32.mrf.mxu3 }
 0x298   :  { %2348 = vmatpush.msra.mxu3 %v601_v28  ;;  %2289 = vmatpush.msra.mxu0 %v209_v33  ;;  %v385_v16 = vld [vmem:[#allocation2 + $0x838] sm:$0xff] }
 0x299   :  { %2309 = vmatpush.msra.mxu1 %v337_v8  ;;  %2329 = vmatpush.msra.mxu2 %v465_v0  ;;  %v513_v17 = vld [vmem:[#allocation2 + $0xc38] sm:$0xff] }
 0x29a   :  { %2349 = vmatpush.msra.mxu3 %v593_v1  ;;  %2290 = vmatpush.msra.mxu0 %v201_v34  ;;  %v761_v60 = vld [vmem:[#allocation2 + $0x13f8] sm:$0xff] }
 0x29b   :  { %2310 = vmatpush.msra.mxu1 %v329_v2  ;;  %2330 = vmatpush.msra.mxu2 %v457_v35  ;;  %v889_v19 = vld [vmem:[#allocation2 + $0x17f8] sm:$0xff]  ;;  %v5544_v2 = vpop.f32.mrf.mxu0 }
 0x29c   :  { %2350 = vmatpush.msra.mxu3 %v585_v36  ;;  %2291 = vmatpush.msra.mxu0 %v193_v38  ;;  %v1017_v21 = vld [vmem:[#allocation2 + $0x1bf8] sm:$0xff] }
 0x29d   :  { %2311 = vmatpush.msra.mxu1 %v321_v39  ;;  %2331 = vmatpush.msra.mxu2 %v449_v40  ;;  %v1145_v22 = vld [vmem:[#allocation2 + $0x1ff8] sm:$0xff] }
 0x29e   :  { %2351 = vmatpush.msra.mxu3 %v577_v41  ;;  %2292 = vmatpush.msra.mxu0 %v185_v45  ;;  %v753_v44 = vld [vmem:[#allocation2 + $0x13b8] sm:$0xff]  ;;  %v5546_v45 = vpop.f32.mrf.mxu1 }
 0x29f   :  { %2312 = vmatpush.msra.mxu1 %v313_v46  ;;  %2332 = vmatpush.msra.mxu2 %v441_v25  ;;  %v881_v5 = vld [vmem:[#allocation2 + $0x17b8] sm:$0xff] }
 0x2a0   :  { %2352 = vmatpush.msra.mxu3 %v569_v23  ;;  %2293 = vmatpush.msra.mxu0 %v177_v24  ;;  %v1009_v28 = vld [vmem:[#allocation2 + $0x1bb8] sm:$0xff]  ;;  %v5548_v23 = vpop.f32.mrf.mxu2 }
 0x2a1   :  { %2313 = vmatpush.msra.mxu1 %v305_v26  ;;  %2333 = vmatpush.msra.mxu2 %v433_v29  ;;  %v1137_v33 = vld [vmem:[#allocation2 + $0x1fb8] sm:$0xff] }
 0x2a2   :  { %2353 = vmatpush.msra.mxu3 %v561_v30  ;;  %2294 = vmatpush.msra.mxu0 %v169_v53  ;;  %v745_v8 = vld [vmem:[#allocation2 + $0x1378] sm:$0xff] }
 0x2a3   :  { %2314 = vmatpush.msra.mxu1 %v297_v54  ;;  %2334 = vmatpush.msra.mxu2 %v425_v31  ;;  %v873_v0 = vld [vmem:[#allocation2 + $0x1778] sm:$0xff]  ;;  %v5550_v31 = vpop.f32.mrf.mxu3 }
 0x2a4   :  { %2354 = vmatpush.msra.mxu3 %v553_v55  ;;  %2295 = vmatpush.msra.mxu0 %v161_v56  ;;  %v1001_v1 = vld [vmem:[#allocation2 + $0x1b78] sm:$0xff] }
 0x2a5   :  { %2315 = vmatpush.msra.mxu1 %v289_v57  ;;  %2335 = vmatpush.msra.mxu2 %v417_v59  ;;  %v1129_v34 = vld [vmem:[#allocation2 + $0x1f78] sm:$0xff]  ;;  %v5552_v57 = vpop.f32.mrf.mxu0 }
 0x2a6   :  { %2355 = vmatpush.msra.mxu3 %v545_v61  ;;  %2296 = vmatpush.msra.mxu0 %v153_v63  ;;  %v737_v35 = vld [vmem:[#allocation2 + $0x1338] sm:$0xff] }
 0x2a7   :  { %2316 = vmatpush.msra.mxu1 %v281_v4  ;;  %2336 = vmatpush.msra.mxu2 %v409_v6  ;;  %v865_v36 = vld [vmem:[#allocation2 + $0x1738] sm:$0xff] }
 0x2a8   :  { %2356 = vmatpush.msra.mxu3 %v537_v20  ;;  %2297 = vmatpush.msra.mxu0 %v145_v49  ;;  %v993_v38 = vld [vmem:[#allocation2 + $0x1b38] sm:$0xff]  ;;  %v5554_v49 = vpop.f32.mrf.mxu1 }
 0x2a9   :  { %2317 = vmatpush.msra.mxu1 %v273_v42  ;;  %2337 = vmatpush.msra.mxu2 %v401_v43  ;;  %v1121_v39 = vld [vmem:[#allocation2 + $0x1f38] sm:$0xff] }
 0x2aa   :  { %2357 = vmatpush.msra.mxu3 %v529_v7  ;;  %2298 = vmatpush.msra.mxu0 %v137_v10  ;;  %v729_v40 = vld [vmem:[#allocation2 + $0x12f8] sm:$0xff]  ;;  %v5556_v7 = vpop.f32.mrf.mxu2 }
 0x2ab   :  { %2318 = vmatpush.msra.mxu1 %v265_v52  ;;  %2338 = vmatpush.msra.mxu2 %v393_v11  ;;  %v857_v41 = vld [vmem:[#allocation2 + $0x16f8] sm:$0xff] }
 0x2ac   :  { %2358 = vmatpush.msra.mxu3 %v521_v12  ;;  %2299 = vmatpush.msra.mxu0 %v129_v13  ;;  %v985_v46 = vld [vmem:[#allocation2 + $0x1af8] sm:$0xff] }
 0x2ad   :  { %2319 = vmatpush.msra.mxu1 %v257_v14  ;;  %2339 = vmatpush.msra.mxu2 %v385_v16  ;;  %v1113_v25 = vld [vmem:[#allocation2 + $0x1ef8] sm:$0xff]  ;;  %v5558_v16 = vpop.f32.mrf.mxu3 }
 0x2ae   :  { %2359 = vmatpush.msra.mxu3 %v513_v17  ;;  %2364 = vmatpush.msrb.mxu0 %v761_v60  ;;  %v721_v24 = vld [vmem:[#allocation2 + $0x12b8] sm:$0xff] }
 0x2af   :  { %2384 = vmatpush.msrb.mxu1 %v889_v19  ;;  %2404 = vmatpush.msrb.mxu2 %v1017_v21  ;;  %v849_v26 = vld [vmem:[#allocation2 + $0x16b8] sm:$0xff] }
 0x2b0   :  { %2424 = vmatpush.msrb.mxu3 %v1145_v22  ;;  %2365 = vmatpush.msrb.mxu0 %v753_v44  ;;  %v977_v29 = vld [vmem:[#allocation2 + $0x1ab8] sm:$0xff] }
 0x2b1   :  { %2385 = vmatpush.msrb.mxu1 %v881_v5  ;;  %2405 = vmatpush.msrb.mxu2 %v1009_v28  ;;  %v1105_v30 = vld [vmem:[#allocation2 + $0x1eb8] sm:$0xff]  ;;  %v5560_v5 = vpop.f32.mrf.mxu0 }
 0x2b2   :  { %2425 = vmatpush.msrb.mxu3 %v1137_v33  ;;  %2366 = vmatpush.msrb.mxu0 %v745_v8  ;;  %v713_v53 = vld [vmem:[#allocation2 + $0x1278] sm:$0xff] }
 0x2b3   :  { %2386 = vmatpush.msrb.mxu1 %v873_v0  ;;  %2406 = vmatpush.msrb.mxu2 %v1001_v1  ;;  %v841_v54 = vld [vmem:[#allocation2 + $0x1678] sm:$0xff]  ;;  %v5562_v1 = vpop.f32.mrf.mxu1 }
 0x2b4   :  { %2426 = vmatpush.msrb.mxu3 %v1129_v34  ;;  %2367 = vmatpush.msrb.mxu0 %v737_v35  ;;  %v969_v55 = vld [vmem:[#allocation2 + $0x1a78] sm:$0xff]  ;;  %v5111_v34 = vld [vmem:[%s5878_s0 + $0x10] sm:$0xff] }
 0x2b5   :  { %2387 = vmatpush.msrb.mxu1 %v865_v36  ;;  %2407 = vmatpush.msrb.mxu2 %v993_v38  ;;  %v1097_v56 = vld [vmem:[#allocation2 + $0x1e78] sm:$0xff]  ;;  %v5567_v36 = vpop.f32.mrf.mxu2 }
 0x2b6   :  { %2427 = vmatpush.msrb.mxu3 %v1121_v39  ;;  %2368 = vmatpush.msrb.mxu0 %v729_v40  ;;  %v705_v59 = vld [vmem:[#allocation2 + $0x1238] sm:$0xff]  ;;  %v5112_v40 = vld [vmem:[%s5878_s0] sm:$0xff] }
 0x2b7   :  { %2388 = vmatpush.msrb.mxu1 %v857_v41  ;;  %2408 = vmatpush.msrb.mxu2 %v985_v46  ;;  %v833_v61 = vld [vmem:[#allocation2 + $0x1638] sm:$0xff]  ;;  %v5572_v46 = vld [vmem:[#allocation4] sm:$0xff] }
 0x2b8   :  { %2428 = vmatpush.msrb.mxu3 %v1113_v25  ;;  %2369 = vmatpush.msrb.mxu0 %v721_v24  ;;  %v961_v63 = vld [vmem:[#allocation2 + $0x1a38] sm:$0xff] }
 0x2b9   :  { %2389 = vmatpush.msrb.mxu1 %v849_v26  ;;  %2409 = vmatpush.msrb.mxu2 %v977_v29  ;;  %v1089_v4 = vld [vmem:[#allocation2 + $0x1e38] sm:$0xff]  ;;  %v5577_v29 = vpop.f32.mrf.mxu3 }
 0x2ba   :  { %2429 = vmatpush.msrb.mxu3 %v1105_v30  ;;  %2370 = vmatpush.msrb.mxu0 %v713_v53  ;;  %v697_v6 = vld [vmem:[#allocation2 + $0x11f8] sm:$0xff] }
 0x2bb   :  { %2390 = vmatpush.msrb.mxu1 %v841_v54  ;;  %2410 = vmatpush.msrb.mxu2 %v969_v55  ;;  %v825_v20 = vld [vmem:[#allocation2 + $0x15f8] sm:$0xff]  ;;  %v1661_v54 = vpop.f32.mrf.mxu0 }
 0x2bc   :  { %2430 = vmatpush.msrb.mxu3 %v1097_v56  ;;  %2371 = vmatpush.msrb.mxu0 %v705_v59  ;;  %v953_v42 = vld [vmem:[#allocation2 + $0x19f8] sm:$0xff]  ;;  %v1148_v59 = vperm.slane %v5572_v46, 0 }
 0x2bd   :  { %2391 = vmatpush.msrb.mxu1 %v833_v61  ;;  %v1081_v43 = vld [vmem:[#allocation2 + $0x1df8] sm:$0xff]  ;;  %2411 = vmatpush.msrb.mxu2 %v961_v63  ;;  %v1149_v61 = vperm.slane %v5572_v46, 1 }
 0x2be   :  { %2431 = vmatpush.msrb.mxu3 %v1089_v4  ;;  %v689_v10 = vld [vmem:[#allocation2 + $0x11b8] sm:$0xff]  ;;  %2372 = vmatpush.msrb.mxu0 %v697_v6  ;;  %v1150_v6 = vperm.slane %v5572_v46, 2 }
 0x2bf   :  { %v817_v52 = vld [vmem:[#allocation2 + $0x15b8] sm:$0xff]  ;;  %2392 = vmatpush.msrb.mxu1 %v825_v20  ;;  %2412 = vmatpush.msrb.mxu2 %v953_v42  ;;  %v1151_v20 = vperm.slane %v5572_v46, 3  ;;  %v2572_v42 = vld [vmem:[#allocation6 + $0x3c0] sm:$0xff] }
 0x2c0   :  { %v945_v11 = vld [vmem:[#allocation2 + $0x19b8] sm:$0xff]  ;;  %2432 = vmatpush.msrb.mxu3 %v1081_v43  ;;  %2373 = vmatpush.msrb.mxu0 %v689_v10  ;;  %v1681_v43 = vpop.f32.mrf.mxu1  ;;  %v2828_v10 = vld [vmem:[#allocation6 + $0xbc0] sm:$0xff] }
 0x2c1   :  { %v1073_v12 = vld [vmem:[#allocation2 + $0x1db8] sm:$0xff]  ;;  %2393 = vmatpush.msrb.mxu1 %v817_v52  ;;  %2413 = vmatpush.msrb.mxu2 %v945_v11  ;;  %v1701_v52 = vpop.f32.mrf.mxu2  ;;  %v2956_v11 = vld [vmem:[#allocation6 + $0xfc0] sm:$0xff] }
 0x2c2   :  { %v681_v13 = vld [vmem:[#allocation2 + $0x1178] sm:$0xff]  ;;  %2433 = vmatpush.msrb.mxu3 %v1073_v12  ;;  %2340 = vmatmul.f32.vlgmr.msra.gmra.mxu2 %v5111_v34  ;;  %v1182_v12 = vadd.f32 %v5520_v32, %v1148_v59  ;;  %v5115_v32 = vld [vmem:[%s5878_s0 + $0x20] sm:$0xff]  ;;  %v2812_v34 = vld [vmem:[#allocation6 + $0xb40] sm:$0xff] }
 0x2c3   :  { %v809_v14 = vld [vmem:[#allocation2 + $0x1578] sm:$0xff]  ;;  %2374 = vmatpush.msrb.mxu0 %v681_v13  ;;  %2320 = vmatmul.f32.vlgmr.msra.gmra.mxu1 %v5513_v47  ;;  %v2700_v47 = vld [vmem:[#allocation6 + $0x7c0] sm:$0xff]  ;;  %v1342_v13 = vadd.f32 %v5536_v9, %v1149_v61 }
 0x2c4   :  { %v937_v17 = vld [vmem:[#allocation2 + $0x1978] sm:$0xff]  ;;  %2394 = vmatpush.msrb.mxu1 %v809_v14  ;;  %2300 = vmatmul.f32.vlgmr.msra.gmra.mxu0 %v5112_v40  ;;  %v5114_v14 = vld [vmem:[%s5878_s0 + $0x30] sm:$0xff]  ;;  %v2948_v9 = vld [vmem:[#allocation6 + $0xf80] sm:$0xff]  ;;  %v5599_v40 = vpop.f32.mrf.mxu0 }
 0x2c5   :  { %v1065_v60 = vld [vmem:[#allocation2 + $0x1d78] sm:$0xff]  ;;  %2414 = vmatpush.msrb.mxu2 %v937_v17  ;;  %v2564_v17 = vld [vmem:[#allocation6 + $0x380] sm:$0xff] }
 0x2c6   :  { %v673_v19 = vld [vmem:[#allocation2 + $0x1138] sm:$0xff]  ;;  %2434 = vmatpush.msrb.mxu3 %v1065_v60  ;;  %v1502_v60 = vadd.f32 %v5552_v57, %v1150_v6  ;;  %v2556_v57 = vld [vmem:[#allocation6 + $0x340] sm:$0xff] }
 0x2c7   :  { %v801_v21 = vld [vmem:[#allocation2 + $0x1538] sm:$0xff]  ;;  %2375 = vmatpush.msrb.mxu0 %v673_v19  ;;  %v1662_v19 = vadd.f32 %v1661_v54, %v1151_v20  ;;  %v2660_v6 = vld [vmem:[#allocation6 + $0x680] sm:$0xff] }
 0x2c8   :  { %v929_v22 = vld [vmem:[#allocation2 + $0x1938] sm:$0xff]  ;;  %2395 = vmatpush.msrb.mxu1 %v801_v21  ;;  %v2692_v21 = vld [vmem:[#allocation6 + $0x780] sm:$0xff]  ;;  %v5606_v54 = vpop.f32.mrf.mxu1 }
 0x2c9   :  { %v1057_v44 = vld [vmem:[#allocation2 + $0x1d38] sm:$0xff]  ;;  %2415 = vmatpush.msrb.mxu2 %v929_v22  ;;  %v2820_v22 = vld [vmem:[#allocation6 + $0xb80] sm:$0xff] }
 0x2ca   :  { %v665_v28 = vld [vmem:[#allocation2 + $0x10f8] sm:$0xff]  ;;  %2435 = vmatpush.msrb.mxu3 %v1057_v44  ;;  %v1721_v44 = vpop.f32.mrf.mxu3  ;;  %v2916_v20 = vld [vmem:[#allocation6 + $0xe80] sm:$0xff] }
 0x2cb   :  { %v793_v33 = vld [vmem:[#allocation2 + $0x14f8] sm:$0xff]  ;;  %2376 = vmatpush.msrb.mxu0 %v665_v28 }
 0x2cc   :  { %v921_v8 = vld [vmem:[#allocation2 + $0x18f8] sm:$0xff]  ;;  %2396 = vmatpush.msrb.mxu1 %v793_v33  ;;  %v2684_v33 = vld [vmem:[#allocation6 + $0x740] sm:$0xff] }
 0x2cd   :  { %v1049_v0 = vld [vmem:[#allocation2 + $0x1cf8] sm:$0xff]  ;;  %2416 = vmatpush.msrb.mxu2 %v921_v8  ;;  %v1202_v8 = vadd.f32 %v5522_v3, %v1182_v12  ;;  %v2804_v3 = vld [vmem:[#allocation6 + $0xb00] sm:$0xff] }
 0x2ce   :  { %v657_v35 = vld [vmem:[#allocation2 + $0x10b8] sm:$0xff]  ;;  %2436 = vmatpush.msrb.mxu3 %v1049_v0  ;;  %v1362_v0 = vadd.f32 %v5538_v15, %v1342_v13  ;;  %v2932_v15 = vld [vmem:[#allocation6 + $0xf00] sm:$0xff]  ;;  %v5616_v13 = vpop.f32.mrf.mxu0 }
 0x2cf   :  { %v785_v38 = vld [vmem:[#allocation2 + $0x14b8] sm:$0xff]  ;;  %2377 = vmatpush.msrb.mxu0 %v657_v35  ;;  %v2940_v35 = vld [vmem:[#allocation6 + $0xf40] sm:$0xff] }
 0x2d0   :  { %v913_v39 = vld [vmem:[#allocation2 + $0x18b8] sm:$0xff]  ;;  %2397 = vmatpush.msrb.mxu1 %v785_v38  ;;  %v1522_v38 = vadd.f32 %v5554_v49, %v1502_v60  ;;  %v1222_v49 = vadd.f32 %v5524_v37, %v1202_v8  ;;  %v2788_v37 = vld [vmem:[#allocation6 + $0xa80] sm:$0xff] }
 0x2d1   :  { %v1041_v41 = vld [vmem:[#allocation2 + $0x1cb8] sm:$0xff]  ;;  %2417 = vmatpush.msrb.mxu2 %v913_v39  ;;  %v1682_v39 = vadd.f32 %v1681_v43, %v1662_v19  ;;  %v2900_v60 = vld [vmem:[#allocation6 + $0xe00] sm:$0xff] }
 0x2d2   :  { %v5113_v25 = vld [vmem:[%s5878_s0 + $0x18] sm:$0xff]  ;;  %2437 = vmatpush.msrb.mxu3 %v1041_v41  ;;  %v5117_v41 = vld [vmem:[%s5878_s0 + $0x28] sm:$0xff]  ;;  %v1542_v59 = vadd.f32 %v5556_v7, %v1522_v38  ;;  %v1242_v43 = vadd.f32 %v5526_v50, %v1222_v49  ;;  %v5613_v7 = vpop.f32.mrf.mxu3 }
 0x2d3   :  { %2360 = vmatmul.f32.vlgmr.msra.gmra.mxu3 %v5113_v25  ;;  %v649_v24 = vld [vmem:[#allocation2 + $0x1078] sm:$0xff]  ;;  %v2548_v25 = vld [vmem:[#allocation6 + $0x300] sm:$0xff]  ;;  %v1702_v61 = vadd.f32 %v1701_v52, %v1682_v39 }
 0x2d4   :  { %v777_v26 = vld [vmem:[#allocation2 + $0x1478] sm:$0xff]  ;;  %2378 = vmatpush.msrb.mxu0 %v649_v24  ;;  %v2676_v24 = vld [vmem:[#allocation6 + $0x700] sm:$0xff] }
 0x2d5   :  { %v905_v30 = vld [vmem:[#allocation2 + $0x1878] sm:$0xff]  ;;  %2398 = vmatpush.msrb.mxu1 %v777_v26  ;;  %v2540_v26 = vld [vmem:[#allocation6 + $0x2c0] sm:$0xff]  ;;  %v1722_v12 = vadd.f32 %v1721_v44, %v1702_v61 }
 0x2d6   :  { %v1033_v53 = vld [vmem:[#allocation2 + $0x1c78] sm:$0xff]  ;;  %2418 = vmatpush.msrb.mxu2 %v905_v30  ;;  %v2668_v30 = vld [vmem:[#allocation6 + $0x6c0] sm:$0xff] }
 0x2d7   :  { %v641_v55 = vld [vmem:[#allocation2 + $0x1038] sm:$0xff]  ;;  %2438 = vmatpush.msrb.mxu3 %v1033_v53  ;;  %v1382_v53 = vadd.f32 %v5540_v18, %v1362_v0  ;;  %v2524_v18 = vld [vmem:[#allocation6 + $0x240] sm:$0xff] }
 0x2d8   :  { %v769_v56 = vld [vmem:[#allocation2 + $0x1438] sm:$0xff]  ;;  %2379 = vmatpush.msrb.mxu0 %v641_v55  ;;  %v2796_v55 = vld [vmem:[#allocation6 + $0xac0] sm:$0xff] }
 0x2d9   :  { %v897_v63 = vld [vmem:[#allocation2 + $0x1838] sm:$0xff]  ;;  %2399 = vmatpush.msrb.mxu1 %v769_v56  ;;  %2380 = vmatmul.f32.vlgmr.msrb.gmra.mxu0 %v5115_v32  ;;  %v2924_v56 = vld [vmem:[#allocation6 + $0xec0] sm:$0xff] }
 0x2da   :  { %v1025_v4 = vld [vmem:[#allocation2 + $0x1c38] sm:$0xff]  ;;  %2419 = vmatpush.msrb.mxu2 %v897_v63  ;;  %3494 = vmatpush.msra.mxu0 %v2572_v42  ;;  %v5609_v63 = vpop.f32.mrf.mxu2  ;;  %v2652_v42 = vld [vmem:[#allocation6 + $0x640] sm:$0xff]  ;;  %v5628_v38 = vpop.f32.mrf.mxu3 }
 0x2db   :  { %2439 = vmatpush.msrb.mxu3 %v1025_v4  ;;  %2420 = vmatmul.f32.vlgmr.msrb.gmra.mxu2 %v5114_v14  ;;  %v5116_v28 = vld [vmem:[%s5878_s0 + $0x38] sm:$0xff]  ;;  %v2532_v4 = vld [vmem:[#allocation6 + $0x280] sm:$0xff] }
 0x2dc   :  { %3514 = vmatpush.msra.mxu1 %v2700_v47  ;;  %3534 = vmatpush.msra.mxu2 %v2828_v10  ;;  %v1402_v47 = vadd.f32 %v5542_v27, %v1382_v53  ;;  %v2780_v10 = vld [vmem:[#allocation6 + $0xa40] sm:$0xff] }
 0x2dd   :  { %3554 = vmatpush.msra.mxu3 %v2956_v11  ;;  %3495 = vmatpush.msra.mxu0 %v2564_v17  ;;  %v2908_v52 = vld [vmem:[#allocation6 + $0xe40] sm:$0xff]  ;;  %v1562_v11 = vadd.f32 %v5558_v16, %v1542_v59  ;;  %v5620_v16 = vpop.f32.mrf.mxu1 }
 0x2de   :  { %2440 = vmatmul.f32.vlgmr.msrb.gmra.mxu3 %v5116_v28  ;;  %3515 = vmatpush.msra.mxu1 %v2692_v21  ;;  %v2516_v14 = vld [vmem:[#allocation6 + $0x200] sm:$0xff]  ;;  %v1262_v21 = vadd.f32 %v5528_v51, %v1242_v43  ;;  %v1742_v28 = vadd.f32 %v5599_v40, %v1722_v12 }
 0x2df   :  { %3535 = vmatpush.msra.mxu2 %v2820_v22  ;;  %3555 = vmatpush.msra.mxu3 %v2948_v9  ;;  %v2644_v17 = vld [vmem:[#allocation6 + $0x600] sm:$0xff]  ;;  %v1422_v22 = vadd.f32 %v5544_v2, %v1402_v47  ;;  %v1582_v9 = vadd.f32 %v5560_v5, %v1562_v11 }
 0x2e0   :  { %2400 = vmatmul.f32.vlgmr.msrb.gmra.mxu1 %v5117_v41  ;;  %3496 = vmatpush.msra.mxu0 %v2556_v57  ;;  %v2772_v50 = vld [vmem:[#allocation6 + $0xa00] sm:$0xff] }
 0x2e1   :  { %3516 = vmatpush.msra.mxu1 %v2684_v33  ;;  %3536 = vmatpush.msra.mxu2 %v2812_v34  ;;  %v2508_v27 = vld [vmem:[#allocation6 + $0x1c0] sm:$0xff]  ;;  %v1442_v5 = vadd.f32 %v5546_v45, %v1422_v22  ;;  %v1602_v41 = vadd.f32 %v5562_v1, %v1582_v9 }
 0x2e2   :  { %3556 = vmatpush.msra.mxu3 %v2940_v35  ;;  %3497 = vmatpush.msra.mxu0 %v2548_v25  ;;  %v2636_v19 = vld [vmem:[#allocation6 + $0x5c0] sm:$0xff]  ;;  %v5624_v57 = vpop.f32.mrf.mxu2  ;;  %v1282_v35 = vadd.f32 %v5530_v58, %v1262_v21  ;;  %v1762_v25 = vadd.f32 %v5606_v54, %v1742_v28  ;;  %v5647_v12 = vpop.f32.mrf.mxu3 }
 0x2e3   :  { %3517 = vmatpush.msra.mxu1 %v2676_v24  ;;  %3537 = vmatpush.msra.mxu2 %v2804_v3  ;;  %v2764_v44 = vld [vmem:[#allocation6 + $0x9c0] sm:$0xff]  ;;  %v1462_v1 = vadd.f32 %v5548_v23, %v1442_v5 }
 0x2e4   :  { %3557 = vmatpush.msra.mxu3 %v2932_v15  ;;  %3498 = vmatpush.msra.mxu0 %v2540_v26  ;;  %v2892_v32 = vld [vmem:[#allocation6 + $0xdc0] sm:$0xff]  ;;  %v5632_v26 = vpop.f32.mrf.mxu0  ;;  %v1302_v49 = vadd.f32 %v5532_v62, %v1282_v35 }
 0x2e5   :  { %3518 = vmatpush.msra.mxu1 %v2668_v30  ;;  %3538 = vmatpush.msra.mxu2 %v2796_v55  ;;  %v2500_v33 = vld [vmem:[#allocation6 + $0x180] sm:$0xff]  ;;  %v1622_v55 = vadd.f32 %v5567_v36, %v1602_v41 }
 0x2e6   :  { %3558 = vmatpush.msra.mxu3 %v2924_v56  ;;  %3499 = vmatpush.msra.mxu0 %v2532_v4  ;;  %v2628_v8 = vld [vmem:[#allocation6 + $0x580] sm:$0xff]  ;;  %v1782_v56 = vadd.f32 %v5609_v63, %v1762_v25  ;;  %v5638_v4 = vpop.f32.mrf.mxu1  ;;  %v1322_v36 = vadd.f32 %v5534_v48, %v1302_v49  ;;  %v1482_v63 = vadd.f32 %v5550_v31, %v1462_v1  ;;  %v1153_v48 = vperm.slane %v5572_v46, 5 }
 0x2e7   :  { %3519 = vmatpush.msra.mxu1 %v2660_v6  ;;  %3539 = vmatpush.msra.mxu2 %v2788_v37  ;;  %v2756_v51 = vld [vmem:[#allocation6 + $0x980] sm:$0xff]  ;;  %v1642_v43 = vadd.f32 %v5577_v29, %v1622_v55 }
 0x2e8   :  { %3559 = vmatpush.msra.mxu3 %v2916_v20  ;;  %3500 = vmatpush.msra.mxu0 %v2524_v18  ;;  %v2884_v2 = vld [vmem:[#allocation6 + $0xd80] sm:$0xff]  ;;  %v1802_v47 = vadd.f32 %v5613_v7, %v1782_v56  ;;  %v5650_v29 = vmax.f32 %v1322_v36, 0.0  ;;  %v5652_v7 = vmax.f32 %v1482_v63, 0.0 }
 0x2e9   :  { %3520 = vmatpush.msra.mxu1 %v2652_v42  ;;  %3540 = vmatpush.msra.mxu2 %v2780_v10  ;;  %v2492_v0 = vld [vmem:[#allocation6 + $0x140] sm:$0xff]  ;;  %v1152_v10 = vperm.slane %v5572_v46, 4 }
 0x2ea   :  { %3560 = vmatpush.msra.mxu3 %v2908_v52  ;;  %3501 = vmatpush.msra.mxu0 %v2516_v14  ;;  %v2620_v34 = vld [vmem:[#allocation6 + $0x540] sm:$0xff]  ;;  %v5640_v37 = vpop.f32.mrf.mxu2 }
 0x2eb   :  { %3521 = vmatpush.msra.mxu1 %v2644_v17  ;;  %3541 = vmatpush.msra.mxu2 %v2772_v50  ;;  %v2748_v39 = vld [vmem:[#allocation6 + $0x940] sm:$0xff]  ;;  %v5654_v50 = vmax.f32 %v1642_v43, 0.0 }
 0x2ec   :  { %3561 = vmatpush.msra.mxu3 %v2900_v60  ;;  %3502 = vmatpush.msra.mxu0 %v2508_v27  ;;  %v2876_v40 = vld [vmem:[#allocation6 + $0xd40] sm:$0xff]  ;;  %v1981_v17 = vpop.f32.mrf.mxu0  ;;  %v5656_v60 = vmax.f32 %v1802_v47, 0.0  ;;  %v1822_v27 = vadd.f32 %v5616_v13, %v1152_v10 }
 0x2ed   :  { %3522 = vmatpush.msra.mxu1 %v2636_v19  ;;  %3542 = vmatpush.msra.mxu2 %v2764_v44  ;;  %v2484_v24 = vld [vmem:[#allocation6 + $0x100] sm:$0xff]  ;;  %v1982_v22 = vadd.f32 %v1981_v17, %v1153_v48 }
 0x2ee   :  { %3562 = vmatpush.msra.mxu3 %v2892_v32  ;;  %3503 = vmatpush.msra.mxu0 %v2500_v33  ;;  %v2612_v3 = vld [vmem:[#allocation6 + $0x500] sm:$0xff]  ;;  %v2001_v44 = vpop.f32.mrf.mxu1 }
 0x2ef   :  { %3523 = vmatpush.msra.mxu1 %v2628_v8  ;;  %3543 = vmatpush.msra.mxu2 %v2756_v51  ;;  %v2740_v15 = vld [vmem:[#allocation6 + $0x900] sm:$0xff]  ;;  %v1842_v8 = vadd.f32 %v5620_v16, %v1822_v27 }
 0x2f0   :  { %3563 = vmatpush.msra.mxu3 %v2884_v2  ;;  %3504 = vmatpush.msra.mxu0 %v2492_v0  ;;  %v2868_v58 = vld [vmem:[#allocation6 + $0xd00] sm:$0xff]  ;;  %v2002_v0 = vadd.f32 %v2001_v44, %v1982_v22 }
 0x2f1   :  { %3524 = vmatpush.msra.mxu1 %v2620_v34  ;;  %3544 = vmatpush.msra.mxu2 %v2748_v39  ;;  %v2476_v45 = vld [vmem:[#allocation6 + $0xc0] sm:$0xff]  ;;  %v2041_v34 = vpop.f32.mrf.mxu3  ;;  %v1862_v41 = vadd.f32 %v5624_v57, %v1842_v8 }
 0x2f2   :  { %3564 = vmatpush.msra.mxu3 %v2876_v40  ;;  %v2604_v30 = vld [vmem:[#allocation6 + $0x4c0] sm:$0xff]  ;;  %3505 = vmatpush.msra.mxu0 %v2484_v24  ;;  %v2021_v9 = vpop.f32.mrf.mxu2 }
 0x2f3   :  { %3525 = vmatpush.msra.mxu1 %v2612_v3  ;;  %v2732_v53 = vld [vmem:[#allocation6 + $0x8c0] sm:$0xff]  ;;  %3545 = vmatpush.msra.mxu2 %v2740_v15  ;;  %v2022_v3 = vadd.f32 %v2021_v9, %v2002_v0  ;;  %v1882_v1 = vadd.f32 %v5628_v38, %v1862_v41 }
 0x2f4   :  { %v2860_v54 = vld [vmem:[#allocation6 + $0xcc0] sm:$0xff]  ;;  %3565 = vmatpush.msra.mxu3 %v2868_v58  ;;  %3506 = vmatpush.msra.mxu0 %v2476_v45  ;;  %v2061_v25 = vpop.f32.mrf.mxu0 }
 0x2f5   :  { %v2468_v59 = vld [vmem:[#allocation6 + $0x80] sm:$0xff]  ;;  %3526 = vmatpush.msra.mxu1 %v2604_v30  ;;  %3546 = vmatpush.msra.mxu2 %v2732_v53  ;;  %v2042_v55 = vadd.f32 %v2041_v34, %v2022_v3  ;;  %v1902_v38 = vadd.f32 %v5632_v26, %v1882_v1 }
 0x2f6   :  { %v2596_v61 = vld [vmem:[#allocation6 + $0x480] sm:$0xff]  ;;  %3566 = vmatpush.msra.mxu3 %v2860_v54  ;;  %3507 = vmatpush.msra.mxu0 %v2468_v59  ;;  %v2081_v30 = vpop.f32.mrf.mxu1  ;;  %v1154_v59 = vperm.slane %v5572_v46, 6 }
 0x2f7   :  { %v2724_v6 = vld [vmem:[#allocation6 + $0x880] sm:$0xff]  ;;  %3527 = vmatpush.msra.mxu1 %v2596_v61  ;;  %v1922_v26 = vadd.f32 %v5638_v4, %v1902_v38  ;;  %v2565_v38 = vld [vmem:[#allocation6 + $0x388] sm:$0xff] }
 0x2f8   :  { %v2852_v62 = vld [vmem:[#allocation6 + $0xc80] sm:$0xff]  ;;  %3547 = vmatpush.msra.mxu2 %v2724_v6 }
 0x2f9   :  { %v2460_v23 = vld [vmem:[#allocation6 + $0x40] sm:$0xff]  ;;  %3567 = vmatpush.msra.mxu3 %v2852_v62  ;;  %v5669_v62 = vpop.f32.mrf.mxu3 }
 0x2fa   :  { %v2588_v20 = vld [vmem:[#allocation6 + $0x440] sm:$0xff]  ;;  %3508 = vmatpush.msra.mxu0 %v2460_v23  ;;  %v5666_v53 = vpop.f32.mrf.mxu2 }
 0x2fb   :  { %v2716_v18 = vld [vmem:[#allocation6 + $0x840] sm:$0xff]  ;;  %3528 = vmatpush.msra.mxu1 %v2588_v20 }
 0x2fc   :  { %v2844_v42 = vld [vmem:[#allocation6 + $0xc40] sm:$0xff]  ;;  %3548 = vmatpush.msra.mxu2 %v2716_v18  ;;  %v2141_v63 = vpop.f32.mrf.mxu0 }
 0x2fd   :  { %v2452_v52 = vld [vmem:[#allocation6] sm:$0xff]  ;;  %3568 = vmatpush.msra.mxu3 %v2844_v42  ;;  %v2062_v42 = vadd.f32 %v2061_v25, %v2042_v55  ;;  %v2142_v46 = vadd.f32 %v2141_v63, %v1154_v59  ;;  %v2693_v63 = vld [vmem:[#allocation6 + $0x788] sm:$0xff] }
 0x2fe   :  { %v2580_v11 = vld [vmem:[#allocation6 + $0x400] sm:$0xff]  ;;  %3509 = vmatpush.msra.mxu0 %v2452_v52  ;;  %v2161_v48 = vpop.f32.mrf.mxu1 }
 0x2ff   :  { %v2708_v31 = vld [vmem:[#allocation6 + $0x800] sm:$0xff]  ;;  %3529 = vmatpush.msra.mxu1 %v2580_v11  ;;  %3510 = vmatmul.f32.vlgmr.msra.gmra.mxu0 %v5650_v29  ;;  %v2162_v17 = vadd.f32 %v2161_v48, %v2142_v46  ;;  %v2685_v46 = vld [vmem:[#allocation6 + $0x748] sm:$0xff] }
 0x300   :  { %v2836_v14 = vld [vmem:[#allocation6 + $0xc00] sm:$0xff]  ;;  %3549 = vmatpush.msra.mxu2 %v2708_v31  ;;  %3530 = vmatmul.f32.vlgmr.msra.gmra.mxu1 %v5652_v7  ;;  %v2805_v48 = vld [vmem:[#allocation6 + $0xb08] sm:$0xff] }
 0x301   :  { %3569 = vmatpush.msra.mxu3 %v2836_v14  ;;  %v3084_v19 = vld [vmem:[#allocation6 + $0x13c0] sm:$0xff]  ;;  %3550 = vmatmul.f32.vlgmr.msra.gmra.mxu2 %v5654_v50 }
 0x302   :  { %v3212_v21 = vld [vmem:[#allocation6 + $0x17c0] sm:$0xff]  ;;  %3570 = vmatmul.f32.vlgmr.msra.gmra.mxu3 %v5656_v60  ;;  %3574 = vmatpush.msrb.mxu0 %v3084_v19  ;;  %v2181_v27 = vpop.f32.mrf.mxu2 }
 0x303   :  { %v3340_v32 = vld [vmem:[#allocation6 + $0x1bc0] sm:$0xff]  ;;  %3594 = vmatpush.msrb.mxu1 %v3212_v21  ;;  %v2082_v21 = vadd.f32 %v2081_v30, %v2062_v42  ;;  %v2182_v9 = vadd.f32 %v2181_v27, %v2162_v17  ;;  %v2557_v42 = vld [vmem:[#allocation6 + $0x348] sm:$0xff] }
 0x304   :  { %v3076_v28 = vld [vmem:[#allocation6 + $0x1380] sm:$0xff]  ;;  %3614 = vmatpush.msrb.mxu2 %v3340_v32  ;;  %v2797_v17 = vld [vmem:[#allocation6 + $0xac8] sm:$0xff] }
 0x305   :  { %v3204_v33 = vld [vmem:[#allocation6 + $0x1780] sm:$0xff]  ;;  %3575 = vmatpush.msrb.mxu0 %v3076_v28  ;;  %v2102_v34 = vadd.f32 %v5666_v53, %v2082_v21  ;;  %v2533_v27 = vld [vmem:[#allocation6 + $0x288] sm:$0xff] }
 0x306   :  { %v3332_v13 = vld [vmem:[#allocation6 + $0x1b80] sm:$0xff]  ;;  %3595 = vmatpush.msrb.mxu1 %v3204_v33  ;;  %v2201_v33 = vpop.f32.mrf.mxu3  ;;  %v2661_v21 = vld [vmem:[#allocation6 + $0x688] sm:$0xff] }
 0x307   :  { %v3068_v51 = vld [vmem:[#allocation6 + $0x1340] sm:$0xff]  ;;  %3615 = vmatpush.msrb.mxu2 %v3332_v13  ;;  %v1942_v13 = vadd.f32 %v5640_v37, %v1922_v26  ;;  %v2541_v26 = vld [vmem:[#allocation6 + $0x2c8] sm:$0xff] }
 0x308   :  { %v3196_v2 = vld [vmem:[#allocation6 + $0x1740] sm:$0xff]  ;;  %3576 = vmatpush.msrb.mxu0 %v3068_v51 }
 0x309   :  { %v3324_v35 = vld [vmem:[#allocation6 + $0x1b40] sm:$0xff]  ;;  %3596 = vmatpush.msrb.mxu1 %v3196_v2  ;;  %v2202_v2 = vadd.f32 %v2201_v33, %v2182_v9  ;;  %v2653_v9 = vld [vmem:[#allocation6 + $0x648] sm:$0xff] }
 0x30a   :  { %v3060_v5 = vld [vmem:[#allocation6 + $0x1300] sm:$0xff]  ;;  %3616 = vmatpush.msrb.mxu2 %v3324_v35 }
 0x30b   :  { %v3188_v39 = vld [vmem:[#allocation6 + $0x1700] sm:$0xff]  ;;  %3577 = vmatpush.msrb.mxu0 %v3060_v5 }
 0x30c   :  { %v3316_v40 = vld [vmem:[#allocation6 + $0x1b00] sm:$0xff]  ;;  %3597 = vmatpush.msrb.mxu1 %v3188_v39 }
 0x30d   :  { %v3052_v24 = vld [vmem:[#allocation6 + $0x12c0] sm:$0xff]  ;;  %3617 = vmatpush.msrb.mxu2 %v3316_v40  ;;  %v2221_v40 = vpop.f32.mrf.mxu0 }
 0x30e   :  { %v3180_v16 = vld [vmem:[#allocation6 + $0x16c0] sm:$0xff]  ;;  %3578 = vmatpush.msrb.mxu0 %v3052_v24  ;;  %v2222_v25 = vadd.f32 %v2221_v40, %v2202_v2  ;;  %v1962_v24 = vadd.f32 %v5647_v12, %v1942_v13  ;;  %v2645_v13 = vld [vmem:[#allocation6 + $0x608] sm:$0xff] }
 0x30f   :  { %v3308_v15 = vld [vmem:[#allocation6 + $0x1ac0] sm:$0xff]  ;;  %3598 = vmatpush.msrb.mxu1 %v3180_v16  ;;  %v2241_v30 = vpop.f32.mrf.mxu1  ;;  %v2757_v40 = vld [vmem:[#allocation6 + $0x988] sm:$0xff] }
 0x310   :  { %v3044_v58 = vld [vmem:[#allocation6 + $0x1280] sm:$0xff]  ;;  %3618 = vmatpush.msrb.mxu2 %v3308_v15  ;;  %v2242_v53 = vadd.f32 %v2241_v30, %v2222_v25  ;;  %v5677_v55 = vmax.f32 %v1962_v24, 0.0  ;;  %v2621_v25 = vld [vmem:[#allocation6 + $0x548] sm:$0xff] }
 0x311   :  { %v3172_v45 = vld [vmem:[#allocation6 + $0x1680] sm:$0xff]  ;;  %3579 = vmatpush.msrb.mxu0 %v3044_v58  ;;  %v2122_v58 = vadd.f32 %v5669_v62, %v2102_v34  ;;  %v2829_v62 = vld [vmem:[#allocation6 + $0xbc8] sm:$0xff] }
 0x312   :  { %v3300_v49 = vld [vmem:[#allocation6 + $0x1a80] sm:$0xff]  ;;  %3599 = vmatpush.msrb.mxu1 %v3172_v45  ;;  %v2765_v34 = vld [vmem:[#allocation6 + $0x9c8] sm:$0xff] }
 0x313   :  { %v3036_v57 = vld [vmem:[#allocation6 + $0x1240] sm:$0xff]  ;;  %3619 = vmatpush.msrb.mxu2 %v3300_v49  ;;  %v2749_v24 = vld [vmem:[#allocation6 + $0x948] sm:$0xff] }
 0x314   :  { %v3164_v54 = vld [vmem:[#allocation6 + $0x1640] sm:$0xff]  ;;  %3580 = vmatpush.msrb.mxu0 %v3036_v57  ;;  %v2261_v57 = vpop.f32.mrf.mxu2  ;;  %v2941_v30 = vld [vmem:[#allocation6 + $0xf48] sm:$0xff] }
 0x315   :  { %v3292_v56 = vld [vmem:[#allocation6 + $0x1a40] sm:$0xff]  ;;  %3600 = vmatpush.msrb.mxu1 %v3164_v54  ;;  %v2262_v59 = vadd.f32 %v2261_v57, %v2242_v53  ;;  %v2469_v53 = vld [vmem:[#allocation6 + $0x88] sm:$0xff] }
 0x316   :  { %v3028_v61 = vld [vmem:[#allocation6 + $0x1200] sm:$0xff]  ;;  %3620 = vmatpush.msrb.mxu2 %v3292_v56  ;;  %v2573_v56 = vld [vmem:[#allocation6 + $0x3c8] sm:$0xff] }
 0x317   :  { %v3156_v6 = vld [vmem:[#allocation6 + $0x1600] sm:$0xff]  ;;  %3581 = vmatpush.msrb.mxu0 %v3028_v61  ;;  %v5679_v61 = vmax.f32 %v2122_v58, 0.0  ;;  %v2741_v58 = vld [vmem:[#allocation6 + $0x908] sm:$0xff] }
 0x318   :  { %v3284_v23 = vld [vmem:[#allocation6 + $0x1a00] sm:$0xff]  ;;  %3601 = vmatpush.msrb.mxu1 %v3156_v6  ;;  %v2701_v6 = vld [vmem:[#allocation6 + $0x7c8] sm:$0xff] }
 0x319   :  { %v3020_v20 = vld [vmem:[#allocation6 + $0x11c0] sm:$0xff]  ;;  %3621 = vmatpush.msrb.mxu2 %v3284_v23  ;;  %v2281_v23 = vpop.f32.mrf.mxu3  ;;  %v2933_v57 = vld [vmem:[#allocation6 + $0xf08] sm:$0xff] }
 0x31a   :  { %v3148_v36 = vld [vmem:[#allocation6 + $0x15c0] sm:$0xff]  ;;  %3582 = vmatpush.msrb.mxu0 %v3020_v20  ;;  %v2282_v20 = vadd.f32 %v2281_v23, %v2262_v59  ;;  %v2925_v59 = vld [vmem:[#allocation6 + $0xec8] sm:$0xff] }
 0x31b   :  { %v3468_v18 = vld [vmem:[#allocation6 + $0x1fc0] sm:$0xff]  ;;  %3602 = vmatpush.msrb.mxu1 %v3148_v36  ;;  %v2453_v23 = vld [vmem:[#allocation6 + $0x8] sm:$0xff] }
 0x31c   :  { %v3276_v43 = vld [vmem:[#allocation6 + $0x19c0] sm:$0xff]  ;;  %3634 = vmatpush.msrb.mxu3 %v3468_v18  ;;  %v2821_v18 = vld [vmem:[#allocation6 + $0xb88] sm:$0xff] }
 0x31d   :  { %v3012_v47 = vld [vmem:[#allocation6 + $0x1180] sm:$0xff]  ;;  %3622 = vmatpush.msrb.mxu2 %v3276_v43  ;;  %v5683_v43 = vmax.f32 %v2282_v20, 0.0  ;;  %v2581_v20 = vld [vmem:[#allocation6 + $0x408] sm:$0xff] }
 0x31e   :  { %v3140_v10 = vld [vmem:[#allocation6 + $0x1580] sm:$0xff]  ;;  %3583 = vmatpush.msrb.mxu0 %v3012_v47  ;;  %v2813_v47 = vld [vmem:[#allocation6 + $0xb48] sm:$0xff] }
 0x31f   :  { %v3460_v52 = vld [vmem:[#allocation6 + $0x1f80] sm:$0xff]  ;;  %3603 = vmatpush.msrb.mxu1 %v3140_v10  ;;  %v2549_v10 = vld [vmem:[#allocation6 + $0x308] sm:$0xff] }
 0x320   :  { %v3268_v11 = vld [vmem:[#allocation6 + $0x1980] sm:$0xff]  ;;  %3635 = vmatpush.msrb.mxu3 %v3460_v52 }
 0x321   :  { %v3004_v31 = vld [vmem:[#allocation6 + $0x1140] sm:$0xff]  ;;  %3623 = vmatpush.msrb.mxu2 %v3268_v11  ;;  %v2677_v11 = vld [vmem:[#allocation6 + $0x708] sm:$0xff] }
 0x322   :  { %v3132_v14 = vld [vmem:[#allocation6 + $0x1540] sm:$0xff]  ;;  %3584 = vmatpush.msrb.mxu0 %v3004_v31 }
 0x323   :  { %v3452_v19 = vld [vmem:[#allocation6 + $0x1f40] sm:$0xff]  ;;  %3604 = vmatpush.msrb.mxu1 %v3132_v14  ;;  %v2669_v14 = vld [vmem:[#allocation6 + $0x6c8] sm:$0xff] }
 0x324   :  { %v3260_v22 = vld [vmem:[#allocation6 + $0x1940] sm:$0xff]  ;;  %3636 = vmatpush.msrb.mxu3 %v3452_v19 }
 0x325   :  { %v2996_v44 = vld [vmem:[#allocation6 + $0x1100] sm:$0xff]  ;;  %3624 = vmatpush.msrb.mxu2 %v3260_v22  ;;  %v2789_v22 = vld [vmem:[#allocation6 + $0xa88] sm:$0xff] }
 0x326   :  { %v3124_v32 = vld [vmem:[#allocation6 + $0x1500] sm:$0xff]  ;;  %3585 = vmatpush.msrb.mxu0 %v2996_v44  ;;  %v2525_v44 = vld [vmem:[#allocation6 + $0x248] sm:$0xff] }
 0x327   :  { %v3444_v28 = vld [vmem:[#allocation6 + $0x1f00] sm:$0xff]  ;;  %3605 = vmatpush.msrb.mxu1 %v3124_v32 }
 0x328   :  { %v3252_v4 = vld [vmem:[#allocation6 + $0x1900] sm:$0xff]  ;;  %3637 = vmatpush.msrb.mxu3 %v3444_v28  ;;  %v2781_v28 = vld [vmem:[#allocation6 + $0xa48] sm:$0xff] }
 0x329   :  { %v2988_v8 = vld [vmem:[#allocation6 + $0x10c0] sm:$0xff]  ;;  %3625 = vmatpush.msrb.mxu2 %v3252_v4  ;;  %v2517_v4 = vld [vmem:[#allocation6 + $0x208] sm:$0xff] }
 0x32a   :  { %v3116_v51 = vld [vmem:[#allocation6 + $0x14c0] sm:$0xff]  ;;  %3586 = vmatpush.msrb.mxu0 %v2988_v8  ;;  %v2773_v8 = vld [vmem:[#allocation6 + $0xa08] sm:$0xff] }
 0x32b   :  { %v3436_v0 = vld [vmem:[#allocation6 + $0x1ec0] sm:$0xff]  ;;  %3606 = vmatpush.msrb.mxu1 %v3116_v51  ;;  %v2509_v51 = vld [vmem:[#allocation6 + $0x1c8] sm:$0xff] }
 0x32c   :  { %v3244_v35 = vld [vmem:[#allocation6 + $0x18c0] sm:$0xff]  ;;  %3638 = vmatpush.msrb.mxu3 %v3436_v0  ;;  %v2637_v0 = vld [vmem:[#allocation6 + $0x5c8] sm:$0xff] }
 0x32d   :  { %v2980_v5 = vld [vmem:[#allocation6 + $0x1080] sm:$0xff]  ;;  %3626 = vmatpush.msrb.mxu2 %v3244_v35  ;;  %v2501_v35 = vld [vmem:[#allocation6 + $0x188] sm:$0xff] }
 0x32e   :  { %v3108_v39 = vld [vmem:[#allocation6 + $0x1480] sm:$0xff]  ;;  %3587 = vmatpush.msrb.mxu0 %v2980_v5 }
 0x32f   :  { %v3428_v41 = vld [vmem:[#allocation6 + $0x1e80] sm:$0xff]  ;;  %3607 = vmatpush.msrb.mxu1 %v3108_v39  ;;  %v2629_v39 = vld [vmem:[#allocation6 + $0x588] sm:$0xff] }
 0x330   :  { %v3236_v37 = vld [vmem:[#allocation6 + $0x1880] sm:$0xff]  ;;  %3639 = vmatpush.msrb.mxu3 %v3428_v41  ;;  %v2493_v41 = vld [vmem:[#allocation6 + $0x148] sm:$0xff] }
 0x331   :  { %v2972_v16 = vld [vmem:[#allocation6 + $0x1040] sm:$0xff]  ;;  %3627 = vmatpush.msrb.mxu2 %v3236_v37  ;;  %v2957_v37 = vld [vmem:[#allocation6 + $0xfc8] sm:$0xff] }
 0x332   :  { %v3100_v3 = vld [vmem:[#allocation6 + $0x1440] sm:$0xff]  ;;  %3588 = vmatpush.msrb.mxu0 %v2972_v16  ;;  %v2485_v16 = vld [vmem:[#allocation6 + $0x108] sm:$0xff] }
 0x333   :  { %v3420_v15 = vld [vmem:[#allocation6 + $0x1e40] sm:$0xff]  ;;  %3608 = vmatpush.msrb.mxu1 %v3100_v3  ;;  %v2949_v3 = vld [vmem:[#allocation6 + $0xf88] sm:$0xff] }
 0x334   :  { %v3228_v45 = vld [vmem:[#allocation6 + $0x1840] sm:$0xff]  ;;  %3640 = vmatpush.msrb.mxu3 %v3420_v15  ;;  %v2613_v15 = vld [vmem:[#allocation6 + $0x508] sm:$0xff] }
 0x335   :  { %v2964_v49 = vld [vmem:[#allocation6 + $0x1000] sm:$0xff]  ;;  %3628 = vmatpush.msrb.mxu2 %v3228_v45  ;;  %v2477_v45 = vld [vmem:[#allocation6 + $0xc8] sm:$0xff] }
 0x336   :  { %v3092_v1 = vld [vmem:[#allocation6 + $0x1400] sm:$0xff]  ;;  %3589 = vmatpush.msrb.mxu0 %v2964_v49  ;;  %v2605_v49 = vld [vmem:[#allocation6 + $0x4c8] sm:$0xff] }
 0x337   :  { %v3412_v54 = vld [vmem:[#allocation6 + $0x1e00] sm:$0xff]  ;;  %3609 = vmatpush.msrb.mxu1 %v3092_v1  ;;  %3590 = vmatmul.f32.vlgmr.msrb.gmra.mxu0 %v5677_v55  ;;  %v2733_v1 = vld [vmem:[#allocation6 + $0x8c8] sm:$0xff] }
 0x338   :  { %v3220_v12 = vld [vmem:[#allocation6 + $0x1800] sm:$0xff]  ;;  %3641 = vmatpush.msrb.mxu3 %v3412_v54  ;;  %3610 = vmatmul.f32.vlgmr.msrb.gmra.mxu1 %v5679_v61  ;;  %v2597_v54 = vld [vmem:[#allocation6 + $0x488] sm:$0xff] }
 0x339   :  { %3629 = vmatpush.msrb.mxu2 %v3220_v12  ;;  %v3404_v36 = vld [vmem:[#allocation6 + $0x1dc0] sm:$0xff]  ;;  %3654 = vmatpush.msra.mxu0 %v2573_v56  ;;  %v2725_v12 = vld [vmem:[#allocation6 + $0x888] sm:$0xff] }
 0x33a   :  { %3674 = vmatpush.msra.mxu1 %v2701_v6  ;;  %3642 = vmatpush.msrb.mxu3 %v3404_v36  ;;  %v3396_v52 = vld [vmem:[#allocation6 + $0x1d80] sm:$0xff]  ;;  %v2461_v56 = vld [vmem:[#allocation6 + $0x48] sm:$0xff] }
 0x33b   :  { %3694 = vmatpush.msra.mxu2 %v2829_v62  ;;  %3655 = vmatpush.msra.mxu0 %v2565_v38  ;;  %v3388_v31 = vld [vmem:[#allocation6 + $0x1d40] sm:$0xff]  ;;  %v2589_v6 = vld [vmem:[#allocation6 + $0x448] sm:$0xff] }
 0x33c   :  { %3675 = vmatpush.msra.mxu1 %v2693_v63  ;;  %3630 = vmatmul.f32.vlgmr.msrb.gmra.mxu2 %v5683_v43  ;;  %v3380_v19 = vld [vmem:[#allocation6 + $0x1d00] sm:$0xff]  ;;  %v2717_v62 = vld [vmem:[#allocation6 + $0x848] sm:$0xff] }
 0x33d   :  { %3695 = vmatpush.msra.mxu2 %v2821_v18  ;;  %3656 = vmatpush.msra.mxu0 %v2557_v42  ;;  %v3372_v32 = vld [vmem:[#allocation6 + $0x1cc0] sm:$0xff]  ;;  %v2917_v38 = vld [vmem:[#allocation6 + $0xe88] sm:$0xff] }
 0x33e   :  { %3676 = vmatpush.msra.mxu1 %v2685_v46  ;;  %3643 = vmatpush.msrb.mxu3 %v3396_v52  ;;  %v3364_v33 = vld [vmem:[#allocation6 + $0x1c80] sm:$0xff]  ;;  %v2709_v36 = vld [vmem:[#allocation6 + $0x808] sm:$0xff] }
 0x33f   :  { %3696 = vmatpush.msra.mxu2 %v2813_v47  ;;  %3657 = vmatpush.msra.mxu0 %v2549_v10  ;;  %v3356_v2 = vld [vmem:[#allocation6 + $0x1c40] sm:$0xff]  ;;  %v3085_v63 = vld [vmem:[#allocation6 + $0x13c8] sm:$0xff] }
 0x340   :  { %3677 = vmatpush.msra.mxu1 %v2677_v11  ;;  %3644 = vmatpush.msrb.mxu3 %v3388_v31  ;;  %v3348_v5 = vld [vmem:[#allocation6 + $0x1c00] sm:$0xff]  ;;  %v3213_v18 = vld [vmem:[#allocation6 + $0x17c8] sm:$0xff] }
 0x341   :  { %3697 = vmatpush.msra.mxu2 %v2805_v48  ;;  %3658 = vmatpush.msra.mxu0 %v2541_v26  ;;  %v3341_v42 = vld [vmem:[#allocation6 + $0x1bc8] sm:$0xff] }
 0x342   :  { %3678 = vmatpush.msra.mxu1 %v2669_v14  ;;  %3645 = vmatpush.msrb.mxu3 %v3380_v19  ;;  %v3077_v46 = vld [vmem:[#allocation6 + $0x1388] sm:$0xff] }
 0x343   :  { %3698 = vmatpush.msra.mxu2 %v2797_v17  ;;  %3659 = vmatpush.msra.mxu0 %v2533_v27  ;;  %v2909_v47 = vld [vmem:[#allocation6 + $0xe48] sm:$0xff] }
 0x344   :  { %3679 = vmatpush.msra.mxu1 %v2661_v21  ;;  %3646 = vmatpush.msrb.mxu3 %v3372_v32  ;;  %v3205_v10 = vld [vmem:[#allocation6 + $0x1788] sm:$0xff] }
 0x345   :  { %3699 = vmatpush.msra.mxu2 %v2789_v22  ;;  %3660 = vmatpush.msra.mxu0 %v2525_v44  ;;  %v3333_v52 = vld [vmem:[#allocation6 + $0x1b88] sm:$0xff] }
 0x346   :  { %3680 = vmatpush.msra.mxu1 %v2653_v9  ;;  %3647 = vmatpush.msrb.mxu3 %v3364_v33  ;;  %v3069_v11 = vld [vmem:[#allocation6 + $0x1348] sm:$0xff] }
 0x347   :  { %3700 = vmatpush.msra.mxu2 %v2781_v28  ;;  %3661 = vmatpush.msra.mxu0 %v2517_v4  ;;  %v2901_v48 = vld [vmem:[#allocation6 + $0xe08] sm:$0xff] }
 0x348   :  { %3681 = vmatpush.msra.mxu1 %v2645_v13  ;;  %3648 = vmatpush.msrb.mxu3 %v3356_v2  ;;  %v3197_v26 = vld [vmem:[#allocation6 + $0x1748] sm:$0xff] }
 0x349   :  { %3701 = vmatpush.msra.mxu2 %v2773_v8  ;;  %3662 = vmatpush.msra.mxu0 %v2509_v51  ;;  %v3325_v31 = vld [vmem:[#allocation6 + $0x1b48] sm:$0xff] }
 0x34a   :  { %3682 = vmatpush.msra.mxu1 %v2637_v0  ;;  %3649 = vmatpush.msrb.mxu3 %v3348_v5  ;;  %v3061_v14 = vld [vmem:[#allocation6 + $0x1308] sm:$0xff] }
 0x34b   :  { %3702 = vmatpush.msra.mxu2 %v2765_v34  ;;  %3663 = vmatpush.msra.mxu0 %v2501_v35  ;;  %v2893_v17 = vld [vmem:[#allocation6 + $0xdc8] sm:$0xff] }
 0x34c   :  { %3683 = vmatpush.msra.mxu1 %v2629_v39  ;;  %3714 = vmatpush.msra.mxu3 %v2957_v37  ;;  %v3189_v27 = vld [vmem:[#allocation6 + $0x1708] sm:$0xff] }
 0x34d   :  { %3703 = vmatpush.msra.mxu2 %v2757_v40  ;;  %3664 = vmatpush.msra.mxu0 %v2493_v41  ;;  %v3317_v19 = vld [vmem:[#allocation6 + $0x1b08] sm:$0xff]  ;;  %v5118_v40 = vld [vmem:[#allocation4] sm:$0xff] }
 0x34e   :  { %3684 = vmatpush.msra.mxu1 %v2621_v25  ;;  %3715 = vmatpush.msra.mxu3 %v2949_v3  ;;  %v3053_v21 = vld [vmem:[#allocation6 + $0x12c8] sm:$0xff]  ;;  %v1155_v41 = vperm.slane %v5118_v40, 7  ;;  %v2542_v40 = vld [vmem:[#allocation6 + $0x2d0] sm:$0xff] }
 0x34f   :  { %3704 = vmatpush.msra.mxu2 %v2749_v24  ;;  %3665 = vmatpush.msra.mxu0 %v2485_v16  ;;  %v2885_v22 = vld [vmem:[#allocation6 + $0xd88] sm:$0xff] }
 0x350   :  { %3685 = vmatpush.msra.mxu1 %v2613_v15  ;;  %3716 = vmatpush.msra.mxu3 %v2941_v30  ;;  %v3181_v44 = vld [vmem:[#allocation6 + $0x16c8] sm:$0xff] }
 0x351   :  { %3705 = vmatpush.msra.mxu2 %v2741_v58  ;;  %3666 = vmatpush.msra.mxu0 %v2477_v45  ;;  %v3309_v32 = vld [vmem:[#allocation6 + $0x1ac8] sm:$0xff]  ;;  %v2301_v45 = vpop.f32.mrf.mxu0 }
 0x352   :  { %3686 = vmatpush.msra.mxu1 %v2605_v49  ;;  %3717 = vmatpush.msra.mxu3 %v2933_v57  ;;  %v3045_v9 = vld [vmem:[#allocation6 + $0x1288] sm:$0xff]  ;;  %v2302_v49 = vadd.f32 %v2301_v45, %v1155_v41 }
 0x353   :  { %3706 = vmatpush.msra.mxu2 %v2733_v1  ;;  %3667 = vmatpush.msra.mxu0 %v2469_v53  ;;  %v2877_v28 = vld [vmem:[#allocation6 + $0xd48] sm:$0xff] }
 0x354   :  { %3687 = vmatpush.msra.mxu1 %v2597_v54  ;;  %3718 = vmatpush.msra.mxu3 %v2925_v59  ;;  %v3173_v4 = vld [vmem:[#allocation6 + $0x1688] sm:$0xff] }
 0x355   :  { %3707 = vmatpush.msra.mxu2 %v2725_v12  ;;  %3668 = vmatpush.msra.mxu0 %v2461_v56  ;;  %v3301_v33 = vld [vmem:[#allocation6 + $0x1a88] sm:$0xff]  ;;  %v2321_v12 = vpop.f32.mrf.mxu1 }
 0x356   :  { %3688 = vmatpush.msra.mxu1 %v2589_v6  ;;  %3719 = vmatpush.msra.mxu3 %v2917_v38  ;;  %v3037_v13 = vld [vmem:[#allocation6 + $0x1248] sm:$0xff]  ;;  %v2322_v6 = vadd.f32 %v2321_v12, %v2302_v49  ;;  %v2782_v49 = vld [vmem:[#allocation6 + $0xa50] sm:$0xff] }
 0x357   :  { %3708 = vmatpush.msra.mxu2 %v2717_v62  ;;  %3669 = vmatpush.msra.mxu0 %v2453_v23  ;;  %v2869_v8 = vld [vmem:[#allocation6 + $0xd08] sm:$0xff]  ;;  %v2341_v62 = vpop.f32.mrf.mxu2  ;;  %v2510_v12 = vld [vmem:[#allocation6 + $0x1d0] sm:$0xff] }
 0x358   :  { %3689 = vmatpush.msra.mxu1 %v2581_v20  ;;  %3670 = vmatmul.f32.vlgmr.msra.gmra.mxu0 %v5650_v29  ;;  %v3165_v51 = vld [vmem:[#allocation6 + $0x1648] sm:$0xff] }
 0x359   :  { %3709 = vmatpush.msra.mxu2 %v2709_v36  ;;  %3690 = vmatmul.f32.vlgmr.msra.gmra.mxu1 %v5652_v7  ;;  %v3293_v2 = vld [vmem:[#allocation6 + $0x1a48] sm:$0xff]  ;;  %v2342_v36 = vadd.f32 %v2341_v62, %v2322_v6  ;;  %v2502_v6 = vld [vmem:[#allocation6 + $0x190] sm:$0xff] }
 0x35a   :  { %3710 = vmatmul.f32.vlgmr.msra.gmra.mxu2 %v5654_v50  ;;  %3734 = vmatpush.msrb.mxu0 %v3085_v63  ;;  %v3029_v0 = vld [vmem:[#allocation6 + $0x1208] sm:$0xff] }
 0x35b   :  { %3754 = vmatpush.msrb.mxu1 %v3213_v18  ;;  %3774 = vmatpush.msrb.mxu2 %v3341_v42  ;;  %v2861_v34 = vld [vmem:[#allocation6 + $0xcc8] sm:$0xff]  ;;  %v2361_v18 = vpop.f32.mrf.mxu3 }
 0x35c   :  { %3735 = vmatpush.msrb.mxu0 %v3077_v46  ;;  %3720 = vmatpush.msra.mxu3 %v2909_v47  ;;  %v3157_v35 = vld [vmem:[#allocation6 + $0x1608] sm:$0xff]  ;;  %v2362_v47 = vadd.f32 %v2361_v18, %v2342_v36  ;;  %v2750_v18 = vld [vmem:[#allocation6 + $0x950] sm:$0xff] }
 0x35d   :  { %3755 = vmatpush.msrb.mxu1 %v3205_v10  ;;  %3775 = vmatpush.msrb.mxu2 %v3333_v52  ;;  %v3285_v5 = vld [vmem:[#allocation6 + $0x1a08] sm:$0xff] }
 0x35e   :  { %3736 = vmatpush.msrb.mxu0 %v3069_v11  ;;  %3721 = vmatpush.msra.mxu3 %v2901_v48  ;;  %v3021_v39 = vld [vmem:[#allocation6 + $0x11c8] sm:$0xff]  ;;  %v2381_v48 = vpop.f32.mrf.mxu0 }
 0x35f   :  { %3756 = vmatpush.msrb.mxu1 %v3197_v26  ;;  %3776 = vmatpush.msrb.mxu2 %v3325_v31  ;;  %v2853_v37 = vld [vmem:[#allocation6 + $0xc88] sm:$0xff]  ;;  %v2382_v31 = vadd.f32 %v2381_v48, %v2362_v47  ;;  %v2614_v47 = vld [vmem:[#allocation6 + $0x510] sm:$0xff] }
 0x360   :  { %3737 = vmatpush.msrb.mxu0 %v3061_v14  ;;  %3722 = vmatpush.msra.mxu3 %v2893_v17  ;;  %v3149_v25 = vld [vmem:[#allocation6 + $0x15c8] sm:$0xff]  ;;  %v2606_v48 = vld [vmem:[#allocation6 + $0x4d0] sm:$0xff] }
 0x361   :  { %3757 = vmatpush.msrb.mxu1 %v3189_v27  ;;  %3777 = vmatpush.msrb.mxu2 %v3317_v19  ;;  %v3277_v24 = vld [vmem:[#allocation6 + $0x19c8] sm:$0xff]  ;;  %v2401_v27 = vpop.f32.mrf.mxu1  ;;  %v2574_v19 = vld [vmem:[#allocation6 + $0x3d0] sm:$0xff] }
 0x362   :  { %3738 = vmatpush.msrb.mxu0 %v3053_v21  ;;  %3723 = vmatpush.msra.mxu3 %v2885_v22  ;;  %v3013_v16 = vld [vmem:[#allocation6 + $0x1188] sm:$0xff]  ;;  %v2402_v21 = vadd.f32 %v2401_v27, %v2382_v31  ;;  %v2421_v22 = vpop.f32.mrf.mxu2  ;;  %v2470_v31 = vld [vmem:[#allocation6 + $0x90] sm:$0xff] }
 0x363   :  { %3758 = vmatpush.msrb.mxu1 %v3181_v44  ;;  %3778 = vmatpush.msrb.mxu2 %v3309_v32  ;;  %v2845_v3 = vld [vmem:[#allocation6 + $0xc48] sm:$0xff]  ;;  %v2702_v44 = vld [vmem:[#allocation6 + $0x7d0] sm:$0xff] }
 0x364   :  { %3739 = vmatpush.msrb.mxu0 %v3045_v9  ;;  %3724 = vmatpush.msra.mxu3 %v2877_v28  ;;  %v3141_v15 = vld [vmem:[#allocation6 + $0x1588] sm:$0xff]  ;;  %v2830_v32 = vld [vmem:[#allocation6 + $0xbd0] sm:$0xff]  ;;  %v2422_v28 = vadd.f32 %v2421_v22, %v2402_v21 }
 0x365   :  { %3759 = vmatpush.msrb.mxu1 %v3173_v4  ;;  %3779 = vmatpush.msrb.mxu2 %v3301_v33  ;;  %v3269_v58 = vld [vmem:[#allocation6 + $0x1988] sm:$0xff]  ;;  %v2566_v9 = vld [vmem:[#allocation6 + $0x390] sm:$0xff] }
 0x366   :  { %3740 = vmatpush.msrb.mxu0 %v3037_v13  ;;  %3725 = vmatpush.msra.mxu3 %v2869_v8  ;;  %v3005_v30 = vld [vmem:[#allocation6 + $0x1148] sm:$0xff]  ;;  %v2694_v4 = vld [vmem:[#allocation6 + $0x790] sm:$0xff]  ;;  %v2441_v13 = vpop.f32.mrf.mxu3 }
 0x367   :  { %3760 = vmatpush.msrb.mxu1 %v3165_v51  ;;  %3780 = vmatpush.msrb.mxu2 %v3293_v2  ;;  %v2837_v1 = vld [vmem:[#allocation6 + $0xc08] sm:$0xff]  ;;  %v2822_v33 = vld [vmem:[#allocation6 + $0xb90] sm:$0xff]  ;;  %v2442_v51 = vadd.f32 %v2441_v13, %v2422_v28 }
 0x368   :  { %3741 = vmatpush.msrb.mxu0 %v3029_v0  ;;  %3726 = vmatpush.msra.mxu3 %v2861_v34  ;;  %v3133_v53 = vld [vmem:[#allocation6 + $0x1548] sm:$0xff]  ;;  %v2558_v8 = vld [vmem:[#allocation6 + $0x350] sm:$0xff] }
 0x369   :  { %3761 = vmatpush.msrb.mxu1 %v3157_v35  ;;  %3781 = vmatpush.msrb.mxu2 %v3285_v5  ;;  %v3261_v57 = vld [vmem:[#allocation6 + $0x1948] sm:$0xff]  ;;  %v2686_v2 = vld [vmem:[#allocation6 + $0x750] sm:$0xff]  ;;  %v5692_v35 = vmax.f32 %v2442_v51, 0.0 }
 0x36a   :  { %3742 = vmatpush.msrb.mxu0 %v3021_v39  ;;  %3727 = vmatpush.msra.mxu3 %v2853_v37  ;;  %v2997_v54 = vld [vmem:[#allocation6 + $0x1108] sm:$0xff]  ;;  %v2814_v0 = vld [vmem:[#allocation6 + $0xb50] sm:$0xff] }
 0x36b   :  { %3762 = vmatpush.msrb.mxu1 %v3149_v25  ;;  %3782 = vmatpush.msrb.mxu2 %v3277_v24  ;;  %v3125_v56 = vld [vmem:[#allocation6 + $0x1508] sm:$0xff]  ;;  %v2550_v34 = vld [vmem:[#allocation6 + $0x310] sm:$0xff] }
 0x36c   :  { %3743 = vmatpush.msrb.mxu0 %v3013_v16  ;;  %3728 = vmatpush.msra.mxu3 %v2845_v3  ;;  %v3253_v59 = vld [vmem:[#allocation6 + $0x1908] sm:$0xff]  ;;  %v2678_v5 = vld [vmem:[#allocation6 + $0x710] sm:$0xff] }
 0x36d   :  { %3763 = vmatpush.msrb.mxu1 %v3141_v15  ;;  %3783 = vmatpush.msrb.mxu2 %v3269_v58  ;;  %v2989_v23 = vld [vmem:[#allocation6 + $0x10c8] sm:$0xff]  ;;  %v2806_v39 = vld [vmem:[#allocation6 + $0xb10] sm:$0xff] }
 0x36e   :  { %3744 = vmatpush.msrb.mxu0 %v3005_v30  ;;  %3729 = vmatpush.msra.mxu3 %v2837_v1  ;;  %v3117_v38 = vld [vmem:[#allocation6 + $0x14c8] sm:$0xff]  ;;  %v2670_v37 = vld [vmem:[#allocation6 + $0x6d0] sm:$0xff] }
 0x36f   :  { %3764 = vmatpush.msrb.mxu1 %v3133_v53  ;;  %3784 = vmatpush.msrb.mxu2 %v3261_v57  ;;  %v3245_v20 = vld [vmem:[#allocation6 + $0x18c8] sm:$0xff]  ;;  %v2798_v25 = vld [vmem:[#allocation6 + $0xad0] sm:$0xff] }
 0x370   :  { %3745 = vmatpush.msrb.mxu0 %v2997_v54  ;;  %v2981_v63 = vld [vmem:[#allocation6 + $0x1088] sm:$0xff]  ;;  %3650 = vmatmul.f32.vlgmr.msrb.gmra.mxu3 %v5692_v35  ;;  %v2534_v24 = vld [vmem:[#allocation6 + $0x290] sm:$0xff] }
 0x371   :  { %3765 = vmatpush.msrb.mxu1 %v3125_v56  ;;  %3785 = vmatpush.msrb.mxu2 %v3253_v59  ;;  %v3109_v42 = vld [vmem:[#allocation6 + $0x1488] sm:$0xff]  ;;  %v2662_v3 = vld [vmem:[#allocation6 + $0x690] sm:$0xff] }
 0x372   :  { %3746 = vmatpush.msrb.mxu0 %v2989_v23  ;;  %v3237_v46 = vld [vmem:[#allocation6 + $0x1888] sm:$0xff]  ;;  %v2790_v15 = vld [vmem:[#allocation6 + $0xa90] sm:$0xff] }
 0x373   :  { %3766 = vmatpush.msrb.mxu1 %v3117_v38  ;;  %3786 = vmatpush.msrb.mxu2 %v3245_v20  ;;  %v2973_v10 = vld [vmem:[#allocation6 + $0x1048] sm:$0xff]  ;;  %v2526_v58 = vld [vmem:[#allocation6 + $0x250] sm:$0xff] }
 0x374   :  { %3747 = vmatpush.msrb.mxu0 %v2981_v63  ;;  %v3101_v52 = vld [vmem:[#allocation6 + $0x1448] sm:$0xff]  ;;  %v2654_v30 = vld [vmem:[#allocation6 + $0x650] sm:$0xff] }
 0x375   :  { %v3229_v11 = vld [vmem:[#allocation6 + $0x1848] sm:$0xff]  ;;  %3767 = vmatpush.msrb.mxu1 %v3109_v42  ;;  %3787 = vmatpush.msrb.mxu2 %v3237_v46  ;;  %v2518_v1 = vld [vmem:[#allocation6 + $0x210] sm:$0xff] }
 0x376   :  { %v2965_v26 = vld [vmem:[#allocation6 + $0x1008] sm:$0xff]  ;;  %3748 = vmatpush.msrb.mxu0 %v2973_v10  ;;  %v2646_v57 = vld [vmem:[#allocation6 + $0x610] sm:$0xff] }
 0x377   :  { %v3093_v14 = vld [vmem:[#allocation6 + $0x1408] sm:$0xff]  ;;  %3768 = vmatpush.msrb.mxu1 %v3101_v52  ;;  %3788 = vmatpush.msrb.mxu2 %v3229_v11  ;;  %v2774_v54 = vld [vmem:[#allocation6 + $0xa10] sm:$0xff] }
 0x378   :  { %v3221_v17 = vld [vmem:[#allocation6 + $0x1808] sm:$0xff]  ;;  %3749 = vmatpush.msrb.mxu0 %v2965_v26  ;;  %v2638_v56 = vld [vmem:[#allocation6 + $0x5d0] sm:$0xff]  ;;  %3730 = vmatmul.f32.vlgmr.msra.gmra.mxu3 %v5656_v60 }
 0x379   :  { %3769 = vmatpush.msrb.mxu1 %v3093_v14  ;;  %3789 = vmatpush.msrb.mxu2 %v3221_v17  ;;  %v3469_v41 = vld [vmem:[#allocation6 + $0x1fc8] sm:$0xff]  ;;  %v2766_v59 = vld [vmem:[#allocation6 + $0x9d0] sm:$0xff] }
 0x37a   :  { %3750 = vmatmul.f32.vlgmr.msrb.gmra.mxu0 %v5677_v55  ;;  %3770 = vmatmul.f32.vlgmr.msrb.gmra.mxu1 %v5679_v61  ;;  %v3461_v16 = vld [vmem:[#allocation6 + $0x1f88] sm:$0xff]  ;;  %v2630_v23 = vld [vmem:[#allocation6 + $0x590] sm:$0xff] }
 0x37b   :  { %3790 = vmatmul.f32.vlgmr.msrb.gmra.mxu2 %v5683_v43  ;;  %3814 = vmatpush.msra.mxu0 %v2574_v19  ;;  %v3453_v45 = vld [vmem:[#allocation6 + $0x1f48] sm:$0xff]  ;;  %v2758_v38 = vld [vmem:[#allocation6 + $0x990] sm:$0xff] }
 0x37c   :  { %3834 = vmatpush.msra.mxu1 %v2702_v44  ;;  %3854 = vmatpush.msra.mxu2 %v2830_v32  ;;  %v3445_v53 = vld [vmem:[#allocation6 + $0x1f08] sm:$0xff]  ;;  %v2494_v20 = vld [vmem:[#allocation6 + $0x150] sm:$0xff] }
 0x37d   :  { %3815 = vmatpush.msra.mxu0 %v2566_v9  ;;  %3794 = vmatpush.msrb.mxu3 %v3469_v41  ;;  %v3437_v62 = vld [vmem:[#allocation6 + $0x1ec8] sm:$0xff]  ;;  %v2622_v63 = vld [vmem:[#allocation6 + $0x550] sm:$0xff] }
 0x37e   :  { %3835 = vmatpush.msra.mxu1 %v2694_v4  ;;  %3855 = vmatpush.msra.mxu2 %v2822_v33  ;;  %v3429_v36 = vld [vmem:[#allocation6 + $0x1e88] sm:$0xff]  ;;  %v2486_v42 = vld [vmem:[#allocation6 + $0x110] sm:$0xff] }
 0x37f   :  { %3816 = vmatpush.msra.mxu0 %v2558_v8  ;;  %3795 = vmatpush.msrb.mxu3 %v3461_v16  ;;  %v3421_v46 = vld [vmem:[#allocation6 + $0x1e48] sm:$0xff]  ;;  %v2742_v10 = vld [vmem:[#allocation6 + $0x910] sm:$0xff] }
 0x380   :  { %3836 = vmatpush.msra.mxu1 %v2686_v2  ;;  %3856 = vmatpush.msra.mxu2 %v2814_v0  ;;  %v2478_v52 = vld [vmem:[#allocation6 + $0xd0] sm:$0xff]  ;;  %v3413_v11 = vld [vmem:[#allocation6 + $0x1e08] sm:$0xff] }
 0x381   :  { %3817 = vmatpush.msra.mxu0 %v2550_v34  ;;  %3796 = vmatpush.msrb.mxu3 %v3453_v45  ;;  %v2734_v26 = vld [vmem:[#allocation6 + $0x8d0] sm:$0xff]  ;;  %v3405_v14 = vld [vmem:[#allocation6 + $0x1dc8] sm:$0xff] }
 0x382   :  { %3837 = vmatpush.msra.mxu1 %v2678_v5  ;;  %3857 = vmatpush.msra.mxu2 %v2806_v39  ;;  %v2598_v17 = vld [vmem:[#allocation6 + $0x490] sm:$0xff]  ;;  %v3397_v21 = vld [vmem:[#allocation6 + $0x1d88] sm:$0xff] }
 0x383   :  { %3818 = vmatpush.msra.mxu0 %v2542_v40  ;;  %3797 = vmatpush.msrb.mxu3 %v3445_v53  ;;  %v2726_v27 = vld [vmem:[#allocation6 + $0x890] sm:$0xff]  ;;  %v3389_v9 = vld [vmem:[#allocation6 + $0x1d48] sm:$0xff] }
 0x384   :  { %3838 = vmatpush.msra.mxu1 %v2670_v37  ;;  %3858 = vmatpush.msra.mxu2 %v2798_v25  ;;  %v2462_v19 = vld [vmem:[#allocation6 + $0x50] sm:$0xff]  ;;  %v3381_v2 = vld [vmem:[#allocation6 + $0x1d08] sm:$0xff] }
 0x385   :  { %3819 = vmatpush.msra.mxu0 %v2534_v24  ;;  %3798 = vmatpush.msrb.mxu3 %v3437_v62  ;;  %v2590_v22 = vld [vmem:[#allocation6 + $0x450] sm:$0xff]  ;;  %v3373_v39 = vld [vmem:[#allocation6 + $0x1cc8] sm:$0xff] }
 0x386   :  { %3839 = vmatpush.msra.mxu1 %v2662_v3  ;;  %3859 = vmatpush.msra.mxu2 %v2790_v15  ;;  %v2718_v44 = vld [vmem:[#allocation6 + $0x850] sm:$0xff]  ;;  %v3365_v25 = vld [vmem:[#allocation6 + $0x1c88] sm:$0xff] }
 0x387   :  { %3820 = vmatpush.msra.mxu0 %v2526_v58  ;;  %3799 = vmatpush.msrb.mxu3 %v3429_v36  ;;  %v2454_v32 = vld [vmem:[#allocation6 + $0x10] sm:$0xff]  ;;  %v3357_v15 = vld [vmem:[#allocation6 + $0x1c48] sm:$0xff] }
 0x388   :  { %3840 = vmatpush.msra.mxu1 %v2654_v30  ;;  %3860 = vmatpush.msra.mxu2 %v2782_v49  ;;  %v2582_v28 = vld [vmem:[#allocation6 + $0x410] sm:$0xff]  ;;  %v3349_v49 = vld [vmem:[#allocation6 + $0x1c08] sm:$0xff] }
 0x389   :  { %3821 = vmatpush.msra.mxu0 %v2518_v1  ;;  %3800 = vmatpush.msrb.mxu3 %v3421_v46  ;;  %v2710_v4 = vld [vmem:[#allocation6 + $0x810] sm:$0xff] }
 0x38a   :  { %3841 = vmatpush.msra.mxu1 %v2646_v57  ;;  %3861 = vmatpush.msra.mxu2 %v2774_v54  ;;  %v3086_v33 = vld [vmem:[#allocation6 + $0x13d0] sm:$0xff] }
 0x38b   :  { %3822 = vmatpush.msra.mxu0 %v2510_v12  ;;  %3801 = vmatpush.msrb.mxu3 %v3413_v11  ;;  %v3214_v13 = vld [vmem:[#allocation6 + $0x17d0] sm:$0xff] }
 0x38c   :  { %3842 = vmatpush.msra.mxu1 %v2638_v56  ;;  %3862 = vmatpush.msra.mxu2 %v2766_v59  ;;  %v3342_v8 = vld [vmem:[#allocation6 + $0x1bd0] sm:$0xff] }
 0x38d   :  { %3823 = vmatpush.msra.mxu0 %v2502_v6  ;;  %3802 = vmatpush.msrb.mxu3 %v3405_v14  ;;  %v3078_v51 = vld [vmem:[#allocation6 + $0x1390] sm:$0xff] }
 0x38e   :  { %3843 = vmatpush.msra.mxu1 %v2630_v23  ;;  %3863 = vmatpush.msra.mxu2 %v2758_v38  ;;  %v3206_v0 = vld [vmem:[#allocation6 + $0x1790] sm:$0xff] }
 0x38f   :  { %3824 = vmatpush.msra.mxu0 %v2494_v20  ;;  %3803 = vmatpush.msrb.mxu3 %v3397_v21  ;;  %v3334_v34 = vld [vmem:[#allocation6 + $0x1b90] sm:$0xff] }
 0x390   :  { %3844 = vmatpush.msra.mxu1 %v2622_v63  ;;  %3864 = vmatpush.msra.mxu2 %v2750_v18  ;;  %v3070_v5 = vld [vmem:[#allocation6 + $0x1350] sm:$0xff] }
 0x391   :  { %3825 = vmatpush.msra.mxu0 %v2486_v42  ;;  %3804 = vmatpush.msrb.mxu3 %v3389_v9  ;;  %v3198_v40 = vld [vmem:[#allocation6 + $0x1750] sm:$0xff] }
 0x392   :  { %3845 = vmatpush.msra.mxu1 %v2614_v47  ;;  %3865 = vmatpush.msra.mxu2 %v2742_v10  ;;  %v3326_v41 = vld [vmem:[#allocation6 + $0x1b50] sm:$0xff] }
 0x393   :  { %3826 = vmatpush.msra.mxu0 %v2478_v52  ;;  %3805 = vmatpush.msrb.mxu3 %v3381_v2  ;;  %v3062_v37 = vld [vmem:[#allocation6 + $0x1310] sm:$0xff] }
 0x394   :  { %3846 = vmatpush.msra.mxu1 %v2606_v48  ;;  %3866 = vmatpush.msra.mxu2 %v2734_v26  ;;  %v3190_v24 = vld [vmem:[#allocation6 + $0x1710] sm:$0xff] }
 0x395   :  { %3827 = vmatpush.msra.mxu0 %v2470_v31  ;;  %v3318_v16 = vld [vmem:[#allocation6 + $0x1b10] sm:$0xff]  ;;  %3806 = vmatpush.msrb.mxu3 %v3373_v39  ;;  %v2831_v39 = vld [vmem:[#allocation6 + $0xbd8] sm:$0xff] }
 0x396   :  { %3847 = vmatpush.msra.mxu1 %v2598_v17  ;;  %3867 = vmatpush.msra.mxu2 %v2726_v27  ;;  %v3054_v3 = vld [vmem:[#allocation6 + $0x12d0] sm:$0xff] }
 0x397   :  { %3828 = vmatpush.msra.mxu0 %v2462_v19  ;;  %v3182_v58 = vld [vmem:[#allocation6 + $0x16d0] sm:$0xff]  ;;  %3807 = vmatpush.msrb.mxu3 %v3365_v25  ;;  %v2823_v25 = vld [vmem:[#allocation6 + $0xb98] sm:$0xff] }
 0x398   :  { %3848 = vmatpush.msra.mxu1 %v2590_v22  ;;  %3868 = vmatpush.msra.mxu2 %v2718_v44  ;;  %v3310_v45 = vld [vmem:[#allocation6 + $0x1ad0] sm:$0xff] }
 0x399   :  { %3829 = vmatpush.msra.mxu0 %v2454_v32  ;;  %v3046_v30 = vld [vmem:[#allocation6 + $0x1290] sm:$0xff]  ;;  %3808 = vmatpush.msrb.mxu3 %v3357_v15  ;;  %v2815_v15 = vld [vmem:[#allocation6 + $0xb58] sm:$0xff] }
 0x39a   :  { %3849 = vmatpush.msra.mxu1 %v2582_v28  ;;  %3869 = vmatpush.msra.mxu2 %v2710_v4  ;;  %v3174_v1 = vld [vmem:[#allocation6 + $0x1690] sm:$0xff] }
 0x39b   :  { %3830 = vmatmul.f32.vlgmr.msra.gmra.mxu0 %v5650_v29  ;;  %3850 = vmatmul.f32.vlgmr.msra.gmra.mxu1 %v5652_v7  ;;  %v3302_v53 = vld [vmem:[#allocation6 + $0x1a90] sm:$0xff] }
 0x39c   :  { %3870 = vmatmul.f32.vlgmr.msra.gmra.mxu2 %v5654_v50  ;;  %3894 = vmatpush.msrb.mxu0 %v3086_v33  ;;  %v3038_v57 = vld [vmem:[#allocation6 + $0x1250] sm:$0xff] }
 0x39d   :  { %3914 = vmatpush.msrb.mxu1 %v3214_v13  ;;  %3934 = vmatpush.msrb.mxu2 %v3342_v8  ;;  %v3166_v54 = vld [vmem:[#allocation6 + $0x1650] sm:$0xff] }
 0x39e   :  { %3895 = vmatpush.msrb.mxu0 %v3078_v51  ;;  %v3294_v12 = vld [vmem:[#allocation6 + $0x1a50] sm:$0xff]  ;;  %3809 = vmatpush.msrb.mxu3 %v3349_v49  ;;  %v2807_v49 = vld [vmem:[#allocation6 + $0xb18] sm:$0xff] }
 0x39f   :  { %3915 = vmatpush.msrb.mxu1 %v3206_v0  ;;  %3935 = vmatpush.msrb.mxu2 %v3334_v34  ;;  %v2958_v56 = vld [vmem:[#allocation6 + $0xfd0] sm:$0xff]  ;;  %v2575_v34 = vld [vmem:[#allocation6 + $0x3d8] sm:$0xff] }
 0x3a0   :  { %3896 = vmatpush.msrb.mxu0 %v3070_v5  ;;  %v3030_v59 = vld [vmem:[#allocation6 + $0x1210] sm:$0xff]  ;;  %3810 = vmatmul.f32.vlgmr.msrb.gmra.mxu3 %v5692_v35  ;;  %v2703_v5 = vld [vmem:[#allocation6 + $0x7d8] sm:$0xff] }
 0x3a1   :  { %3916 = vmatpush.msrb.mxu1 %v3198_v40  ;;  %3936 = vmatpush.msrb.mxu2 %v3326_v41  ;;  %v3158_v6 = vld [vmem:[#allocation6 + $0x1610] sm:$0xff]  ;;  %v2567_v41 = vld [vmem:[#allocation6 + $0x398] sm:$0xff] }
 0x3a2   :  { %3897 = vmatpush.msrb.mxu0 %v3062_v37  ;;  %v3286_v62 = vld [vmem:[#allocation6 + $0x1a10] sm:$0xff]  ;;  %3874 = vmatpush.msra.mxu3 %v2958_v56  ;;  %v2695_v37 = vld [vmem:[#allocation6 + $0x798] sm:$0xff] }
 0x3a3   :  { %3917 = vmatpush.msrb.mxu1 %v3190_v24  ;;  %3937 = vmatpush.msrb.mxu2 %v3318_v16  ;;  %v2950_v23 = vld [vmem:[#allocation6 + $0xf90] sm:$0xff]  ;;  %v2559_v16 = vld [vmem:[#allocation6 + $0x358] sm:$0xff] }
 0x3a4   :  { %3898 = vmatpush.msrb.mxu0 %v3054_v3  ;;  %v3022_v38 = vld [vmem:[#allocation6 + $0x11d0] sm:$0xff]  ;;  %3875 = vmatpush.msra.mxu3 %v2950_v23  ;;  %v2687_v3 = vld [vmem:[#allocation6 + $0x758] sm:$0xff] }
 0x3a5   :  { %3918 = vmatpush.msrb.mxu1 %v3182_v58  ;;  %3938 = vmatpush.msrb.mxu2 %v3310_v45  ;;  %v3150_v20 = vld [vmem:[#allocation6 + $0x15d0] sm:$0xff]  ;;  %v2551_v45 = vld [vmem:[#allocation6 + $0x318] sm:$0xff] }
 0x3a6   :  { %3899 = vmatpush.msrb.mxu0 %v3046_v30  ;;  %v3278_v36 = vld [vmem:[#allocation6 + $0x19d0] sm:$0xff]  ;;  %v2679_v30 = vld [vmem:[#allocation6 + $0x718] sm:$0xff] }
 0x3a7   :  { %3919 = vmatpush.msrb.mxu1 %v3174_v1  ;;  %3939 = vmatpush.msrb.mxu2 %v3302_v53  ;;  %v2942_v63 = vld [vmem:[#allocation6 + $0xf50] sm:$0xff]  ;;  %v2543_v53 = vld [vmem:[#allocation6 + $0x2d8] sm:$0xff] }
 0x3a8   :  { %3900 = vmatpush.msrb.mxu0 %v3038_v57  ;;  %v3014_v18 = vld [vmem:[#allocation6 + $0x1190] sm:$0xff]  ;;  %3876 = vmatpush.msra.mxu3 %v2942_v63  ;;  %v2671_v57 = vld [vmem:[#allocation6 + $0x6d8] sm:$0xff] }
 0x3a9   :  { %3920 = vmatpush.msrb.mxu1 %v3166_v54  ;;  %3940 = vmatpush.msrb.mxu2 %v3294_v12  ;;  %v3142_v42 = vld [vmem:[#allocation6 + $0x1590] sm:$0xff]  ;;  %v2799_v54 = vld [vmem:[#allocation6 + $0xad8] sm:$0xff] }
 0x3aa   :  { %3901 = vmatpush.msrb.mxu0 %v3030_v59  ;;  %v3270_v46 = vld [vmem:[#allocation6 + $0x1990] sm:$0xff]  ;;  %v2535_v56 = vld [vmem:[#allocation6 + $0x298] sm:$0xff] }
 0x3ab   :  { %3921 = vmatpush.msrb.mxu1 %v3158_v6  ;;  %3941 = vmatpush.msrb.mxu2 %v3286_v62  ;;  %v2934_v47 = vld [vmem:[#allocation6 + $0xf10] sm:$0xff]  ;;  %v2663_v59 = vld [vmem:[#allocation6 + $0x698] sm:$0xff] }
 0x3ac   :  { %3902 = vmatpush.msrb.mxu0 %v3022_v38  ;;  %v3006_v10 = vld [vmem:[#allocation6 + $0x1150] sm:$0xff]  ;;  %3877 = vmatpush.msra.mxu3 %v2934_v47  ;;  %v2791_v6 = vld [vmem:[#allocation6 + $0xa98] sm:$0xff] }
 0x3ad   :  { %3922 = vmatpush.msrb.mxu1 %v3150_v20  ;;  %3942 = vmatpush.msrb.mxu2 %v3278_v36  ;;  %v3134_v52 = vld [vmem:[#allocation6 + $0x1550] sm:$0xff]  ;;  %v2527_v23 = vld [vmem:[#allocation6 + $0x258] sm:$0xff] }
 0x3ae   :  { %3903 = vmatpush.msrb.mxu0 %v3014_v18  ;;  %v3262_v11 = vld [vmem:[#allocation6 + $0x1950] sm:$0xff]  ;;  %v2655_v38 = vld [vmem:[#allocation6 + $0x658] sm:$0xff] }
 0x3af   :  { %3923 = vmatpush.msrb.mxu1 %v3142_v42  ;;  %3943 = vmatpush.msrb.mxu2 %v3270_v46  ;;  %v2926_v48 = vld [vmem:[#allocation6 + $0xed0] sm:$0xff]  ;;  %v2783_v20 = vld [vmem:[#allocation6 + $0xa58] sm:$0xff] }
 0x3b0   :  { %v2998_v26 = vld [vmem:[#allocation6 + $0x1110] sm:$0xff]  ;;  %3904 = vmatpush.msrb.mxu0 %v3006_v10  ;;  %3878 = vmatpush.msra.mxu3 %v2926_v48  ;;  %v2519_v63 = vld [vmem:[#allocation6 + $0x218] sm:$0xff] }
 0x3b1   :  { %v3126_v31 = vld [vmem:[#allocation6 + $0x1510] sm:$0xff]  ;;  %3924 = vmatpush.msrb.mxu1 %v3134_v52  ;;  %3944 = vmatpush.msrb.mxu2 %v3262_v11  ;;  %v2647_v18 = vld [vmem:[#allocation6 + $0x618] sm:$0xff] }
 0x3b2   :  { %v3254_v14 = vld [vmem:[#allocation6 + $0x1910] sm:$0xff]  ;;  %3905 = vmatpush.msrb.mxu0 %v2998_v26  ;;  %v2775_v46 = vld [vmem:[#allocation6 + $0xa18] sm:$0xff] }
 0x3b3   :  { %v2918_v17 = vld [vmem:[#allocation6 + $0xe90] sm:$0xff]  ;;  %3925 = vmatpush.msrb.mxu1 %v3126_v31  ;;  %3945 = vmatpush.msrb.mxu2 %v3254_v14  ;;  %v2511_v47 = vld [vmem:[#allocation6 + $0x1d8] sm:$0xff] }
 0x3b4   :  { %v2990_v27 = vld [vmem:[#allocation6 + $0x10d0] sm:$0xff]  ;;  %3879 = vmatpush.msra.mxu3 %v2918_v17  ;;  %v2639_v10 = vld [vmem:[#allocation6 + $0x5d8] sm:$0xff] }
 0x3b5   :  { %v3118_v19 = vld [vmem:[#allocation6 + $0x14d0] sm:$0xff]  ;;  %3906 = vmatpush.msrb.mxu0 %v2990_v27  ;;  %v2767_v11 = vld [vmem:[#allocation6 + $0x9d8] sm:$0xff] }
 0x3b6   :  { %v3246_v21 = vld [vmem:[#allocation6 + $0x18d0] sm:$0xff]  ;;  %3926 = vmatpush.msrb.mxu1 %v3118_v19  ;;  %v2503_v48 = vld [vmem:[#allocation6 + $0x198] sm:$0xff] }
 0x3b7   :  { %v2910_v22 = vld [vmem:[#allocation6 + $0xe50] sm:$0xff]  ;;  %3946 = vmatpush.msrb.mxu2 %v3246_v21  ;;  %v2631_v26 = vld [vmem:[#allocation6 + $0x598] sm:$0xff] }
 0x3b8   :  { %v2982_v44 = vld [vmem:[#allocation6 + $0x1090] sm:$0xff]  ;;  %3880 = vmatpush.msra.mxu3 %v2910_v22  ;;  %v2759_v14 = vld [vmem:[#allocation6 + $0x998] sm:$0xff] }
 0x3b9   :  { %v3110_v32 = vld [vmem:[#allocation6 + $0x1490] sm:$0xff]  ;;  %3907 = vmatpush.msrb.mxu0 %v2982_v44  ;;  %v2495_v17 = vld [vmem:[#allocation6 + $0x158] sm:$0xff] }
 0x3ba   :  { %v3238_v9 = vld [vmem:[#allocation6 + $0x1890] sm:$0xff]  ;;  %3927 = vmatpush.msrb.mxu1 %v3110_v32  ;;  %v2623_v27 = vld [vmem:[#allocation6 + $0x558] sm:$0xff] }
 0x3bb   :  { %v2902_v28 = vld [vmem:[#allocation6 + $0xe10] sm:$0xff]  ;;  %3947 = vmatpush.msrb.mxu2 %v3238_v9  ;;  %v2751_v21 = vld [vmem:[#allocation6 + $0x958] sm:$0xff] }
 0x3bc   :  { %v2974_v4 = vld [vmem:[#allocation6 + $0x1050] sm:$0xff]  ;;  %3881 = vmatpush.msra.mxu3 %v2902_v28  ;;  %v2487_v22 = vld [vmem:[#allocation6 + $0x118] sm:$0xff] }
 0x3bd   :  { %v3102_v33 = vld [vmem:[#allocation6 + $0x1450] sm:$0xff]  ;;  %3908 = vmatpush.msrb.mxu0 %v2974_v4  ;;  %v2615_v44 = vld [vmem:[#allocation6 + $0x518] sm:$0xff] }
 0x3be   :  { %v3230_v13 = vld [vmem:[#allocation6 + $0x1850] sm:$0xff]  ;;  %3928 = vmatpush.msrb.mxu1 %v3102_v33  ;;  %v2743_v9 = vld [vmem:[#allocation6 + $0x918] sm:$0xff] }
 0x3bf   :  { %v2894_v8 = vld [vmem:[#allocation6 + $0xdd0] sm:$0xff]  ;;  %3948 = vmatpush.msrb.mxu2 %v3230_v13  ;;  %v2479_v28 = vld [vmem:[#allocation6 + $0xd8] sm:$0xff] }
 0x3c0   :  { %v2966_v51 = vld [vmem:[#allocation6 + $0x1010] sm:$0xff]  ;;  %3882 = vmatpush.msra.mxu3 %v2894_v8  ;;  %v2607_v4 = vld [vmem:[#allocation6 + $0x4d8] sm:$0xff] }
 0x3c1   :  { %v3094_v2 = vld [vmem:[#allocation6 + $0x1410] sm:$0xff]  ;;  %3909 = vmatpush.msrb.mxu0 %v2966_v51  ;;  %v2735_v13 = vld [vmem:[#allocation6 + $0x8d8] sm:$0xff] }
 0x3c2   :  { %v3222_v0 = vld [vmem:[#allocation6 + $0x1810] sm:$0xff]  ;;  %3929 = vmatpush.msrb.mxu1 %v3094_v2  ;;  %3910 = vmatmul.f32.vlgmr.msrb.gmra.mxu0 %v5677_v55  ;;  %v2471_v8 = vld [vmem:[#allocation6 + $0x98] sm:$0xff] }
 0x3c3   :  { %3949 = vmatpush.msrb.mxu2 %v3222_v0  ;;  %3930 = vmatmul.f32.vlgmr.msrb.gmra.mxu1 %v5679_v61  ;;  %v2886_v40 = vld [vmem:[#allocation6 + $0xd90] sm:$0xff]  ;;  %v2599_v51 = vld [vmem:[#allocation6 + $0x498] sm:$0xff] }
 0x3c4   :  { %3950 = vmatmul.f32.vlgmr.msrb.gmra.mxu2 %v5683_v43  ;;  %3974 = vmatpush.msra.mxu0 %v2575_v34  ;;  %v2878_v24 = vld [vmem:[#allocation6 + $0xd50] sm:$0xff]  ;;  %v2727_v0 = vld [vmem:[#allocation6 + $0x898] sm:$0xff] }
 0x3c5   :  { %3994 = vmatpush.msra.mxu1 %v2703_v5  ;;  %4014 = vmatpush.msra.mxu2 %v2831_v39  ;;  %v2870_v58 = vld [vmem:[#allocation6 + $0xd10] sm:$0xff]  ;;  %v2463_v34 = vld [vmem:[#allocation6 + $0x58] sm:$0xff] }
 0x3c6   :  { %3883 = vmatpush.msra.mxu3 %v2886_v40  ;;  %3975 = vmatpush.msra.mxu0 %v2567_v41  ;;  %v2862_v1 = vld [vmem:[#allocation6 + $0xcd0] sm:$0xff]  ;;  %v2591_v5 = vld [vmem:[#allocation6 + $0x458] sm:$0xff] }
 0x3c7   :  { %3995 = vmatpush.msra.mxu1 %v2695_v37  ;;  %4015 = vmatpush.msra.mxu2 %v2823_v25  ;;  %v2854_v12 = vld [vmem:[#allocation6 + $0xc90] sm:$0xff]  ;;  %v2719_v40 = vld [vmem:[#allocation6 + $0x858] sm:$0xff] }
 0x3c8   :  { %3884 = vmatpush.msra.mxu3 %v2878_v24  ;;  %3976 = vmatpush.msra.mxu0 %v2559_v16  ;;  %v2846_v62 = vld [vmem:[#allocation6 + $0xc50] sm:$0xff]  ;;  %v2455_v41 = vld [vmem:[#allocation6 + $0x18] sm:$0xff] }
 0x3c9   :  { %3996 = vmatpush.msra.mxu1 %v2687_v3  ;;  %4016 = vmatpush.msra.mxu2 %v2815_v15  ;;  %v2838_v36 = vld [vmem:[#allocation6 + $0xc10] sm:$0xff]  ;;  %v2583_v37 = vld [vmem:[#allocation6 + $0x418] sm:$0xff] }
 0x3ca   :  { %3885 = vmatpush.msra.mxu3 %v2870_v58  ;;  %3977 = vmatpush.msra.mxu0 %v2551_v45  ;;  %v3470_v42 = vld [vmem:[#allocation6 + $0x1fd0] sm:$0xff]  ;;  %v2711_v24 = vld [vmem:[#allocation6 + $0x818] sm:$0xff] }
 0x3cb   :  { %3997 = vmatpush.msra.mxu1 %v2679_v30  ;;  %4017 = vmatpush.msra.mxu2 %v2807_v49  ;;  %v3462_v52 = vld [vmem:[#allocation6 + $0x1f90] sm:$0xff]  ;;  %v3087_v16 = vld [vmem:[#allocation6 + $0x13d8] sm:$0xff] }
 0x3cc   :  { %3886 = vmatpush.msra.mxu3 %v2862_v1  ;;  %3978 = vmatpush.msra.mxu0 %v2543_v53  ;;  %v3454_v31 = vld [vmem:[#allocation6 + $0x1f50] sm:$0xff]  ;;  %v3215_v3 = vld [vmem:[#allocation6 + $0x17d8] sm:$0xff] }
 0x3cd   :  { %3998 = vmatpush.msra.mxu1 %v2671_v57  ;;  %4018 = vmatpush.msra.mxu2 %v2799_v54  ;;  %v3446_v19 = vld [vmem:[#allocation6 + $0x1f10] sm:$0xff]  ;;  %v3343_v15 = vld [vmem:[#allocation6 + $0x1bd8] sm:$0xff] }
 0x3ce   :  { %3887 = vmatpush.msra.mxu3 %v2854_v12  ;;  %3979 = vmatpush.msra.mxu0 %v2535_v56  ;;  %v3438_v32 = vld [vmem:[#allocation6 + $0x1ed0] sm:$0xff]  ;;  %v3079_v45 = vld [vmem:[#allocation6 + $0x1398] sm:$0xff] }
 0x3cf   :  { %3999 = vmatpush.msra.mxu1 %v2663_v59  ;;  %4019 = vmatpush.msra.mxu2 %v2791_v6  ;;  %v3430_v33 = vld [vmem:[#allocation6 + $0x1e90] sm:$0xff]  ;;  %v3207_v30 = vld [vmem:[#allocation6 + $0x1798] sm:$0xff] }
 0x3d0   :  { %3888 = vmatpush.msra.mxu3 %v2846_v62  ;;  %3980 = vmatpush.msra.mxu0 %v2527_v23  ;;  %v3422_v2 = vld [vmem:[#allocation6 + $0x1e50] sm:$0xff]  ;;  %v3335_v49 = vld [vmem:[#allocation6 + $0x1b98] sm:$0xff] }
 0x3d1   :  { %4000 = vmatpush.msra.mxu1 %v2655_v38  ;;  %4020 = vmatpush.msra.mxu2 %v2783_v20  ;;  %v3414_v39 = vld [vmem:[#allocation6 + $0x1e10] sm:$0xff]  ;;  %v3071_v53 = vld [vmem:[#allocation6 + $0x1358] sm:$0xff] }
 0x3d2   :  { %3889 = vmatpush.msra.mxu3 %v2838_v36  ;;  %3981 = vmatpush.msra.mxu0 %v2519_v63  ;;  %v3406_v25 = vld [vmem:[#allocation6 + $0x1dd0] sm:$0xff]  ;;  %v3199_v57 = vld [vmem:[#allocation6 + $0x1758] sm:$0xff] }
 0x3d3   :  { %3890 = vmatmul.f32.vlgmr.msra.gmra.mxu3 %v5656_v60  ;;  %4001 = vmatpush.msra.mxu1 %v2647_v18  ;;  %v3398_v58 = vld [vmem:[#allocation6 + $0x1d90] sm:$0xff]  ;;  %v3327_v54 = vld [vmem:[#allocation6 + $0x1b58] sm:$0xff] }
 0x3d4   :  { %3954 = vmatpush.msrb.mxu3 %v3470_v42  ;;  %4021 = vmatpush.msra.mxu2 %v2775_v46  ;;  %v3390_v1 = vld [vmem:[#allocation6 + $0x1d50] sm:$0xff]  ;;  %v3063_v56 = vld [vmem:[#allocation6 + $0x1318] sm:$0xff] }
 0x3d5   :  { %3982 = vmatpush.msra.mxu0 %v2511_v47  ;;  %4002 = vmatpush.msra.mxu1 %v2639_v10  ;;  %v3382_v12 = vld [vmem:[#allocation6 + $0x1d10] sm:$0xff]  ;;  %v3191_v59 = vld [vmem:[#allocation6 + $0x1718] sm:$0xff] }
 0x3d6   :  { %3955 = vmatpush.msrb.mxu3 %v3462_v52  ;;  %4022 = vmatpush.msra.mxu2 %v2767_v11  ;;  %v3319_v6 = vld [vmem:[#allocation6 + $0x1b18] sm:$0xff]  ;;  %v3374_v62 = vld [vmem:[#allocation6 + $0x1cd0] sm:$0xff] }
 0x3d7   :  { %3983 = vmatpush.msra.mxu0 %v2503_v48  ;;  %4003 = vmatpush.msra.mxu1 %v2631_v26  ;;  %v3055_v23 = vld [vmem:[#allocation6 + $0x12d8] sm:$0xff]  ;;  %v3366_v36 = vld [vmem:[#allocation6 + $0x1c90] sm:$0xff] }
 0x3d8   :  { %3956 = vmatpush.msrb.mxu3 %v3454_v31  ;;  %4023 = vmatpush.msra.mxu2 %v2759_v14  ;;  %v3183_v38 = vld [vmem:[#allocation6 + $0x16d8] sm:$0xff]  ;;  %v3358_v46 = vld [vmem:[#allocation6 + $0x1c50] sm:$0xff] }
 0x3d9   :  { %3984 = vmatpush.msra.mxu0 %v2495_v17  ;;  %4004 = vmatpush.msra.mxu1 %v2623_v27  ;;  %v3311_v20 = vld [vmem:[#allocation6 + $0x1ad8] sm:$0xff]  ;;  %v3350_v11 = vld [vmem:[#allocation6 + $0x1c10] sm:$0xff] }
 0x3da   :  { %3957 = vmatpush.msrb.mxu3 %v3446_v19  ;;  %4024 = vmatpush.msra.mxu2 %v2751_v21  ;;  %v3047_v63 = vld [vmem:[#allocation6 + $0x1298] sm:$0xff] }
 0x3db   :  { %3985 = vmatpush.msra.mxu0 %v2487_v22  ;;  %4005 = vmatpush.msra.mxu1 %v2615_v44  ;;  %v3175_v18 = vld [vmem:[#allocation6 + $0x1698] sm:$0xff] }
 0x3dc   :  { %3958 = vmatpush.msrb.mxu3 %v3438_v32  ;;  %4025 = vmatpush.msra.mxu2 %v2743_v9  ;;  %v3303_v42 = vld [vmem:[#allocation6 + $0x1a98] sm:$0xff] }
 0x3dd   :  { %3986 = vmatpush.msra.mxu0 %v2479_v28  ;;  %4006 = vmatpush.msra.mxu1 %v2607_v4  ;;  %v3039_v47 = vld [vmem:[#allocation6 + $0x1258] sm:$0xff] }
 0x3de   :  { %3959 = vmatpush.msrb.mxu3 %v3430_v33  ;;  %4026 = vmatpush.msra.mxu2 %v2735_v13  ;;  %v3167_v10 = vld [vmem:[#allocation6 + $0x1658] sm:$0xff] }
 0x3df   :  { %3987 = vmatpush.msra.mxu0 %v2471_v8  ;;  %4007 = vmatpush.msra.mxu1 %v2599_v51  ;;  %v3295_v52 = vld [vmem:[#allocation6 + $0x1a58] sm:$0xff] }
 0x3e0   :  { %3960 = vmatpush.msrb.mxu3 %v3422_v2  ;;  %4027 = vmatpush.msra.mxu2 %v2727_v0  ;;  %v3031_v48 = vld [vmem:[#allocation6 + $0x1218] sm:$0xff] }
 0x3e1   :  { %3988 = vmatpush.msra.mxu0 %v2463_v34  ;;  %4008 = vmatpush.msra.mxu1 %v2591_v5  ;;  %v3159_v26 = vld [vmem:[#allocation6 + $0x1618] sm:$0xff] }
 0x3e2   :  { %3961 = vmatpush.msrb.mxu3 %v3414_v39  ;;  %4028 = vmatpush.msra.mxu2 %v2719_v40  ;;  %v2959_v31 = vld [vmem:[#allocation6 + $0xfd8] sm:$0xff] }
 0x3e3   :  { %3989 = vmatpush.msra.mxu0 %v2455_v41  ;;  %4009 = vmatpush.msra.mxu1 %v2583_v37  ;;  %v3287_v14 = vld [vmem:[#allocation6 + $0x1a18] sm:$0xff] }
 0x3e4   :  { %3962 = vmatpush.msrb.mxu3 %v3406_v25  ;;  %4029 = vmatpush.msra.mxu2 %v2711_v24  ;;  %v3023_v17 = vld [vmem:[#allocation6 + $0x11d8] sm:$0xff] }
 0x3e5   :  { %3990 = vmatmul.f32.vlgmr.msra.gmra.mxu0 %v5650_v29  ;;  %4010 = vmatmul.f32.vlgmr.msra.gmra.mxu1 %v5652_v7  ;;  %v3151_v27 = vld [vmem:[#allocation6 + $0x15d8] sm:$0xff] }
 0x3e6   :  { %4030 = vmatmul.f32.vlgmr.msra.gmra.mxu2 %v5654_v50  ;;  %4054 = vmatpush.msrb.mxu0 %v3087_v16  ;;  %v2951_v19 = vld [vmem:[#allocation6 + $0xf98] sm:$0xff] }
 0x3e7   :  { %4074 = vmatpush.msrb.mxu1 %v3215_v3  ;;  %4094 = vmatpush.msrb.mxu2 %v3343_v15  ;;  %v3279_v21 = vld [vmem:[#allocation6 + $0x19d8] sm:$0xff] }
 0x3e8   :  { %3963 = vmatpush.msrb.mxu3 %v3398_v58  ;;  %4055 = vmatpush.msrb.mxu0 %v3079_v45  ;;  %v3015_v22 = vld [vmem:[#allocation6 + $0x1198] sm:$0xff] }
 0x3e9   :  { %4075 = vmatpush.msrb.mxu1 %v3207_v30  ;;  %4095 = vmatpush.msrb.mxu2 %v3335_v49  ;;  %v3143_v44 = vld [vmem:[#allocation6 + $0x1598] sm:$0xff] }
 0x3ea   :  { %3964 = vmatpush.msrb.mxu3 %v3390_v1  ;;  %4056 = vmatpush.msrb.mxu0 %v3071_v53  ;;  %v2943_v32 = vld [vmem:[#allocation6 + $0xf58] sm:$0xff]  ;;  %v2576_v53 = vld [vmem:[#allocation6 + $0x3e0] sm:$0xff] }
 0x3eb   :  { %4076 = vmatpush.msrb.mxu1 %v3199_v57  ;;  %4096 = vmatpush.msrb.mxu2 %v3327_v54  ;;  %v3271_v9 = vld [vmem:[#allocation6 + $0x1998] sm:$0xff]  ;;  %v2704_v57 = vld [vmem:[#allocation6 + $0x7e0] sm:$0xff] }
 0x3ec   :  { %3965 = vmatpush.msrb.mxu3 %v3382_v12  ;;  %4057 = vmatpush.msrb.mxu0 %v3063_v56  ;;  %v3007_v28 = vld [vmem:[#allocation6 + $0x1158] sm:$0xff]  ;;  %v2832_v54 = vld [vmem:[#allocation6 + $0xbe0] sm:$0xff] }
 0x3ed   :  { %4077 = vmatpush.msrb.mxu1 %v3191_v59  ;;  %4097 = vmatpush.msrb.mxu2 %v3319_v6  ;;  %v3135_v4 = vld [vmem:[#allocation6 + $0x1558] sm:$0xff]  ;;  %v2568_v56 = vld [vmem:[#allocation6 + $0x3a0] sm:$0xff] }
 0x3ee   :  { %3966 = vmatpush.msrb.mxu3 %v3374_v62  ;;  %4058 = vmatpush.msrb.mxu0 %v3055_v23  ;;  %v2935_v33 = vld [vmem:[#allocation6 + $0xf18] sm:$0xff]  ;;  %v2696_v59 = vld [vmem:[#allocation6 + $0x7a0] sm:$0xff] }
 0x3ef   :  { %4078 = vmatpush.msrb.mxu1 %v3183_v38  ;;  %4098 = vmatpush.msrb.mxu2 %v3311_v20  ;;  %v3263_v13 = vld [vmem:[#allocation6 + $0x1958] sm:$0xff]  ;;  %v2824_v6 = vld [vmem:[#allocation6 + $0xba0] sm:$0xff] }
 0x3f0   :  { %3967 = vmatpush.msrb.mxu3 %v3366_v36  ;;  %4059 = vmatpush.msrb.mxu0 %v3047_v63  ;;  %v2999_v8 = vld [vmem:[#allocation6 + $0x1118] sm:$0xff]  ;;  %v2560_v23 = vld [vmem:[#allocation6 + $0x360] sm:$0xff] }
 0x3f1   :  { %4079 = vmatpush.msrb.mxu1 %v3175_v18  ;;  %4099 = vmatpush.msrb.mxu2 %v3303_v42  ;;  %v3127_v51 = vld [vmem:[#allocation6 + $0x1518] sm:$0xff]  ;;  %v2688_v38 = vld [vmem:[#allocation6 + $0x760] sm:$0xff] }
 0x3f2   :  { %3968 = vmatpush.msrb.mxu3 %v3358_v46  ;;  %4060 = vmatpush.msrb.mxu0 %v3039_v47  ;;  %v2927_v2 = vld [vmem:[#allocation6 + $0xed8] sm:$0xff]  ;;  %v2816_v20 = vld [vmem:[#allocation6 + $0xb60] sm:$0xff] }
 0x3f3   :  { %4080 = vmatpush.msrb.mxu1 %v3167_v10  ;;  %4100 = vmatpush.msrb.mxu2 %v3295_v52  ;;  %v3255_v0 = vld [vmem:[#allocation6 + $0x1918] sm:$0xff]  ;;  %v2552_v63 = vld [vmem:[#allocation6 + $0x320] sm:$0xff] }
 0x3f4   :  { %3969 = vmatpush.msrb.mxu3 %v3350_v11  ;;  %4061 = vmatpush.msrb.mxu0 %v3031_v48  ;;  %v2991_v34 = vld [vmem:[#allocation6 + $0x10d8] sm:$0xff]  ;;  %v2680_v18 = vld [vmem:[#allocation6 + $0x720] sm:$0xff] }
 0x3f5   :  { %3970 = vmatmul.f32.vlgmr.msrb.gmra.mxu3 %v5692_v35  ;;  %4081 = vmatpush.msrb.mxu1 %v3159_v26  ;;  %v3119_v5 = vld [vmem:[#allocation6 + $0x14d8] sm:$0xff]  ;;  %v2808_v42 = vld [vmem:[#allocation6 + $0xb20] sm:$0xff] }
 0x3f6   :  { %4034 = vmatpush.msra.mxu3 %v2959_v31  ;;  %4101 = vmatpush.msrb.mxu2 %v3287_v14  ;;  %v2919_v39 = vld [vmem:[#allocation6 + $0xe98] sm:$0xff]  ;;  %v2544_v47 = vld [vmem:[#allocation6 + $0x2e0] sm:$0xff] }
 0x3f7   :  { %4062 = vmatpush.msrb.mxu0 %v3023_v17  ;;  %4082 = vmatpush.msrb.mxu1 %v3151_v27  ;;  %v3247_v40 = vld [vmem:[#allocation6 + $0x18d8] sm:$0xff]  ;;  %v2672_v10 = vld [vmem:[#allocation6 + $0x6e0] sm:$0xff] }
 0x3f8   :  { %4035 = vmatpush.msra.mxu3 %v2951_v19  ;;  %4102 = vmatpush.msrb.mxu2 %v3279_v21  ;;  %v2983_v41 = vld [vmem:[#allocation6 + $0x1098] sm:$0xff]  ;;  %v2800_v52 = vld [vmem:[#allocation6 + $0xae0] sm:$0xff] }
 0x3f9   :  { %4063 = vmatpush.msrb.mxu0 %v3015_v22  ;;  %4083 = vmatpush.msrb.mxu1 %v3143_v44  ;;  %v3111_v37 = vld [vmem:[#allocation6 + $0x1498] sm:$0xff]  ;;  %v2536_v48 = vld [vmem:[#allocation6 + $0x2a0] sm:$0xff] }
 0x3fa   :  { %4036 = vmatpush.msra.mxu3 %v2943_v32  ;;  %4103 = vmatpush.msrb.mxu2 %v3271_v9  ;;  %v2911_v25 = vld [vmem:[#allocation6 + $0xe58] sm:$0xff]  ;;  %v2664_v26 = vld [vmem:[#allocation6 + $0x6a0] sm:$0xff] }
 0x3fb   :  { %4064 = vmatpush.msrb.mxu0 %v3007_v28  ;;  %4084 = vmatpush.msrb.mxu1 %v3135_v4  ;;  %v3239_v24 = vld [vmem:[#allocation6 + $0x1898] sm:$0xff]  ;;  %v2792_v31 = vld [vmem:[#allocation6 + $0xaa0] sm:$0xff] }
 0x3fc   :  { %4037 = vmatpush.msra.mxu3 %v2935_v33  ;;  %4104 = vmatpush.msrb.mxu2 %v3263_v13  ;;  %v2975_v16 = vld [vmem:[#allocation6 + $0x1058] sm:$0xff]  ;;  %v2528_v17 = vld [vmem:[#allocation6 + $0x260] sm:$0xff] }
 0x3fd   :  { %4065 = vmatpush.msrb.mxu0 %v2999_v8  ;;  %4085 = vmatpush.msrb.mxu1 %v3127_v51  ;;  %v3103_v3 = vld [vmem:[#allocation6 + $0x1458] sm:$0xff]  ;;  %v2656_v27 = vld [vmem:[#allocation6 + $0x660] sm:$0xff] }
 0x3fe   :  { %4038 = vmatpush.msra.mxu3 %v2927_v2  ;;  %4105 = vmatpush.msrb.mxu2 %v3255_v0  ;;  %v2903_v15 = vld [vmem:[#allocation6 + $0xe18] sm:$0xff]  ;;  %v2784_v19 = vld [vmem:[#allocation6 + $0xa60] sm:$0xff] }
 0x3ff   :  { %4066 = vmatpush.msrb.mxu0 %v2991_v34  ;;  %4086 = vmatpush.msrb.mxu1 %v3119_v5  ;;  %v3231_v58 = vld [vmem:[#allocation6 + $0x1858] sm:$0xff]  ;;  %v2520_v22 = vld [vmem:[#allocation6 + $0x220] sm:$0xff] }
 0x400   :  { %4039 = vmatpush.msra.mxu3 %v2919_v39  ;;  %4106 = vmatpush.msrb.mxu2 %v3247_v40  ;;  %v2967_v45 = vld [vmem:[#allocation6 + $0x1018] sm:$0xff]  ;;  %v2648_v44 = vld [vmem:[#allocation6 + $0x620] sm:$0xff] }
 0x401   :  { %4067 = vmatpush.msrb.mxu0 %v2983_v41  ;;  %4087 = vmatpush.msrb.mxu1 %v3111_v37  ;;  %v3095_v30 = vld [vmem:[#allocation6 + $0x1418] sm:$0xff]  ;;  %v2776_v9 = vld [vmem:[#allocation6 + $0xa20] sm:$0xff] }
 0x402   :  { %4040 = vmatpush.msra.mxu3 %v2911_v25  ;;  %4107 = vmatpush.msrb.mxu2 %v3239_v24  ;;  %v2895_v49 = vld [vmem:[#allocation6 + $0xdd8] sm:$0xff]  ;;  %v2512_v28 = vld [vmem:[#allocation6 + $0x1e0] sm:$0xff] }
 0x403   :  { %4068 = vmatpush.msrb.mxu0 %v2975_v16  ;;  %4088 = vmatpush.msrb.mxu1 %v3103_v3  ;;  %v3223_v1 = vld [vmem:[#allocation6 + $0x1818] sm:$0xff]  ;;  %v2640_v4 = vld [vmem:[#allocation6 + $0x5e0] sm:$0xff] }
 0x404   :  { %4041 = vmatpush.msra.mxu3 %v2903_v15  ;;  %4108 = vmatpush.msrb.mxu2 %v3231_v58  ;;  %v2887_v12 = vld [vmem:[#allocation6 + $0xd98] sm:$0xff]  ;;  %v2768_v13 = vld [vmem:[#allocation6 + $0x9e0] sm:$0xff] }
 0x405   :  { %4069 = vmatpush.msrb.mxu0 %v2967_v45  ;;  %4089 = vmatpush.msrb.mxu1 %v3095_v30  ;;  %v2879_v62 = vld [vmem:[#allocation6 + $0xd58] sm:$0xff]  ;;  %v2504_v8 = vld [vmem:[#allocation6 + $0x1a0] sm:$0xff] }
 0x406   :  { %4042 = vmatpush.msra.mxu3 %v2895_v49  ;;  %4109 = vmatpush.msrb.mxu2 %v3223_v1  ;;  %v2871_v36 = vld [vmem:[#allocation6 + $0xd18] sm:$0xff]  ;;  %v2632_v51 = vld [vmem:[#allocation6 + $0x5a0] sm:$0xff] }
 0x407   :  { %4070 = vmatmul.f32.vlgmr.msrb.gmra.mxu0 %v5677_v55  ;;  %4090 = vmatmul.f32.vlgmr.msrb.gmra.mxu1 %v5679_v61  ;;  %v2863_v46 = vld [vmem:[#allocation6 + $0xcd8] sm:$0xff]  ;;  %v2760_v0 = vld [vmem:[#allocation6 + $0x9a0] sm:$0xff] }
 0x408   :  { %4110 = vmatmul.f32.vlgmr.msrb.gmra.mxu2 %v5683_v43  ;;  %4134 = vmatpush.msra.mxu0 %v2576_v53  ;;  %v2855_v11 = vld [vmem:[#allocation6 + $0xc98] sm:$0xff]  ;;  %v2496_v34 = vld [vmem:[#allocation6 + $0x160] sm:$0xff] }
 0x409   :  { %4154 = vmatpush.msra.mxu1 %v2704_v57  ;;  %4174 = vmatpush.msra.mxu2 %v2832_v54  ;;  %v2847_v14 = vld [vmem:[#allocation6 + $0xc58] sm:$0xff]  ;;  %v2624_v5 = vld [vmem:[#allocation6 + $0x560] sm:$0xff] }
 0x40a   :  { %4043 = vmatpush.msra.mxu3 %v2887_v12  ;;  %4135 = vmatpush.msra.mxu0 %v2568_v56  ;;  %v2839_v21 = vld [vmem:[#allocation6 + $0xc18] sm:$0xff]  ;;  %v2752_v40 = vld [vmem:[#allocation6 + $0x960] sm:$0xff] }
 0x40b   :  { %4155 = vmatpush.msra.mxu1 %v2696_v59  ;;  %4175 = vmatpush.msra.mxu2 %v2824_v6  ;;  %v3471_v32 = vld [vmem:[#allocation6 + $0x1fd8] sm:$0xff]  ;;  %v2488_v41 = vld [vmem:[#allocation6 + $0x120] sm:$0xff] }
 0x40c   :  { %4044 = vmatpush.msra.mxu3 %v2879_v62  ;;  %4136 = vmatpush.msra.mxu0 %v2560_v23  ;;  %v3463_v33 = vld [vmem:[#allocation6 + $0x1f98] sm:$0xff]  ;;  %v2616_v37 = vld [vmem:[#allocation6 + $0x520] sm:$0xff] }
 0x40d   :  { %4156 = vmatpush.msra.mxu1 %v2688_v38  ;;  %4176 = vmatpush.msra.mxu2 %v2816_v20  ;;  %v3455_v2 = vld [vmem:[#allocation6 + $0x1f58] sm:$0xff]  ;;  %v2744_v24 = vld [vmem:[#allocation6 + $0x920] sm:$0xff] }
 0x40e   :  { %4045 = vmatpush.msra.mxu3 %v2871_v36  ;;  %4137 = vmatpush.msra.mxu0 %v2552_v63  ;;  %v3447_v39 = vld [vmem:[#allocation6 + $0x1f18] sm:$0xff]  ;;  %v2480_v16 = vld [vmem:[#allocation6 + $0xe0] sm:$0xff] }
 0x40f   :  { %4157 = vmatpush.msra.mxu1 %v2680_v18  ;;  %4177 = vmatpush.msra.mxu2 %v2808_v42  ;;  %v3439_v25 = vld [vmem:[#allocation6 + $0x1ed8] sm:$0xff]  ;;  %v2608_v3 = vld [vmem:[#allocation6 + $0x4e0] sm:$0xff] }
 0x410   :  { %4046 = vmatpush.msra.mxu3 %v2863_v46  ;;  %4138 = vmatpush.msra.mxu0 %v2544_v47  ;;  %v3431_v15 = vld [vmem:[#allocation6 + $0x1e98] sm:$0xff]  ;;  %v2736_v58 = vld [vmem:[#allocation6 + $0x8e0] sm:$0xff] }
 0x411   :  { %4158 = vmatpush.msra.mxu1 %v2672_v10  ;;  %4178 = vmatpush.msra.mxu2 %v2800_v52  ;;  %v2472_v45 = vld [vmem:[#allocation6 + $0xa0] sm:$0xff]  ;;  %v3423_v49 = vld [vmem:[#allocation6 + $0x1e58] sm:$0xff] }
 0x412   :  { %4047 = vmatpush.msra.mxu3 %v2855_v11  ;;  %4139 = vmatpush.msra.mxu0 %v2536_v48  ;;  %v2600_v30 = vld [vmem:[#allocation6 + $0x4a0] sm:$0xff]  ;;  %v3415_v54 = vld [vmem:[#allocation6 + $0x1e18] sm:$0xff] }
 0x413   :  { %4159 = vmatpush.msra.mxu1 %v2664_v26  ;;  %4179 = vmatpush.msra.mxu2 %v2792_v31  ;;  %v2728_v1 = vld [vmem:[#allocation6 + $0x8a0] sm:$0xff]  ;;  %v3407_v6 = vld [vmem:[#allocation6 + $0x1dd8] sm:$0xff] }
 0x414   :  { %4048 = vmatpush.msra.mxu3 %v2847_v14  ;;  %4140 = vmatpush.msra.mxu0 %v2528_v17  ;;  %v2464_v53 = vld [vmem:[#allocation6 + $0x60] sm:$0xff]  ;;  %v3399_v36 = vld [vmem:[#allocation6 + $0x1d98] sm:$0xff] }
 0x415   :  { %4160 = vmatpush.msra.mxu1 %v2656_v27  ;;  %4180 = vmatpush.msra.mxu2 %v2784_v19  ;;  %v2592_v57 = vld [vmem:[#allocation6 + $0x460] sm:$0xff]  ;;  %v3391_v46 = vld [vmem:[#allocation6 + $0x1d58] sm:$0xff] }
 0x416   :  { %4049 = vmatpush.msra.mxu3 %v2839_v21  ;;  %4141 = vmatpush.msra.mxu0 %v2520_v22  ;;  %v2720_v12 = vld [vmem:[#allocation6 + $0x860] sm:$0xff]  ;;  %v3383_v11 = vld [vmem:[#allocation6 + $0x1d18] sm:$0xff] }
 0x417   :  { %4050 = vmatmul.f32.vlgmr.msra.gmra.mxu3 %v5656_v60  ;;  %4161 = vmatpush.msra.mxu1 %v2648_v44  ;;  %v2456_v56 = vld [vmem:[#allocation6 + $0x20] sm:$0xff]  ;;  %v3375_v14 = vld [vmem:[#allocation6 + $0x1cd8] sm:$0xff] }
 0x418   :  { %4114 = vmatpush.msrb.mxu3 %v3471_v32  ;;  %4181 = vmatpush.msra.mxu2 %v2776_v9  ;;  %v2584_v59 = vld [vmem:[#allocation6 + $0x420] sm:$0xff]  ;;  %v3367_v21 = vld [vmem:[#allocation6 + $0x1c98] sm:$0xff] }
 0x419   :  { %4142 = vmatpush.msra.mxu0 %v2512_v28  ;;  %4162 = vmatpush.msra.mxu1 %v2640_v4  ;;  %v2712_v62 = vld [vmem:[#allocation6 + $0x820] sm:$0xff]  ;;  %v3359_v9 = vld [vmem:[#allocation6 + $0x1c58] sm:$0xff] }
 0x41a   :  { %4115 = vmatpush.msrb.mxu3 %v3463_v33  ;;  %4182 = vmatpush.msra.mxu2 %v2768_v13  ;;  %v3088_v23 = vld [vmem:[#allocation6 + $0x13e0] sm:$0xff]  ;;  %v3351_v13 = vld [vmem:[#allocation6 + $0x1c18] sm:$0xff] }
 0x41b   :  { %4143 = vmatpush.msra.mxu0 %v2504_v8  ;;  %4163 = vmatpush.msra.mxu1 %v2632_v51  ;;  %v3216_v38 = vld [vmem:[#allocation6 + $0x17e0] sm:$0xff] }
 0x41c   :  { %4116 = vmatpush.msrb.mxu3 %v3455_v2  ;;  %4183 = vmatpush.msra.mxu2 %v2760_v0  ;;  %v3344_v20 = vld [vmem:[#allocation6 + $0x1be0] sm:$0xff] }
 0x41d   :  { %4144 = vmatpush.msra.mxu0 %v2496_v34  ;;  %4164 = vmatpush.msra.mxu1 %v2624_v5  ;;  %v3080_v63 = vld [vmem:[#allocation6 + $0x13a0] sm:$0xff] }
 0x41e   :  { %4117 = vmatpush.msrb.mxu3 %v3447_v39  ;;  %4184 = vmatpush.msra.mxu2 %v2752_v40  ;;  %v3208_v18 = vld [vmem:[#allocation6 + $0x17a0] sm:$0xff] }
 0x41f   :  { %4145 = vmatpush.msra.mxu0 %v2488_v41  ;;  %4165 = vmatpush.msra.mxu1 %v2616_v37  ;;  %v3336_v42 = vld [vmem:[#allocation6 + $0x1ba0] sm:$0xff] }
 0x420   :  { %4118 = vmatpush.msrb.mxu3 %v3439_v25  ;;  %4185 = vmatpush.msra.mxu2 %v2744_v24  ;;  %v3072_v47 = vld [vmem:[#allocation6 + $0x1360] sm:$0xff] }
 0x421   :  { %4146 = vmatpush.msra.mxu0 %v2480_v16  ;;  %4166 = vmatpush.msra.mxu1 %v2608_v3  ;;  %v3200_v10 = vld [vmem:[#allocation6 + $0x1760] sm:$0xff] }
 0x422   :  { %4119 = vmatpush.msrb.mxu3 %v3431_v15  ;;  %4186 = vmatpush.msra.mxu2 %v2736_v58  ;;  %v3328_v52 = vld [vmem:[#allocation6 + $0x1b60] sm:$0xff] }
 0x423   :  { %4147 = vmatpush.msra.mxu0 %v2472_v45  ;;  %4167 = vmatpush.msra.mxu1 %v2600_v30  ;;  %v3064_v48 = vld [vmem:[#allocation6 + $0x1320] sm:$0xff] }
 0x424   :  { %4120 = vmatpush.msrb.mxu3 %v3423_v49  ;;  %4187 = vmatpush.msra.mxu2 %v2728_v1  ;;  %v3192_v26 = vld [vmem:[#allocation6 + $0x1720] sm:$0xff] }
 0x425   :  { %4148 = vmatpush.msra.mxu0 %v2464_v53  ;;  %4168 = vmatpush.msra.mxu1 %v2592_v57  ;;  %v3320_v31 = vld [vmem:[#allocation6 + $0x1b20] sm:$0xff] }
 0x426   :  { %4121 = vmatpush.msrb.mxu3 %v3415_v54  ;;  %4188 = vmatpush.msra.mxu2 %v2720_v12  ;;  %v3056_v17 = vld [vmem:[#allocation6 + $0x12e0] sm:$0xff] }
 0x427   :  { %4149 = vmatpush.msra.mxu0 %v2456_v56  ;;  %4169 = vmatpush.msra.mxu1 %v2584_v59  ;;  %v3184_v27 = vld [vmem:[#allocation6 + $0x16e0] sm:$0xff] }
 0x428   :  { %4122 = vmatpush.msrb.mxu3 %v3407_v6  ;;  %4189 = vmatpush.msra.mxu2 %v2712_v62  ;;  %v3312_v19 = vld [vmem:[#allocation6 + $0x1ae0] sm:$0xff] }
 0x429   :  { %4150 = vmatmul.f32.vlgmr.msra.gmra.mxu0 %v5650_v29  ;;  %4170 = vmatmul.f32.vlgmr.msra.gmra.mxu1 %v5652_v7  ;;  %v3048_v22 = vld [vmem:[#allocation6 + $0x12a0] sm:$0xff] }
 0x42a   :  { %4190 = vmatmul.f32.vlgmr.msra.gmra.mxu2 %v5654_v50  ;;  %4214 = vmatpush.msrb.mxu0 %v3088_v23  ;;  %v3176_v44 = vld [vmem:[#allocation6 + $0x16a0] sm:$0xff] }
 0x42b   :  { %4234 = vmatpush.msrb.mxu1 %v3216_v38  ;;  %4254 = vmatpush.msrb.mxu2 %v3344_v20  ;;  %v3304_v32 = vld [vmem:[#allocation6 + $0x1aa0] sm:$0xff] }
 0x42c   :  { %4123 = vmatpush.msrb.mxu3 %v3399_v36  ;;  %4215 = vmatpush.msrb.mxu0 %v3080_v63  ;;  %v3040_v28 = vld [vmem:[#allocation6 + $0x1260] sm:$0xff] }
 0x42d   :  { %4235 = vmatpush.msrb.mxu1 %v3208_v18  ;;  %4255 = vmatpush.msrb.mxu2 %v3336_v42  ;;  %v3168_v4 = vld [vmem:[#allocation6 + $0x1660] sm:$0xff] }
 0x42e   :  { %4124 = vmatpush.msrb.mxu3 %v3391_v46  ;;  %4216 = vmatpush.msrb.mxu0 %v3072_v47  ;;  %v3296_v33 = vld [vmem:[#allocation6 + $0x1a60] sm:$0xff]  ;;  %v2577_v47 = vld [vmem:[#allocation6 + $0x3e8] sm:$0xff] }
 0x42f   :  { %4236 = vmatpush.msrb.mxu1 %v3200_v10  ;;  %4256 = vmatpush.msrb.mxu2 %v3328_v52  ;;  %v3032_v8 = vld [vmem:[#allocation6 + $0x1220] sm:$0xff]  ;;  %v2705_v10 = vld [vmem:[#allocation6 + $0x7e8] sm:$0xff] }
 0x430   :  { %4125 = vmatpush.msrb.mxu3 %v3383_v11  ;;  %4217 = vmatpush.msrb.mxu0 %v3064_v48  ;;  %v3160_v51 = vld [vmem:[#allocation6 + $0x1620] sm:$0xff]  ;;  %v2833_v52 = vld [vmem:[#allocation6 + $0xbe8] sm:$0xff] }
 0x431   :  { %4237 = vmatpush.msrb.mxu1 %v3192_v26  ;;  %4257 = vmatpush.msrb.mxu2 %v3320_v31  ;;  %v2960_v2 = vld [vmem:[#allocation6 + $0xfe0] sm:$0xff]  ;;  %v2569_v48 = vld [vmem:[#allocation6 + $0x3a8] sm:$0xff] }
 0x432   :  { %4126 = vmatpush.msrb.mxu3 %v3375_v14  ;;  %4218 = vmatpush.msrb.mxu0 %v3056_v17  ;;  %v3288_v0 = vld [vmem:[#allocation6 + $0x1a20] sm:$0xff]  ;;  %v2697_v26 = vld [vmem:[#allocation6 + $0x7a8] sm:$0xff] }
 0x433   :  { %4238 = vmatpush.msrb.mxu1 %v3184_v27  ;;  %4258 = vmatpush.msrb.mxu2 %v3312_v19  ;;  %v3024_v34 = vld [vmem:[#allocation6 + $0x11e0] sm:$0xff]  ;;  %v2825_v31 = vld [vmem:[#allocation6 + $0xba8] sm:$0xff] }
 0x434   :  { %4127 = vmatpush.msrb.mxu3 %v3367_v21  ;;  %4219 = vmatpush.msrb.mxu0 %v3048_v22  ;;  %v3152_v5 = vld [vmem:[#allocation6 + $0x15e0] sm:$0xff]  ;;  %v2561_v17 = vld [vmem:[#allocation6 + $0x368] sm:$0xff] }
 0x435   :  { %4239 = vmatpush.msrb.mxu1 %v3176_v44  ;;  %4259 = vmatpush.msrb.mxu2 %v3304_v32  ;;  %v2952_v39 = vld [vmem:[#allocation6 + $0xfa0] sm:$0xff]  ;;  %v2689_v27 = vld [vmem:[#allocation6 + $0x768] sm:$0xff] }
 0x436   :  { %4128 = vmatpush.msrb.mxu3 %v3359_v9  ;;  %4220 = vmatpush.msrb.mxu0 %v3040_v28  ;;  %v3280_v40 = vld [vmem:[#allocation6 + $0x19e0] sm:$0xff]  ;;  %v2817_v19 = vld [vmem:[#allocation6 + $0xb68] sm:$0xff] }
 0x437   :  { %4240 = vmatpush.msrb.mxu1 %v3168_v4  ;;  %4260 = vmatpush.msrb.mxu2 %v3296_v33  ;;  %v3016_v41 = vld [vmem:[#allocation6 + $0x11a0] sm:$0xff]  ;;  %v2553_v22 = vld [vmem:[#allocation6 + $0x328] sm:$0xff] }
 0x438   :  { %4129 = vmatpush.msrb.mxu3 %v3351_v13  ;;  %4221 = vmatpush.msrb.mxu0 %v3032_v8  ;;  %v3144_v37 = vld [vmem:[#allocation6 + $0x15a0] sm:$0xff]  ;;  %v2681_v44 = vld [vmem:[#allocation6 + $0x728] sm:$0xff] }
 0x439   :  { %4130 = vmatmul.f32.vlgmr.msrb.gmra.mxu3 %v5692_v35  ;;  %4241 = vmatpush.msrb.mxu1 %v3160_v51  ;;  %v2944_v25 = vld [vmem:[#allocation6 + $0xf60] sm:$0xff]  ;;  %v2809_v32 = vld [vmem:[#allocation6 + $0xb28] sm:$0xff] }
 0x43a   :  { %4194 = vmatpush.msra.mxu3 %v2960_v2  ;;  %4261 = vmatpush.msrb.mxu2 %v3288_v0  ;;  %v3272_v24 = vld [vmem:[#allocation6 + $0x19a0] sm:$0xff]  ;;  %v2545_v28 = vld [vmem:[#allocation6 + $0x2e8] sm:$0xff] }
 0x43b   :  { %4222 = vmatpush.msrb.mxu0 %v3024_v34  ;;  %4242 = vmatpush.msrb.mxu1 %v3152_v5  ;;  %v3008_v16 = vld [vmem:[#allocation6 + $0x1160] sm:$0xff]  ;;  %v2673_v4 = vld [vmem:[#allocation6 + $0x6e8] sm:$0xff] }
 0x43c   :  { %4195 = vmatpush.msra.mxu3 %v2952_v39  ;;  %4262 = vmatpush.msrb.mxu2 %v3280_v40  ;;  %v3136_v3 = vld [vmem:[#allocation6 + $0x1560] sm:$0xff]  ;;  %v2801_v33 = vld [vmem:[#allocation6 + $0xae8] sm:$0xff] }
 0x43d   :  { %4223 = vmatpush.msrb.mxu0 %v3016_v41  ;;  %4243 = vmatpush.msrb.mxu1 %v3144_v37  ;;  %v2936_v15 = vld [vmem:[#allocation6 + $0xf20] sm:$0xff]  ;;  %v2537_v8 = vld [vmem:[#allocation6 + $0x2a8] sm:$0xff] }
 0x43e   :  { %v3264_v58 = vld [vmem:[#allocation6 + $0x1960] sm:$0xff]  ;;  %4196 = vmatpush.msra.mxu3 %v2944_v25  ;;  %4263 = vmatpush.msrb.mxu2 %v3272_v24  ;;  %v2665_v51 = vld [vmem:[#allocation6 + $0x6a8] sm:$0xff] }
 0x43f   :  { %v3000_v45 = vld [vmem:[#allocation6 + $0x1120] sm:$0xff]  ;;  %4224 = vmatpush.msrb.mxu0 %v3008_v16  ;;  %4244 = vmatpush.msrb.mxu1 %v3136_v3  ;;  %v2793_v2 = vld [vmem:[#allocation6 + $0xaa8] sm:$0xff] }
 0x440   :  { %v3128_v30 = vld [vmem:[#allocation6 + $0x1520] sm:$0xff]  ;;  %4197 = vmatpush.msra.mxu3 %v2936_v15  ;;  %4264 = vmatpush.msrb.mxu2 %v3264_v58  ;;  %v2529_v34 = vld [vmem:[#allocation6 + $0x268] sm:$0xff] }
 0x441   :  { %v2928_v49 = vld [vmem:[#allocation6 + $0xee0] sm:$0xff]  ;;  %4225 = vmatpush.msrb.mxu0 %v3000_v45  ;;  %4245 = vmatpush.msrb.mxu1 %v3128_v30  ;;  %v2657_v5 = vld [vmem:[#allocation6 + $0x668] sm:$0xff] }
 0x442   :  { %v3256_v1 = vld [vmem:[#allocation6 + $0x1920] sm:$0xff]  ;;  %4198 = vmatpush.msra.mxu3 %v2928_v49  ;;  %v2785_v39 = vld [vmem:[#allocation6 + $0xa68] sm:$0xff] }
 0x443   :  { %v2992_v53 = vld [vmem:[#allocation6 + $0x10e0] sm:$0xff]  ;;  %4265 = vmatpush.msrb.mxu2 %v3256_v1  ;;  %v2521_v41 = vld [vmem:[#allocation6 + $0x228] sm:$0xff] }
 0x444   :  { %v3120_v57 = vld [vmem:[#allocation6 + $0x14e0] sm:$0xff]  ;;  %4226 = vmatpush.msrb.mxu0 %v2992_v53  ;;  %v2649_v37 = vld [vmem:[#allocation6 + $0x628] sm:$0xff] }
 0x445   :  { %v2920_v54 = vld [vmem:[#allocation6 + $0xea0] sm:$0xff]  ;;  %4246 = vmatpush.msrb.mxu1 %v3120_v57  ;;  %v2777_v24 = vld [vmem:[#allocation6 + $0xa28] sm:$0xff] }
 0x446   :  { %v3248_v12 = vld [vmem:[#allocation6 + $0x18e0] sm:$0xff]  ;;  %4199 = vmatpush.msra.mxu3 %v2920_v54  ;;  %v2513_v16 = vld [vmem:[#allocation6 + $0x1e8] sm:$0xff] }
 0x447   :  { %v2984_v56 = vld [vmem:[#allocation6 + $0x10a0] sm:$0xff]  ;;  %4266 = vmatpush.msrb.mxu2 %v3248_v12  ;;  %v2641_v3 = vld [vmem:[#allocation6 + $0x5e8] sm:$0xff] }
 0x448   :  { %v3112_v59 = vld [vmem:[#allocation6 + $0x14a0] sm:$0xff]  ;;  %4227 = vmatpush.msrb.mxu0 %v2984_v56  ;;  %v2769_v58 = vld [vmem:[#allocation6 + $0x9e8] sm:$0xff] }
 0x449   :  { %v2912_v6 = vld [vmem:[#allocation6 + $0xe60] sm:$0xff]  ;;  %4247 = vmatpush.msrb.mxu1 %v3112_v59  ;;  %v2505_v45 = vld [vmem:[#allocation6 + $0x1a8] sm:$0xff] }
 0x44a   :  { %v3240_v62 = vld [vmem:[#allocation6 + $0x18a0] sm:$0xff]  ;;  %4200 = vmatpush.msra.mxu3 %v2912_v6  ;;  %v2633_v30 = vld [vmem:[#allocation6 + $0x5a8] sm:$0xff] }
 0x44b   :  { %v2976_v23 = vld [vmem:[#allocation6 + $0x1060] sm:$0xff]  ;;  %4267 = vmatpush.msrb.mxu2 %v3240_v62  ;;  %v2761_v1 = vld [vmem:[#allocation6 + $0x9a8] sm:$0xff] }
 0x44c   :  { %v3104_v38 = vld [vmem:[#allocation6 + $0x1460] sm:$0xff]  ;;  %4228 = vmatpush.msrb.mxu0 %v2976_v23  ;;  %v2497_v53 = vld [vmem:[#allocation6 + $0x168] sm:$0xff] }
 0x44d   :  { %v2904_v20 = vld [vmem:[#allocation6 + $0xe20] sm:$0xff]  ;;  %4248 = vmatpush.msrb.mxu1 %v3104_v38  ;;  %v2625_v57 = vld [vmem:[#allocation6 + $0x568] sm:$0xff] }
 0x44e   :  { %v3232_v36 = vld [vmem:[#allocation6 + $0x1860] sm:$0xff]  ;;  %4201 = vmatpush.msra.mxu3 %v2904_v20  ;;  %v2753_v12 = vld [vmem:[#allocation6 + $0x968] sm:$0xff] }
 0x44f   :  { %v2968_v63 = vld [vmem:[#allocation6 + $0x1020] sm:$0xff]  ;;  %4268 = vmatpush.msrb.mxu2 %v3232_v36  ;;  %v2489_v56 = vld [vmem:[#allocation6 + $0x128] sm:$0xff] }
 0x450   :  { %v3096_v18 = vld [vmem:[#allocation6 + $0x1420] sm:$0xff]  ;;  %4229 = vmatpush.msrb.mxu0 %v2968_v63  ;;  %v2617_v59 = vld [vmem:[#allocation6 + $0x528] sm:$0xff] }
 0x451   :  { %v2896_v42 = vld [vmem:[#allocation6 + $0xde0] sm:$0xff]  ;;  %4249 = vmatpush.msrb.mxu1 %v3096_v18  ;;  %4230 = vmatmul.f32.vlgmr.msrb.gmra.mxu0 %v5677_v55  ;;  %v2745_v62 = vld [vmem:[#allocation6 + $0x928] sm:$0xff] }
 0x452   :  { %v3224_v46 = vld [vmem:[#allocation6 + $0x1820] sm:$0xff]  ;;  %4202 = vmatpush.msra.mxu3 %v2896_v42  ;;  %4250 = vmatmul.f32.vlgmr.msrb.gmra.mxu1 %v5679_v61  ;;  %v2481_v23 = vld [vmem:[#allocation6 + $0xe8] sm:$0xff] }
 0x453   :  { %4269 = vmatpush.msrb.mxu2 %v3224_v46  ;;  %v2888_v11 = vld [vmem:[#allocation6 + $0xda0] sm:$0xff]  ;;  %4294 = vmatpush.msra.mxu0 %v2577_v47  ;;  %v2609_v38 = vld [vmem:[#allocation6 + $0x4e8] sm:$0xff] }
 0x454   :  { %4270 = vmatmul.f32.vlgmr.msrb.gmra.mxu2 %v5683_v43  ;;  %4314 = vmatpush.msra.mxu1 %v2705_v10  ;;  %v2880_v14 = vld [vmem:[#allocation6 + $0xd60] sm:$0xff]  ;;  %v2737_v36 = vld [vmem:[#allocation6 + $0x8e8] sm:$0xff] }
 0x455   :  { %4334 = vmatpush.msra.mxu2 %v2833_v52  ;;  %4203 = vmatpush.msra.mxu3 %v2888_v11  ;;  %v2872_v21 = vld [vmem:[#allocation6 + $0xd20] sm:$0xff]  ;;  %v2473_v63 = vld [vmem:[#allocation6 + $0xa8] sm:$0xff] }
 0x456   :  { %4295 = vmatpush.msra.mxu0 %v2569_v48  ;;  %4315 = vmatpush.msra.mxu1 %v2697_v26  ;;  %v2864_v9 = vld [vmem:[#allocation6 + $0xce0] sm:$0xff]  ;;  %v2601_v18 = vld [vmem:[#allocation6 + $0x4a8] sm:$0xff] }
 0x457   :  { %4335 = vmatpush.msra.mxu2 %v2825_v31  ;;  %4204 = vmatpush.msra.mxu3 %v2880_v14  ;;  %v2856_v13 = vld [vmem:[#allocation6 + $0xca0] sm:$0xff]  ;;  %v2729_v46 = vld [vmem:[#allocation6 + $0x8a8] sm:$0xff] }
 0x458   :  { %4296 = vmatpush.msra.mxu0 %v2561_v17  ;;  %4316 = vmatpush.msra.mxu1 %v2689_v27  ;;  %v2848_v0 = vld [vmem:[#allocation6 + $0xc60] sm:$0xff]  ;;  %v2465_v47 = vld [vmem:[#allocation6 + $0x68] sm:$0xff] }
 0x459   :  { %4336 = vmatpush.msra.mxu2 %v2817_v19  ;;  %4205 = vmatpush.msra.mxu3 %v2872_v21  ;;  %v2840_v40 = vld [vmem:[#allocation6 + $0xc20] sm:$0xff]  ;;  %v2593_v10 = vld [vmem:[#allocation6 + $0x468] sm:$0xff] }
 0x45a   :  { %4297 = vmatpush.msra.mxu0 %v2553_v22  ;;  %4317 = vmatpush.msra.mxu1 %v2681_v44  ;;  %v3472_v25 = vld [vmem:[#allocation6 + $0x1fe0] sm:$0xff]  ;;  %v2721_v11 = vld [vmem:[#allocation6 + $0x868] sm:$0xff] }
 0x45b   :  { %4337 = vmatpush.msra.mxu2 %v2809_v32  ;;  %4206 = vmatpush.msra.mxu3 %v2864_v9  ;;  %v3464_v15 = vld [vmem:[#allocation6 + $0x1fa0] sm:$0xff]  ;;  %v2457_v48 = vld [vmem:[#allocation6 + $0x28] sm:$0xff] }
 0x45c   :  { %4298 = vmatpush.msra.mxu0 %v2545_v28  ;;  %4318 = vmatpush.msra.mxu1 %v2673_v4  ;;  %v3456_v49 = vld [vmem:[#allocation6 + $0x1f60] sm:$0xff]  ;;  %v2585_v26 = vld [vmem:[#allocation6 + $0x428] sm:$0xff] }
 0x45d   :  { %4338 = vmatpush.msra.mxu2 %v2801_v33  ;;  %4207 = vmatpush.msra.mxu3 %v2856_v13  ;;  %v3448_v54 = vld [vmem:[#allocation6 + $0x1f20] sm:$0xff]  ;;  %v2713_v14 = vld [vmem:[#allocation6 + $0x828] sm:$0xff] }
 0x45e   :  { %4299 = vmatpush.msra.mxu0 %v2537_v8  ;;  %4319 = vmatpush.msra.mxu1 %v2665_v51  ;;  %v3440_v6 = vld [vmem:[#allocation6 + $0x1ee0] sm:$0xff]  ;;  %v3089_v17 = vld [vmem:[#allocation6 + $0x13e8] sm:$0xff] }
 0x45f   :  { %4339 = vmatpush.msra.mxu2 %v2793_v2  ;;  %4208 = vmatpush.msra.mxu3 %v2848_v0  ;;  %v3432_v20 = vld [vmem:[#allocation6 + $0x1ea0] sm:$0xff]  ;;  %v3217_v27 = vld [vmem:[#allocation6 + $0x17e8] sm:$0xff] }
 0x460   :  { %4300 = vmatpush.msra.mxu0 %v2529_v34  ;;  %4320 = vmatpush.msra.mxu1 %v2657_v5  ;;  %v3424_v42 = vld [vmem:[#allocation6 + $0x1e60] sm:$0xff]  ;;  %v3345_v19 = vld [vmem:[#allocation6 + $0x1be8] sm:$0xff] }
 0x461   :  { %4340 = vmatpush.msra.mxu2 %v2785_v39  ;;  %4209 = vmatpush.msra.mxu3 %v2840_v40  ;;  %v3416_v52 = vld [vmem:[#allocation6 + $0x1e20] sm:$0xff]  ;;  %v3081_v22 = vld [vmem:[#allocation6 + $0x13a8] sm:$0xff] }
 0x462   :  { %4301 = vmatpush.msra.mxu0 %v2521_v41  ;;  %4210 = vmatmul.f32.vlgmr.msra.gmra.mxu3 %v5656_v60  ;;  %v3408_v31 = vld [vmem:[#allocation6 + $0x1de0] sm:$0xff]  ;;  %v3209_v44 = vld [vmem:[#allocation6 + $0x17a8] sm:$0xff] }
 0x463   :  { %4321 = vmatpush.msra.mxu1 %v2649_v37  ;;  %4274 = vmatpush.msrb.mxu3 %v3472_v25  ;;  %v3400_v21 = vld [vmem:[#allocation6 + $0x1da0] sm:$0xff]  ;;  %v3337_v32 = vld [vmem:[#allocation6 + $0x1ba8] sm:$0xff] }
 0x464   :  { %4341 = vmatpush.msra.mxu2 %v2777_v24  ;;  %4302 = vmatpush.msra.mxu0 %v2513_v16  ;;  %v3392_v9 = vld [vmem:[#allocation6 + $0x1d60] sm:$0xff]  ;;  %v3073_v28 = vld [vmem:[#allocation6 + $0x1368] sm:$0xff] }
 0x465   :  { %4322 = vmatpush.msra.mxu1 %v2641_v3  ;;  %4275 = vmatpush.msrb.mxu3 %v3464_v15  ;;  %v3201_v4 = vld [vmem:[#allocation6 + $0x1768] sm:$0xff]  ;;  %v3384_v13 = vld [vmem:[#allocation6 + $0x1d20] sm:$0xff] }
 0x466   :  { %4342 = vmatpush.msra.mxu2 %v2769_v58  ;;  %4303 = vmatpush.msra.mxu0 %v2505_v45  ;;  %v3329_v33 = vld [vmem:[#allocation6 + $0x1b68] sm:$0xff]  ;;  %v3376_v0 = vld [vmem:[#allocation6 + $0x1ce0] sm:$0xff] }
 0x467   :  { %4323 = vmatpush.msra.mxu1 %v2633_v30  ;;  %4276 = vmatpush.msrb.mxu3 %v3456_v49  ;;  %v3065_v8 = vld [vmem:[#allocation6 + $0x1328] sm:$0xff]  ;;  %v3368_v40 = vld [vmem:[#allocation6 + $0x1ca0] sm:$0xff] }
 0x468   :  { %4343 = vmatpush.msra.mxu2 %v2761_v1  ;;  %4304 = vmatpush.msra.mxu0 %v2497_v53  ;;  %v3193_v51 = vld [vmem:[#allocation6 + $0x1728] sm:$0xff]  ;;  %v3360_v24 = vld [vmem:[#allocation6 + $0x1c60] sm:$0xff] }
 0x469   :  { %4324 = vmatpush.msra.mxu1 %v2625_v57  ;;  %4277 = vmatpush.msrb.mxu3 %v3448_v54  ;;  %v3321_v2 = vld [vmem:[#allocation6 + $0x1b28] sm:$0xff]  ;;  %v3352_v58 = vld [vmem:[#allocation6 + $0x1c20] sm:$0xff] }
 0x46a   :  { %4344 = vmatpush.msra.mxu2 %v2753_v12  ;;  %4305 = vmatpush.msra.mxu0 %v2489_v56  ;;  %v3057_v34 = vld [vmem:[#allocation6 + $0x12e8] sm:$0xff] }
 0x46b   :  { %4325 = vmatpush.msra.mxu1 %v2617_v59  ;;  %4278 = vmatpush.msrb.mxu3 %v3440_v6  ;;  %v3185_v5 = vld [vmem:[#allocation6 + $0x16e8] sm:$0xff] }
 0x46c   :  { %4345 = vmatpush.msra.mxu2 %v2745_v62  ;;  %4306 = vmatpush.msra.mxu0 %v2481_v23  ;;  %v3313_v39 = vld [vmem:[#allocation6 + $0x1ae8] sm:$0xff] }
 0x46d   :  { %4326 = vmatpush.msra.mxu1 %v2609_v38  ;;  %4279 = vmatpush.msrb.mxu3 %v3432_v20  ;;  %v3049_v41 = vld [vmem:[#allocation6 + $0x12a8] sm:$0xff] }
 0x46e   :  { %4346 = vmatpush.msra.mxu2 %v2737_v36  ;;  %4307 = vmatpush.msra.mxu0 %v2473_v63  ;;  %v3177_v37 = vld [vmem:[#allocation6 + $0x16a8] sm:$0xff] }
 0x46f   :  { %4327 = vmatpush.msra.mxu1 %v2601_v18  ;;  %4280 = vmatpush.msrb.mxu3 %v3424_v42  ;;  %v3305_v25 = vld [vmem:[#allocation6 + $0x1aa8] sm:$0xff] }
 0x470   :  { %4347 = vmatpush.msra.mxu2 %v2729_v46  ;;  %4308 = vmatpush.msra.mxu0 %v2465_v47  ;;  %v3041_v16 = vld [vmem:[#allocation6 + $0x1268] sm:$0xff] }
 0x471   :  { %4328 = vmatpush.msra.mxu1 %v2593_v10  ;;  %4281 = vmatpush.msrb.mxu3 %v3416_v52  ;;  %v3169_v3 = vld [vmem:[#allocation6 + $0x1668] sm:$0xff] }
 0x472   :  { %4348 = vmatpush.msra.mxu2 %v2721_v11  ;;  %4309 = vmatpush.msra.mxu0 %v2457_v48  ;;  %v3297_v15 = vld [vmem:[#allocation6 + $0x1a68] sm:$0xff] }
 0x473   :  { %4329 = vmatpush.msra.mxu1 %v2585_v26  ;;  %4282 = vmatpush.msrb.mxu3 %v3408_v31  ;;  %v3033_v45 = vld [vmem:[#allocation6 + $0x1228] sm:$0xff] }
 0x474   :  { %4349 = vmatpush.msra.mxu2 %v2713_v14  ;;  %4310 = vmatmul.f32.vlgmr.msra.gmra.mxu0 %v5650_v29  ;;  %v3161_v30 = vld [vmem:[#allocation6 + $0x1628] sm:$0xff] }
 0x475   :  { %4330 = vmatmul.f32.vlgmr.msra.gmra.mxu1 %v5652_v7  ;;  %4350 = vmatmul.f32.vlgmr.msra.gmra.mxu2 %v5654_v50  ;;  %v2961_v49 = vld [vmem:[#allocation6 + $0xfe8] sm:$0xff] }
 0x476   :  { %4374 = vmatpush.msrb.mxu0 %v3089_v17  ;;  %4394 = vmatpush.msrb.mxu1 %v3217_v27  ;;  %v3289_v1 = vld [vmem:[#allocation6 + $0x1a28] sm:$0xff] }
 0x477   :  { %4414 = vmatpush.msrb.mxu2 %v3345_v19  ;;  %4283 = vmatpush.msrb.mxu3 %v3400_v21  ;;  %v3025_v53 = vld [vmem:[#allocation6 + $0x11e8] sm:$0xff] }
 0x478   :  { %4375 = vmatpush.msrb.mxu0 %v3081_v22  ;;  %4395 = vmatpush.msrb.mxu1 %v3209_v44  ;;  %v3153_v57 = vld [vmem:[#allocation6 + $0x15e8] sm:$0xff] }
 0x479   :  { %4415 = vmatpush.msrb.mxu2 %v3337_v32  ;;  %4284 = vmatpush.msrb.mxu3 %v3392_v9  ;;  %v2953_v54 = vld [vmem:[#allocation6 + $0xfa8] sm:$0xff] }
 0x47a   :  { %4376 = vmatpush.msrb.mxu0 %v3073_v28  ;;  %4396 = vmatpush.msrb.mxu1 %v3201_v4  ;;  %v3281_v12 = vld [vmem:[#allocation6 + $0x19e8] sm:$0xff]  ;;  %v2578_v28 = vld [vmem:[#allocation6 + $0x3f0] sm:$0xff] }
 0x47b   :  { %4416 = vmatpush.msrb.mxu2 %v3329_v33  ;;  %4285 = vmatpush.msrb.mxu3 %v3384_v13  ;;  %v3017_v56 = vld [vmem:[#allocation6 + $0x11a8] sm:$0xff]  ;;  %v2706_v4 = vld [vmem:[#allocation6 + $0x7f0] sm:$0xff] }
 0x47c   :  { %4377 = vmatpush.msrb.mxu0 %v3065_v8  ;;  %4397 = vmatpush.msrb.mxu1 %v3193_v51  ;;  %v3145_v59 = vld [vmem:[#allocation6 + $0x15a8] sm:$0xff]  ;;  %v2834_v33 = vld [vmem:[#allocation6 + $0xbf0] sm:$0xff] }
 0x47d   :  { %4417 = vmatpush.msrb.mxu2 %v3321_v2  ;;  %4286 = vmatpush.msrb.mxu3 %v3376_v0  ;;  %v2945_v6 = vld [vmem:[#allocation6 + $0xf68] sm:$0xff]  ;;  %v2570_v8 = vld [vmem:[#allocation6 + $0x3b0] sm:$0xff] }
 0x47e   :  { %4378 = vmatpush.msrb.mxu0 %v3057_v34  ;;  %4398 = vmatpush.msrb.mxu1 %v3185_v5  ;;  %v3273_v62 = vld [vmem:[#allocation6 + $0x19a8] sm:$0xff]  ;;  %v2698_v51 = vld [vmem:[#allocation6 + $0x7b0] sm:$0xff] }
 0x47f   :  { %4418 = vmatpush.msrb.mxu2 %v3313_v39  ;;  %4287 = vmatpush.msrb.mxu3 %v3368_v40  ;;  %v3009_v23 = vld [vmem:[#allocation6 + $0x1168] sm:$0xff]  ;;  %v2826_v2 = vld [vmem:[#allocation6 + $0xbb0] sm:$0xff] }
 0x480   :  { %4379 = vmatpush.msrb.mxu0 %v3049_v41  ;;  %4399 = vmatpush.msrb.mxu1 %v3177_v37  ;;  %v3137_v38 = vld [vmem:[#allocation6 + $0x1568] sm:$0xff]  ;;  %v2562_v34 = vld [vmem:[#allocation6 + $0x370] sm:$0xff] }
 0x481   :  { %4419 = vmatpush.msrb.mxu2 %v3305_v25  ;;  %4288 = vmatpush.msrb.mxu3 %v3360_v24  ;;  %v2937_v20 = vld [vmem:[#allocation6 + $0xf28] sm:$0xff]  ;;  %v2690_v5 = vld [vmem:[#allocation6 + $0x770] sm:$0xff] }
 0x482   :  { %4380 = vmatpush.msrb.mxu0 %v3041_v16  ;;  %4400 = vmatpush.msrb.mxu1 %v3169_v3  ;;  %v3265_v36 = vld [vmem:[#allocation6 + $0x1968] sm:$0xff]  ;;  %v2818_v39 = vld [vmem:[#allocation6 + $0xb70] sm:$0xff] }
 0x483   :  { %4420 = vmatpush.msrb.mxu2 %v3297_v15  ;;  %4289 = vmatpush.msrb.mxu3 %v3352_v58  ;;  %v3001_v63 = vld [vmem:[#allocation6 + $0x1128] sm:$0xff]  ;;  %v2554_v41 = vld [vmem:[#allocation6 + $0x330] sm:$0xff] }
 0x484   :  { %4381 = vmatpush.msrb.mxu0 %v3033_v45  ;;  %4290 = vmatmul.f32.vlgmr.msrb.gmra.mxu3 %v5692_v35  ;;  %v3129_v18 = vld [vmem:[#allocation6 + $0x1528] sm:$0xff]  ;;  %v2682_v37 = vld [vmem:[#allocation6 + $0x730] sm:$0xff] }
 0x485   :  { %4401 = vmatpush.msrb.mxu1 %v3161_v30  ;;  %4354 = vmatpush.msra.mxu3 %v2961_v49  ;;  %v2929_v42 = vld [vmem:[#allocation6 + $0xee8] sm:$0xff]  ;;  %v2810_v25 = vld [vmem:[#allocation6 + $0xb30] sm:$0xff] }
 0x486   :  { %4421 = vmatpush.msrb.mxu2 %v3289_v1  ;;  %4382 = vmatpush.msrb.mxu0 %v3025_v53  ;;  %v3257_v46 = vld [vmem:[#allocation6 + $0x1928] sm:$0xff]  ;;  %v2546_v16 = vld [vmem:[#allocation6 + $0x2f0] sm:$0xff] }
 0x487   :  { %4402 = vmatpush.msrb.mxu1 %v3153_v57  ;;  %4355 = vmatpush.msra.mxu3 %v2953_v54  ;;  %v2993_v47 = vld [vmem:[#allocation6 + $0x10e8] sm:$0xff]  ;;  %v2674_v3 = vld [vmem:[#allocation6 + $0x6f0] sm:$0xff] }
 0x488   :  { %4422 = vmatpush.msrb.mxu2 %v3281_v12  ;;  %4383 = vmatpush.msrb.mxu0 %v3017_v56  ;;  %v3121_v10 = vld [vmem:[#allocation6 + $0x14e8] sm:$0xff]  ;;  %v2802_v15 = vld [vmem:[#allocation6 + $0xaf0] sm:$0xff] }
 0x489   :  { %4403 = vmatpush.msrb.mxu1 %v3145_v59  ;;  %4356 = vmatpush.msra.mxu3 %v2945_v6  ;;  %v2921_v52 = vld [vmem:[#allocation6 + $0xea8] sm:$0xff]  ;;  %v2538_v45 = vld [vmem:[#allocation6 + $0x2b0] sm:$0xff] }
 0x48a   :  { %4423 = vmatpush.msrb.mxu2 %v3273_v62  ;;  %4384 = vmatpush.msrb.mxu0 %v3009_v23  ;;  %v3249_v11 = vld [vmem:[#allocation6 + $0x18e8] sm:$0xff]  ;;  %v2666_v30 = vld [vmem:[#allocation6 + $0x6b0] sm:$0xff] }
 0x48b   :  { %4404 = vmatpush.msrb.mxu1 %v3137_v38  ;;  %4357 = vmatpush.msra.mxu3 %v2937_v20  ;;  %v2985_v48 = vld [vmem:[#allocation6 + $0x10a8] sm:$0xff]  ;;  %v2794_v49 = vld [vmem:[#allocation6 + $0xab0] sm:$0xff] }
 0x48c   :  { %4424 = vmatpush.msrb.mxu2 %v3265_v36  ;;  %4385 = vmatpush.msrb.mxu0 %v3001_v63  ;;  %v3113_v26 = vld [vmem:[#allocation6 + $0x14a8] sm:$0xff]  ;;  %v2530_v53 = vld [vmem:[#allocation6 + $0x270] sm:$0xff] }
 0x48d   :  { %4405 = vmatpush.msrb.mxu1 %v3129_v18  ;;  %4358 = vmatpush.msra.mxu3 %v2929_v42  ;;  %v2913_v31 = vld [vmem:[#allocation6 + $0xe68] sm:$0xff]  ;;  %v2658_v57 = vld [vmem:[#allocation6 + $0x670] sm:$0xff] }
 0x48e   :  { %4425 = vmatpush.msrb.mxu2 %v3257_v46  ;;  %4386 = vmatpush.msrb.mxu0 %v2993_v47  ;;  %v3241_v14 = vld [vmem:[#allocation6 + $0x18a8] sm:$0xff]  ;;  %v2786_v54 = vld [vmem:[#allocation6 + $0xa70] sm:$0xff] }
 0x48f   :  { %4406 = vmatpush.msrb.mxu1 %v3121_v10  ;;  %4359 = vmatpush.msra.mxu3 %v2921_v52  ;;  %v2977_v17 = vld [vmem:[#allocation6 + $0x1068] sm:$0xff]  ;;  %v2522_v56 = vld [vmem:[#allocation6 + $0x230] sm:$0xff] }
 0x490   :  { %4426 = vmatpush.msrb.mxu2 %v3249_v11  ;;  %v3105_v27 = vld [vmem:[#allocation6 + $0x1468] sm:$0xff]  ;;  %4387 = vmatpush.msrb.mxu0 %v2985_v48  ;;  %v2650_v59 = vld [vmem:[#allocation6 + $0x630] sm:$0xff] }
 0x491   :  { %4407 = vmatpush.msrb.mxu1 %v3113_v26  ;;  %v2905_v19 = vld [vmem:[#allocation6 + $0xe28] sm:$0xff]  ;;  %4360 = vmatpush.msra.mxu3 %v2913_v31  ;;  %v2778_v62 = vld [vmem:[#allocation6 + $0xa30] sm:$0xff] }
 0x492   :  { %v3233_v21 = vld [vmem:[#allocation6 + $0x1868] sm:$0xff]  ;;  %4427 = vmatpush.msrb.mxu2 %v3241_v14  ;;  %4388 = vmatpush.msrb.mxu0 %v2977_v17  ;;  %v2514_v23 = vld [vmem:[#allocation6 + $0x1f0] sm:$0xff] }
 0x493   :  { %v2969_v22 = vld [vmem:[#allocation6 + $0x1028] sm:$0xff]  ;;  %4408 = vmatpush.msrb.mxu1 %v3105_v27  ;;  %4361 = vmatpush.msra.mxu3 %v2905_v19  ;;  %v2642_v38 = vld [vmem:[#allocation6 + $0x5f0] sm:$0xff] }
 0x494   :  { %v3097_v44 = vld [vmem:[#allocation6 + $0x1428] sm:$0xff]  ;;  %4428 = vmatpush.msrb.mxu2 %v3233_v21  ;;  %4389 = vmatpush.msrb.mxu0 %v2969_v22  ;;  %v2770_v36 = vld [vmem:[#allocation6 + $0x9f0] sm:$0xff] }
 0x495   :  { %v2897_v32 = vld [vmem:[#allocation6 + $0xde8] sm:$0xff]  ;;  %4409 = vmatpush.msrb.mxu1 %v3097_v44  ;;  %4390 = vmatmul.f32.vlgmr.msrb.gmra.mxu0 %v5677_v55  ;;  %v2506_v63 = vld [vmem:[#allocation6 + $0x1b0] sm:$0xff] }
 0x496   :  { %v3225_v9 = vld [vmem:[#allocation6 + $0x1828] sm:$0xff]  ;;  %4362 = vmatpush.msra.mxu3 %v2897_v32  ;;  %4410 = vmatmul.f32.vlgmr.msrb.gmra.mxu1 %v5679_v61  ;;  %v2634_v18 = vld [vmem:[#allocation6 + $0x5b0] sm:$0xff] }
 0x497   :  { %4429 = vmatpush.msrb.mxu2 %v3225_v9  ;;  %v2889_v13 = vld [vmem:[#allocation6 + $0xda8] sm:$0xff]  ;;  %4454 = vmatpush.msra.mxu0 %v2578_v28  ;;  %v2762_v46 = vld [vmem:[#allocation6 + $0x9b0] sm:$0xff] }
 0x498   :  { %4430 = vmatmul.f32.vlgmr.msrb.gmra.mxu2 %v5683_v43  ;;  %4474 = vmatpush.msra.mxu1 %v2706_v4  ;;  %v2881_v0 = vld [vmem:[#allocation6 + $0xd68] sm:$0xff]  ;;  %v2498_v47 = vld [vmem:[#allocation6 + $0x170] sm:$0xff] }
 0x499   :  { %4494 = vmatpush.msra.mxu2 %v2834_v33  ;;  %4363 = vmatpush.msra.mxu3 %v2889_v13  ;;  %v2873_v40 = vld [vmem:[#allocation6 + $0xd28] sm:$0xff]  ;;  %v2626_v10 = vld [vmem:[#allocation6 + $0x570] sm:$0xff] }
 0x49a   :  { %4455 = vmatpush.msra.mxu0 %v2570_v8  ;;  %4475 = vmatpush.msra.mxu1 %v2698_v51  ;;  %v2865_v24 = vld [vmem:[#allocation6 + $0xce8] sm:$0xff]  ;;  %v2754_v11 = vld [vmem:[#allocation6 + $0x970] sm:$0xff] }
 0x49b   :  { %4495 = vmatpush.msra.mxu2 %v2826_v2  ;;  %4364 = vmatpush.msra.mxu3 %v2881_v0  ;;  %v2857_v58 = vld [vmem:[#allocation6 + $0xca8] sm:$0xff]  ;;  %v2490_v48 = vld [vmem:[#allocation6 + $0x130] sm:$0xff] }
 0x49c   :  { %4456 = vmatpush.msra.mxu0 %v2562_v34  ;;  %4476 = vmatpush.msra.mxu1 %v2690_v5  ;;  %v2849_v1 = vld [vmem:[#allocation6 + $0xc68] sm:$0xff]  ;;  %v2618_v26 = vld [vmem:[#allocation6 + $0x530] sm:$0xff] }
 0x49d   :  { %4496 = vmatpush.msra.mxu2 %v2818_v39  ;;  %4365 = vmatpush.msra.mxu3 %v2873_v40  ;;  %v2841_v12 = vld [vmem:[#allocation6 + $0xc28] sm:$0xff]  ;;  %v2746_v14 = vld [vmem:[#allocation6 + $0x930] sm:$0xff] }
 0x49e   :  { %4457 = vmatpush.msra.mxu0 %v2554_v41  ;;  %4477 = vmatpush.msra.mxu1 %v2682_v37  ;;  %v3473_v6 = vld [vmem:[#allocation6 + $0x1fe8] sm:$0xff]  ;;  %v2482_v17 = vld [vmem:[#allocation6 + $0xf0] sm:$0xff] }
 0x49f   :  { %4497 = vmatpush.msra.mxu2 %v2810_v25  ;;  %4366 = vmatpush.msra.mxu3 %v2865_v24  ;;  %v3465_v20 = vld [vmem:[#allocation6 + $0x1fa8] sm:$0xff]  ;;  %v2610_v27 = vld [vmem:[#allocation6 + $0x4f0] sm:$0xff] }
 0x4a0   :  { %4458 = vmatpush.msra.mxu0 %v2546_v16  ;;  %4478 = vmatpush.msra.mxu1 %v2674_v3  ;;  %v3457_v42 = vld [vmem:[#allocation6 + $0x1f68] sm:$0xff]  ;;  %v2738_v21 = vld [vmem:[#allocation6 + $0x8f0] sm:$0xff] }
 0x4a1   :  { %4498 = vmatpush.msra.mxu2 %v2802_v15  ;;  %4367 = vmatpush.msra.mxu3 %v2857_v58  ;;  %v3449_v52 = vld [vmem:[#allocation6 + $0x1f28] sm:$0xff]  ;;  %v2474_v22 = vld [vmem:[#allocation6 + $0xb0] sm:$0xff] }
 0x4a2   :  { %4459 = vmatpush.msra.mxu0 %v2538_v45  ;;  %4479 = vmatpush.msra.mxu1 %v2666_v30  ;;  %v3441_v31 = vld [vmem:[#allocation6 + $0x1ee8] sm:$0xff]  ;;  %v2602_v44 = vld [vmem:[#allocation6 + $0x4b0] sm:$0xff] }
 0x4a3   :  { %4499 = vmatpush.msra.mxu2 %v2794_v49  ;;  %4368 = vmatpush.msra.mxu3 %v2849_v1  ;;  %v3433_v19 = vld [vmem:[#allocation6 + $0x1ea8] sm:$0xff]  ;;  %v2730_v9 = vld [vmem:[#allocation6 + $0x8b0] sm:$0xff] }
 0x4a4   :  { %4460 = vmatpush.msra.mxu0 %v2530_v53  ;;  %4480 = vmatpush.msra.mxu1 %v2658_v57  ;;  %v3425_v32 = vld [vmem:[#allocation6 + $0x1e68] sm:$0xff]  ;;  %v2466_v28 = vld [vmem:[#allocation6 + $0x70] sm:$0xff] }
 0x4a5   :  { %4500 = vmatpush.msra.mxu2 %v2786_v54  ;;  %4369 = vmatpush.msra.mxu3 %v2841_v12  ;;  %v2594_v4 = vld [vmem:[#allocation6 + $0x470] sm:$0xff]  ;;  %v3417_v33 = vld [vmem:[#allocation6 + $0x1e28] sm:$0xff] }
 0x4a6   :  { %4461 = vmatpush.msra.mxu0 %v2522_v56  ;;  %4370 = vmatmul.f32.vlgmr.msra.gmra.mxu3 %v5656_v60  ;;  %v2722_v13 = vld [vmem:[#allocation6 + $0x870] sm:$0xff]  ;;  %v3409_v2 = vld [vmem:[#allocation6 + $0x1de8] sm:$0xff] }
 0x4a7   :  { %4481 = vmatpush.msra.mxu1 %v2650_v59  ;;  %4434 = vmatpush.msrb.mxu3 %v3473_v6  ;;  %v2458_v8 = vld [vmem:[#allocation6 + $0x30] sm:$0xff]  ;;  %v3401_v40 = vld [vmem:[#allocation6 + $0x1da8] sm:$0xff] }
 0x4a8   :  { %4501 = vmatpush.msra.mxu2 %v2778_v62  ;;  %4462 = vmatpush.msra.mxu0 %v2514_v23  ;;  %v2586_v51 = vld [vmem:[#allocation6 + $0x430] sm:$0xff]  ;;  %v3393_v24 = vld [vmem:[#allocation6 + $0x1d68] sm:$0xff] }
 0x4a9   :  { %4482 = vmatpush.msra.mxu1 %v2642_v38  ;;  %4435 = vmatpush.msrb.mxu3 %v3465_v20  ;;  %v2714_v0 = vld [vmem:[#allocation6 + $0x830] sm:$0xff]  ;;  %v3385_v58 = vld [vmem:[#allocation6 + $0x1d28] sm:$0xff] }
 0x4aa   :  { %4502 = vmatpush.msra.mxu2 %v2770_v36  ;;  %4463 = vmatpush.msra.mxu0 %v2506_v63  ;;  %v3090_v34 = vld [vmem:[#allocation6 + $0x13f0] sm:$0xff]  ;;  %v3377_v1 = vld [vmem:[#allocation6 + $0x1ce8] sm:$0xff] }
 0x4ab   :  { %4483 = vmatpush.msra.mxu1 %v2634_v18  ;;  %4436 = vmatpush.msrb.mxu3 %v3457_v42  ;;  %v3218_v5 = vld [vmem:[#allocation6 + $0x17f0] sm:$0xff]  ;;  %v3369_v12 = vld [vmem:[#allocation6 + $0x1ca8] sm:$0xff] }
 0x4ac   :  { %4503 = vmatpush.msra.mxu2 %v2762_v46  ;;  %4464 = vmatpush.msra.mxu0 %v2498_v47  ;;  %v3346_v39 = vld [vmem:[#allocation6 + $0x1bf0] sm:$0xff]  ;;  %v3361_v62 = vld [vmem:[#allocation6 + $0x1c68] sm:$0xff] }
 0x4ad   :  { %4484 = vmatpush.msra.mxu1 %v2626_v10  ;;  %4437 = vmatpush.msrb.mxu3 %v3449_v52  ;;  %v3082_v41 = vld [vmem:[#allocation6 + $0x13b0] sm:$0xff]  ;;  %v3353_v36 = vld [vmem:[#allocation6 + $0x1c28] sm:$0xff] }
 0x4ae   :  { %4504 = vmatpush.msra.mxu2 %v2754_v11  ;;  %4465 = vmatpush.msra.mxu0 %v2490_v48  ;;  %v3210_v37 = vld [vmem:[#allocation6 + $0x17b0] sm:$0xff] }
 0x4af   :  { %4485 = vmatpush.msra.mxu1 %v2618_v26  ;;  %4438 = vmatpush.msrb.mxu3 %v3441_v31  ;;  %v3338_v25 = vld [vmem:[#allocation6 + $0x1bb0] sm:$0xff] }
 0x4b0   :  { %4505 = vmatpush.msra.mxu2 %v2746_v14  ;;  %4466 = vmatpush.msra.mxu0 %v2482_v17  ;;  %v3074_v16 = vld [vmem:[#allocation6 + $0x1370] sm:$0xff] }
 0x4b1   :  { %4486 = vmatpush.msra.mxu1 %v2610_v27  ;;  %4439 = vmatpush.msrb.mxu3 %v3433_v19  ;;  %v3202_v3 = vld [vmem:[#allocation6 + $0x1770] sm:$0xff] }
 0x4b2   :  { %4506 = vmatpush.msra.mxu2 %v2738_v21  ;;  %4467 = vmatpush.msra.mxu0 %v2474_v22  ;;  %v3330_v15 = vld [vmem:[#allocation6 + $0x1b70] sm:$0xff] }
 0x4b3   :  { %4487 = vmatpush.msra.mxu1 %v2602_v44  ;;  %4440 = vmatpush.msrb.mxu3 %v3425_v32  ;;  %v3066_v45 = vld [vmem:[#allocation6 + $0x1330] sm:$0xff] }
 0x4b4   :  { %4507 = vmatpush.msra.mxu2 %v2730_v9  ;;  %4468 = vmatpush.msra.mxu0 %v2466_v28  ;;  %v3194_v30 = vld [vmem:[#allocation6 + $0x1730] sm:$0xff] }
 0x4b5   :  { %4488 = vmatpush.msra.mxu1 %v2594_v4  ;;  %4441 = vmatpush.msrb.mxu3 %v3417_v33  ;;  %v3322_v49 = vld [vmem:[#allocation6 + $0x1b30] sm:$0xff] }
 0x4b6   :  { %4508 = vmatpush.msra.mxu2 %v2722_v13  ;;  %4469 = vmatpush.msra.mxu0 %v2458_v8  ;;  %v3058_v53 = vld [vmem:[#allocation6 + $0x12f0] sm:$0xff] }
 0x4b7   :  { %4489 = vmatpush.msra.mxu1 %v2586_v51  ;;  %4442 = vmatpush.msrb.mxu3 %v3409_v2  ;;  %v3186_v57 = vld [vmem:[#allocation6 + $0x16f0] sm:$0xff] }
 0x4b8   :  { %4509 = vmatpush.msra.mxu2 %v2714_v0  ;;  %4470 = vmatmul.f32.vlgmr.msra.gmra.mxu0 %v5650_v29  ;;  %v3314_v54 = vld [vmem:[#allocation6 + $0x1af0] sm:$0xff] }
 0x4b9   :  { %4490 = vmatmul.f32.vlgmr.msra.gmra.mxu1 %v5652_v7  ;;  %4510 = vmatmul.f32.vlgmr.msra.gmra.mxu2 %v5654_v50  ;;  %v3050_v56 = vld [vmem:[#allocation6 + $0x12b0] sm:$0xff] }
 0x4ba   :  { %4534 = vmatpush.msrb.mxu0 %v3090_v34  ;;  %4554 = vmatpush.msrb.mxu1 %v3218_v5  ;;  %v3178_v59 = vld [vmem:[#allocation6 + $0x16b0] sm:$0xff] }
 0x4bb   :  { %4574 = vmatpush.msrb.mxu2 %v3346_v39  ;;  %4443 = vmatpush.msrb.mxu3 %v3401_v40  ;;  %v3306_v6 = vld [vmem:[#allocation6 + $0x1ab0] sm:$0xff] }
 0x4bc   :  { %4535 = vmatpush.msrb.mxu0 %v3082_v41  ;;  %4555 = vmatpush.msrb.mxu1 %v3210_v37  ;;  %v3042_v23 = vld [vmem:[#allocation6 + $0x1270] sm:$0xff] }
 0x4bd   :  { %4575 = vmatpush.msrb.mxu2 %v3338_v25  ;;  %4444 = vmatpush.msrb.mxu3 %v3393_v24  ;;  %v3170_v38 = vld [vmem:[#allocation6 + $0x1670] sm:$0xff] }
 0x4be   :  { %4536 = vmatpush.msrb.mxu0 %v3074_v16  ;;  %4556 = vmatpush.msrb.mxu1 %v3202_v3  ;;  %v3298_v20 = vld [vmem:[#allocation6 + $0x1a70] sm:$0xff]  ;;  %v2579_v16 = vld [vmem:[#allocation6 + $0x3f8] sm:$0xff] }
 0x4bf   :  { %4576 = vmatpush.msrb.mxu2 %v3330_v15  ;;  %4445 = vmatpush.msrb.mxu3 %v3385_v58  ;;  %v3034_v63 = vld [vmem:[#allocation6 + $0x1230] sm:$0xff]  ;;  %v2707_v3 = vld [vmem:[#allocation6 + $0x7f8] sm:$0xff] }
 0x4c0   :  { %4537 = vmatpush.msrb.mxu0 %v3066_v45  ;;  %4557 = vmatpush.msrb.mxu1 %v3194_v30  ;;  %v3162_v18 = vld [vmem:[#allocation6 + $0x1630] sm:$0xff]  ;;  %v2835_v15 = vld [vmem:[#allocation6 + $0xbf8] sm:$0xff] }
 0x4c1   :  { %4577 = vmatpush.msrb.mxu2 %v3322_v49  ;;  %4446 = vmatpush.msrb.mxu3 %v3377_v1  ;;  %v2962_v42 = vld [vmem:[#allocation6 + $0xff0] sm:$0xff]  ;;  %v2571_v45 = vld [vmem:[#allocation6 + $0x3b8] sm:$0xff] }
 0x4c2   :  { %4538 = vmatpush.msrb.mxu0 %v3058_v53  ;;  %4558 = vmatpush.msrb.mxu1 %v3186_v57  ;;  %v3290_v46 = vld [vmem:[#allocation6 + $0x1a30] sm:$0xff]  ;;  %v2699_v30 = vld [vmem:[#allocation6 + $0x7b8] sm:$0xff] }
 0x4c3   :  { %4578 = vmatpush.msrb.mxu2 %v3314_v54  ;;  %4447 = vmatpush.msrb.mxu3 %v3369_v12  ;;  %v3026_v47 = vld [vmem:[#allocation6 + $0x11f0] sm:$0xff]  ;;  %v2827_v49 = vld [vmem:[#allocation6 + $0xbb8] sm:$0xff] }
 0x4c4   :  { %4539 = vmatpush.msrb.mxu0 %v3050_v56  ;;  %4559 = vmatpush.msrb.mxu1 %v3178_v59  ;;  %v3154_v10 = vld [vmem:[#allocation6 + $0x15f0] sm:$0xff]  ;;  %v2563_v53 = vld [vmem:[#allocation6 + $0x378] sm:$0xff] }
 0x4c5   :  { %4579 = vmatpush.msrb.mxu2 %v3306_v6  ;;  %4448 = vmatpush.msrb.mxu3 %v3361_v62  ;;  %v2954_v52 = vld [vmem:[#allocation6 + $0xfb0] sm:$0xff]  ;;  %v2691_v57 = vld [vmem:[#allocation6 + $0x778] sm:$0xff] }
 0x4c6   :  { %4540 = vmatpush.msrb.mxu0 %v3042_v23  ;;  %4560 = vmatpush.msrb.mxu1 %v3170_v38  ;;  %v3282_v11 = vld [vmem:[#allocation6 + $0x19f0] sm:$0xff]  ;;  %v2819_v54 = vld [vmem:[#allocation6 + $0xb78] sm:$0xff] }
 0x4c7   :  { %4580 = vmatpush.msrb.mxu2 %v3298_v20  ;;  %4449 = vmatpush.msrb.mxu3 %v3353_v36  ;;  %v3018_v48 = vld [vmem:[#allocation6 + $0x11b0] sm:$0xff]  ;;  %v2555_v56 = vld [vmem:[#allocation6 + $0x338] sm:$0xff] }
 0x4c8   :  { %4541 = vmatpush.msrb.mxu0 %v3034_v63  ;;  %4450 = vmatmul.f32.vlgmr.msrb.gmra.mxu3 %v5692_v35  ;;  %v3146_v26 = vld [vmem:[#allocation6 + $0x15b0] sm:$0xff]  ;;  %v2683_v59 = vld [vmem:[#allocation6 + $0x738] sm:$0xff] }
 0x4c9   :  { %4561 = vmatpush.msrb.mxu1 %v3162_v18  ;;  %4514 = vmatpush.msra.mxu3 %v2962_v42  ;;  %v2946_v31 = vld [vmem:[#allocation6 + $0xf70] sm:$0xff]  ;;  %v2811_v6 = vld [vmem:[#allocation6 + $0xb38] sm:$0xff] }
 0x4ca   :  { %4581 = vmatpush.msrb.mxu2 %v3290_v46  ;;  %4542 = vmatpush.msrb.mxu0 %v3026_v47  ;;  %v3274_v14 = vld [vmem:[#allocation6 + $0x19b0] sm:$0xff]  ;;  %v2547_v23 = vld [vmem:[#allocation6 + $0x2f8] sm:$0xff] }
 0x4cb   :  { %4562 = vmatpush.msrb.mxu1 %v3154_v10  ;;  %4515 = vmatpush.msra.mxu3 %v2954_v52  ;;  %v3010_v17 = vld [vmem:[#allocation6 + $0x1170] sm:$0xff]  ;;  %v2675_v38 = vld [vmem:[#allocation6 + $0x6f8] sm:$0xff] }
 0x4cc   :  { %4582 = vmatpush.msrb.mxu2 %v3282_v11  ;;  %v3138_v27 = vld [vmem:[#allocation6 + $0x1570] sm:$0xff]  ;;  %4543 = vmatpush.msrb.mxu0 %v3018_v48  ;;  %v2803_v20 = vld [vmem:[#allocation6 + $0xaf8] sm:$0xff] }
 0x4cd   :  { %4563 = vmatpush.msrb.mxu1 %v3146_v26  ;;  %v2938_v19 = vld [vmem:[#allocation6 + $0xf30] sm:$0xff]  ;;  %4516 = vmatpush.msra.mxu3 %v2946_v31  ;;  %v2539_v63 = vld [vmem:[#allocation6 + $0x2b8] sm:$0xff] }
 0x4ce   :  { %v3266_v21 = vld [vmem:[#allocation6 + $0x1970] sm:$0xff]  ;;  %4583 = vmatpush.msrb.mxu2 %v3274_v14  ;;  %4544 = vmatpush.msrb.mxu0 %v3010_v17  ;;  %v2667_v18 = vld [vmem:[#allocation6 + $0x6b8] sm:$0xff] }
 0x4cf   :  { %v3002_v22 = vld [vmem:[#allocation6 + $0x1130] sm:$0xff]  ;;  %4564 = vmatpush.msrb.mxu1 %v3138_v27  ;;  %4517 = vmatpush.msra.mxu3 %v2938_v19  ;;  %v2795_v42 = vld [vmem:[#allocation6 + $0xab8] sm:$0xff] }
 0x4d0   :  { %v3130_v44 = vld [vmem:[#allocation6 + $0x1530] sm:$0xff]  ;;  %4584 = vmatpush.msrb.mxu2 %v3266_v21  ;;  %4545 = vmatpush.msrb.mxu0 %v3002_v22  ;;  %v2531_v47 = vld [vmem:[#allocation6 + $0x278] sm:$0xff] }
 0x4d1   :  { %v2930_v32 = vld [vmem:[#allocation6 + $0xef0] sm:$0xff]  ;;  %4565 = vmatpush.msrb.mxu1 %v3130_v44  ;;  %v2659_v10 = vld [vmem:[#allocation6 + $0x678] sm:$0xff] }
 0x4d2   :  { %v3258_v9 = vld [vmem:[#allocation6 + $0x1930] sm:$0xff]  ;;  %4518 = vmatpush.msra.mxu3 %v2930_v32  ;;  %v2787_v52 = vld [vmem:[#allocation6 + $0xa78] sm:$0xff] }
 0x4d3   :  { %v2994_v28 = vld [vmem:[#allocation6 + $0x10f0] sm:$0xff]  ;;  %4585 = vmatpush.msrb.mxu2 %v3258_v9  ;;  %v2523_v48 = vld [vmem:[#allocation6 + $0x238] sm:$0xff] }
 0x4d4   :  { %v3122_v4 = vld [vmem:[#allocation6 + $0x14f0] sm:$0xff]  ;;  %4546 = vmatpush.msrb.mxu0 %v2994_v28  ;;  %v2651_v26 = vld [vmem:[#allocation6 + $0x638] sm:$0xff] }
 0x4d5   :  { %v2922_v33 = vld [vmem:[#allocation6 + $0xeb0] sm:$0xff]  ;;  %4566 = vmatpush.msrb.mxu1 %v3122_v4  ;;  %v2779_v14 = vld [vmem:[#allocation6 + $0xa38] sm:$0xff] }
 0x4d6   :  { %v3250_v13 = vld [vmem:[#allocation6 + $0x18f0] sm:$0xff]  ;;  %4519 = vmatpush.msra.mxu3 %v2922_v33  ;;  %v2515_v17 = vld [vmem:[#allocation6 + $0x1f8] sm:$0xff] }
 0x4d7   :  { %v2986_v8 = vld [vmem:[#allocation6 + $0x10b0] sm:$0xff]  ;;  %4586 = vmatpush.msrb.mxu2 %v3250_v13  ;;  %v2643_v27 = vld [vmem:[#allocation6 + $0x5f8] sm:$0xff] }
 0x4d8   :  { %v3114_v51 = vld [vmem:[#allocation6 + $0x14b0] sm:$0xff]  ;;  %4547 = vmatpush.msrb.mxu0 %v2986_v8  ;;  %v2771_v21 = vld [vmem:[#allocation6 + $0x9f8] sm:$0xff] }
 0x4d9   :  { %v2914_v2 = vld [vmem:[#allocation6 + $0xe70] sm:$0xff]  ;;  %4567 = vmatpush.msrb.mxu1 %v3114_v51  ;;  %v2507_v22 = vld [vmem:[#allocation6 + $0x1b8] sm:$0xff] }
 0x4da   :  { %v3242_v0 = vld [vmem:[#allocation6 + $0x18b0] sm:$0xff]  ;;  %4520 = vmatpush.msra.mxu3 %v2914_v2  ;;  %v2635_v44 = vld [vmem:[#allocation6 + $0x5b8] sm:$0xff] }
 0x4db   :  { %v2978_v34 = vld [vmem:[#allocation6 + $0x1070] sm:$0xff]  ;;  %4587 = vmatpush.msrb.mxu2 %v3242_v0  ;;  %v2763_v9 = vld [vmem:[#allocation6 + $0x9b8] sm:$0xff] }
 0x4dc   :  { %v3106_v5 = vld [vmem:[#allocation6 + $0x1470] sm:$0xff]  ;;  %4548 = vmatpush.msrb.mxu0 %v2978_v34  ;;  %v2499_v28 = vld [vmem:[#allocation6 + $0x178] sm:$0xff] }
 0x4dd   :  { %v2906_v39 = vld [vmem:[#allocation6 + $0xe30] sm:$0xff]  ;;  %4568 = vmatpush.msrb.mxu1 %v3106_v5  ;;  %v2627_v4 = vld [vmem:[#allocation6 + $0x578] sm:$0xff] }
 0x4de   :  { %v3234_v40 = vld [vmem:[#allocation6 + $0x1870] sm:$0xff]  ;;  %4521 = vmatpush.msra.mxu3 %v2906_v39  ;;  %v2755_v13 = vld [vmem:[#allocation6 + $0x978] sm:$0xff]  ;;  %v5736_v39 = vpop.f32.mrf.mxu0 }
 0x4df   :  { %v2970_v41 = vld [vmem:[#allocation6 + $0x1030] sm:$0xff]  ;;  %4588 = vmatpush.msrb.mxu2 %v3234_v40  ;;  %v2491_v8 = vld [vmem:[#allocation6 + $0x138] sm:$0xff] }
 0x4e0   :  { %v3098_v37 = vld [vmem:[#allocation6 + $0x1430] sm:$0xff]  ;;  %4549 = vmatpush.msrb.mxu0 %v2970_v41  ;;  %v2619_v51 = vld [vmem:[#allocation6 + $0x538] sm:$0xff] }
 0x4e1   :  { %v2898_v25 = vld [vmem:[#allocation6 + $0xdf0] sm:$0xff]  ;;  %4569 = vmatpush.msrb.mxu1 %v3098_v37  ;;  %4550 = vmatmul.f32.vlgmr.msrb.gmra.mxu0 %v5677_v55  ;;  %v2747_v0 = vld [vmem:[#allocation6 + $0x938] sm:$0xff] }
 0x4e2   :  { %v3226_v24 = vld [vmem:[#allocation6 + $0x1830] sm:$0xff]  ;;  %4522 = vmatpush.msra.mxu3 %v2898_v25  ;;  %4570 = vmatmul.f32.vlgmr.msrb.gmra.mxu1 %v5679_v61  ;;  %v2483_v34 = vld [vmem:[#allocation6 + $0xf8] sm:$0xff] }
 0x4e3   :  { %4589 = vmatpush.msrb.mxu2 %v3226_v24  ;;  %v2890_v58 = vld [vmem:[#allocation6 + $0xdb0] sm:$0xff]  ;;  %4614 = vmatpush.msra.mxu0 %v2579_v16  ;;  %v2611_v5 = vld [vmem:[#allocation6 + $0x4f8] sm:$0xff] }
 0x4e4   :  { %4590 = vmatmul.f32.vlgmr.msrb.gmra.mxu2 %v5683_v43  ;;  %4634 = vmatpush.msra.mxu1 %v2707_v3  ;;  %v2882_v1 = vld [vmem:[#allocation6 + $0xd70] sm:$0xff]  ;;  %v2739_v41 = vld [vmem:[#allocation6 + $0x8f8] sm:$0xff] }
 0x4e5   :  { %4654 = vmatpush.msra.mxu2 %v2835_v15  ;;  %4523 = vmatpush.msra.mxu3 %v2890_v58  ;;  %v2874_v12 = vld [vmem:[#allocation6 + $0xd30] sm:$0xff]  ;;  %v2475_v37 = vld [vmem:[#allocation6 + $0xb8] sm:$0xff] }
 0x4e6   :  { %4615 = vmatpush.msra.mxu0 %v2571_v45  ;;  %4635 = vmatpush.msra.mxu1 %v2699_v30  ;;  %v2866_v62 = vld [vmem:[#allocation6 + $0xcf0] sm:$0xff]  ;;  %v2603_v25 = vld [vmem:[#allocation6 + $0x4b8] sm:$0xff]  ;;  %v5738_v30 = vpop.f32.mrf.mxu1 }
 0x4e7   :  { %4655 = vmatpush.msra.mxu2 %v2827_v49  ;;  %4524 = vmatpush.msra.mxu3 %v2882_v1  ;;  %v2858_v36 = vld [vmem:[#allocation6 + $0xcb0] sm:$0xff]  ;;  %v2731_v16 = vld [vmem:[#allocation6 + $0x8b8] sm:$0xff] }
 0x4e8   :  { %4616 = vmatpush.msra.mxu0 %v2563_v53  ;;  %4636 = vmatpush.msra.mxu1 %v2691_v57  ;;  %v2850_v46 = vld [vmem:[#allocation6 + $0xc70] sm:$0xff]  ;;  %v2467_v3 = vld [vmem:[#allocation6 + $0x78] sm:$0xff]  ;;  %v5740_v53 = vpop.f32.mrf.mxu2  ;;  %v5742_v57 = vpop.f32.mrf.mxu3 }
 0x4e9   :  { %4656 = vmatpush.msra.mxu2 %v2819_v54  ;;  %4525 = vmatpush.msra.mxu3 %v2874_v12  ;;  %v2842_v11 = vld [vmem:[#allocation6 + $0xc30] sm:$0xff]  ;;  %v2595_v15 = vld [vmem:[#allocation6 + $0x478] sm:$0xff] }
 0x4ea   :  { %4617 = vmatpush.msra.mxu0 %v2555_v56  ;;  %4637 = vmatpush.msra.mxu1 %v2683_v59  ;;  %v3474_v31 = vld [vmem:[#allocation6 + $0x1ff0] sm:$0xff]  ;;  %v2723_v45 = vld [vmem:[#allocation6 + $0x878] sm:$0xff]  ;;  %v5744_v56 = vpop.f32.mrf.mxu0 }
 0x4eb   :  { %4657 = vmatpush.msra.mxu2 %v2811_v6  ;;  %4526 = vmatpush.msra.mxu3 %v2866_v62  ;;  %v3466_v19 = vld [vmem:[#allocation6 + $0x1fb0] sm:$0xff]  ;;  %v2459_v49 = vld [vmem:[#allocation6 + $0x38] sm:$0xff] }
 0x4ec   :  { %4618 = vmatpush.msra.mxu0 %v2547_v23  ;;  %4638 = vmatpush.msra.mxu1 %v2675_v38  ;;  %v3458_v32 = vld [vmem:[#allocation6 + $0x1f70] sm:$0xff]  ;;  %v2587_v1 = vld [vmem:[#allocation6 + $0x438] sm:$0xff] }
 0x4ed   :  { %4658 = vmatpush.msra.mxu2 %v2803_v20  ;;  %4527 = vmatpush.msra.mxu3 %v2858_v36  ;;  %v3450_v33 = vld [vmem:[#allocation6 + $0x1f30] sm:$0xff]  ;;  %v2715_v12 = vld [vmem:[#allocation6 + $0x838] sm:$0xff] }
 0x4ee   :  { %4619 = vmatpush.msra.mxu0 %v2539_v63  ;;  %4639 = vmatpush.msra.mxu1 %v2667_v18  ;;  %v3442_v2 = vld [vmem:[#allocation6 + $0x1ef0] sm:$0xff]  ;;  %v3091_v59 = vld [vmem:[#allocation6 + $0x13f8] sm:$0xff] }
 0x4ef   :  { %4659 = vmatpush.msra.mxu2 %v2795_v42  ;;  %4528 = vmatpush.msra.mxu3 %v2850_v46  ;;  %v3434_v40 = vld [vmem:[#allocation6 + $0x1eb0] sm:$0xff]  ;;  %v3219_v6 = vld [vmem:[#allocation6 + $0x17f8] sm:$0xff]  ;;  %v5749_v42 = vpop.f32.mrf.mxu1 }
 0x4f0   :  { %4620 = vmatpush.msra.mxu0 %v2531_v47  ;;  %4640 = vmatpush.msra.mxu1 %v2659_v10  ;;  %v3426_v24 = vld [vmem:[#allocation6 + $0x1e70] sm:$0xff]  ;;  %v3347_v62 = vld [vmem:[#allocation6 + $0x1bf8] sm:$0xff] }
 0x4f1   :  { %4660 = vmatpush.msra.mxu2 %v2787_v52  ;;  %4529 = vmatpush.msra.mxu3 %v2842_v11  ;;  %v3418_v58 = vld [vmem:[#allocation6 + $0x1e30] sm:$0xff]  ;;  %v3083_v38 = vld [vmem:[#allocation6 + $0x13b8] sm:$0xff] }
 0x4f2   :  { %4621 = vmatpush.msra.mxu0 %v2523_v48  ;;  %4530 = vmatmul.f32.vlgmr.msra.gmra.mxu3 %v5656_v60  ;;  %v3410_v54 = vld [vmem:[#allocation6 + $0x1df0] sm:$0xff]  ;;  %v3211_v20 = vld [vmem:[#allocation6 + $0x17b8] sm:$0xff]  ;;  %v5755_v48 = vpop.f32.mrf.mxu0 }
 0x4f3   :  { %4641 = vmatpush.msra.mxu1 %v2651_v26  ;;  %4594 = vmatpush.msrb.mxu3 %v3474_v31  ;;  %v3402_v23 = vld [vmem:[#allocation6 + $0x1db0] sm:$0xff]  ;;  %v3339_v36 = vld [vmem:[#allocation6 + $0x1bb8] sm:$0xff] }
 0x4f4   :  { %4661 = vmatpush.msra.mxu2 %v2779_v14  ;;  %4622 = vmatpush.msra.mxu0 %v2515_v17  ;;  %v3394_v63 = vld [vmem:[#allocation6 + $0x1d70] sm:$0xff]  ;;  %v3075_v18 = vld [vmem:[#allocation6 + $0x1378] sm:$0xff] }
 0x4f5   :  { %4642 = vmatpush.msra.mxu1 %v2643_v27  ;;  %4595 = vmatpush.msrb.mxu3 %v3466_v19  ;;  %v3203_v46 = vld [vmem:[#allocation6 + $0x1778] sm:$0xff]  ;;  %v3378_v26 = vld [vmem:[#allocation6 + $0x1cf0] sm:$0xff] }
 0x4f6   :  { %4662 = vmatpush.msra.mxu2 %v2771_v21  ;;  %4623 = vmatpush.msra.mxu0 %v2507_v22  ;;  %v3331_v47 = vld [vmem:[#allocation6 + $0x1b78] sm:$0xff]  ;;  %v3370_v27 = vld [vmem:[#allocation6 + $0x1cb0] sm:$0xff] }
 0x4f7   :  { %4643 = vmatpush.msra.mxu1 %v2635_v44  ;;  %4596 = vmatpush.msrb.mxu3 %v3458_v32  ;;  %v3067_v10 = vld [vmem:[#allocation6 + $0x1338] sm:$0xff]  ;;  %v3362_v44 = vld [vmem:[#allocation6 + $0x1c70] sm:$0xff] }
 0x4f8   :  { %4663 = vmatpush.msra.mxu2 %v2763_v9  ;;  %4624 = vmatpush.msra.mxu0 %v2499_v28  ;;  %v3195_v52 = vld [vmem:[#allocation6 + $0x1738] sm:$0xff] }
 0x4f9   :  { %4644 = vmatpush.msra.mxu1 %v2627_v4  ;;  %4597 = vmatpush.msrb.mxu3 %v3450_v33  ;;  %v3323_v11 = vld [vmem:[#allocation6 + $0x1b38] sm:$0xff]  ;;  %v5757_v4 = vpop.f32.mrf.mxu1 }
 0x4fa   :  { %4664 = vmatpush.msra.mxu2 %v2755_v13  ;;  %4625 = vmatpush.msra.mxu0 %v2491_v8  ;;  %v3059_v31 = vld [vmem:[#allocation6 + $0x12f8] sm:$0xff]  ;;  %v3354_v13 = vld [vmem:[#allocation6 + $0x1c30] sm:$0xff] }
 0x4fb   :  { %4645 = vmatpush.msra.mxu1 %v2619_v51  ;;  %4598 = vmatpush.msrb.mxu3 %v3442_v2  ;;  %v3187_v14 = vld [vmem:[#allocation6 + $0x16f8] sm:$0xff]  ;;  %v5761_v2 = vpop.f32.mrf.mxu0 }
 0x4fc   :  { %4665 = vmatpush.msra.mxu2 %v2747_v0  ;;  %4626 = vmatpush.msra.mxu0 %v2483_v34  ;;  %v3315_v17 = vld [vmem:[#allocation6 + $0x1af8] sm:$0xff] }
 0x4fd   :  { %4646 = vmatpush.msra.mxu1 %v2611_v5  ;;  %4599 = vmatpush.msrb.mxu3 %v3434_v40  ;;  %v3051_v19 = vld [vmem:[#allocation6 + $0x12b8] sm:$0xff] }
 0x4fe   :  { %4666 = vmatpush.msra.mxu2 %v2739_v41  ;;  %4627 = vmatpush.msra.mxu0 %v2475_v37  ;;  %v3179_v21 = vld [vmem:[#allocation6 + $0x16b8] sm:$0xff] }
 0x4ff   :  { %4647 = vmatpush.msra.mxu1 %v2603_v25  ;;  %4600 = vmatpush.msrb.mxu3 %v3426_v24  ;;  %v3307_v22 = vld [vmem:[#allocation6 + $0x1ab8] sm:$0xff] }
 0x500   :  { %4667 = vmatpush.msra.mxu2 %v2731_v16  ;;  %4628 = vmatpush.msra.mxu0 %v2467_v3  ;;  %v3043_v32 = vld [vmem:[#allocation6 + $0x1278] sm:$0xff] }
 0x501   :  { %4648 = vmatpush.msra.mxu1 %v2595_v15  ;;  %4601 = vmatpush.msrb.mxu3 %v3418_v58  ;;  %v3171_v9 = vld [vmem:[#allocation6 + $0x1678] sm:$0xff] }
 0x502   :  { %4668 = vmatpush.msra.mxu2 %v2723_v45  ;;  %4629 = vmatpush.msra.mxu0 %v2459_v49  ;;  %v3299_v28 = vld [vmem:[#allocation6 + $0x1a78] sm:$0xff]  ;;  %v5766_v49 = vpop.f32.mrf.mxu1 }
 0x503   :  { %4649 = vmatpush.msra.mxu1 %v2587_v1  ;;  %4602 = vmatpush.msrb.mxu3 %v3410_v54  ;;  %v3035_v8 = vld [vmem:[#allocation6 + $0x1238] sm:$0xff] }
 0x504   :  { %4669 = vmatpush.msra.mxu2 %v2715_v12  ;;  %4630 = vmatmul.f32.vlgmr.msra.gmra.mxu0 %v5650_v29  ;;  %v5751_v29 = vpop.f32.mrf.mxu2  ;;  %v3163_v51 = vld [vmem:[#allocation6 + $0x1638] sm:$0xff] }
 0x505   :  { %4650 = vmatmul.f32.vlgmr.msra.gmra.mxu1 %v5652_v7  ;;  %4670 = vmatmul.f32.vlgmr.msra.gmra.mxu2 %v5654_v50  ;;  %v5753_v7 = vpop.f32.mrf.mxu3  ;;  %v3386_v50 = vld [vmem:[#allocation6 + $0x1d30] sm:$0xff]  ;;  %v2963_v34 = vld [vmem:[#allocation6 + $0xff8] sm:$0xff] }
 0x506   :  { %4694 = vmatpush.msrb.mxu0 %v3091_v59  ;;  %4714 = vmatpush.msrb.mxu1 %v3219_v6  ;;  %v3291_v5 = vld [vmem:[#allocation6 + $0x1a38] sm:$0xff] }
 0x507   :  { %4734 = vmatpush.msrb.mxu2 %v3347_v62  ;;  %4603 = vmatpush.msrb.mxu3 %v3402_v23  ;;  %v3027_v40 = vld [vmem:[#allocation6 + $0x11f8] sm:$0xff]  ;;  %v5770_v62 = vpop.f32.mrf.mxu0 }
 0x508   :  { %4695 = vmatpush.msrb.mxu0 %v3083_v38  ;;  %4715 = vmatpush.msrb.mxu1 %v3211_v20  ;;  %v3155_v41 = vld [vmem:[#allocation6 + $0x15f8] sm:$0xff] }
 0x509   :  { %4735 = vmatpush.msrb.mxu2 %v3339_v36  ;;  %4604 = vmatpush.msrb.mxu3 %v3394_v63  ;;  %v2955_v37 = vld [vmem:[#allocation6 + $0xfb8] sm:$0xff] }
 0x50a   :  { %4696 = vmatpush.msrb.mxu0 %v3075_v18  ;;  %4716 = vmatpush.msrb.mxu1 %v3203_v46  ;;  %v3283_v25 = vld [vmem:[#allocation6 + $0x19f8] sm:$0xff] }
 0x50b   :  { %4736 = vmatpush.msrb.mxu2 %v3331_v47  ;;  %4605 = vmatpush.msrb.mxu3 %v3386_v50  ;;  %v3019_v24 = vld [vmem:[#allocation6 + $0x11b8] sm:$0xff] }
 0x50c   :  { %4697 = vmatpush.msrb.mxu0 %v3067_v10  ;;  %4717 = vmatpush.msrb.mxu1 %v3195_v52  ;;  %v5759_v33 = vpop.f32.mrf.mxu2  ;;  %v3147_v16 = vld [vmem:[#allocation6 + $0x15b8] sm:$0xff] }
 0x50d   :  { %4737 = vmatpush.msrb.mxu2 %v3323_v11  ;;  %4606 = vmatpush.msrb.mxu3 %v3378_v26  ;;  %v5763_v0 = vpop.f32.mrf.mxu3  ;;  %v2947_v3 = vld [vmem:[#allocation6 + $0xf78] sm:$0xff] }
 0x50e   :  { %4698 = vmatpush.msrb.mxu0 %v3059_v31  ;;  %4718 = vmatpush.msrb.mxu1 %v3187_v14  ;;  %v3275_v15 = vld [vmem:[#allocation6 + $0x19b8] sm:$0xff]  ;;  %v5774_v31 = vpop.f32.mrf.mxu1 }
 0x50f   :  { %4738 = vmatpush.msrb.mxu2 %v3315_v17  ;;  %4607 = vmatpush.msrb.mxu3 %v3370_v27  ;;  %v3011_v58 = vld [vmem:[#allocation6 + $0x1178] sm:$0xff] }
 0x510   :  { %4699 = vmatpush.msrb.mxu0 %v3051_v19  ;;  %4719 = vmatpush.msrb.mxu1 %v3179_v21  ;;  %v3139_v45 = vld [vmem:[#allocation6 + $0x1578] sm:$0xff] }
 0x511   :  { %4739 = vmatpush.msrb.mxu2 %v3307_v22  ;;  %4608 = vmatpush.msrb.mxu3 %v3362_v44  ;;  %v2939_v54 = vld [vmem:[#allocation6 + $0xf38] sm:$0xff]  ;;  %v5778_v22 = vpop.f32.mrf.mxu0 }
 0x512   :  { %4700 = vmatpush.msrb.mxu0 %v3043_v32  ;;  %4720 = vmatpush.msrb.mxu1 %v3171_v9  ;;  %v3267_v12 = vld [vmem:[#allocation6 + $0x1978] sm:$0xff] }
 0x513   :  { %4740 = vmatpush.msrb.mxu2 %v3299_v28  ;;  %4609 = vmatpush.msrb.mxu3 %v3354_v13  ;;  %v3003_v59 = vld [vmem:[#allocation6 + $0x1138] sm:$0xff]  ;;  %v4797_v28 = vld [vmem:[#allocation9 + $0x78] sm:$0xff] }
 0x514   :  { %4701 = vmatpush.msrb.mxu0 %v3035_v8  ;;  %4610 = vmatmul.f32.vlgmr.msrb.gmra.mxu3 %v5692_v35  ;;  %v5768_v1 = vpop.f32.mrf.mxu2  ;;  %v3131_v6 = vld [vmem:[#allocation6 + $0x1538] sm:$0xff]  ;;  %v4813_v13 = vld [vmem:[#allocation9 + $0xf8] sm:$0xff] }
 0x515   :  { %4721 = vmatpush.msrb.mxu1 %v3163_v51  ;;  %4674 = vmatpush.msra.mxu3 %v2963_v34  ;;  %v5772_v23 = vpop.f32.mrf.mxu3  ;;  %v2931_v38 = vld [vmem:[#allocation6 + $0xef8] sm:$0xff]  ;;  %v4829_v8 = vld [vmem:[#allocation9 + $0x178] sm:$0xff] }
 0x516   :  { %4741 = vmatpush.msrb.mxu2 %v3291_v5  ;;  %4702 = vmatpush.msrb.mxu0 %v3027_v40  ;;  %v3259_v20 = vld [vmem:[#allocation6 + $0x1938] sm:$0xff]  ;;  %v5784_v5 = vld [vmem:[#allocation7] sm:$0xff] }
 0x517   :  { %4722 = vmatpush.msrb.mxu1 %v3155_v41  ;;  %4675 = vmatpush.msra.mxu3 %v2955_v37  ;;  %v2995_v36 = vld [vmem:[#allocation6 + $0x10f8] sm:$0xff]  ;;  %v3479_v37 = vperm.slane %v5784_v5, 1 }
 0x518   :  { %4742 = vmatpush.msrb.mxu2 %v3283_v25  ;;  %4703 = vmatpush.msrb.mxu0 %v3019_v24  ;;  %v3123_v63 = vld [vmem:[#allocation6 + $0x14f8] sm:$0xff]  ;;  %v5788_v25 = vpop.f32.mrf.mxu1 }
 0x519   :  { %4723 = vmatpush.msrb.mxu1 %v3147_v16  ;;  %4676 = vmatpush.msra.mxu3 %v2947_v3  ;;  %v2923_v18 = vld [vmem:[#allocation6 + $0xeb8] sm:$0xff]  ;;  %v4795_v16 = vld [vmem:[#allocation9 + $0x68] sm:$0xff] }
 0x51a   :  { %4743 = vmatpush.msrb.mxu2 %v3275_v15  ;;  %4704 = vmatpush.msrb.mxu0 %v3011_v58  ;;  %v3251_v46 = vld [vmem:[#allocation6 + $0x18f8] sm:$0xff]  ;;  %v4811_v3 = vld [vmem:[#allocation9 + $0xe8] sm:$0xff]  ;;  %v5794_v58 = vpop.f32.mrf.mxu0 }
 0x51b   :  { %4724 = vmatpush.msrb.mxu1 %v3139_v45  ;;  %4677 = vmatpush.msra.mxu3 %v2939_v54  ;;  %v2987_v47 = vld [vmem:[#allocation6 + $0x10b8] sm:$0xff]  ;;  %v4827_v15 = vld [vmem:[#allocation9 + $0x168] sm:$0xff] }
 0x51c   :  { %4744 = vmatpush.msrb.mxu2 %v3267_v12  ;;  %4705 = vmatpush.msrb.mxu0 %v3003_v59  ;;  %v3115_v50 = vld [vmem:[#allocation6 + $0x14b8] sm:$0xff]  ;;  %v5776_v14 = vpop.f32.mrf.mxu2  ;;  %v4794_v12 = vld [vmem:[#allocation9 + $0x60] sm:$0xff] }
 0x51d   :  { %4725 = vmatpush.msrb.mxu1 %v3131_v6  ;;  %4678 = vmatpush.msra.mxu3 %v2931_v38  ;;  %v2915_v10 = vld [vmem:[#allocation6 + $0xe78] sm:$0xff]  ;;  %v5780_v44 = vpop.f32.mrf.mxu3  ;;  %v4810_v59 = vld [vmem:[#allocation9 + $0xe0] sm:$0xff]  ;;  %v3672_v38 = vadd.f32 %v5755_v48, %v3479_v37  ;;  %v4789_v37 = vld [vmem:[#allocation9 + $0x38] sm:$0xff] }
 0x51e   :  { %4745 = vmatpush.msrb.mxu2 %v3259_v20  ;;  %4706 = vmatpush.msrb.mxu0 %v2995_v36  ;;  %v3243_v52 = vld [vmem:[#allocation6 + $0x18b8] sm:$0xff]  ;;  %v4826_v6 = vld [vmem:[#allocation9 + $0x160] sm:$0xff]  ;;  %v4793_v36 = vld [vmem:[#allocation9 + $0x58] sm:$0xff] }
 0x51f   :  { %4726 = vmatpush.msrb.mxu1 %v3123_v63  ;;  %4679 = vmatpush.msra.mxu3 %v2923_v18  ;;  %v2979_v11 = vld [vmem:[#allocation6 + $0x1078] sm:$0xff]  ;;  %v4809_v18 = vld [vmem:[#allocation9 + $0xd8] sm:$0xff] }
 0x520   :  { %4746 = vmatpush.msrb.mxu2 %v3251_v46  ;;  %v3107_v26 = vld [vmem:[#allocation6 + $0x1478] sm:$0xff]  ;;  %4707 = vmatpush.msrb.mxu0 %v2987_v47  ;;  %v4825_v46 = vld [vmem:[#allocation9 + $0x158] sm:$0xff] }
 0x521   :  { %4727 = vmatpush.msrb.mxu1 %v3115_v50  ;;  %v2907_v17 = vld [vmem:[#allocation6 + $0xe38] sm:$0xff]  ;;  %4680 = vmatpush.msra.mxu3 %v2915_v10 }
 0x522   :  { %v3235_v27 = vld [vmem:[#allocation6 + $0x1878] sm:$0xff]  ;;  %4747 = vmatpush.msrb.mxu2 %v3243_v52  ;;  %4708 = vmatpush.msrb.mxu0 %v2979_v11  ;;  %v3692_v11 = vadd.f32 %v5757_v4, %v3672_v38 }
 0x523   :  { %v2971_v19 = vld [vmem:[#allocation6 + $0x1038] sm:$0xff]  ;;  %4728 = vmatpush.msrb.mxu1 %v3107_v26  ;;  %4681 = vmatpush.msra.mxu3 %v2907_v17  ;;  %v5802_v26 = vpop.f32.mrf.mxu1 }
 0x524   :  { %v3099_v21 = vld [vmem:[#allocation6 + $0x1438] sm:$0xff]  ;;  %4748 = vmatpush.msrb.mxu2 %v3235_v27  ;;  %4709 = vmatpush.msrb.mxu0 %v2971_v19  ;;  %v5790_v24 = vpop.f32.mrf.mxu2  ;;  %v4791_v27 = vld [vmem:[#allocation9 + $0x48] sm:$0xff] }
 0x525   :  { %v2899_v32 = vld [vmem:[#allocation6 + $0xdf8] sm:$0xff]  ;;  %4729 = vmatpush.msrb.mxu1 %v3099_v21  ;;  %4710 = vmatmul.f32.vlgmr.msrb.gmra.mxu0 %v5677_v55  ;;  %v5796_v45 = vpop.f32.mrf.mxu3  ;;  %v4807_v19 = vld [vmem:[#allocation9 + $0xc8] sm:$0xff] }
 0x526   :  { %v3227_v9 = vld [vmem:[#allocation6 + $0x1838] sm:$0xff]  ;;  %4682 = vmatpush.msra.mxu3 %v2899_v32  ;;  %4730 = vmatmul.f32.vlgmr.msrb.gmra.mxu1 %v5679_v61  ;;  %v3480_v61 = vperm.slane %v5784_v5, 2  ;;  %v4823_v21 = vld [vmem:[#allocation9 + $0x148] sm:$0xff] }
 0x527   :  { %4749 = vmatpush.msrb.mxu2 %v3227_v9  ;;  %v2891_v51 = vld [vmem:[#allocation6 + $0xdb8] sm:$0xff]  ;;  %4914 = vmatpush.msra.mxu0 %v4797_v28  ;;  %v3712_v9 = vadd.f32 %v5759_v33, %v3692_v11  ;;  %v5809_v28 = vpop.f32.mrf.mxu0  ;;  %v4822_v33 = vld [vmem:[#allocation9 + $0x140] sm:$0xff] }
 0x528   :  { %v4796_v34 = vld [vmem:[#allocation9 + $0x70] sm:$0xff]  ;;  %4750 = vmatmul.f32.vlgmr.msrb.gmra.mxu2 %v5683_v43  ;;  %4934 = vmatpush.msra.mxu1 %v4813_v13  ;;  %v3478_v43 = vperm.slane %v5784_v5, 0  ;;  %v3832_v63 = vadd.f32 %v5770_v62, %v3480_v61 }
 0x529   :  { %v4812_v40 = vld [vmem:[#allocation9 + $0xf0] sm:$0xff]  ;;  %4954 = vmatpush.msra.mxu2 %v4829_v8  ;;  %4683 = vmatpush.msra.mxu3 %v2891_v51  ;;  %v4790_v8 = vld [vmem:[#allocation9 + $0x40] sm:$0xff] }
 0x52a   :  { %v4828_v41 = vld [vmem:[#allocation9 + $0x170] sm:$0xff]  ;;  %4915 = vmatpush.msra.mxu0 %v4796_v34  ;;  %4935 = vmatpush.msra.mxu1 %v4812_v40  ;;  %v3512_v47 = vadd.f32 %v5736_v39, %v3478_v43  ;;  %v3852_v39 = vadd.f32 %v5774_v31, %v3832_v63  ;;  %v4806_v31 = vld [vmem:[#allocation9 + $0xc0] sm:$0xff]  ;;  %v3732_v40 = vadd.f32 %v5763_v0, %v3712_v9  ;;  %v4799_v9 = vld [vmem:[#allocation9 + $0x88] sm:$0xff] }
 0x52b   :  { %v2883_v55 = vld [vmem:[#allocation6 + $0xd78] sm:$0xff]  ;;  %4955 = vmatpush.msra.mxu2 %v4828_v41  ;;  %v4802_v63 = vld [vmem:[#allocation9 + $0xa0] sm:$0xff] }
 0x52c   :  { %v2875_v54 = vld [vmem:[#allocation6 + $0xd38] sm:$0xff]  ;;  %4684 = vmatpush.msra.mxu3 %v2883_v55  ;;  %4916 = vmatpush.msra.mxu0 %v4795_v16  ;;  %v5804_v17 = vpop.f32.mrf.mxu2  ;;  %v3532_v32 = vadd.f32 %v5738_v30, %v3512_v47  ;;  %v3872_v51 = vadd.f32 %v5776_v14, %v3852_v39  ;;  %v4805_v55 = vld [vmem:[#allocation9 + $0xb8] sm:$0xff] }
 0x52d   :  { %4936 = vmatpush.msra.mxu1 %v4811_v3  ;;  %4956 = vmatpush.msra.mxu2 %v4827_v15  ;;  %v2867_v20 = vld [vmem:[#allocation6 + $0xcf8] sm:$0xff]  ;;  %v5811_v4 = vpop.f32.mrf.mxu3  ;;  %v4821_v16 = vld [vmem:[#allocation9 + $0x138] sm:$0xff]  ;;  %v3752_v3 = vadd.f32 %v5761_v2, %v3732_v40  ;;  %v5820_v15 = vpop.f32.mrf.mxu1  ;;  %v4798_v40 = vld [vmem:[#allocation9 + $0x80] sm:$0xff] }
 0x52e   :  { %4685 = vmatpush.msra.mxu3 %v2875_v54  ;;  %4917 = vmatpush.msra.mxu0 %v4794_v12  ;;  %v2859_v50 = vld [vmem:[#allocation6 + $0xcb8] sm:$0xff]  ;;  %v3552_v34 = vadd.f32 %v5740_v53, %v3532_v32  ;;  %v3892_v41 = vadd.f32 %v5780_v44, %v3872_v51  ;;  %v4787_v12 = vld [vmem:[#allocation9 + $0x28] sm:$0xff]  ;;  %v4785_v47 = vld [vmem:[#allocation9 + $0x18] sm:$0xff] }
 0x52f   :  { %4937 = vmatpush.msra.mxu1 %v4810_v59  ;;  %4957 = vmatpush.msra.mxu2 %v4826_v6  ;;  %v4792_v10 = vld [vmem:[#allocation9 + $0x50] sm:$0xff]  ;;  %v4803_v59 = vld [vmem:[#allocation9 + $0xa8] sm:$0xff]  ;;  %v5826_v38 = vpop.f32.mrf.mxu0 }
 0x530   :  { %4686 = vmatpush.msra.mxu3 %v2867_v20  ;;  %4918 = vmatpush.msra.mxu0 %v4793_v36  ;;  %v4808_v52 = vld [vmem:[#allocation9 + $0xd0] sm:$0xff]  ;;  %v3572_v0 = vadd.f32 %v5742_v57, %v3552_v34  ;;  %v4819_v20 = vld [vmem:[#allocation9 + $0x128] sm:$0xff]  ;;  %v4786_v36 = vld [vmem:[#allocation9 + $0x20] sm:$0xff] }
 0x531   :  { %v4824_v48 = vld [vmem:[#allocation9 + $0x150] sm:$0xff]  ;;  %4938 = vmatpush.msra.mxu1 %v4809_v18  ;;  %4958 = vmatpush.msra.mxu2 %v4825_v46  ;;  %v4818_v46 = vld [vmem:[#allocation9 + $0x120] sm:$0xff]  ;;  %v4783_v32 = vld [vmem:[#allocation9 + $0x8] sm:$0xff] }
 0x532   :  { %v2851_v62 = vld [vmem:[#allocation6 + $0xc78] sm:$0xff]  ;;  %4687 = vmatpush.msra.mxu3 %v2859_v50  ;;  %4919 = vmatpush.msra.mxu0 %v4792_v10  ;;  %v3592_v6 = vadd.f32 %v5744_v56, %v3572_v0  ;;  %v4801_v50 = vld [vmem:[#allocation9 + $0x98] sm:$0xff]  ;;  %v3483_v0 = vperm.slane %v5784_v5, 5 }
 0x533   :  { %4939 = vmatpush.msra.mxu1 %v4808_v52  ;;  %4959 = vmatpush.msra.mxu2 %v4824_v48  ;;  %v2843_v13 = vld [vmem:[#allocation6 + $0xc38] sm:$0xff]  ;;  %v4817_v48 = vld [vmem:[#allocation9 + $0x118] sm:$0xff] }
 0x534   :  { %4688 = vmatpush.msra.mxu3 %v2851_v62  ;;  %4920 = vmatpush.msra.mxu0 %v4791_v27  ;;  %v3475_v30 = vld [vmem:[#allocation6 + $0x1ff8] sm:$0xff]  ;;  %v5822_v44 = vpop.f32.mrf.mxu2  ;;  %v3612_v10 = vadd.f32 %v5749_v42, %v3592_v6 }
 0x535   :  { %4940 = vmatpush.msra.mxu1 %v4807_v19  ;;  %4960 = vmatpush.msra.mxu2 %v4823_v21  ;;  %v3467_v14 = vld [vmem:[#allocation6 + $0x1fb8] sm:$0xff]  ;;  %v5828_v57 = vpop.f32.mrf.mxu3  ;;  %v5835_v39 = vpop.f32.mrf.mxu1 }
 0x536   :  { %4689 = vmatpush.msra.mxu3 %v2843_v13  ;;  %4921 = vmatpush.msra.mxu0 %v4790_v8  ;;  %v4788_v53 = vld [vmem:[#allocation9 + $0x30] sm:$0xff]  ;;  %v3632_v62 = vadd.f32 %v5751_v29, %v3612_v10 }
 0x537   :  { %4690 = vmatmul.f32.vlgmr.msra.gmra.mxu3 %v5656_v60  ;;  %4941 = vmatpush.msra.mxu1 %v4806_v31  ;;  %v4804_v61 = vld [vmem:[#allocation9 + $0xb0] sm:$0xff]  ;;  %v3912_v60 = vadd.f32 %v5778_v22, %v3892_v41  ;;  %v3772_v22 = vadd.f32 %v5766_v49, %v3752_v3  ;;  %v5842_v8 = vpop.f32.mrf.mxu0  ;;  %v4815_v31 = vld [vmem:[#allocation9 + $0x108] sm:$0xff]  ;;  %v4861_v41 = vld [vmem:[#allocation9 + $0x278] sm:$0xff] }
 0x538   :  { %4754 = vmatpush.msrb.mxu3 %v3475_v30  ;;  %4961 = vmatpush.msra.mxu2 %v4822_v33  ;;  %v3459_v43 = vld [vmem:[#allocation6 + $0x1f78] sm:$0xff]  ;;  %v3652_v13 = vadd.f32 %v5753_v7, %v3632_v62  ;;  %v4814_v7 = vld [vmem:[#allocation9 + $0x100] sm:$0xff]  ;;  %v4855_v62 = vld [vmem:[#allocation9 + $0x248] sm:$0xff] }
 0x539   :  { %4922 = vmatpush.msra.mxu0 %v4789_v37  ;;  %4942 = vmatpush.msra.mxu1 %v4805_v55  ;;  %v4820_v54 = vld [vmem:[#allocation9 + $0x130] sm:$0xff]  ;;  %v3932_v56 = vadd.f32 %v5788_v25, %v3912_v60  ;;  %v3792_v27 = vadd.f32 %v5768_v1, %v3772_v22  ;;  %v4877_v55 = vld [vmem:[#allocation9 + $0x2f8] sm:$0xff] }
 0x53a   :  { %4755 = vmatpush.msrb.mxu3 %v3467_v14  ;;  %4962 = vmatpush.msra.mxu2 %v4821_v16  ;;  %v3451_v2 = vld [vmem:[#allocation6 + $0x1f38] sm:$0xff] }
 0x53b   :  { %4923 = vmatpush.msra.mxu0 %v4788_v53  ;;  %4943 = vmatpush.msra.mxu1 %v4804_v61  ;;  %v3443_v18 = vld [vmem:[#allocation6 + $0x1ef8] sm:$0xff]  ;;  %v3952_v21 = vadd.f32 %v5790_v24, %v3932_v56  ;;  %v3812_v29 = vadd.f32 %v5772_v23, %v3792_v27  ;;  %v4782_v24 = vld [vmem:[#allocation9] sm:$0xff]  ;;  %v4774_v23 = vmax.f32 %v3652_v13, 0.0  ;;  %v3482_v61 = vperm.slane %v5784_v5, 4  ;;  %v4845_v13 = vld [vmem:[#allocation9 + $0x1f8] sm:$0xff] }
 0x53c   :  { %4756 = vmatpush.msrb.mxu3 %v3459_v43  ;;  %4963 = vmatpush.msra.mxu2 %v4820_v54  ;;  %v3435_v52 = vld [vmem:[#allocation6 + $0x1eb8] sm:$0xff]  ;;  %v5837_v25 = vpop.f32.mrf.mxu2 }
 0x53d   :  { %4924 = vmatpush.msra.mxu0 %v4787_v12  ;;  %4944 = vmatpush.msra.mxu1 %v4803_v59  ;;  %v4784_v11 = vld [vmem:[#allocation9 + $0x10] sm:$0xff]  ;;  %v5844_v1 = vpop.f32.mrf.mxu3  ;;  %v3972_v34 = vadd.f32 %v5796_v45, %v3952_v21  ;;  %v4775_v33 = vmax.f32 %v3812_v29, 0.0  ;;  %v5847_v14 = vpop.f32.mrf.mxu1  ;;  %v4859_v12 = vld [vmem:[#allocation9 + $0x268] sm:$0xff]  ;;  %v4870_v29 = vld [vmem:[#allocation9 + $0x2c0] sm:$0xff] }
 0x53e   :  { %4757 = vmatpush.msrb.mxu3 %v3451_v2  ;;  %4964 = vmatpush.msra.mxu2 %v4819_v20  ;;  %v4800_v49 = vld [vmem:[#allocation9 + $0x90] sm:$0xff]  ;;  %v4875_v59 = vld [vmem:[#allocation9 + $0x2e8] sm:$0xff]  ;;  %v4858_v2 = vld [vmem:[#allocation9 + $0x260] sm:$0xff]  ;;  %v4152_v20 = vadd.f32 %v5826_v38, %v3482_v61 }
 0x53f   :  { %4925 = vmatpush.msra.mxu0 %v4786_v36  ;;  %4945 = vmatpush.msra.mxu1 %v4802_v63  ;;  %v3427_v19 = vld [vmem:[#allocation6 + $0x1e78] sm:$0xff]  ;;  %v4776_v37 = vmax.f32 %v3972_v34, 0.0  ;;  %v4311_v54 = vpop.f32.mrf.mxu0  ;;  %v4874_v63 = vld [vmem:[#allocation9 + $0x2e0] sm:$0xff]  ;;  %v4869_v34 = vld [vmem:[#allocation9 + $0x2b8] sm:$0xff] }
 0x540   :  { %4758 = vmatpush.msrb.mxu3 %v3443_v18  ;;  %4965 = vmatpush.msra.mxu2 %v4818_v46  ;;  %v4816_v42 = vld [vmem:[#allocation9 + $0x110] sm:$0xff]  ;;  %v4312_v36 = vadd.f32 %v4311_v54, %v3483_v0  ;;  %v4857_v18 = vld [vmem:[#allocation9 + $0x258] sm:$0xff]  ;;  %v4850_v0 = vld [vmem:[#allocation9 + $0x220] sm:$0xff] }
 0x541   :  { %4926 = vmatpush.msra.mxu0 %v4785_v47  ;;  %4946 = vmatpush.msra.mxu1 %v4801_v50  ;;  %v3419_v51 = vld [vmem:[#allocation6 + $0x1e38] sm:$0xff]  ;;  %v4873_v46 = vld [vmem:[#allocation9 + $0x2d8] sm:$0xff]  ;;  %v4866_v54 = vld [vmem:[#allocation9 + $0x2a0] sm:$0xff] }
 0x542   :  { %4759 = vmatpush.msrb.mxu3 %v3435_v52  ;;  %4966 = vmatpush.msra.mxu2 %v4817_v48  ;;  %v3411_v30 = vld [vmem:[#allocation6 + $0x1df8] sm:$0xff]  ;;  %v4172_v52 = vadd.f32 %v5835_v39, %v4152_v20 }
 0x543   :  { %4927 = vmatpush.msra.mxu0 %v4784_v11  ;;  %4947 = vmatpush.msra.mxu1 %v4800_v49  ;;  %v3403_v45 = vld [vmem:[#allocation6 + $0x1db8] sm:$0xff] }
 0x544   :  { %4760 = vmatpush.msrb.mxu3 %v3427_v19  ;;  %4967 = vmatpush.msra.mxu2 %v4816_v42  ;;  %v5849_v16 = vpop.f32.mrf.mxu2  ;;  %v4860_v53 = vld [vmem:[#allocation9 + $0x270] sm:$0xff]  ;;  %v4192_v27 = vadd.f32 %v5837_v25, %v4172_v52  ;;  %v4871_v42 = vld [vmem:[#allocation9 + $0x2c8] sm:$0xff] }
 0x545   :  { %4928 = vmatpush.msra.mxu0 %v4783_v32  ;;  %4948 = vmatpush.msra.mxu1 %v4799_v9  ;;  %v4876_v3 = vld [vmem:[#allocation9 + $0x2f0] sm:$0xff]  ;;  %v5853_v60 = vpop.f32.mrf.mxu3  ;;  %v4331_v47 = vpop.f32.mrf.mxu1  ;;  %v4854_v32 = vld [vmem:[#allocation9 + $0x240] sm:$0xff]  ;;  %v4863_v52 = vld [vmem:[#allocation9 + $0x288] sm:$0xff] }
 0x546   :  { %4761 = vmatpush.msrb.mxu3 %v3419_v51  ;;  %4968 = vmatpush.msra.mxu2 %v4815_v31  ;;  %v3395_v43 = vld [vmem:[#allocation6 + $0x1d78] sm:$0xff]  ;;  %v4332_v48 = vadd.f32 %v4331_v47, %v4312_v36  ;;  %v4212_v9 = vadd.f32 %v5844_v1, %v4192_v27  ;;  %v4853_v51 = vld [vmem:[#allocation9 + $0x238] sm:$0xff]  ;;  %v3481_v31 = vperm.slane %v5784_v5, 3 }
 0x547   :  { %4929 = vmatpush.msra.mxu0 %v4782_v24  ;;  %4949 = vmatpush.msra.mxu1 %v4798_v40  ;;  %v3387_v6 = vld [vmem:[#allocation6 + $0x1d38] sm:$0xff]  ;;  %v4391_v24 = vpop.f32.mrf.mxu0 }
 0x548   :  { %4762 = vmatpush.msrb.mxu3 %v3411_v30  ;;  %4969 = vmatpush.msra.mxu2 %v4814_v7  ;;  %v3379_v22 = vld [vmem:[#allocation6 + $0x1cf8] sm:$0xff]  ;;  %v4893_v30 = vld [vmem:[#allocation9 + $0x378] sm:$0xff]  ;;  %v4232_v7 = vadd.f32 %v5842_v8, %v4212_v9  ;;  %v4886_v9 = vld [vmem:[#allocation9 + $0x340] sm:$0xff] }
 0x549   :  { %4930 = vmatmul.f32.vlgmr.msra.gmra.mxu0 %v4774_v23  ;;  %4950 = vmatmul.f32.vlgmr.msra.gmra.mxu1 %v4775_v33  ;;  %v3371_v56 = vld [vmem:[#allocation6 + $0x1cb8] sm:$0xff]  ;;  %v4843_v33 = vld [vmem:[#allocation9 + $0x1e8] sm:$0xff] }
 0x54a   :  { %4970 = vmatmul.f32.vlgmr.msra.gmra.mxu2 %v4776_v37  ;;  %4994 = vmatpush.msrb.mxu0 %v4861_v41  ;;  %v4856_v10 = vld [vmem:[#allocation9 + $0x250] sm:$0xff]  ;;  %v4851_v37 = vld [vmem:[#allocation9 + $0x228] sm:$0xff]  ;;  %v4252_v8 = vadd.f32 %v5847_v14, %v4232_v7  ;;  %v4878_v7 = vld [vmem:[#allocation9 + $0x300] sm:$0xff] }
 0x54b   :  { %5014 = vmatpush.msrb.mxu1 %v4877_v55  ;;  %4763 = vmatpush.msrb.mxu3 %v3403_v45  ;;  %v4872_v38 = vld [vmem:[#allocation9 + $0x2d0] sm:$0xff]  ;;  %v3992_v55 = vadd.f32 %v5794_v58, %v3481_v31  ;;  %v4842_v45 = vld [vmem:[#allocation9 + $0x1e0] sm:$0xff] }
 0x54c   :  { %4995 = vmatpush.msrb.mxu0 %v4860_v53  ;;  %v4351_v50 = vpop.f32.mrf.mxu2  ;;  %v3363_v11 = vld [vmem:[#allocation6 + $0x1c78] sm:$0xff]  ;;  %5034 = vmatpush.msrb.mxu2 %v4893_v30  ;;  %v4867_v53 = vld [vmem:[#allocation9 + $0x2a8] sm:$0xff]  ;;  %v4881_v30 = vld [vmem:[#allocation9 + $0x318] sm:$0xff] }
 0x54d   :  { %5015 = vmatpush.msrb.mxu1 %v4876_v3  ;;  %4764 = vmatpush.msrb.mxu3 %v3395_v43  ;;  %v4371_v49 = vpop.f32.mrf.mxu3  ;;  %v4352_v19 = vadd.f32 %v4351_v50, %v4332_v48  ;;  %v3355_v21 = vld [vmem:[#allocation6 + $0x1c38] sm:$0xff]  ;;  %v4411_v61 = vpop.f32.mrf.mxu1  ;;  %v4841_v43 = vld [vmem:[#allocation9 + $0x1d8] sm:$0xff]  ;;  %v4012_v58 = vadd.f32 %v5802_v26, %v3992_v55  ;;  %v4890_v48 = vld [vmem:[#allocation9 + $0x360] sm:$0xff] }
 0x54e   :  { %4996 = vmatpush.msrb.mxu0 %v4859_v12  ;;  %v4844_v25 = vld [vmem:[#allocation9 + $0x1f0] sm:$0xff]  ;;  %v4849_v12 = vld [vmem:[#allocation9 + $0x218] sm:$0xff] }
 0x54f   :  { %5016 = vmatpush.msrb.mxu1 %v4875_v59  ;;  %4765 = vmatpush.msrb.mxu3 %v3387_v6  ;;  %v4372_v39 = vadd.f32 %v4371_v49, %v4352_v19  ;;  %v4852_v40 = vld [vmem:[#allocation9 + $0x230] sm:$0xff]  ;;  %v4865_v6 = vld [vmem:[#allocation9 + $0x298] sm:$0xff]  ;;  %v4032_v14 = vadd.f32 %v5804_v17, %v4012_v58  ;;  %v4846_v17 = vld [vmem:[#allocation9 + $0x200] sm:$0xff] }
 0x550   :  { %4997 = vmatpush.msrb.mxu0 %v4858_v2  ;;  %v4892_v1 = vld [vmem:[#allocation9 + $0x370] sm:$0xff]  ;;  %v4835_v19 = vld [vmem:[#allocation9 + $0x1a8] sm:$0xff] }
 0x551   :  { %5017 = vmatpush.msrb.mxu1 %v4874_v63  ;;  %4766 = vmatpush.msrb.mxu3 %v3379_v22  ;;  %v4392_v23 = vadd.f32 %v4391_v24, %v4372_v39  ;;  %v4868_v41 = vld [vmem:[#allocation9 + $0x2b0] sm:$0xff]  ;;  %v4272_v63 = vadd.f32 %v5849_v16, %v4252_v8  ;;  %v4052_v26 = vadd.f32 %v5811_v4, %v4032_v14  ;;  %v4889_v16 = vld [vmem:[#allocation9 + $0x358] sm:$0xff]  ;;  %v4882_v24 = vld [vmem:[#allocation9 + $0x320] sm:$0xff] }
 0x552   :  { %4998 = vmatpush.msrb.mxu0 %v4857_v18  ;;  %5035 = vmatpush.msrb.mxu2 %v4892_v1  ;;  %v4840_v59 = vld [vmem:[#allocation9 + $0x1d0] sm:$0xff]  ;;  %v4839_v18 = vld [vmem:[#allocation9 + $0x1c8] sm:$0xff]  ;;  %v4885_v39 = vld [vmem:[#allocation9 + $0x338] sm:$0xff] }
 0x553   :  { %5018 = vmatpush.msrb.mxu1 %v4873_v46  ;;  %4767 = vmatpush.msrb.mxu3 %v3371_v56  ;;  %v4412_v3 = vadd.f32 %v4411_v61, %v4392_v23  ;;  %v4848_v36 = vld [vmem:[#allocation9 + $0x210] sm:$0xff]  ;;  %v4847_v56 = vld [vmem:[#allocation9 + $0x208] sm:$0xff]  ;;  %v4292_v47 = vadd.f32 %v5853_v60, %v4272_v63  ;;  %v4072_v49 = vadd.f32 %v5809_v28, %v4052_v26  ;;  %v4833_v28 = vld [vmem:[#allocation9 + $0x198] sm:$0xff]  ;;  %v4471_v23 = vpop.f32.mrf.mxu0 }
 0x554   :  { %4999 = vmatpush.msrb.mxu0 %v4856_v10  ;;  %v4431_v2 = vpop.f32.mrf.mxu2  ;;  %v4864_v46 = vld [vmem:[#allocation9 + $0x290] sm:$0xff]  ;;  %v4838_v10 = vld [vmem:[#allocation9 + $0x1c0] sm:$0xff]  ;;  %v4879_v1 = vld [vmem:[#allocation9 + $0x308] sm:$0xff] }
 0x555   :  { %5019 = vmatpush.msrb.mxu1 %v4872_v38  ;;  %4768 = vmatpush.msrb.mxu3 %v3363_v11  ;;  %v4451_v20 = vpop.f32.mrf.mxu3  ;;  %v4432_v22 = vadd.f32 %v4431_v2, %v4412_v3  ;;  %v4837_v38 = vld [vmem:[#allocation9 + $0x1b8] sm:$0xff]  ;;  %v4862_v11 = vld [vmem:[#allocation9 + $0x280] sm:$0xff]  ;;  %v4778_v4 = vmax.f32 %v4292_v47, 0.0  ;;  %v4836_v60 = vld [vmem:[#allocation9 + $0x1b0] sm:$0xff] }
 0x556   :  { %5000 = vmatpush.msrb.mxu0 %v4855_v62  ;;  %v4888_v27 = vld [vmem:[#allocation9 + $0x350] sm:$0xff]  ;;  %v4905_v14 = vld [vmem:[#allocation9 + $0x3d8] sm:$0xff]  ;;  %v4899_v26 = vld [vmem:[#allocation9 + $0x3a8] sm:$0xff] }
 0x557   :  { %5020 = vmatpush.msrb.mxu1 %v4871_v42  ;;  %4769 = vmatpush.msrb.mxu3 %v3355_v21  ;;  %v4452_v50 = vadd.f32 %v4451_v20, %v4432_v22  ;;  %v4887_v42 = vld [vmem:[#allocation9 + $0x348] sm:$0xff]  ;;  %v4092_v21 = vadd.f32 %v5820_v15, %v4072_v49  ;;  %v4830_v15 = vld [vmem:[#allocation9 + $0x180] sm:$0xff]  ;;  %v4908_v2 = vld [vmem:[#allocation9 + $0x3f0] sm:$0xff] }
 0x558   :  { %4770 = vmatmul.f32.vlgmr.msrb.gmra.mxu3 %v5692_v35  ;;  %5001 = vmatpush.msrb.mxu0 %v4854_v32  ;;  %v4891_v35 = vld [vmem:[#allocation9 + $0x368] sm:$0xff]  ;;  %v4834_v32 = vld [vmem:[#allocation9 + $0x1a0] sm:$0xff]  ;;  %v4904_v63 = vld [vmem:[#allocation9 + $0x3d0] sm:$0xff] }
 0x559   :  { %4974 = vmatpush.msra.mxu3 %v4845_v13  ;;  %5021 = vmatpush.msrb.mxu1 %v4870_v29  ;;  %v4779_v62 = vmax.f32 %v4452_v50, 0.0  ;;  %v4112_v13 = vadd.f32 %v5822_v44, %v4092_v21  ;;  %v4832_v29 = vld [vmem:[#allocation9 + $0x190] sm:$0xff]  ;;  %v4907_v20 = vld [vmem:[#allocation9 + $0x3e8] sm:$0xff]  ;;  %v4898_v47 = vld [vmem:[#allocation9 + $0x3a0] sm:$0xff] }
 0x55a   :  { %5002 = vmatpush.msrb.mxu0 %v4853_v51  ;;  %5036 = vmatpush.msrb.mxu2 %v4891_v35  ;;  %v4884_v51 = vld [vmem:[#allocation9 + $0x330] sm:$0xff]  ;;  %v4903_v22 = vld [vmem:[#allocation9 + $0x3c8] sm:$0xff]  ;;  %v4897_v50 = vld [vmem:[#allocation9 + $0x398] sm:$0xff] }
 0x55b   :  { %4975 = vmatpush.msra.mxu3 %v4844_v25  ;;  %5022 = vmatpush.msrb.mxu1 %v4869_v34  ;;  %v4132_v31 = vadd.f32 %v5828_v57, %v4112_v13  ;;  %v4831_v25 = vld [vmem:[#allocation9 + $0x188] sm:$0xff]  ;;  %v4880_v44 = vld [vmem:[#allocation9 + $0x310] sm:$0xff]  ;;  %v3484_v57 = vperm.slane %v5784_v5, 6 }
 0x55c   :  { %5003 = vmatpush.msrb.mxu0 %v4852_v40  ;;  %5037 = vmatpush.msrb.mxu2 %v4890_v48  ;;  %v4883_v34 = vld [vmem:[#allocation9 + $0x328] sm:$0xff]  ;;  %v3485_v48 = vperm.slane %v5784_v5, 7 }
 0x55d   :  { %4976 = vmatpush.msra.mxu3 %v4843_v33  ;;  %5023 = vmatpush.msrb.mxu1 %v4868_v41  ;;  %v4777_v40 = vmax.f32 %v4132_v31, 0.0  ;;  %v4472_v33 = vadd.f32 %v4471_v23, %v3484_v57  ;;  %v4491_v41 = vpop.f32.mrf.mxu1 }
 0x55e   :  { %5004 = vmatpush.msrb.mxu0 %v4851_v37  ;;  %5038 = vmatpush.msrb.mxu2 %v4889_v16  ;;  %v4511_v37 = vpop.f32.mrf.mxu2  ;;  %v4551_v61 = vpop.f32.mrf.mxu0 }
 0x55f   :  { %4977 = vmatpush.msra.mxu3 %v4842_v45  ;;  %5024 = vmatpush.msrb.mxu1 %v4867_v53  ;;  %v4492_v35 = vadd.f32 %v4491_v41, %v4472_v33 }
 0x560   :  { %5005 = vmatpush.msrb.mxu0 %v4850_v0  ;;  %5039 = vmatpush.msrb.mxu2 %v4888_v27 }
 0x561   :  { %4978 = vmatpush.msra.mxu3 %v4841_v43  ;;  %5025 = vmatpush.msrb.mxu1 %v4866_v54  ;;  %v4512_v45 = vadd.f32 %v4511_v37, %v4492_v35 }
 0x562   :  { %5006 = vmatpush.msrb.mxu0 %v4849_v12  ;;  %5040 = vmatpush.msrb.mxu2 %v4887_v42 }
 0x563   :  { %4979 = vmatpush.msra.mxu3 %v4840_v59  ;;  %5026 = vmatpush.msrb.mxu1 %v4865_v6  ;;  %v4909_v6 = vld [vmem:[#allocation9 + $0x3f8] sm:$0xff] }
 0x564   :  { %5007 = vmatpush.msrb.mxu0 %v4848_v36  ;;  %5041 = vmatpush.msrb.mxu2 %v4886_v9  ;;  %v4906_v36 = vld [vmem:[#allocation9 + $0x3e0] sm:$0xff] }
 0x565   :  { %4980 = vmatpush.msra.mxu3 %v4839_v18  ;;  %5027 = vmatpush.msrb.mxu1 %v4864_v46  ;;  %v4571_v8 = vpop.f32.mrf.mxu1  ;;  %v4902_v18 = vld [vmem:[#allocation9 + $0x3c0] sm:$0xff]  ;;  %v4901_v46 = vld [vmem:[#allocation9 + $0x3b8] sm:$0xff] }
 0x566   :  { %5008 = vmatpush.msrb.mxu0 %v4847_v56  ;;  %5042 = vmatpush.msrb.mxu2 %v4885_v39  ;;  %v4900_v56 = vld [vmem:[#allocation9 + $0x3b0] sm:$0xff] }
 0x567   :  { %4981 = vmatpush.msra.mxu3 %v4838_v10  ;;  %5028 = vmatpush.msrb.mxu1 %v4863_v52  ;;  %v4591_v43 = vpop.f32.mrf.mxu2  ;;  %v4896_v10 = vld [vmem:[#allocation9 + $0x390] sm:$0xff]  ;;  %v4895_v52 = vld [vmem:[#allocation9 + $0x388] sm:$0xff] }
 0x568   :  { %5009 = vmatpush.msrb.mxu0 %v4846_v17  ;;  %5043 = vmatpush.msrb.mxu2 %v4884_v51  ;;  %v4894_v17 = vld [vmem:[#allocation9 + $0x380] sm:$0xff] }
 0x569   :  { %4982 = vmatpush.msra.mxu3 %v4837_v38  ;;  %5029 = vmatpush.msrb.mxu1 %v4862_v11  ;;  %v5093_v51 = vld [vmem:[#allocation10] ss:$0 sm:$0xff] }
 0x56a   :  { %5010 = vmatmul.f32.vlgmr.msrb.gmra.mxu0 %v4778_v4  ;;  %5030 = vmatmul.f32.vlgmr.msrb.gmra.mxu1 %v4779_v62 }
 0x56b   :  { %4983 = vmatpush.msra.mxu3 %v4836_v60  ;;  %5044 = vmatpush.msrb.mxu2 %v4883_v34 }
 0x56d   :  { %4984 = vmatpush.msra.mxu3 %v4835_v19  ;;  %5045 = vmatpush.msrb.mxu2 %v4882_v24 }
 0x56f   :  { %4985 = vmatpush.msra.mxu3 %v4834_v32  ;;  %5046 = vmatpush.msrb.mxu2 %v4881_v30 }
 0x571   :  { %4986 = vmatpush.msra.mxu3 %v4833_v28  ;;  %5047 = vmatpush.msrb.mxu2 %v4880_v44 }
 0x573   :  { %4987 = vmatpush.msra.mxu3 %v4832_v29  ;;  %5048 = vmatpush.msrb.mxu2 %v4879_v1 }
 0x575   :  { %4988 = vmatpush.msra.mxu3 %v4831_v25  ;;  %5049 = vmatpush.msrb.mxu2 %v4878_v7  ;;  %v4531_v55 = vpop.f32.mrf.mxu3 }
 0x576   :  { %v4532_v53 = vadd.f32 %v4531_v55, %v4512_v45 }
 0x577   :  { %4989 = vmatpush.msra.mxu3 %v4830_v15 }
 0x578   :  { %4990 = vmatmul.f32.vlgmr.msra.gmra.mxu3 %v4777_v40  ;;  %v4552_v0 = vadd.f32 %v4551_v61, %v4532_v53 }
 0x579   :  { %5054 = vmatpush.msrb.mxu3 %v4909_v6 }
 0x57a   :  { %v4572_v3 = vadd.f32 %v4571_v8, %v4552_v0 }
 0x57b   :  { %5055 = vmatpush.msrb.mxu3 %v4908_v2 }
 0x57c   :  { %v4592_v54 = vadd.f32 %v4591_v43, %v4572_v3 }
 0x57d   :  { %5056 = vmatpush.msrb.mxu3 %v4907_v20 }
 0x57f   :  { %5057 = vmatpush.msrb.mxu3 %v4906_v36 }
 0x581   :  { %5058 = vmatpush.msrb.mxu3 %v4905_v14  ;;  %v4631_v16 = vpop.f32.mrf.mxu0 }
 0x582   :  { %v4632_v38 = vadd.f32 %v4631_v16, %v3485_v48  ;;  %v4651_v11 = vpop.f32.mrf.mxu1 }
 0x583   :  { %5059 = vmatpush.msrb.mxu3 %v4904_v63 }
 0x584   :  { %v4652_v4 = vadd.f32 %v4651_v11, %v4632_v38 }
 0x585   :  { %5060 = vmatpush.msrb.mxu3 %v4903_v22 }
 0x587   :  { %5061 = vmatpush.msrb.mxu3 %v4902_v18 }
 0x588   :  { %v4671_v49 = vpop.f32.mrf.mxu2 }
 0x589   :  { %5062 = vmatpush.msrb.mxu3 %v4901_v46  ;;  %v4672_v60 = vadd.f32 %v4671_v49, %v4652_v4 }
 0x58b   :  { %5063 = vmatpush.msrb.mxu3 %v4900_v56 }
 0x58d   :  { %5064 = vmatpush.msrb.mxu3 %v4899_v26 }
 0x58f   :  { %5065 = vmatpush.msrb.mxu3 %v4898_v47 }
 0x591   :  { %5066 = vmatpush.msrb.mxu3 %v4897_v50 }
 0x593   :  { %5067 = vmatpush.msrb.mxu3 %v4896_v10 }
 0x595   :  { %5068 = vmatpush.msrb.mxu3 %v4895_v52 }
 0x597   :  { %v4611_v12 = vpop.f32.mrf.mxu3  ;;  %5069 = vmatpush.msrb.mxu3 %v4894_v17 }
 0x598   :  { %v4612_v58 = vadd.f32 %v4611_v12, %v4592_v54 }
 0x59a   :  { %v4780_v59 = vmax.f32 %v4612_v58, 0.0 }
 0x59c   :  { %5050 = vmatmul.f32.vlgmr.msrb.gmra.mxu2 %v4780_v59 }
 0x5a2   :  { %v4711_v19 = vpop.f32.mrf.mxu0 }
 0x5a3   :  { %v4731_v21 = vpop.f32.mrf.mxu1 }
 0x5ab   :  { %v4751_v9 = vpop.f32.mrf.mxu2 }
 0x5ba   :  { %v4691_v62 = vpop.f32.mrf.mxu3 }
 0x5bb   :  { %v4692_v27 = vadd.f32 %v4691_v62, %v4672_v60 }
 0x5bd   :  { %v4712_v42 = vadd.f32 %v4711_v19, %v4692_v27 }
 0x5bf   :  { %v4732_v32 = vadd.f32 %v4731_v21, %v4712_v42 }
 0x5c1   :  { %v4752_v28 = vadd.f32 %v4751_v9, %v4732_v32 }
 0x5c6   :  { %v4931_v5 = vpop.f32.mrf.mxu0  ;;  %v4951_v25 = vpop.f32.mrf.mxu1 }
 0x5c7   :  { %v4932_v31 = vadd.f32 %v5093_v51, %v4931_v5 }
 0x5c9   :  { %v4952_v15 = vadd.f32 %v4951_v25, %v4932_v31 }
 0x5cd   :  { %v4971_v34 = vpop.f32.mrf.mxu2 }
 0x5ce   :  { %v4972_v40 = vadd.f32 %v4971_v34, %v4952_v15 }
 0x5db   :  { %v4771_v39 = vpop.f32.mrf.mxu3 }
 0x5dc   :  { %v4772_v13 = vadd.f32 %v4771_v39, %v4752_v28 }
 0x5de   :  { %v4781_v29 = vmax.f32 %v4772_v13, 0.0 }
 0x5e0   :  { %5070 = vmatmul.f32.vlgmr.msrb.gmra.mxu3 %v4781_v29 }
 0x5e7   :  { %v5011_v44 = vpop.f32.mrf.mxu0  ;;  %v5031_v7 = vpop.f32.mrf.mxu1 }
 0x5fb   :  { %v4991_v24 = vpop.f32.mrf.mxu3 }
 0x5fc   :  { %v4992_v30 = vadd.f32 %v4991_v24, %v4972_v40 }
 0x5fe   :  { %v5012_v1 = vadd.f32 %v5011_v44, %v4992_v30 }
 0x600   :  { %v5032_v23 = vadd.f32 %v5031_v7, %v5012_v1 }
 0x61f   :  { %v5051_v57 = vpop.f32.mrf.mxu2 }
 0x620   :  { %v5052_v33 = vadd.f32 %v5051_v57, %v5032_v23 }
 0x663   :  { %v5071_v41 = vpop.f32.mrf.mxu3 }
 0x664   :  { %v5072_v37 = vadd.f32 %v5071_v41, %v5052_v33 }
 0x666   :  { %5074 = vst [vmem:[%s5885_s7] sm:$0xff] %v5072_v37 }
 0x667   :  { %5079 = vsyncpa [#allocation3], 1 }
 0x668   :  { %5080 = vsyncpa [#allocation5], 1 }
 0x669   :  { %5081 = vsyncpa [#allocation8], 1 }
 0x66a   :  { %5082 = vsyncpa [#allocation11], 1 }

</bundles_post_ra>
